<compile_context>
chip_gen: v5e
topology: v5e:2x2
jax: 0.10.0
libtpu: 0.0.40
codegen_flags: <defaults>
</compile_context>

<pallas_src>
import functools

import jax
import jax.numpy as jnp
from jax.experimental import pallas as pl
from jax.experimental.pallas import tpu as pltpu


# ----------------------------------------------------------------------------
# Pallas kernels
# ----------------------------------------------------------------------------
def _conv_bn_relu_kernel(p_ref, w_ref, gamma_ref, beta_ref, o_ref,
                         raw_ref, sum_ref, ssq_ref, *, m_valid, eps):
    """One M-tile of: (im2col patches) @ W^T  ->  BatchNorm(train)  ->  ReLU.

    p_ref:     (tm, K)             bf16  patch tile (zero rows beyond m_valid)
    w_ref:     (Cout, K)           bf16  conv weight in im2col (i, j, c) order
    gamma_ref: (Cout, 1)           f32
    beta_ref:  (Cout, 1)           f32
    o_ref:     (Cout, M_pad)       bf16  resident output (written in last step)
    raw_ref:   (n_tiles, Cout, tm) f32   raw conv results kept for pass 2
    sum_ref, ssq_ref: (Cout, 1)    f32   running per-channel sum / sum-of-sq
    """
    t = pl.program_id(0)
    n_tiles = pl.num_programs(0)

    @pl.when(t == 0)
    def _init():
        sum_ref[...] = jnp.zeros_like(sum_ref)
        ssq_ref[...] = jnp.zeros_like(ssq_ref)

    # (Cout, K) x (tm, K)^T -> (Cout, tm): channels-major, lane-dense stores.
    raw = jax.lax.dot_general(
        w_ref[...], p_ref[...],
        dimension_numbers=(((1,), (1,)), ((), ())),
        preferred_element_type=jnp.float32)
    raw_ref[t] = raw
    # Single-pass stats; zero-padded patch rows contribute exactly zero.
    sum_ref[...] += jnp.sum(raw, axis=1, keepdims=True)
    ssq_ref[...] += jnp.sum(raw * raw, axis=1, keepdims=True)

    @pl.when(t == n_tiles - 1)
    def _finalize():
        inv_m = 1.0 / float(m_valid)
        mean = sum_ref[...] * inv_m
        var = ssq_ref[...] * inv_m - mean * mean          # biased (training) var
        scale = gamma_ref[...] * jax.lax.rsqrt(var + eps)
        shift = beta_ref[...] - mean * scale
        nt, _, tm = raw_ref.shape
        for tt in range(nt):                               # static, small unroll
            y = jnp.maximum(raw_ref[tt] * scale + shift, 0.0)
            o_ref[:, tt * tm:(tt + 1) * tm] = y.astype(o_ref.dtype)


def _fc_fused_kernel(x_ref, w1_ref, b1_ref, w2_ref, b2_ref, o_ref):
    # fc1 (bf16 matmul, f32 accumulate) + bias + ReLU, then fc2 (f32) + bias.
    h = jnp.dot(x_ref[...], w1_ref[...], preferred_element_type=jnp.float32)
    h = jnp.maximum(h + b1_ref[...], 0.0)
    out = jnp.dot(h, w2_ref[...], preferred_element_type=jnp.float32)
    o_ref[...] = out + b2_ref[...]


# ----------------------------------------------------------------------------
# pallas_call wrappers
# ----------------------------------------------------------------------------
def _conv_bn_relu(patches, w_ck, gamma, beta, *, m_valid, tm, eps=1e-5):
    m_pad, k = patches.shape
    cout = w_ck.shape[0]
    n_tiles = m_pad // tm
    kernel = functools.partial(_conv_bn_relu_kernel, m_valid=m_valid, eps=eps)
    return pl.pallas_call(
        kernel,
        out_shape=jax.ShapeDtypeStruct((cout, m_pad), jnp.bfloat16),
        grid=(n_tiles,),
        in_specs=[
            pl.BlockSpec((tm, k), lambda t: (t, 0)),       # streamed patch tiles
            pl.BlockSpec((cout, k), lambda t: (0, 0)),     # weight (resident)
            pl.BlockSpec((cout, 1), lambda t: (0, 0)),     # gamma
            pl.BlockSpec((cout, 1), lambda t: (0, 0)),     # beta
        ],
        out_specs=pl.BlockSpec((cout, m_pad), lambda t: (0, 0)),  # resident
        scratch_shapes=[
            pltpu.VMEM((n_tiles, cout, tm), jnp.float32),  # raw conv results
            pltpu.VMEM((cout, 1), jnp.float32),            # sum
            pltpu.VMEM((cout, 1), jnp.float32),            # sum of squares
        ],
        compiler_params=pltpu.CompilerParams(
            dimension_semantics=("arbitrary",),
            vmem_limit_bytes=32 * 1024 * 1024),
    )(patches, w_ck, gamma, beta)


def _fc_fused(x, w1, b1, w2, b2):
    m, k = x.shape
    hdim = w1.shape[1]
    a = w2.shape[1]
    return pl.pallas_call(
        _fc_fused_kernel,
        out_shape=jax.ShapeDtypeStruct((m, a), jnp.float32),
        grid=(1,),
        in_specs=[
            pl.BlockSpec((m, k), lambda i: (0, 0)),
            pl.BlockSpec((k, hdim), lambda i: (0, 0)),
            pl.BlockSpec((1, hdim), lambda i: (0, 0)),
            pl.BlockSpec((hdim, a), lambda i: (0, 0)),
            pl.BlockSpec((1, a), lambda i: (0, 0)),
        ],
        out_specs=pl.BlockSpec((m, a), lambda i: (0, 0)),
        compiler_params=pltpu.CompilerParams(
            dimension_semantics=("arbitrary",),
            vmem_limit_bytes=32 * 1024 * 1024),
    )(x, w1, b1, w2, b2)


# ----------------------------------------------------------------------------
# Plain-JAX glue: im2col, tiling, parameter init, forward driver
# ----------------------------------------------------------------------------
_CONV_LAYOUT = {"conv1": (8, 4), "conv2": (4, 2), "conv3": (3, 1)}  # (kernel, stride)


def _im2col(x_nhwc, k, s):
    n, h, w, c = x_nhwc.shape
    oh = (h - k) // s + 1
    ow = (w - k) // s + 1
    cols = []
    for i in range(k):
        for j in range(k):
            cols.append(x_nhwc[:, i:i + s * (oh - 1) + 1:s,
                                  j:j + s * (ow - 1) + 1:s, :])
    patches = jnp.stack(cols, axis=3)                      # (n, oh, ow, k*k, c)
    return patches.reshape(n * oh * ow, k * k * c), oh, ow


def _row_tiling(m, max_tile=512):
    # Tile rows so VMEM stays bounded at large batch and DMA pipelines.
    # Single tile (rounded to a 128 multiple -> unmasked lane-dense stores)
    # when the whole row dim is small.
    if m <= max_tile:
        tm = -(-m // 128) * 128
        return tm, tm
    m_pad = -(-m // max_tile) * max_tile
    return max_tile, m_pad


def _kaiming_uniform(key, shape, fan_in):
    # nn.init.kaiming_uniform_(..., nonlinearity='relu'):
    # bound = sqrt(2) * sqrt(3 / fan_in) = sqrt(6 / fan_in)
    bound = (6.0 / fan_in) ** 0.5
    return jax.random.uniform(key, shape, jnp.float32, -bound, bound)


def init_dqn_params(key, input_channels, n_actions):
    convw = convh = 7                        # conv2d_size_out chain on 84x84
    linear_input_size = convw * convh * 64
    ks = jax.random.split(key, 5)
    params = {}
    conv_cfg = [("conv1", 32, input_channels), ("conv2", 64, 32), ("conv3", 64, 64)]
    for idx, (name, oc, ic) in enumerate(conv_cfg):
        k, _ = _CONV_LAYOUT[name]
        w = _kaiming_uniform(ks[idx], (oc, ic, k, k), ic * k * k)
        # (O, I, KH, KW) -> (O, KH, KW, I) -> (O, KH*KW*I): im2col (i, j, c) order.
        w_ck = jnp.transpose(w, (0, 2, 3, 1)).reshape(oc, k * k * ic)
        params[name] = (w_ck.astype(jnp.bfloat16),
                        jnp.ones((oc, 1), jnp.float32),    # BN gamma
                        jnp.zeros((oc, 1), jnp.float32))   # BN beta
    w1 = _kaiming_uniform(ks[3], (512, linear_input_size), linear_input_size)
    w2 = _kaiming_uniform(ks[4], (n_actions, 512), 512)
    params["fc1"] = (jnp.transpose(w1).astype(jnp.bfloat16),   # (K, 512) bf16
                     jnp.zeros((1, 512), jnp.float32))
    params["fc2"] = (jnp.transpose(w2).astype(jnp.float32),    # (512, A) f32
                     jnp.zeros((1, n_actions), jnp.float32))
    return params


def dqn_forward(x_nchw, params):
    n = x_nchw.shape[0]
    # NCHW -> NHWC, bf16 activations.
    x = jnp.transpose(x_nchw.astype(jnp.bfloat16), (0, 2, 3, 1))

    y = m = oh = ow = cout = None
    for name in ("conv1", "conv2", "conv3"):
        k, s = _CONV_LAYOUT[name]
        w_ck, gamma, beta = params[name]
        patches, oh, ow = _im2col(x, k, s)
        m = patches.shape[0]
        tm, m_pad = _row_tiling(m)
        if m_pad != m:
            patches = jnp.pad(patches, ((0, m_pad - m), (0, 0)))
        y = _conv_bn_relu(patches, w_ck, gamma, beta, m_valid=m, tm=tm)
        cout = w_ck.shape[0]
        if name != "conv3":
            # (Cout, M) channels-major -> NHWC for the next layer's im2col.
            x = jnp.transpose(y[:, :m].reshape(cout, n, oh, ow), (1, 2, 3, 0))

    # conv3 output is channels-major with columns ordered (n, y, x), so torch's
    # x.view(N, -1) on NCHW is just a small per-image (c, y*x) regrouping.
    fc_in = jnp.transpose(y[:, :m].reshape(cout, n, oh * ow),
                          (1, 0, 2)).reshape(n, cout * oh * ow)
    w1, b1 = params["fc1"]
    w2, b2 = params["fc2"]
    return _fc_fused(fc_in, w1, b1, w2, b2)


if __name__ == "__main__":
    INPUT_CHANNELS = 4
    N_ACTIONS = 6
    BATCH = 2
    SPATIAL = 84   # fixed by the module: fc1 sizing assumes 84x84 inputs

    key = jax.random.PRNGKey(0)
    k_params, k_x = jax.random.split(key)
    params = init_dqn_params(k_params, INPUT_CHANNELS, N_ACTIONS)
    x = jax.random.normal(k_x, (BATCH, INPUT_CHANNELS, SPATIAL, SPATIAL),
                          jnp.float32)

    fwd = jax.jit(dqn_forward)
    out = jax.block_until_ready(fwd(x, params))
    assert out.shape == (BATCH, N_ACTIONS), out.shape
    assert bool(jnp.all(jnp.isfinite(out))), "non-finite output"
    print("KERNEL_OK")
</pallas_src>

<mosaic_0001>
module attributes {stable_mosaic.version = 11 : i64} {
  func.func @_conv_bn_relu_kernel(%arg0: i32, %arg1: memref<512x256xbf16, #tpu.memory_space<vmem>>, %arg2: memref<32x256xbf16, #tpu.memory_space<vmem>>, %arg3: memref<32x1xf32, #tpu.memory_space<vmem>>, %arg4: memref<32x1xf32, #tpu.memory_space<vmem>>, %arg5: memref<32x1024xbf16, #tpu.memory_space<vmem>>, %arg6: memref<2x32x512xf32, #tpu.memory_space<vmem>>, %arg7: memref<32x1xf32, #tpu.memory_space<vmem>>, %arg8: memref<32x1xf32, #tpu.memory_space<vmem>>) attributes {dimension_semantics = [#tpu.dimension_semantics<arbitrary>], iteration_bounds = array<i64: 2>, scalar_prefetch = 0 : i64, scratch_operands = 3 : i64, tpu.core_type = #tpu.core_type<tc>, window_params = [{transform_indices = @transform_0, window_bounds = array<i64: 512, 256>}, {pipeline_mode = #tpu.pipeline_mode<synchronous>, transform_indices = @transform_1, window_bounds = array<i64: 32, 256>}, {pipeline_mode = #tpu.pipeline_mode<synchronous>, transform_indices = @transform_2, window_bounds = array<i64: 32, 1>}, {pipeline_mode = #tpu.pipeline_mode<synchronous>, transform_indices = @transform_3, window_bounds = array<i64: 32, 1>}, {pipeline_mode = #tpu.pipeline_mode<synchronous>, transform_indices = @transform_4, window_bounds = array<i64: 32, 1024>}]} {
    %c0_i32 = arith.constant 0 : i32
    %0 = arith.cmpi eq, %arg0, %c0_i32 : i32
    %1 = arith.extui %0 : i1 to i32
    %c0_i32_0 = arith.constant 0 : i32
    %2 = arith.cmpi ne, %1, %c0_i32_0 : i32
    scf.if %2 {
      %cst_17 = arith.constant 0.000000e+00 : f32
      %24 = vector.broadcast %cst_17 : f32 to vector<32x1xf32>
      %c0_18 = arith.constant 0 : index
      %c0_19 = arith.constant 0 : index
      %25 = vector.load %arg7[%c0_18, %c0_19] : memref<32x1xf32, #tpu.memory_space<vmem>>, vector<32x1xf32>
      tpu.vector_store %arg7[%c0_18, %c0_19], %24 {strides = array<i32>} : memref<32x1xf32, #tpu.memory_space<vmem>>, vector<32x1xf32>,
      %cst_20 = arith.constant 0.000000e+00 : f32
      %26 = vector.broadcast %cst_20 : f32 to vector<32x1xf32>
      %c0_21 = arith.constant 0 : index
      %c0_22 = arith.constant 0 : index
      %27 = vector.load %arg8[%c0_21, %c0_22] : memref<32x1xf32, #tpu.memory_space<vmem>>, vector<32x1xf32>
      tpu.vector_store %arg8[%c0_21, %c0_22], %26 {strides = array<i32>} : memref<32x1xf32, #tpu.memory_space<vmem>>, vector<32x1xf32>,
    } else {
    }
    %c0 = arith.constant 0 : index
    %c0_1 = arith.constant 0 : index
    %3 = vector.load %arg2[%c0, %c0_1] : memref<32x256xbf16, #tpu.memory_space<vmem>>, vector<32x256xbf16>
    %c0_2 = arith.constant 0 : index
    %c0_3 = arith.constant 0 : index
    %4 = vector.load %arg1[%c0_2, %c0_3] : memref<512x256xbf16, #tpu.memory_space<vmem>>, vector<512x256xbf16>
    %cst = arith.constant dense<0.000000e+00> : vector<32x512xf32>
    %5 = tpu.matmul %3, %4, %cst {dimension_numbers = #tpu.dot_dimension_numbers<[1], [1], [0], [0], [0, 0, 1, 0], [], []>} : vector<32x256xbf16>, vector<512x256xbf16>, vector<32x512xf32> -> vector<32x512xf32>
    %6 = arith.index_cast %arg0 : i32 to index
    %c0_4 = arith.constant 0 : index
    %c0_5 = arith.constant 0 : index
    %7 = vector.load %arg6[%6, %c0_4, %c0_5] : memref<2x32x512xf32, #tpu.memory_space<vmem>>, vector<1x32x512xf32>
    %8 = vector.shape_cast %7 : vector<1x32x512xf32> to vector<32x512xf32>
    %9 = vector.shape_cast %5 : vector<32x512xf32> to vector<1x32x512xf32>
    tpu.vector_store %arg6[%6, %c0_4, %c0_5], %9 {strides = array<i32>} : memref<2x32x512xf32, #tpu.memory_space<vmem>>, vector<1x32x512xf32>,
    %c0_6 = arith.constant 0 : index
    %c0_7 = arith.constant 0 : index
    %10 = vector.load %arg7[%c0_6, %c0_7] : memref<32x1xf32, #tpu.memory_space<vmem>>, vector<32x1xf32>
    %cst_8 = arith.constant dense<0.000000e+00> : vector<32xf32>
    %11 = vector.multi_reduction <add>, %5, %cst_8 [1] : vector<32x512xf32> to vector<32xf32>
    %12 = vector.shape_cast %11 : vector<32xf32> to vector<32x1xf32>
    %13 = arith.addf %10, %12 : vector<32x1xf32>
    %c0_9 = arith.constant 0 : index
    %c0_10 = arith.constant 0 : index
    %14 = vector.load %arg7[%c0_9, %c0_10] : memref<32x1xf32, #tpu.memory_space<vmem>>, vector<32x1xf32>
    tpu.vector_store %arg7[%c0_9, %c0_10], %13 {strides = array<i32>} : memref<32x1xf32, #tpu.memory_space<vmem>>, vector<32x1xf32>,
    %c0_11 = arith.constant 0 : index
    %c0_12 = arith.constant 0 : index
    %15 = vector.load %arg8[%c0_11, %c0_12] : memref<32x1xf32, #tpu.memory_space<vmem>>, vector<32x1xf32>
    %16 = arith.mulf %5, %5 : vector<32x512xf32>
    %cst_13 = arith.constant dense<0.000000e+00> : vector<32xf32>
    %17 = vector.multi_reduction <add>, %16, %cst_13 [1] : vector<32x512xf32> to vector<32xf32>
    %18 = vector.shape_cast %17 : vector<32xf32> to vector<32x1xf32>
    %19 = arith.addf %15, %18 : vector<32x1xf32>
    %c0_14 = arith.constant 0 : index
    %c0_15 = arith.constant 0 : index
    %20 = vector.load %arg8[%c0_14, %c0_15] : memref<32x1xf32, #tpu.memory_space<vmem>>, vector<32x1xf32>
    tpu.vector_store %arg8[%c0_14, %c0_15], %19 {strides = array<i32>} : memref<32x1xf32, #tpu.memory_space<vmem>>, vector<32x1xf32>,
    %c1_i32 = arith.constant 1 : i32
    %21 = arith.cmpi eq, %arg0, %c1_i32 : i32
    %22 = arith.extui %21 : i1 to i32
    %c0_i32_16 = arith.constant 0 : i32
    %23 = arith.cmpi ne, %22, %c0_i32_16 : i32
    scf.if %23 {
      %c0_17 = arith.constant 0 : index
      %c0_18 = arith.constant 0 : index
      %24 = vector.load %arg7[%c0_17, %c0_18] : memref<32x1xf32, #tpu.memory_space<vmem>>, vector<32x1xf32>
      %cst_19 = arith.constant 1.250000e-03 : f32
      %25 = vector.broadcast %cst_19 : f32 to vector<32x1xf32>
      %26 = arith.mulf %24, %25 : vector<32x1xf32>
      %c0_20 = arith.constant 0 : index
      %c0_21 = arith.constant 0 : index
      %27 = vector.load %arg8[%c0_20, %c0_21] : memref<32x1xf32, #tpu.memory_space<vmem>>, vector<32x1xf32>
      %cst_22 = arith.constant 1.250000e-03 : f32
      %28 = vector.broadcast %cst_22 : f32 to vector<32x1xf32>
      %29 = arith.mulf %27, %28 : vector<32x1xf32>
      %30 = arith.mulf %26, %26 : vector<32x1xf32>
      %31 = arith.subf %29, %30 : vector<32x1xf32>
      %c0_23 = arith.constant 0 : index
      %c0_24 = arith.constant 0 : index
      %32 = vector.load %arg3[%c0_23, %c0_24] : memref<32x1xf32, #tpu.memory_space<vmem>>, vector<32x1xf32>
      %cst_25 = arith.constant 9.99999974E-6 : f32
      %33 = vector.broadcast %cst_25 : f32 to vector<32x1xf32>
      %34 = arith.addf %31, %33 : vector<32x1xf32>
      %35 = math.rsqrt %34 : vector<32x1xf32>
      %36 = arith.mulf %32, %35 : vector<32x1xf32>
      %c0_26 = arith.constant 0 : index
      %c0_27 = arith.constant 0 : index
      %37 = vector.load %arg4[%c0_26, %c0_27] : memref<32x1xf32, #tpu.memory_space<vmem>>, vector<32x1xf32>
      %38 = arith.mulf %26, %36 : vector<32x1xf32>
      %39 = arith.subf %37, %38 : vector<32x1xf32>
      %c0_28 = arith.constant 0 : index
      %c0_29 = arith.constant 0 : index
      %c0_30 = arith.constant 0 : index
      %40 = vector.load %arg6[%c0_28, %c0_29, %c0_30] : memref<2x32x512xf32, #tpu.memory_space<vmem>>, vector<1x32x512xf32>
      %41 = vector.shape_cast %40 : vector<1x32x512xf32> to vector<32x512xf32>
      %42 = vector.broadcast %36 : vector<32x1xf32> to vector<32x512xf32>
      %43 = arith.mulf %41, %42 : vector<32x512xf32>
      %44 = vector.broadcast %39 : vector<32x1xf32> to vector<32x512xf32>
      %45 = arith.addf %43, %44 : vector<32x512xf32>
      %cst_31 = arith.constant 0.000000e+00 : f32
      %46 = vector.broadcast %cst_31 : f32 to vector<32x512xf32>
      %47 = arith.maximumf %45, %46 : vector<32x512xf32>
      %48 = arith.truncf %47 : vector<32x512xf32> to vector<32x512xbf16>
      %c0_32 = arith.constant 0 : index
      %c0_33 = arith.constant 0 : index
      %49 = vector.load %arg5[%c0_32, %c0_33] : memref<32x1024xbf16, #tpu.memory_space<vmem>>, vector<32x512xbf16>
      tpu.vector_store %arg5[%c0_32, %c0_33], %48 {strides = array<i32>} : memref<32x1024xbf16, #tpu.memory_space<vmem>>, vector<32x512xbf16>,
      %c1 = arith.constant 1 : index
      %c0_34 = arith.constant 0 : index
      %c0_35 = arith.constant 0 : index
      %50 = vector.load %arg6[%c1, %c0_34, %c0_35] : memref<2x32x512xf32, #tpu.memory_space<vmem>>, vector<1x32x512xf32>
      %51 = vector.shape_cast %50 : vector<1x32x512xf32> to vector<32x512xf32>
      %52 = vector.broadcast %36 : vector<32x1xf32> to vector<32x512xf32>
      %53 = arith.mulf %51, %52 : vector<32x512xf32>
      %54 = vector.broadcast %39 : vector<32x1xf32> to vector<32x512xf32>
      %55 = arith.addf %53, %54 : vector<32x512xf32>
      %cst_36 = arith.constant 0.000000e+00 : f32
      %56 = vector.broadcast %cst_36 : f32 to vector<32x512xf32>
      %57 = arith.maximumf %55, %56 : vector<32x512xf32>
      %58 = arith.truncf %57 : vector<32x512xf32> to vector<32x512xbf16>
      %c0_37 = arith.constant 0 : index
      %c512 = arith.constant 512 : index
      %59 = vector.load %arg5[%c0_37, %c512] : memref<32x1024xbf16, #tpu.memory_space<vmem>>, vector<32x512xbf16>
      tpu.vector_store %arg5[%c0_37, %c512], %58 {strides = array<i32>} : memref<32x1024xbf16, #tpu.memory_space<vmem>>, vector<32x512xbf16>,
    } else {
    }
    return
  }
  func.func @transform_0(%arg0: i32) -> (i32, i32) {
    %c0_i32 = arith.constant 0 : i32
    %c0_i32_0 = arith.constant 0 : i32
    return %arg0, %c0_i32 : i32, i32
  }
  func.func @transform_1(%arg0: i32) -> (i32, i32) {
    %c0_i32 = arith.constant 0 : i32
    %c0_i32_0 = arith.constant 0 : i32
    %c0_i32_1 = arith.constant 0 : i32
    return %c0_i32, %c0_i32_0 : i32, i32
  }
  func.func @transform_2(%arg0: i32) -> (i32, i32) {
    %c0_i32 = arith.constant 0 : i32
    %c0_i32_0 = arith.constant 0 : i32
    %c0_i32_1 = arith.constant 0 : i32
    return %c0_i32, %c0_i32_0 : i32, i32
  }
  func.func @transform_3(%arg0: i32) -> (i32, i32) {
    %c0_i32 = arith.constant 0 : i32
    %c0_i32_0 = arith.constant 0 : i32
    %c0_i32_1 = arith.constant 0 : i32
    return %c0_i32, %c0_i32_0 : i32, i32
  }
  func.func @transform_4(%arg0: i32) -> (i32, i32) {
    %c0_i32 = arith.constant 0 : i32
    %c0_i32_0 = arith.constant 0 : i32
    %c0_i32_1 = arith.constant 0 : i32
    return %c0_i32, %c0_i32_0 : i32, i32
  }
}

module attributes {stable_mosaic.version = 11 : i64} {
  func.func @_conv_bn_relu_kernel(%arg0: i32, %arg1: memref<256x512xbf16, #tpu.memory_space<vmem>>, %arg2: memref<64x512xbf16, #tpu.memory_space<vmem>>, %arg3: memref<64x1xf32, #tpu.memory_space<vmem>>, %arg4: memref<64x1xf32, #tpu.memory_space<vmem>>, %arg5: memref<64x256xbf16, #tpu.memory_space<vmem>>, %arg6: memref<1x64x256xf32, #tpu.memory_space<vmem>>, %arg7: memref<64x1xf32, #tpu.memory_space<vmem>>, %arg8: memref<64x1xf32, #tpu.memory_space<vmem>>) attributes {dimension_semantics = [#tpu.dimension_semantics<arbitrary>], iteration_bounds = array<i64: 1>, scalar_prefetch = 0 : i64, scratch_operands = 3 : i64, tpu.core_type = #tpu.core_type<tc>, window_params = [{transform_indices = @transform_0, window_bounds = array<i64: 256, 512>}, {pipeline_mode = #tpu.pipeline_mode<synchronous>, transform_indices = @transform_1, window_bounds = array<i64: 64, 512>}, {pipeline_mode = #tpu.pipeline_mode<synchronous>, transform_indices = @transform_2, window_bounds = array<i64: 64, 1>}, {pipeline_mode = #tpu.pipeline_mode<synchronous>, transform_indices = @transform_3, window_bounds = array<i64: 64, 1>}, {pipeline_mode = #tpu.pipeline_mode<synchronous>, transform_indices = @transform_4, window_bounds = array<i64: 64, 256>}]} {
    %c0_i32 = arith.constant 0 : i32
    %0 = arith.cmpi eq, %arg0, %c0_i32 : i32
    %1 = arith.extui %0 : i1 to i32
    %c0_i32_0 = arith.constant 0 : i32
    %2 = arith.cmpi ne, %1, %c0_i32_0 : i32
    scf.if %2 {
      %cst_18 = arith.constant 0.000000e+00 : f32
      %24 = vector.broadcast %cst_18 : f32 to vector<64x1xf32>
      %c0_19 = arith.constant 0 : index
      %c0_20 = arith.constant 0 : index
      %25 = vector.load %arg7[%c0_19, %c0_20] : memref<64x1xf32, #tpu.memory_space<vmem>>, vector<64x1xf32>
      tpu.vector_store %arg7[%c0_19, %c0_20], %24 {strides = array<i32>} : memref<64x1xf32, #tpu.memory_space<vmem>>, vector<64x1xf32>,
      %cst_21 = arith.constant 0.000000e+00 : f32
      %26 = vector.broadcast %cst_21 : f32 to vector<64x1xf32>
      %c0_22 = arith.constant 0 : index
      %c0_23 = arith.constant 0 : index
      %27 = vector.load %arg8[%c0_22, %c0_23] : memref<64x1xf32, #tpu.memory_space<vmem>>, vector<64x1xf32>
      tpu.vector_store %arg8[%c0_22, %c0_23], %26 {strides = array<i32>} : memref<64x1xf32, #tpu.memory_space<vmem>>, vector<64x1xf32>,
    } else {
    }
    %c0 = arith.constant 0 : index
    %c0_1 = arith.constant 0 : index
    %3 = vector.load %arg2[%c0, %c0_1] : memref<64x512xbf16, #tpu.memory_space<vmem>>, vector<64x512xbf16>
    %c0_2 = arith.constant 0 : index
    %c0_3 = arith.constant 0 : index
    %4 = vector.load %arg1[%c0_2, %c0_3] : memref<256x512xbf16, #tpu.memory_space<vmem>>, vector<256x512xbf16>
    %cst = arith.constant dense<0.000000e+00> : vector<64x256xf32>
    %5 = tpu.matmul %3, %4, %cst {dimension_numbers = #tpu.dot_dimension_numbers<[1], [1], [0], [0], [0, 0, 1, 0], [], []>} : vector<64x512xbf16>, vector<256x512xbf16>, vector<64x256xf32> -> vector<64x256xf32>
    %6 = arith.index_cast %arg0 : i32 to index
    %c0_4 = arith.constant 0 : index
    %c0_5 = arith.constant 0 : index
    %7 = vector.load %arg6[%6, %c0_4, %c0_5] : memref<1x64x256xf32, #tpu.memory_space<vmem>>, vector<1x64x256xf32>
    %8 = vector.shape_cast %7 : vector<1x64x256xf32> to vector<64x256xf32>
    %9 = vector.shape_cast %5 : vector<64x256xf32> to vector<1x64x256xf32>
    tpu.vector_store %arg6[%6, %c0_4, %c0_5], %9 {strides = array<i32>} : memref<1x64x256xf32, #tpu.memory_space<vmem>>, vector<1x64x256xf32>,
    %c0_6 = arith.constant 0 : index
    %c0_7 = arith.constant 0 : index
    %10 = vector.load %arg7[%c0_6, %c0_7] : memref<64x1xf32, #tpu.memory_space<vmem>>, vector<64x1xf32>
    %cst_8 = arith.constant dense<0.000000e+00> : vector<64xf32>
    %11 = vector.multi_reduction <add>, %5, %cst_8 [1] : vector<64x256xf32> to vector<64xf32>
    %12 = vector.shape_cast %11 : vector<64xf32> to vector<64x1xf32>
    %13 = arith.addf %10, %12 : vector<64x1xf32>
    %c0_9 = arith.constant 0 : index
    %c0_10 = arith.constant 0 : index
    %14 = vector.load %arg7[%c0_9, %c0_10] : memref<64x1xf32, #tpu.memory_space<vmem>>, vector<64x1xf32>
    tpu.vector_store %arg7[%c0_9, %c0_10], %13 {strides = array<i32>} : memref<64x1xf32, #tpu.memory_space<vmem>>, vector<64x1xf32>,
    %c0_11 = arith.constant 0 : index
    %c0_12 = arith.constant 0 : index
    %15 = vector.load %arg8[%c0_11, %c0_12] : memref<64x1xf32, #tpu.memory_space<vmem>>, vector<64x1xf32>
    %16 = arith.mulf %5, %5 : vector<64x256xf32>
    %cst_13 = arith.constant dense<0.000000e+00> : vector<64xf32>
    %17 = vector.multi_reduction <add>, %16, %cst_13 [1] : vector<64x256xf32> to vector<64xf32>
    %18 = vector.shape_cast %17 : vector<64xf32> to vector<64x1xf32>
    %19 = arith.addf %15, %18 : vector<64x1xf32>
    %c0_14 = arith.constant 0 : index
    %c0_15 = arith.constant 0 : index
    %20 = vector.load %arg8[%c0_14, %c0_15] : memref<64x1xf32, #tpu.memory_space<vmem>>, vector<64x1xf32>
    tpu.vector_store %arg8[%c0_14, %c0_15], %19 {strides = array<i32>} : memref<64x1xf32, #tpu.memory_space<vmem>>, vector<64x1xf32>,
    %c0_i32_16 = arith.constant 0 : i32
    %21 = arith.cmpi eq, %arg0, %c0_i32_16 : i32
    %22 = arith.extui %21 : i1 to i32
    %c0_i32_17 = arith.constant 0 : i32
    %23 = arith.cmpi ne, %22, %c0_i32_17 : i32
    scf.if %23 {
      %c0_18 = arith.constant 0 : index
      %c0_19 = arith.constant 0 : index
      %24 = vector.load %arg7[%c0_18, %c0_19] : memref<64x1xf32, #tpu.memory_space<vmem>>, vector<64x1xf32>
      %cst_20 = arith.constant 0.00617283955 : f32
      %25 = vector.broadcast %cst_20 : f32 to vector<64x1xf32>
      %26 = arith.mulf %24, %25 : vector<64x1xf32>
      %c0_21 = arith.constant 0 : index
      %c0_22 = arith.constant 0 : index
      %27 = vector.load %arg8[%c0_21, %c0_22] : memref<64x1xf32, #tpu.memory_space<vmem>>, vector<64x1xf32>
      %cst_23 = arith.constant 0.00617283955 : f32
      %28 = vector.broadcast %cst_23 : f32 to vector<64x1xf32>
      %29 = arith.mulf %27, %28 : vector<64x1xf32>
      %30 = arith.mulf %26, %26 : vector<64x1xf32>
      %31 = arith.subf %29, %30 : vector<64x1xf32>
      %c0_24 = arith.constant 0 : index
      %c0_25 = arith.constant 0 : index
      %32 = vector.load %arg3[%c0_24, %c0_25] : memref<64x1xf32, #tpu.memory_space<vmem>>, vector<64x1xf32>
      %cst_26 = arith.constant 9.99999974E-6 : f32
      %33 = vector.broadcast %cst_26 : f32 to vector<64x1xf32>
      %34 = arith.addf %31, %33 : vector<64x1xf32>
      %35 = math.rsqrt %34 : vector<64x1xf32>
      %36 = arith.mulf %32, %35 : vector<64x1xf32>
      %c0_27 = arith.constant 0 : index
      %c0_28 = arith.constant 0 : index
      %37 = vector.load %arg4[%c0_27, %c0_28] : memref<64x1xf32, #tpu.memory_space<vmem>>, vector<64x1xf32>
      %38 = arith.mulf %26, %36 : vector<64x1xf32>
      %39 = arith.subf %37, %38 : vector<64x1xf32>
      %c0_29 = arith.constant 0 : index
      %c0_30 = arith.constant 0 : index
      %c0_31 = arith.constant 0 : index
      %40 = vector.load %arg6[%c0_29, %c0_30, %c0_31] : memref<1x64x256xf32, #tpu.memory_space<vmem>>, vector<1x64x256xf32>
      %41 = vector.shape_cast %40 : vector<1x64x256xf32> to vector<64x256xf32>
      %42 = vector.broadcast %36 : vector<64x1xf32> to vector<64x256xf32>
      %43 = arith.mulf %41, %42 : vector<64x256xf32>
      %44 = vector.broadcast %39 : vector<64x1xf32> to vector<64x256xf32>
      %45 = arith.addf %43, %44 : vector<64x256xf32>
      %cst_32 = arith.constant 0.000000e+00 : f32
      %46 = vector.broadcast %cst_32 : f32 to vector<64x256xf32>
      %47 = arith.maximumf %45, %46 : vector<64x256xf32>
      %48 = arith.truncf %47 : vector<64x256xf32> to vector<64x256xbf16>
      %c0_33 = arith.constant 0 : index
      %c0_34 = arith.constant 0 : index
      %49 = vector.load %arg5[%c0_33, %c0_34] : memref<64x256xbf16, #tpu.memory_space<vmem>>, vector<64x256xbf16>
      tpu.vector_store %arg5[%c0_33, %c0_34], %48 {strides = array<i32>} : memref<64x256xbf16, #tpu.memory_space<vmem>>, vector<64x256xbf16>,
    } else {
    }
    return
  }
  func.func @transform_0(%arg0: i32) -> (i32, i32) {
    %c0_i32 = arith.constant 0 : i32
    %c0_i32_0 = arith.constant 0 : i32
    return %arg0, %c0_i32 : i32, i32
  }
  func.func @transform_1(%arg0: i32) -> (i32, i32) {
    %c0_i32 = arith.constant 0 : i32
    %c0_i32_0 = arith.constant 0 : i32
    %c0_i32_1 = arith.constant 0 : i32
    return %c0_i32, %c0_i32_0 : i32, i32
  }
  func.func @transform_2(%arg0: i32) -> (i32, i32) {
    %c0_i32 = arith.constant 0 : i32
    %c0_i32_0 = arith.constant 0 : i32
    %c0_i32_1 = arith.constant 0 : i32
    return %c0_i32, %c0_i32_0 : i32, i32
  }
  func.func @transform_3(%arg0: i32) -> (i32, i32) {
    %c0_i32 = arith.constant 0 : i32
    %c0_i32_0 = arith.constant 0 : i32
    %c0_i32_1 = arith.constant 0 : i32
    return %c0_i32, %c0_i32_0 : i32, i32
  }
  func.func @transform_4(%arg0: i32) -> (i32, i32) {
    %c0_i32 = arith.constant 0 : i32
    %c0_i32_0 = arith.constant 0 : i32
    %c0_i32_1 = arith.constant 0 : i32
    return %c0_i32, %c0_i32_0 : i32, i32
  }
}

module attributes {stable_mosaic.version = 11 : i64} {
  func.func @_conv_bn_relu_kernel(%arg0: i32, %arg1: memref<128x576xbf16, #tpu.memory_space<vmem>>, %arg2: memref<64x576xbf16, #tpu.memory_space<vmem>>, %arg3: memref<64x1xf32, #tpu.memory_space<vmem>>, %arg4: memref<64x1xf32, #tpu.memory_space<vmem>>, %arg5: memref<64x128xbf16, #tpu.memory_space<vmem>>, %arg6: memref<1x64x128xf32, #tpu.memory_space<vmem>>, %arg7: memref<64x1xf32, #tpu.memory_space<vmem>>, %arg8: memref<64x1xf32, #tpu.memory_space<vmem>>) attributes {dimension_semantics = [#tpu.dimension_semantics<arbitrary>], iteration_bounds = array<i64: 1>, scalar_prefetch = 0 : i64, scratch_operands = 3 : i64, tpu.core_type = #tpu.core_type<tc>, window_params = [{transform_indices = @transform_0, window_bounds = array<i64: 128, 576>}, {pipeline_mode = #tpu.pipeline_mode<synchronous>, transform_indices = @transform_1, window_bounds = array<i64: 64, 576>}, {pipeline_mode = #tpu.pipeline_mode<synchronous>, transform_indices = @transform_2, window_bounds = array<i64: 64, 1>}, {pipeline_mode = #tpu.pipeline_mode<synchronous>, transform_indices = @transform_3, window_bounds = array<i64: 64, 1>}, {pipeline_mode = #tpu.pipeline_mode<synchronous>, transform_indices = @transform_4, window_bounds = array<i64: 64, 128>}]} {
    %c0_i32 = arith.constant 0 : i32
    %0 = arith.cmpi eq, %arg0, %c0_i32 : i32
    %1 = arith.extui %0 : i1 to i32
    %c0_i32_0 = arith.constant 0 : i32
    %2 = arith.cmpi ne, %1, %c0_i32_0 : i32
    scf.if %2 {
      %cst_18 = arith.constant 0.000000e+00 : f32
      %24 = vector.broadcast %cst_18 : f32 to vector<64x1xf32>
      %c0_19 = arith.constant 0 : index
      %c0_20 = arith.constant 0 : index
      %25 = vector.load %arg7[%c0_19, %c0_20] : memref<64x1xf32, #tpu.memory_space<vmem>>, vector<64x1xf32>
      tpu.vector_store %arg7[%c0_19, %c0_20], %24 {strides = array<i32>} : memref<64x1xf32, #tpu.memory_space<vmem>>, vector<64x1xf32>,
      %cst_21 = arith.constant 0.000000e+00 : f32
      %26 = vector.broadcast %cst_21 : f32 to vector<64x1xf32>
      %c0_22 = arith.constant 0 : index
      %c0_23 = arith.constant 0 : index
      %27 = vector.load %arg8[%c0_22, %c0_23] : memref<64x1xf32, #tpu.memory_space<vmem>>, vector<64x1xf32>
      tpu.vector_store %arg8[%c0_22, %c0_23], %26 {strides = array<i32>} : memref<64x1xf32, #tpu.memory_space<vmem>>, vector<64x1xf32>,
    } else {
    }
    %c0 = arith.constant 0 : index
    %c0_1 = arith.constant 0 : index
    %3 = vector.load %arg2[%c0, %c0_1] : memref<64x576xbf16, #tpu.memory_space<vmem>>, vector<64x576xbf16>
    %c0_2 = arith.constant 0 : index
    %c0_3 = arith.constant 0 : index
    %4 = vector.load %arg1[%c0_2, %c0_3] : memref<128x576xbf16, #tpu.memory_space<vmem>>, vector<128x576xbf16>
    %cst = arith.constant dense<0.000000e+00> : vector<64x128xf32>
    %5 = tpu.matmul %3, %4, %cst {dimension_numbers = #tpu.dot_dimension_numbers<[1], [1], [0], [0], [0, 0, 1, 0], [], []>} : vector<64x576xbf16>, vector<128x576xbf16>, vector<64x128xf32> -> vector<64x128xf32>
    %6 = arith.index_cast %arg0 : i32 to index
    %c0_4 = arith.constant 0 : index
    %c0_5 = arith.constant 0 : index
    %7 = vector.load %arg6[%6, %c0_4, %c0_5] : memref<1x64x128xf32, #tpu.memory_space<vmem>>, vector<1x64x128xf32>
    %8 = vector.shape_cast %7 : vector<1x64x128xf32> to vector<64x128xf32>
    %9 = vector.shape_cast %5 : vector<64x128xf32> to vector<1x64x128xf32>
    tpu.vector_store %arg6[%6, %c0_4, %c0_5], %9 {strides = array<i32>} : memref<1x64x128xf32, #tpu.memory_space<vmem>>, vector<1x64x128xf32>,
    %c0_6 = arith.constant 0 : index
    %c0_7 = arith.constant 0 : index
    %10 = vector.load %arg7[%c0_6, %c0_7] : memref<64x1xf32, #tpu.memory_space<vmem>>, vector<64x1xf32>
    %cst_8 = arith.constant dense<0.000000e+00> : vector<64xf32>
    %11 = vector.multi_reduction <add>, %5, %cst_8 [1] : vector<64x128xf32> to vector<64xf32>
    %12 = vector.shape_cast %11 : vector<64xf32> to vector<64x1xf32>
    %13 = arith.addf %10, %12 : vector<64x1xf32>
    %c0_9 = arith.constant 0 : index
    %c0_10 = arith.constant 0 : index
    %14 = vector.load %arg7[%c0_9, %c0_10] : memref<64x1xf32, #tpu.memory_space<vmem>>, vector<64x1xf32>
    tpu.vector_store %arg7[%c0_9, %c0_10], %13 {strides = array<i32>} : memref<64x1xf32, #tpu.memory_space<vmem>>, vector<64x1xf32>,
    %c0_11 = arith.constant 0 : index
    %c0_12 = arith.constant 0 : index
    %15 = vector.load %arg8[%c0_11, %c0_12] : memref<64x1xf32, #tpu.memory_space<vmem>>, vector<64x1xf32>
    %16 = arith.mulf %5, %5 : vector<64x128xf32>
    %cst_13 = arith.constant dense<0.000000e+00> : vector<64xf32>
    %17 = vector.multi_reduction <add>, %16, %cst_13 [1] : vector<64x128xf32> to vector<64xf32>
    %18 = vector.shape_cast %17 : vector<64xf32> to vector<64x1xf32>
    %19 = arith.addf %15, %18 : vector<64x1xf32>
    %c0_14 = arith.constant 0 : index
    %c0_15 = arith.constant 0 : index
    %20 = vector.load %arg8[%c0_14, %c0_15] : memref<64x1xf32, #tpu.memory_space<vmem>>, vector<64x1xf32>
    tpu.vector_store %arg8[%c0_14, %c0_15], %19 {strides = array<i32>} : memref<64x1xf32, #tpu.memory_space<vmem>>, vector<64x1xf32>,
    %c0_i32_16 = arith.constant 0 : i32
    %21 = arith.cmpi eq, %arg0, %c0_i32_16 : i32
    %22 = arith.extui %21 : i1 to i32
    %c0_i32_17 = arith.constant 0 : i32
    %23 = arith.cmpi ne, %22, %c0_i32_17 : i32
    scf.if %23 {
      %c0_18 = arith.constant 0 : index
      %c0_19 = arith.constant 0 : index
      %24 = vector.load %arg7[%c0_18, %c0_19] : memref<64x1xf32, #tpu.memory_space<vmem>>, vector<64x1xf32>
      %cst_20 = arith.constant 0.0102040814 : f32
      %25 = vector.broadcast %cst_20 : f32 to vector<64x1xf32>
      %26 = arith.mulf %24, %25 : vector<64x1xf32>
      %c0_21 = arith.constant 0 : index
      %c0_22 = arith.constant 0 : index
      %27 = vector.load %arg8[%c0_21, %c0_22] : memref<64x1xf32, #tpu.memory_space<vmem>>, vector<64x1xf32>
      %cst_23 = arith.constant 0.0102040814 : f32
      %28 = vector.broadcast %cst_23 : f32 to vector<64x1xf32>
      %29 = arith.mulf %27, %28 : vector<64x1xf32>
      %30 = arith.mulf %26, %26 : vector<64x1xf32>
      %31 = arith.subf %29, %30 : vector<64x1xf32>
      %c0_24 = arith.constant 0 : index
      %c0_25 = arith.constant 0 : index
      %32 = vector.load %arg3[%c0_24, %c0_25] : memref<64x1xf32, #tpu.memory_space<vmem>>, vector<64x1xf32>
      %cst_26 = arith.constant 9.99999974E-6 : f32
      %33 = vector.broadcast %cst_26 : f32 to vector<64x1xf32>
      %34 = arith.addf %31, %33 : vector<64x1xf32>
      %35 = math.rsqrt %34 : vector<64x1xf32>
      %36 = arith.mulf %32, %35 : vector<64x1xf32>
      %c0_27 = arith.constant 0 : index
      %c0_28 = arith.constant 0 : index
      %37 = vector.load %arg4[%c0_27, %c0_28] : memref<64x1xf32, #tpu.memory_space<vmem>>, vector<64x1xf32>
      %38 = arith.mulf %26, %36 : vector<64x1xf32>
      %39 = arith.subf %37, %38 : vector<64x1xf32>
      %c0_29 = arith.constant 0 : index
      %c0_30 = arith.constant 0 : index
      %c0_31 = arith.constant 0 : index
      %40 = vector.load %arg6[%c0_29, %c0_30, %c0_31] : memref<1x64x128xf32, #tpu.memory_space<vmem>>, vector<1x64x128xf32>
      %41 = vector.shape_cast %40 : vector<1x64x128xf32> to vector<64x128xf32>
      %42 = vector.broadcast %36 : vector<64x1xf32> to vector<64x128xf32>
      %43 = arith.mulf %41, %42 : vector<64x128xf32>
      %44 = vector.broadcast %39 : vector<64x1xf32> to vector<64x128xf32>
      %45 = arith.addf %43, %44 : vector<64x128xf32>
      %cst_32 = arith.constant 0.000000e+00 : f32
      %46 = vector.broadcast %cst_32 : f32 to vector<64x128xf32>
      %47 = arith.maximumf %45, %46 : vector<64x128xf32>
      %48 = arith.truncf %47 : vector<64x128xf32> to vector<64x128xbf16>
      %c0_33 = arith.constant 0 : index
      %c0_34 = arith.constant 0 : index
      %49 = vector.load %arg5[%c0_33, %c0_34] : memref<64x128xbf16, #tpu.memory_space<vmem>>, vector<64x128xbf16>
      tpu.vector_store %arg5[%c0_33, %c0_34], %48 {strides = array<i32>} : memref<64x128xbf16, #tpu.memory_space<vmem>>, vector<64x128xbf16>,
    } else {
    }
    return
  }
  func.func @transform_0(%arg0: i32) -> (i32, i32) {
    %c0_i32 = arith.constant 0 : i32
    %c0_i32_0 = arith.constant 0 : i32
    return %arg0, %c0_i32 : i32, i32
  }
  func.func @transform_1(%arg0: i32) -> (i32, i32) {
    %c0_i32 = arith.constant 0 : i32
    %c0_i32_0 = arith.constant 0 : i32
    %c0_i32_1 = arith.constant 0 : i32
    return %c0_i32, %c0_i32_0 : i32, i32
  }
  func.func @transform_2(%arg0: i32) -> (i32, i32) {
    %c0_i32 = arith.constant 0 : i32
    %c0_i32_0 = arith.constant 0 : i32
    %c0_i32_1 = arith.constant 0 : i32
    return %c0_i32, %c0_i32_0 : i32, i32
  }
  func.func @transform_3(%arg0: i32) -> (i32, i32) {
    %c0_i32 = arith.constant 0 : i32
    %c0_i32_0 = arith.constant 0 : i32
    %c0_i32_1 = arith.constant 0 : i32
    return %c0_i32, %c0_i32_0 : i32, i32
  }
  func.func @transform_4(%arg0: i32) -> (i32, i32) {
    %c0_i32 = arith.constant 0 : i32
    %c0_i32_0 = arith.constant 0 : i32
    %c0_i32_1 = arith.constant 0 : i32
    return %c0_i32, %c0_i32_0 : i32, i32
  }
}

module attributes {stable_mosaic.version = 11 : i64} {
  func.func @_fc_fused_kernel(%arg0: i32, %arg1: memref<2x3136xbf16, #tpu.memory_space<vmem>>, %arg2: memref<3136x512xbf16, #tpu.memory_space<vmem>>, %arg3: memref<1x512xf32, #tpu.memory_space<vmem>>, %arg4: memref<512x6xf32, #tpu.memory_space<vmem>>, %arg5: memref<1x6xf32, #tpu.memory_space<vmem>>, %arg6: memref<2x6xf32, #tpu.memory_space<vmem>>) attributes {dimension_semantics = [#tpu.dimension_semantics<arbitrary>], iteration_bounds = array<i64: 1>, scalar_prefetch = 0 : i64, scratch_operands = 0 : i64, tpu.core_type = #tpu.core_type<tc>, window_params = [{pipeline_mode = #tpu.pipeline_mode<synchronous>, transform_indices = @transform_0, window_bounds = array<i64: 2, 3136>}, {pipeline_mode = #tpu.pipeline_mode<synchronous>, transform_indices = @transform_1, window_bounds = array<i64: 3136, 512>}, {pipeline_mode = #tpu.pipeline_mode<synchronous>, transform_indices = @transform_2, window_bounds = array<i64: 1, 512>}, {pipeline_mode = #tpu.pipeline_mode<synchronous>, transform_indices = @transform_3, window_bounds = array<i64: 512, 6>}, {pipeline_mode = #tpu.pipeline_mode<synchronous>, transform_indices = @transform_4, window_bounds = array<i64: 1, 6>}, {pipeline_mode = #tpu.pipeline_mode<synchronous>, transform_indices = @transform_5, window_bounds = array<i64: 2, 6>}]} {
    %c0 = arith.constant 0 : index
    %c0_0 = arith.constant 0 : index
    %0 = vector.load %arg1[%c0, %c0_0] : memref<2x3136xbf16, #tpu.memory_space<vmem>>, vector<2x3136xbf16>
    %c0_1 = arith.constant 0 : index
    %c0_2 = arith.constant 0 : index
    %1 = vector.load %arg2[%c0_1, %c0_2] : memref<3136x512xbf16, #tpu.memory_space<vmem>>, vector<3136x512xbf16>
    %cst = arith.constant dense<0.000000e+00> : vector<2x512xf32>
    %2 = tpu.matmul %0, %1, %cst {dimension_numbers = #tpu.dot_dimension_numbers<[1], [0], [0], [1], [0, 0, 1, 1], [], []>} : vector<2x3136xbf16>, vector<3136x512xbf16>, vector<2x512xf32> -> vector<2x512xf32>
    %c0_3 = arith.constant 0 : index
    %c0_4 = arith.constant 0 : index
    %3 = vector.load %arg3[%c0_3, %c0_4] : memref<1x512xf32, #tpu.memory_space<vmem>>, vector<1x512xf32>
    %4 = vector.broadcast %3 : vector<1x512xf32> to vector<2x512xf32>
    %5 = arith.addf %2, %4 : vector<2x512xf32>
    %cst_5 = arith.constant 0.000000e+00 : f32
    %6 = vector.broadcast %cst_5 : f32 to vector<2x512xf32>
    %7 = arith.maximumf %5, %6 : vector<2x512xf32>
    %c0_6 = arith.constant 0 : index
    %c0_7 = arith.constant 0 : index
    %8 = vector.load %arg4[%c0_6, %c0_7] : memref<512x6xf32, #tpu.memory_space<vmem>>, vector<512x6xf32>
    %cst_8 = arith.constant dense<0.000000e+00> : vector<2x6xf32>
    %9 = tpu.matmul %7, %8, %cst_8 {dimension_numbers = #tpu.dot_dimension_numbers<[1], [0], [0], [1], [0, 0, 1, 1], [], []>} : vector<2x512xf32>, vector<512x6xf32>, vector<2x6xf32> -> vector<2x6xf32>
    %c0_9 = arith.constant 0 : index
    %c0_10 = arith.constant 0 : index
    %10 = vector.load %arg5[%c0_9, %c0_10] : memref<1x6xf32, #tpu.memory_space<vmem>>, vector<1x6xf32>
    %11 = vector.broadcast %10 : vector<1x6xf32> to vector<2x6xf32>
    %12 = arith.addf %9, %11 : vector<2x6xf32>
    %c0_11 = arith.constant 0 : index
    %c0_12 = arith.constant 0 : index
    %13 = vector.load %arg6[%c0_11, %c0_12] : memref<2x6xf32, #tpu.memory_space<vmem>>, vector<2x6xf32>
    tpu.vector_store %arg6[%c0_11, %c0_12], %12 {strides = array<i32>} : memref<2x6xf32, #tpu.memory_space<vmem>>, vector<2x6xf32>,
    return
  }
  func.func @transform_0(%arg0: i32) -> (i32, i32) {
    %c0_i32 = arith.constant 0 : i32
    %c0_i32_0 = arith.constant 0 : i32
    %c0_i32_1 = arith.constant 0 : i32
    return %c0_i32, %c0_i32_0 : i32, i32
  }
  func.func @transform_1(%arg0: i32) -> (i32, i32) {
    %c0_i32 = arith.constant 0 : i32
    %c0_i32_0 = arith.constant 0 : i32
    %c0_i32_1 = arith.constant 0 : i32
    return %c0_i32, %c0_i32_0 : i32, i32
  }
  func.func @transform_2(%arg0: i32) -> (i32, i32) {
    %c0_i32 = arith.constant 0 : i32
    %c0_i32_0 = arith.constant 0 : i32
    %c0_i32_1 = arith.constant 0 : i32
    return %c0_i32, %c0_i32_0 : i32, i32
  }
  func.func @transform_3(%arg0: i32) -> (i32, i32) {
    %c0_i32 = arith.constant 0 : i32
    %c0_i32_0 = arith.constant 0 : i32
    %c0_i32_1 = arith.constant 0 : i32
    return %c0_i32, %c0_i32_0 : i32, i32
  }
  func.func @transform_4(%arg0: i32) -> (i32, i32) {
    %c0_i32 = arith.constant 0 : i32
    %c0_i32_0 = arith.constant 0 : i32
    %c0_i32_1 = arith.constant 0 : i32
    return %c0_i32, %c0_i32_0 : i32, i32
  }
  func.func @transform_5(%arg0: i32) -> (i32, i32) {
    %c0_i32 = arith.constant 0 : i32
    %c0_i32_0 = arith.constant 0 : i32
    %c0_i32_1 = arith.constant 0 : i32
    return %c0_i32, %c0_i32_0 : i32, i32
  }
}

</mosaic_0001>

<bundles_post_ra>
// kernel: dqn_forward.4
= control target key start
LH: loop header
LB: loop body
LE: loop exit
PB: predicated region body
PF: predicated region fallthrough
CT: control target
= control target key end

     0   :  { %s1595_s15 = smov 0   ;;  %s1963_s0 = inlined_call_operand.vmem [shape: bf16[1024,256], index: 0, kind: input, shape index: {}]   ;;  %s1964_s1 = inlined_call_operand.vmem [shape: bf16[32,256], index: 1, kind: input, shape index: {}]   ;;  %s1965_s2 = inlined_call_operand.vmem [shape: f32[32,1], index: 2, kind: input, shape index: {}]   ;;  %s1966_s3 = inlined_call_operand.vmem [shape: f32[32,1], index: 3, kind: input, shape index: {}]   ;;  %s1967_s4 = inlined_call_operand.vmem [shape: bf16[32,1024], index: 4, kind: output, shape index: {}]  }
   0x1 LB: > { %s1601_s16 = sadd.s32 4294967295, %s1566_s15   ;;  %p1187_p0 = scmp.ge.s32.totalorder %s1566_s15, 1  ;;  %s1566_s15 = sphi %s1595_s15, %s14_s15  }
   0x2   : > { %p159_p1 = scmp.lt.s32.totalorder %s1566_s15, 3 }
   0x4   : > { %p160_p2 = pnand %p1187_p0, %p159_p1 }
   0x5   : > { %s1188_s17 = sshll.u32 (!%p160_p2), %s1601_s16, 6  ;;  %p1191_p4 = scmp.ne.s32.totalorder (!%p160_p2), %s1601_s16, 0 }
   0x6   : > { %163 = sbr.rel (%p160_p2) target bundleno = 621 (0x26d), region = 36  ;;  %p182_p3 = scmp.lt.s32.totalorder (!%p160_p2), %s1188_s17, 127 }
   0xb   : > { %s1971_s17 = smov (!%p182_p3, %s1188_s17), 127  ;;  %191 = sbr.rel (%p1191_p4) target bundleno = 25 (0x19), region = 40 }
   0xc   : > { %s1469_s18 = sshll.u32 %s1971_s17, 3 }
   0xd   : > { %s1609_s21 = scalar_lea.vmem %s1963_s0, %s1469_s18 }
  0x10   : > { %vm192_vm0 = vcmask 7168   ;;  %v1568_v0 = vmov 0.0  }
  0x11   : > { %193 = vst.msk [vmem:[#allocation3] sm:$0xff] %vm192_vm0, %v1568_v0 }
  0x12   : > { %194 = vst.msk [vmem:[#allocation3 + $0x8] sm:$0xff] %vm192_vm0, %v1568_v0 }
  0x13   : > { %195 = vst.msk [vmem:[#allocation3 + $0x10] sm:$0xff] %vm192_vm0, %v1568_v0 }
  0x14   : > { %196 = vst.msk [vmem:[#allocation3 + $0x18] sm:$0xff] %vm192_vm0, %v1568_v0 }
  0x15   : > { %197 = vst.msk [vmem:[#allocation4] sm:$0xff] %vm192_vm0, %v1568_v0 }
  0x16   : > { %198 = vst.msk [vmem:[#allocation4 + $0x8] sm:$0xff] %vm192_vm0, %v1568_v0 }
  0x17   : > { %199 = vst.msk [vmem:[#allocation4 + $0x10] sm:$0xff] %vm192_vm0, %v1568_v0 }
  0x18   : > { %200 = vst.msk [vmem:[#allocation4 + $0x18] sm:$0xff] %vm192_vm0, %v1568_v0 }
  0x19 PF: > { %v1266_v1 = vld [vmem:[%s1609_s21 + $0x70] sm:$0xf]  ;;  %v1489_v2 = vld [vmem:[%s1609_s21 + $0x74] sm:$0xf0]  ;;  %v1488_v3 = vld [vmem:[%s1609_s21 + $0x74] sm:$0xf] }
  0x1a   : > { %v1267_v4 = vor.u32 %v1489_v2, %v1266_v1  ;;  %v1268_v5 = vld [vmem:[%s1609_s21 + $0x78] sm:$0xf0]  ;;  %v1330_v6 = vld [vmem:[%s1609_s21 + $0xf0] sm:$0xf]  ;;  %v1505_v7 = vld [vmem:[%s1609_s21 + $0xf4] sm:$0xf0] }
  0x1b   : > { %v1271_v8 = vor.u32 %v1488_v3, %v1268_v5  ;;  %v1331_v9 = vor.u32 %v1505_v7, %v1330_v6  ;;  %v1504_v10 = vld [vmem:[%s1609_s21 + $0xf4] sm:$0xf]  ;;  %v1332_v11 = vld [vmem:[%s1609_s21 + $0xf8] sm:$0xf0]  ;;  %v1258_v13 = vld [vmem:[%s1609_s21 + $0x60] sm:$0xf] }
  0x1c   : > { %609 = vmatpush.bf16.xpose.msra.mxu0 %v1267_v4  ;;  %v1335_v12 = vor.u32 %v1504_v10, %v1332_v11  ;;  %v1487_v14 = vld [vmem:[%s1609_s21 + $0x64] sm:$0xf0]  ;;  %v1486_v15 = vld [vmem:[%s1609_s21 + $0x64] sm:$0xf]  ;;  %v1260_v16 = vld [vmem:[%s1609_s21 + $0x68] sm:$0xf0] }
  0x1d   : > { %628 = vmatpush.bf16.xpose.msra.mxu1 %v1271_v8  ;;  %647 = vmatpush.bf16.xpose.msra.mxu2 %v1331_v9  ;;  %v1322_v17 = vld [vmem:[%s1609_s21 + $0xe0] sm:$0xf]  ;;  %v1503_v18 = vld [vmem:[%s1609_s21 + $0xe4] sm:$0xf0]  ;;  %v1502_v19 = vld [vmem:[%s1609_s21 + $0xe4] sm:$0xf]  ;;  %v1259_v21 = vor.u32 %v1487_v14, %v1258_v13  ;;  %v1263_v22 = vor.u32 %v1486_v15, %v1260_v16 }
  0x1e   : > { %666 = vmatpush.bf16.xpose.msra.mxu3 %v1335_v12  ;;  %v1324_v20 = vld [vmem:[%s1609_s21 + $0xe8] sm:$0xf0]  ;;  %v1323_v23 = vor.u32 %v1503_v18, %v1322_v17  ;;  %v1250_v25 = vld [vmem:[%s1609_s21 + $0x50] sm:$0xf]  ;;  %v1485_v26 = vld [vmem:[%s1609_s21 + $0x54] sm:$0xf0] }
  0x1f   : > { %v1327_v24 = vor.u32 %v1502_v19, %v1324_v20  ;;  %v1484_v27 = vld [vmem:[%s1609_s21 + $0x54] sm:$0xf]  ;;  %v1252_v28 = vld [vmem:[%s1609_s21 + $0x58] sm:$0xf0]  ;;  %v1314_v29 = vld [vmem:[%s1609_s21 + $0xd0] sm:$0xf]  ;;  %v1251_v33 = vor.u32 %v1485_v26, %v1250_v25 }
  0x20   : > { %v1501_v30 = vld [vmem:[%s1609_s21 + $0xd4] sm:$0xf0]  ;;  %v1500_v31 = vld [vmem:[%s1609_s21 + $0xd4] sm:$0xf]  ;;  %v1316_v32 = vld [vmem:[%s1609_s21 + $0xd8] sm:$0xf0]  ;;  %v1255_v34 = vor.u32 %v1484_v27, %v1252_v28 }
  0x21   : > { %v1315_v35 = vor.u32 %v1501_v30, %v1314_v29  ;;  %v1319_v36 = vor.u32 %v1500_v31, %v1316_v32  ;;  %v1242_v37 = vld [vmem:[%s1609_s21 + $0x40] sm:$0xf]  ;;  %v1483_v38 = vld [vmem:[%s1609_s21 + $0x44] sm:$0xf0]  ;;  %v1482_v39 = vld [vmem:[%s1609_s21 + $0x44] sm:$0xf] }
  0x22   : > { %v1244_v40 = vld [vmem:[%s1609_s21 + $0x48] sm:$0xf0]  ;;  %v1306_v41 = vld [vmem:[%s1609_s21 + $0xc0] sm:$0xf]  ;;  %v1499_v42 = vld [vmem:[%s1609_s21 + $0xc4] sm:$0xf0]  ;;  %v1243_v45 = vor.u32 %v1483_v38, %v1242_v37 }
  0x23   : > { %v1498_v43 = vld [vmem:[%s1609_s21 + $0xc4] sm:$0xf]  ;;  %v1308_v44 = vld [vmem:[%s1609_s21 + $0xc8] sm:$0xf0]  ;;  %v1247_v46 = vor.u32 %v1482_v39, %v1244_v40  ;;  %v1307_v47 = vor.u32 %v1499_v42, %v1306_v41  ;;  %v1234_v49 = vld [vmem:[%s1609_s21 + $0x30] sm:$0xf] }
  0x24   : > { %610 = vmatpush.bf16.xpose.msra.mxu0 %v1259_v21  ;;  %v1311_v48 = vor.u32 %v1498_v43, %v1308_v44  ;;  %v1481_v50 = vld [vmem:[%s1609_s21 + $0x34] sm:$0xf0]  ;;  %v1480_v51 = vld [vmem:[%s1609_s21 + $0x34] sm:$0xf]  ;;  %v1236_v52 = vld [vmem:[%s1609_s21 + $0x38] sm:$0xf0] }
  0x25   : > { %629 = vmatpush.bf16.xpose.msra.mxu1 %v1263_v22  ;;  %648 = vmatpush.bf16.xpose.msra.mxu2 %v1323_v23  ;;  %v1298_v53 = vld [vmem:[%s1609_s21 + $0xb0] sm:$0xf]  ;;  %v1497_v54 = vld [vmem:[%s1609_s21 + $0xb4] sm:$0xf0]  ;;  %v1496_v55 = vld [vmem:[%s1609_s21 + $0xb4] sm:$0xf]  ;;  %v1235_v57 = vor.u32 %v1481_v50, %v1234_v49  ;;  %v1239_v58 = vor.u32 %v1480_v51, %v1236_v52 }
  0x26   : > { %667 = vmatpush.bf16.xpose.msra.mxu3 %v1327_v24  ;;  %v1300_v56 = vld [vmem:[%s1609_s21 + $0xb8] sm:$0xf0]  ;;  %v1299_v59 = vor.u32 %v1497_v54, %v1298_v53  ;;  %v1226_v61 = vld [vmem:[%s1609_s21 + $0x20] sm:$0xf]  ;;  %v1479_v62 = vld [vmem:[%s1609_s21 + $0x24] sm:$0xf0] }
  0x27   : > { %v1303_v60 = vor.u32 %v1496_v55, %v1300_v56  ;;  %v1478_v63 = vld [vmem:[%s1609_s21 + $0x24] sm:$0xf]  ;;  %v1228_v0 = vld [vmem:[%s1609_s21 + $0x28] sm:$0xf0]  ;;  %v1290_v1 = vld [vmem:[%s1609_s21 + $0xa0] sm:$0xf]  ;;  %v1227_v5 = vor.u32 %v1479_v62, %v1226_v61 }
  0x28   : > { %v1495_v2 = vld [vmem:[%s1609_s21 + $0xa4] sm:$0xf0]  ;;  %v1494_v3 = vld [vmem:[%s1609_s21 + $0xa4] sm:$0xf]  ;;  %v1292_v4 = vld [vmem:[%s1609_s21 + $0xa8] sm:$0xf0]  ;;  %v1231_v6 = vor.u32 %v1478_v63, %v1228_v0 }
  0x29   : > { %v1291_v7 = vor.u32 %v1495_v2, %v1290_v1  ;;  %v1295_v8 = vor.u32 %v1494_v3, %v1292_v4  ;;  %v1218_v9 = vld [vmem:[%s1609_s21 + $0x10] sm:$0xf]  ;;  %v1477_v10 = vld [vmem:[%s1609_s21 + $0x14] sm:$0xf0]  ;;  %v1476_v11 = vld [vmem:[%s1609_s21 + $0x14] sm:$0xf] }
  0x2a   : > { %v1220_v12 = vld [vmem:[%s1609_s21 + $0x18] sm:$0xf0]  ;;  %v1282_v13 = vld [vmem:[%s1609_s21 + $0x90] sm:$0xf]  ;;  %v1493_v14 = vld [vmem:[%s1609_s21 + $0x94] sm:$0xf0]  ;;  %v1219_v17 = vor.u32 %v1477_v10, %v1218_v9 }
  0x2b   : > { %v1492_v15 = vld [vmem:[%s1609_s21 + $0x94] sm:$0xf]  ;;  %v1284_v16 = vld [vmem:[%s1609_s21 + $0x98] sm:$0xf0]  ;;  %v1223_v18 = vor.u32 %v1476_v11, %v1220_v12  ;;  %v1283_v19 = vor.u32 %v1493_v14, %v1282_v13  ;;  %v1210_v21 = vld [vmem:[%s1609_s21] sm:$0xf] }
  0x2c   : > { %611 = vmatpush.bf16.xpose.msra.mxu0 %v1251_v33  ;;  %v1287_v20 = vor.u32 %v1492_v15, %v1284_v16  ;;  %v1475_v22 = vld [vmem:[%s1609_s21 + $0x4] sm:$0xf0]  ;;  %v1474_v23 = vld [vmem:[%s1609_s21 + $0x4] sm:$0xf]  ;;  %v1212_v24 = vld [vmem:[%s1609_s21 + $0x8] sm:$0xf0] }
  0x2d   : > { %630 = vmatpush.bf16.xpose.msra.mxu1 %v1255_v34  ;;  %649 = vmatpush.bf16.xpose.msra.mxu2 %v1315_v35  ;;  %v1274_v25 = vld [vmem:[%s1609_s21 + $0x80] sm:$0xf]  ;;  %v1491_v26 = vld [vmem:[%s1609_s21 + $0x84] sm:$0xf0]  ;;  %v1490_v27 = vld [vmem:[%s1609_s21 + $0x84] sm:$0xf]  ;;  %v1211_v32 = vor.u32 %v1475_v22, %v1210_v21 }
  0x2e   : > { %668 = vmatpush.bf16.xpose.msra.mxu3 %v1319_v36  ;;  %v1276_v28 = vld [vmem:[%s1609_s21 + $0x88] sm:$0xf0]  ;;  %v1394_v29 = vld [vmem:[%s1609_s21 + $0x170] sm:$0xf]  ;;  %v1521_v30 = vld [vmem:[%s1609_s21 + $0x174] sm:$0xf0]  ;;  %v1215_v36 = vor.u32 %v1474_v23, %v1212_v24  ;;  %v1275_v37 = vor.u32 %v1491_v26, %v1274_v25 }
  0x2f   : > { %v1520_v31 = vld [vmem:[%s1609_s21 + $0x174] sm:$0xf]  ;;  %v1396_v33 = vld [vmem:[%s1609_s21 + $0x178] sm:$0xf0]  ;;  %v1458_v34 = vld [vmem:[%s1609_s21 + $0x1f0] sm:$0xf]  ;;  %v1279_v40 = vor.u32 %v1490_v27, %v1276_v28  ;;  %v1395_v41 = vor.u32 %v1521_v30, %v1394_v29 }
  0x30   : > { %v1537_v35 = vld [vmem:[%s1609_s21 + $0x1f4] sm:$0xf0]  ;;  %v1536_v38 = vld [vmem:[%s1609_s21 + $0x1f4] sm:$0xf]  ;;  %v1460_v39 = vld [vmem:[%s1609_s21 + $0x1f8] sm:$0xf0]  ;;  %v1399_v42 = vor.u32 %v1520_v31, %v1396_v33 }
  0x31   : > { %v1459_v43 = vor.u32 %v1537_v35, %v1458_v34  ;;  %v1463_v44 = vor.u32 %v1536_v38, %v1460_v39  ;;  %v1386_v49 = vld [vmem:[%s1609_s21 + $0x160] sm:$0xf]  ;;  %v1519_v50 = vld [vmem:[%s1609_s21 + $0x164] sm:$0xf0]  ;;  %v1518_v51 = vld [vmem:[%s1609_s21 + $0x164] sm:$0xf] }
  0x32   : > { %v1388_v52 = vld [vmem:[%s1609_s21 + $0x168] sm:$0xf0]  ;;  %v1450_v53 = vld [vmem:[%s1609_s21 + $0x1e0] sm:$0xf]  ;;  %v1535_v54 = vld [vmem:[%s1609_s21 + $0x1e4] sm:$0xf0] }
  0x33   : > { %v1534_v56 = vld [vmem:[%s1609_s21 + $0x1e4] sm:$0xf]  ;;  %v1451_v61 = vor.u32 %v1535_v54, %v1450_v53  ;;  %v1378_v63 = vld [vmem:[%s1609_s21 + $0x150] sm:$0xf]  ;;  %v1517_v0 = vld [vmem:[%s1609_s21 + $0x154] sm:$0xf0] }
  0x34   : > { %612 = vmatpush.bf16.xpose.msra.mxu0 %v1243_v45  ;;  %v1194_v45 = vld [vmem:[%s1964_s1] sm:$0xf]  ;;  %v1516_v1 = vld [vmem:[%s1609_s21 + $0x154] sm:$0xf]  ;;  %v1380_v2 = vld [vmem:[%s1609_s21 + $0x158] sm:$0xf0] }
  0x35   : > { %631 = vmatpush.bf16.xpose.msra.mxu1 %v1247_v46  ;;  %650 = vmatpush.bf16.xpose.msra.mxu2 %v1307_v47  ;;  %v1471_v46 = vld [vmem:[%s1964_s1 + $0x4] sm:$0xf0]  ;;  %v1470_v47 = vld [vmem:[%s1964_s1 + $0x4] sm:$0xf]  ;;  %v1442_v3 = vld [vmem:[%s1609_s21 + $0x1d0] sm:$0xf] }
  0x36   : > { %669 = vmatpush.bf16.xpose.msra.mxu3 %v1311_v48  ;;  %v1196_v48 = vld [vmem:[%s1964_s1 + $0x8] sm:$0xf0]  ;;  %v1702_v55 = vor.u32 %v1471_v46, %v1194_v45  ;;  %v1533_v4 = vld [vmem:[%s1609_s21 + $0x1d4] sm:$0xf0]  ;;  %v1202_v11 = vld [vmem:[%s1964_s1 + $0x10] sm:$0xf] }
  0x37   : > { %v1443_v9 = vor.u32 %v1533_v4, %v1442_v3  ;;  %v1473_v12 = vld [vmem:[%s1964_s1 + $0x14] sm:$0xf0]  ;;  %v1472_v13 = vld [vmem:[%s1964_s1 + $0x14] sm:$0xf]  ;;  %v1204_v14 = vld [vmem:[%s1964_s1 + $0x18] sm:$0xf0] }
  0x38   : > { %v1370_v15 = vld [vmem:[%s1609_s21 + $0x140] sm:$0xf]  ;;  %v1515_v16 = vld [vmem:[%s1609_s21 + $0x144] sm:$0xf0]  ;;  %v1738_v21 = vor.u32 %v1473_v12, %v1202_v11  ;;  %v1530_v22 = vld [vmem:[%s1609_s21 + $0x1c4] sm:$0xf]  ;;  %v1742_v24 = vor.u32 %v1472_v13, %v1204_v14 }
  0x39   : > { %v1436_v23 = vld [vmem:[%s1609_s21 + $0x1c8] sm:$0xf0]  ;;  %v1371_v25 = vor.u32 %v1515_v16, %v1370_v15  ;;  %v1362_v29 = vld [vmem:[%s1609_s21 + $0x130] sm:$0xf]  ;;  %v1513_v30 = vld [vmem:[%s1609_s21 + $0x134] sm:$0xf0] }
  0x3a   : > { %v1439_v28 = vor.u32 %v1530_v22, %v1436_v23  ;;  %v1512_v31 = vld [vmem:[%s1609_s21 + $0x134] sm:$0xf]  ;;  %v1426_v33 = vld [vmem:[%s1609_s21 + $0x1b0] sm:$0xf]  ;;  %v1529_v34 = vld [vmem:[%s1609_s21 + $0x1b4] sm:$0xf0] }
  0x3b   : > { %v1528_v35 = vld [vmem:[%s1609_s21 + $0x1b4] sm:$0xf]  ;;  %v1427_v39 = vor.u32 %v1529_v34, %v1426_v33  ;;  %v1418_v45 = vld [vmem:[%s1609_s21 + $0x1a0] sm:$0xf]  ;;  %v1527_v46 = vld [vmem:[%s1609_s21 + $0x1a4] sm:$0xf0] }
  0x3c   : > { %613 = vmatpush.bf16.xpose.msra.mxu0 %v1235_v57  ;;  %v1452_v57 = vld [vmem:[%s1609_s21 + $0x1e8] sm:$0xf0]  ;;  %v1346_v53 = vld [vmem:[%s1609_s21 + $0x110] sm:$0xf]  ;;  %v1509_v54 = vld [vmem:[%s1609_s21 + $0x114] sm:$0xf0] }
  0x3d   : > { %632 = vmatpush.bf16.xpose.msra.mxu1 %v1239_v58  ;;  %651 = vmatpush.bf16.xpose.msra.mxu2 %v1299_v59  ;;  %v1706_v58 = vor.u32 %v1470_v47, %v1196_v48  ;;  %v1387_v59 = vor.u32 %v1519_v50, %v1386_v49  ;;  %v1455_v62 = vor.u32 %v1534_v56, %v1452_v57  ;;  %v1526_v47 = vld [vmem:[%s1609_s21 + $0x1a4] sm:$0xf]  ;;  %v1420_v48 = vld [vmem:[%s1609_s21 + $0x1a8] sm:$0xf0]  ;;  %v1508_v56 = vld [vmem:[%s1609_s21 + $0x114] sm:$0xf] }
  0x3e   : > { %670 = vmatpush.bf16.xpose.msra.mxu3 %v1303_v60  ;;  %v1391_v60 = vor.u32 %v1518_v51, %v1388_v52  ;;  %v1419_v51 = vor.u32 %v1527_v46, %v1418_v45  ;;  %v1423_v52 = vor.u32 %v1526_v47, %v1420_v48  ;;  %v1348_v57 = vld [vmem:[%s1609_s21 + $0x118] sm:$0xf0]  ;;  %v1338_v3 = vld [vmem:[%s1609_s21 + $0x100] sm:$0xf]  ;;  %v1507_v4 = vld [vmem:[%s1609_s21 + $0x104] sm:$0xf0] }
  0x3f   : > { %v1339_v11 = vor.u32 %v1507_v4, %v1338_v3  ;;  %s1538_s12 = sshll.u32 %s1601_s16, 7  ;;  %vm808_vm1 = vcmask 7168   ;;  %p1466_p5 = scmp.ne.s32.totalorder %s1601_s16, 1 }
  0x40   : > { %s1789_s13 = scalar_lea.vmem [#allocation2], %s1538_s12 }
  0x44   : > { %614 = vmatpush.bf16.xpose.msra.mxu0 %v1227_v5  ;;  %v1532_v5 = vld [vmem:[%s1609_s21 + $0x1d4] sm:$0xf] }
  0x45   : > { %633 = vmatpush.bf16.xpose.msra.mxu1 %v1231_v6  ;;  %652 = vmatpush.bf16.xpose.msra.mxu2 %v1291_v7  ;;  %v1444_v6 = vld [vmem:[%s1609_s21 + $0x1d8] sm:$0xf0]  ;;  %v1379_v7 = vor.u32 %v1517_v0, %v1378_v63  ;;  %v1347_v63 = vor.u32 %v1509_v54, %v1346_v53  ;;  %v1351_v0 = vor.u32 %v1508_v56, %v1348_v57 }
  0x46   : > { %671 = vmatpush.bf16.xpose.msra.mxu3 %v1295_v8  ;;  %v1383_v8 = vor.u32 %v1516_v1, %v1380_v2  ;;  %v1447_v10 = vor.u32 %v1532_v5, %v1444_v6  ;;  %v1506_v5 = vld [vmem:[%s1609_s21 + $0x104] sm:$0xf]  ;;  %v1340_v6 = vld [vmem:[%s1609_s21 + $0x108] sm:$0xf0] }
  0x47   : > { %v1343_v12 = vor.u32 %v1506_v5, %v1340_v6 }
  0x4c   : > { %615 = vmatpush.bf16.xpose.msra.mxu0 %v1219_v17  ;;  %v1514_v17 = vld [vmem:[%s1609_s21 + $0x144] sm:$0xf] }
  0x4d   : > { %634 = vmatpush.bf16.xpose.msra.mxu1 %v1223_v18  ;;  %653 = vmatpush.bf16.xpose.msra.mxu2 %v1283_v19  ;;  %v1372_v18 = vld [vmem:[%s1609_s21 + $0x148] sm:$0xf0]  ;;  %v1434_v19 = vld [vmem:[%s1609_s21 + $0x1c0] sm:$0xf] }
  0x4e   : > { %672 = vmatpush.bf16.xpose.msra.mxu3 %v1287_v20  ;;  %v1531_v20 = vld [vmem:[%s1609_s21 + $0x1c4] sm:$0xf0]  ;;  %v1375_v26 = vor.u32 %v1514_v17, %v1372_v18 }
  0x4f   : > { %v1435_v27 = vor.u32 %v1531_v20, %v1434_v19 }
  0x54   : > { %616 = vmatpush.bf16.xpose.msra.mxu0 %v1211_v32  ;;  %v1364_v32 = vld [vmem:[%s1609_s21 + $0x138] sm:$0xf0] }
  0x55   : > { %635 = vmatpush.bf16.xpose.msra.mxu1 %v1215_v36  ;;  %654 = vmatpush.bf16.xpose.msra.mxu2 %v1275_v37  ;;  %v1428_v36 = vld [vmem:[%s1609_s21 + $0x1b8] sm:$0xf0]  ;;  %v1363_v37 = vor.u32 %v1513_v30, %v1362_v29  ;;  %v1367_v38 = vor.u32 %v1512_v31, %v1364_v32 }
  0x56   : > { %673 = vmatpush.bf16.xpose.msra.mxu3 %v1279_v40  ;;  %v1431_v40 = vor.u32 %v1528_v35, %v1428_v36 }
  0x5b   : > { %617 = vmatmul.bf16.vlgmr.msra.gmra.mxu0 %v1702_v55 }
  0x5c   : > { %685 = vmatpush.bf16.xpose.msrb.mxu0 %v1395_v41  ;;  %655 = vmatmul.bf16.vlgmr.msra.gmra.mxu2 %v1702_v55  ;;  %v1354_v41 = vld [vmem:[%s1609_s21 + $0x120] sm:$0xf] }
  0x5d   : > { %704 = vmatpush.bf16.xpose.msrb.mxu1 %v1399_v42  ;;  %723 = vmatpush.bf16.xpose.msrb.mxu2 %v1459_v43  ;;  %v1511_v42 = vld [vmem:[%s1609_s21 + $0x124] sm:$0xf0]  ;;  %v1510_v43 = vld [vmem:[%s1609_s21 + $0x124] sm:$0xf] }
  0x5e   : > { %742 = vmatpush.bf16.xpose.msrb.mxu3 %v1463_v44  ;;  %636 = vmatmul.bf16.vlgmr.msra.gmra.mxu1 %v1706_v58  ;;  %v1356_v44 = vld [vmem:[%s1609_s21 + $0x128] sm:$0xf0]  ;;  %v1355_v49 = vor.u32 %v1511_v42, %v1354_v41 }
  0x5f   : > { %674 = vmatmul.bf16.vlgmr.msra.gmra.mxu3 %v1706_v58  ;;  %v1359_v50 = vor.u32 %v1510_v43, %v1356_v44 }
  0x64   : > { %686 = vmatpush.bf16.xpose.msrb.mxu0 %v1387_v59  ;;  %v1410_v59 = vld [vmem:[%s1609_s21 + $0x190] sm:$0xf] }
  0x65   : > { %705 = vmatpush.bf16.xpose.msrb.mxu1 %v1391_v60  ;;  %724 = vmatpush.bf16.xpose.msrb.mxu2 %v1451_v61  ;;  %v1525_v60 = vld [vmem:[%s1609_s21 + $0x194] sm:$0xf0]  ;;  %v1524_v61 = vld [vmem:[%s1609_s21 + $0x194] sm:$0xf] }
  0x66   : > { %743 = vmatpush.bf16.xpose.msrb.mxu3 %v1455_v62  ;;  %v1412_v62 = vld [vmem:[%s1609_s21 + $0x198] sm:$0xf0]  ;;  %v1411_v1 = vor.u32 %v1525_v60, %v1410_v59 }
  0x67   : > { %v1415_v2 = vor.u32 %v1524_v61, %v1412_v62 }
  0x6b   : > { %622 = vmatmul.bf16.gmra.mxu0 %v1738_v21 }
  0x6c   : > { %687 = vmatpush.bf16.xpose.msrb.mxu0 %v1379_v7  ;;  %660 = vmatmul.bf16.gmra.mxu2 %v1738_v21  ;;  %v1402_v7 = vld [vmem:[%s1609_s21 + $0x180] sm:$0xf] }
  0x6d   : > { %706 = vmatpush.bf16.xpose.msrb.mxu1 %v1383_v8  ;;  %725 = vmatpush.bf16.xpose.msrb.mxu2 %v1443_v9  ;;  %v1523_v8 = vld [vmem:[%s1609_s21 + $0x184] sm:$0xf0]  ;;  %v1522_v9 = vld [vmem:[%s1609_s21 + $0x184] sm:$0xf] }
  0x6e   : > { %744 = vmatpush.bf16.xpose.msrb.mxu3 %v1447_v10  ;;  %641 = vmatmul.bf16.gmra.mxu1 %v1742_v24  ;;  %v1404_v10 = vld [vmem:[%s1609_s21 + $0x188] sm:$0xf0]  ;;  %v1403_v13 = vor.u32 %v1523_v8, %v1402_v7 }
  0x6f   : > { %679 = vmatmul.bf16.gmra.mxu3 %v1742_v24  ;;  %v1407_v14 = vor.u32 %v1522_v9, %v1404_v10 }
  0x74   : > { %688 = vmatpush.bf16.xpose.msrb.mxu0 %v1371_v25 }
  0x75   : > { %707 = vmatpush.bf16.xpose.msrb.mxu1 %v1375_v26  ;;  %726 = vmatpush.bf16.xpose.msrb.mxu2 %v1435_v27 }
  0x76   : > { %745 = vmatpush.bf16.xpose.msrb.mxu3 %v1439_v28 }
  0x7c   : > { %689 = vmatpush.bf16.xpose.msrb.mxu0 %v1363_v37 }
  0x7d   : > { %708 = vmatpush.bf16.xpose.msrb.mxu1 %v1367_v38  ;;  %727 = vmatpush.bf16.xpose.msrb.mxu2 %v1427_v39 }
  0x7e   : > { %746 = vmatpush.bf16.xpose.msrb.mxu3 %v1431_v40 }
  0x84   : > { %690 = vmatpush.bf16.xpose.msrb.mxu0 %v1355_v49 }
  0x85   : > { %709 = vmatpush.bf16.xpose.msrb.mxu1 %v1359_v50  ;;  %728 = vmatpush.bf16.xpose.msrb.mxu2 %v1419_v51 }
  0x86   : > { %747 = vmatpush.bf16.xpose.msrb.mxu3 %v1423_v52 }
  0x8c   : > { %691 = vmatpush.bf16.xpose.msrb.mxu0 %v1347_v63 }
  0x8d   : > { %710 = vmatpush.bf16.xpose.msrb.mxu1 %v1351_v0  ;;  %729 = vmatpush.bf16.xpose.msrb.mxu2 %v1411_v1 }
  0x8e   : > { %748 = vmatpush.bf16.xpose.msrb.mxu3 %v1415_v2 }
  0x94   : > { %692 = vmatpush.bf16.xpose.msrb.mxu0 %v1339_v11 }
  0x95   : > { %711 = vmatpush.bf16.xpose.msrb.mxu1 %v1343_v12  ;;  %730 = vmatpush.bf16.xpose.msrb.mxu2 %v1403_v13 }
  0x96   : > { %749 = vmatpush.bf16.xpose.msrb.mxu3 %v1407_v14 }
  0x9b   : > { %693 = vmatmul.bf16.vlgmr.msrb.gmra.mxu0 %v1702_v55 }
  0x9c   : > { %712 = vmatmul.bf16.vlgmr.msrb.gmra.mxu1 %v1706_v58  ;;  %731 = vmatmul.bf16.vlgmr.msrb.gmra.mxu2 %v1702_v55 }
  0x9d   : > { %750 = vmatmul.bf16.vlgmr.msrb.gmra.mxu3 %v1706_v58 }
  0xab   : > { %698 = vmatmul.bf16.gmra.mxu0 %v1738_v21 }
  0xac   : > { %717 = vmatmul.bf16.gmra.mxu1 %v1742_v24  ;;  %736 = vmatmul.bf16.gmra.mxu2 %v1738_v21 }
  0xad   : > { %755 = vmatmul.bf16.gmra.mxu3 %v1742_v24 }
  0xd8   : > { %v618_v15 = vpop.f32.mrf.mxu0 }
  0xdb   : > { %v637_v16 = vpop.f32.mrf.mxu1 }
  0xdc   : > { %v638_v17 = vadd.f32 %v637_v16, %v618_v15 }
  0xde   : > { %764 = vst [vmem:[%s1789_s13] sm:$0xff] %v638_v17  ;;  %v817_v40 = vmul.f32 %v638_v17, %v638_v17 }
  0xdf   : > { %v656_v55 = vpop.f32.mrf.mxu2 }
  0xe0   : > { %v620_v18 = vpop.f32.mrf.mxu0 }
  0xe2   : > { %v675_v58 = vpop.f32.mrf.mxu3 }
  0xe3   : > { %v676_v19 = vadd.f32 %v675_v58, %v656_v55  ;;  %v639_v20 = vpop.f32.mrf.mxu1 }
  0xe4   : > { %v640_v21 = vadd.f32 %v639_v20, %v620_v18 }
  0xe5   : > { %765 = vst [vmem:[%s1789_s13 + $0x8] sm:$0xff] %v676_v19  ;;  %v818_v41 = vmul.f32 %v676_v19, %v676_v19  ;;  %v784_v43 = vadd.f32 %v676_v19, %v638_v17 }
  0xe6   : > { %768 = vst [vmem:[%s1789_s13 + $0x20] sm:$0xff] %v640_v21  ;;  %v821_v56 = vmul.f32 %v640_v21, %v640_v21 }
  0xe7   : > { %v658_v22 = vpop.f32.mrf.mxu2  ;;  %v833_v50 = vadd.f32 %v818_v41, %v817_v40  ;;  %v813_v41 = vld [vmem:[#allocation4] sm:$0xff] }
  0xe8   : > { %v623_v24 = vpop.f32.mrf.mxu0 }
  0xea   : > { %v677_v23 = vpop.f32.mrf.mxu3 }
  0xeb   : > { %v678_v25 = vadd.f32 %v677_v23, %v658_v22  ;;  %v642_v26 = vpop.f32.mrf.mxu1 }
  0xec   : > { %v1794_v27 = vadd.f32 %v642_v26, %v623_v24 }
  0xed   : > { %769 = vst [vmem:[%s1789_s13 + $0x28] sm:$0xff] %v678_v25  ;;  %v822_v57 = vmul.f32 %v678_v25, %v678_v25  ;;  %v789_v60 = vadd.f32 %v678_v25, %v640_v21 }
  0xee   : > { %772 = vst [vmem:[%s1789_s13 + $0x40] sm:$0xff] %v1794_v27  ;;  %v825_v9 = vmul.f32 %v1794_v27, %v1794_v27 }
  0xef   : > { %v661_v28 = vpop.f32.mrf.mxu2  ;;  %v838_v4 = vadd.f32 %v822_v57, %v821_v56  ;;  %v783_v56 = vld [vmem:[#allocation3 + $0x18] sm:$0xff] }
  0xf0   : > { %v625_v30 = vpop.f32.mrf.mxu0 }
  0xf2   : > { %v680_v29 = vpop.f32.mrf.mxu3 }
  0xf3   : > { %v681_v31 = vadd.f32 %v680_v29, %v661_v28  ;;  %v644_v32 = vpop.f32.mrf.mxu1 }
  0xf4   : > { %v1799_v33 = vadd.f32 %v644_v32, %v625_v30 }
  0xf5   : > { %773 = vst [vmem:[%s1789_s13 + $0x48] sm:$0xff] %v681_v31  ;;  %v826_v10 = vmul.f32 %v681_v31, %v681_v31  ;;  %v794_v14 = vadd.f32 %v681_v31, %v1794_v27 }
  0xf6   : > { %776 = vst [vmem:[%s1789_s13 + $0x60] sm:$0xff] %v1799_v33  ;;  %v829_v29 = vmul.f32 %v1799_v33, %v1799_v33 }
  0xf7   : > { %v663_v34 = vpop.f32.mrf.mxu2  ;;  %v843_v18 = vadd.f32 %v826_v10, %v825_v9 }
  0xfa   : > { %v682_v35 = vpop.f32.mrf.mxu3 }
  0xfb   : > { %v1804_v36 = vadd.f32 %v682_v35, %v663_v34 }
  0xfd   : > { %777 = vst [vmem:[%s1789_s13 + $0x68] sm:$0xff] %v1804_v36  ;;  %v799_v24 = vadd.f32 %v1804_v36, %v1799_v33  ;;  %v830_v30 = vmul.f32 %v1804_v36, %v1804_v36  ;;  %v781_v36 = vld [vmem:[#allocation3 + $0x8] sm:$0xff] }
  0xff   : > { %v848_v35 = vadd.f32 %v830_v30, %v829_v29 }
 0x118   : > { %v694_v37 = vpop.f32.mrf.mxu0 }
 0x119   : > { %v713_v38 = vpop.f32.mrf.mxu1 }
 0x11a   : > { %v714_v39 = vadd.f32 %v713_v38, %v694_v37 }
 0x11c   : > { %766 = vst [vmem:[%s1789_s13 + $0x10] sm:$0xff] %v714_v39  ;;  %v819_v44 = vmul.f32 %v714_v39, %v714_v39  ;;  %v785_v49 = vadd.f32 %v784_v43, %v714_v39  ;;  %v780_v39 = vld [vmem:[#allocation3] sm:$0xff] }
 0x11e   : > { %v834_v54 = vadd.f32 %v833_v50, %v819_v44 }
 0x11f   : > { %v732_v42 = vpop.f32.mrf.mxu2 }
 0x120   : > { %v751_v45 = vpop.f32.mrf.mxu3  ;;  %v696_v46 = vpop.f32.mrf.mxu0 }
 0x121   : > { %v752_v47 = vadd.f32 %v751_v45, %v732_v42  ;;  %v715_v48 = vpop.f32.mrf.mxu1  ;;  %v814_v45 = vld [vmem:[#allocation4 + $0x8] sm:$0xff] }
 0x122   : > { %v716_v51 = vadd.f32 %v715_v48, %v696_v46 }
 0x123   : > { %767 = vst [vmem:[%s1789_s13 + $0x18] sm:$0xff] %v752_v47  ;;  %v786_v52 = vadd.f32 %v785_v49, %v752_v47  ;;  %v820_v53 = vmul.f32 %v752_v47, %v752_v47  ;;  %v782_v49 = vld [vmem:[#allocation3 + $0x10] sm:$0xff] }
 0x124   : > { %770 = vst [vmem:[%s1789_s13 + $0x30] sm:$0xff] %v716_v51  ;;  %v823_v61 = vmul.f32 %v716_v51, %v716_v51  ;;  %v790_v3 = vadd.f32 %v789_v60, %v716_v51  ;;  %v815_v51 = vld [vmem:[#allocation4 + $0x10] sm:$0xff]  ;;  %v816_v60 = vld [vmem:[#allocation4 + $0x18] sm:$0xff] }
 0x125   : > { %787 = vadd.xlane.f32.xlu0 %v786_v52  ;;  %v835_v59 = vadd.f32 %v834_v54, %v820_v53 }
 0x126   : > { %v839_v8 = vadd.f32 %v838_v4, %v823_v61 }
 0x127   : > { %836 = vadd.xlane.f32.xlu2 %v835_v59  ;;  %v734_v62 = vpop.f32.mrf.mxu2 }
 0x128   : > { %v753_v63 = vpop.f32.mrf.mxu3  ;;  %v699_v0 = vpop.f32.mrf.mxu0 }
 0x129   : > { %v754_v1 = vadd.f32 %v753_v63, %v734_v62  ;;  %v718_v2 = vpop.f32.mrf.mxu1 }
 0x12a   : > { %v719_v5 = vadd.f32 %v718_v2, %v699_v0 }
 0x12b   : > { %771 = vst [vmem:[%s1789_s13 + $0x38] sm:$0xff] %v754_v1  ;;  %v791_v6 = vadd.f32 %v790_v3, %v754_v1  ;;  %v824_v7 = vmul.f32 %v754_v1, %v754_v1 }
 0x12c   : > { %774 = vst [vmem:[%s1789_s13 + $0x50] sm:$0xff] %v719_v5  ;;  %v827_v12 = vmul.f32 %v719_v5, %v719_v5  ;;  %v795_v58 = vadd.f32 %v794_v14, %v719_v5 }
 0x12d   : > { %792 = vadd.xlane.f32.xlu0 %v791_v6  ;;  %v840_v11 = vadd.f32 %v839_v8, %v824_v7 }
 0x12e   : > { %v844_v22 = vadd.f32 %v843_v18, %v827_v12 }
 0x12f   : > { %841 = vadd.xlane.f32.xlu2 %v840_v11  ;;  %v737_v13 = vpop.f32.mrf.mxu2 }
 0x130   : > { %v756_v15 = vpop.f32.mrf.mxu3  ;;  %v701_v16 = vpop.f32.mrf.mxu0 }
 0x131   : > { %v757_v17 = vadd.f32 %v756_v15, %v737_v13  ;;  %v720_v55 = vpop.f32.mrf.mxu1 }
 0x132   : > { %v721_v19 = vadd.f32 %v720_v55, %v701_v16 }
 0x133   : > { %775 = vst [vmem:[%s1789_s13 + $0x58] sm:$0xff] %v757_v17  ;;  %v796_v20 = vadd.f32 %v795_v58, %v757_v17  ;;  %v828_v21 = vmul.f32 %v757_v17, %v757_v17 }
 0x134   : > { %778 = vst [vmem:[%s1789_s13 + $0x70] sm:$0xff] %v721_v19  ;;  %v800_v28 = vadd.f32 %v799_v24, %v721_v19  ;;  %v831_v32 = vmul.f32 %v721_v19, %v721_v19 }
 0x135   : > { %797 = vadd.xlane.f32.xlu1 %v796_v20  ;;  %v845_v23 = vadd.f32 %v844_v22, %v828_v21 }
 0x136   : > { %v849_v37 = vadd.f32 %v848_v35, %v831_v32 }
 0x137   : > { %846 = vadd.xlane.f32.xlu0 %v845_v23  ;;  %v739_v25 = vpop.f32.mrf.mxu2 }
 0x138   : > { %v758_v26 = vpop.f32.mrf.mxu3 }
 0x139   : > { %v759_v27 = vadd.f32 %v758_v26, %v739_v25 }
 0x13b   : > { %779 = vst [vmem:[%s1789_s13 + $0x78] sm:$0xff] %v759_v27  ;;  %v801_v31 = vadd.f32 %v800_v28, %v759_v27  ;;  %v832_v34 = vmul.f32 %v759_v27, %v759_v27 }
 0x13d   : > { %802 = vadd.xlane.f32.xlu1 %v801_v31  ;;  %v850_v38 = vadd.f32 %v849_v37, %v832_v34 }
 0x145   : > { %851 = vadd.xlane.f32.xlu1 %v850_v38 }
 0x198   : > { %v788_v40 = vpop.xlane.xlu0 %787 }
 0x199   : > { %v804_v42 = vadd.f32 %v788_v40, %v780_v39 }
 0x19a   : > { %v837_v43 = vpop.xlane.xlu2 %836 }
 0x19b   : > { %809 = vst.msk [vmem:[#allocation3] sm:$0xff] %vm808_vm1, %v804_v42  ;;  %v853_v33 = vadd.f32 %v837_v43, %v813_v41 }
 0x19d   : > { %857 = vst.msk [vmem:[#allocation4] sm:$0xff] %vm808_vm1, %v853_v33 }
 0x1a0   : > { %v793_v44 = vpop.xlane.xlu0 %792 }
 0x1a1   : > { %v805_v46 = vadd.f32 %v793_v44, %v781_v36 }
 0x1a2   : > { %v842_v47 = vpop.xlane.xlu2 %841 }
 0x1a3   : > { %810 = vst.msk [vmem:[#allocation3 + $0x8] sm:$0xff] %vm808_vm1, %v805_v46  ;;  %v854_v48 = vadd.f32 %v842_v47, %v814_v45 }
 0x1a5   : > { %858 = vst.msk [vmem:[#allocation4 + $0x8] sm:$0xff] %vm808_vm1, %v854_v48 }
 0x1a8   : > { %v798_v50 = vpop.xlane.xlu1 %797 }
 0x1a9   : > { %v806_v52 = vadd.f32 %v798_v50, %v782_v49 }
 0x1aa   : > { %v847_v53 = vpop.xlane.xlu0 %846 }
 0x1ab   : > { %811 = vst.msk [vmem:[#allocation3 + $0x10] sm:$0xff] %vm808_vm1, %v806_v52  ;;  %v855_v54 = vadd.f32 %v847_v53, %v815_v51 }
 0x1ad   : > { %859 = vst.msk [vmem:[#allocation4 + $0x10] sm:$0xff] %vm808_vm1, %v855_v54 }
 0x1b0   : > { %v803_v57 = vpop.xlane.xlu1 %802 }
 0x1b1   : > { %v807_v59 = vadd.f32 %v803_v57, %v783_v56 }
 0x1b3   : > { %812 = vst.msk [vmem:[#allocation3 + $0x18] sm:$0xff] %vm808_vm1, %v807_v59 }
 0x1b7   : > { %864 = sbr.rel (%p1466_p5) target bundleno = 621 (0x26d), region = 44 }
 0x1b8   : > { %v852_v61 = vpop.xlane.xlu1 %851 }
 0x1b9   : > { %v856_v62 = vadd.f32 %v852_v61, %v816_v60 }
 0x1bb   : > { %860 = vst.msk [vmem:[#allocation4 + $0x18] sm:$0xff] %vm808_vm1, %v856_v62 }
 0x1bc   : > { %v867_v63 = vld [vmem:[#allocation3 + $0x10] sm:$0xff]  ;;  %v1569_v1 = vmov 0   ;;  %v865_v4 = vld [vmem:[#allocation3] sm:$0xff]  ;;  %v868_v8 = vld [vmem:[#allocation3 + $0x18] sm:$0xff] }
 0x1bd   : > { %v875_v0 = vld [vmem:[#allocation4 + $0x10] sm:$0xff]  ;;  %1550 = vset.pattern.permute.xlu1 %v1569_v1  ;;  %1549 = vset.pattern.permute.xlu0 %v1569_v1  ;;  %v1834_v2 = vmul.f32 0.00125, %v867_v63  ;;  %v873_v5 = vld [vmem:[#allocation4] sm:$0xff]  ;;  %v1836_v6 = vmul.f32 0.00125, %v865_v4 }
 0x1be   : > { %v879_v3 = vmul.f32 0.00125, %v875_v0  ;;  %v877_v7 = vmul.f32 0.00125, %v873_v5  ;;  %1551 = vset.pattern.permute.xlu2 %v1569_v1  ;;  %v1840_v10 = vmul.f32 0.00125, %v868_v8 }
 0x1bf   : > { %v883_v9 = vmul.f32 %v1834_v2, %v1834_v2  ;;  %v866_v12 = vld [vmem:[#allocation3 + $0x8] sm:$0xff]  ;;  %v881_v13 = vmul.f32 %v1836_v6, %v1836_v6  ;;  %v891_v45 = vld [vmem:[%s1965_s2 + $0x10] sm:$0xff]  ;;  %v889_v48 = vld [vmem:[%s1965_s2] sm:$0xff] }
 0x1c0   : > { %v1844_v15 = vmul.f32 0.00125, %v866_v12  ;;  %v874_v16 = vld [vmem:[#allocation4 + $0x8] sm:$0xff]  ;;  %v884_v55 = vmul.f32 %v1840_v10, %v1840_v10  ;;  %v941_v61 = vld [vmem:[%s1966_s3] sm:$0xff]  ;;  %v892_v62 = vld [vmem:[%s1965_s2 + $0x18] sm:$0xff] }
 0x1c1   : > { %v887_v17 = vsub.f32 %v879_v3, %v883_v9  ;;  %v878_v58 = vmul.f32 0.00125, %v874_v16  ;;  %v885_v18 = vsub.f32 %v877_v7, %v881_v13  ;;  %v890_v59 = vld [vmem:[%s1965_s2 + $0x8] sm:$0xff]  ;;  %v943_v12 = vld [vmem:[%s1966_s3 + $0x10] sm:$0xff]  ;;  %v1082_v33 = vld [vmem:[#allocation2 + $0xc0] sm:$0xff] }
 0x1c2   : > { %v876_v11 = vld [vmem:[#allocation4 + $0x18] sm:$0xff]  ;;  %v882_v19 = vmul.f32 %v1844_v15, %v1844_v15  ;;  %v942_v7 = vld [vmem:[%s1966_s3 + $0x8] sm:$0xff] }
 0x1c3   : > { %v880_v14 = vmul.f32 0.00125, %v876_v11  ;;  %v895_v20 = vadd.f32 1e-05, %v887_v17  ;;  %v893_v22 = vadd.f32 1e-05, %v885_v18 }
 0x1c4   : > { %v886_v23 = vsub.f32 %v878_v58, %v882_v19  ;;  %v954_v16 = vld [vmem:[#allocation2 + $0x8] sm:$0xff]  ;;  %v955_v58 = vld [vmem:[#allocation2 + $0x10] sm:$0xff]  ;;  %v956_v18 = vld [vmem:[#allocation2 + $0x18] sm:$0xff] }
 0x1c5   : > { %v888_v21 = vsub.f32 %v880_v14, %v884_v55  ;;  %1552 = vrsqrt.f32 %v895_v20  ;;  %vm923_vm2 = vweird.f32 %v895_v20  ;;  %vm903_vm4 = vweird.f32 %v893_v22  ;;  %v962_v17 = vld [vmem:[#allocation2 + $0x48] sm:$0xff]  ;;  %v964_v55 = vld [vmem:[#allocation2 + $0x58] sm:$0xff]  ;;  %v1074_v19 = vld [vmem:[#allocation2 + $0x80] sm:$0xff] }
 0x1c6   : > { %1554 = vrsqrt.f32 %v893_v22  ;;  %v894_v25 = vadd.f32 1e-05, %v886_v23  ;;  %v1077_v23 = vld [vmem:[#allocation2 + $0x98] sm:$0xff] }
 0x1c7   : > { %v896_v24 = vadd.f32 1e-05, %v888_v21  ;;  %v1075_v21 = vld [vmem:[#allocation2 + $0x88] sm:$0xff] }
 0x1c8   : > { %vm913_vm7 = vweird.f32 %v894_v25 }
 0x1c9   : > { %1556 = vrsqrt.f32 %v896_v24  ;;  %vm933_vm10 = vweird.f32 %v896_v24 }
 0x1ca   : > { %1558 = vrsqrt.f32 %v894_v25 }
 0x1cb   : > { %v1553_v26 = vpop.eup %1552 }
 0x1cc   : > { %v1555_v27 = vpop.eup %1554  ;;  %v918_v28 = vmul.f32 %v1553_v26, %v895_v20  ;;  %vm924_vm3 = vweird.f32 %v1553_v26 }
 0x1cd   : > { %v898_v30 = vmul.f32 %v1555_v27, %v893_v22  ;;  %vm904_vm5 = vweird.f32 %v1555_v27  ;;  %vm1850_vm6 = vmor %vm923_vm2, %vm924_vm3  ;;  %v1076_v22 = vld [vmem:[#allocation2 + $0x90] sm:$0xff] }
 0x1ce   : > { %v919_v32 = vmul.f32 %v1553_v26, %v918_v28  ;;  %vm905_vm9 = vmor %vm903_vm4, %vm904_vm5 }
 0x1cf   : > { %v1557_v29 = vpop.eup %1556  ;;  %v899_v35 = vmul.f32 %v1555_v27, %v898_v30 }
 0x1d0   : > { %v1559_v31 = vpop.eup %1558  ;;  %v928_v34 = vmul.f32 %v1557_v29, %v896_v24  ;;  %v920_v38 = vmul.f32 0.5, %v919_v32  ;;  %vm934_vm11 = vweird.f32 %v1557_v29 }
 0x1d1   : > { %v908_v37 = vmul.f32 %v1559_v31, %v894_v25  ;;  %v900_v40 = vmul.f32 0.5, %v899_v35  ;;  %vm914_vm8 = vweird.f32 %v1559_v31  ;;  %vm935_vm13 = vmor %vm933_vm10, %vm934_vm11 }
 0x1d2   : > { %v929_v39 = vmul.f32 %v1557_v29, %v928_v34  ;;  %v921_v42 = vsub.f32 1.5, %v920_v38  ;;  %vm915_vm12 = vmor %vm913_vm7, %vm914_vm8 }
 0x1d3   : > { %v909_v41 = vmul.f32 %v1559_v31, %v908_v37  ;;  %v901_v36 = vsub.f32 1.5, %v900_v40 }
 0x1d4   : > { %v930_v43 = vmul.f32 0.5, %v929_v39  ;;  %v922_v46 = vmul.f32 %v1553_v26, %v921_v42 }
 0x1d5   : > { %v910_v44 = vmul.f32 0.5, %v909_v41  ;;  %v902_v49 = vmul.f32 %v1555_v27, %v901_v36  ;;  %v1083_v36 = vld [vmem:[#allocation2 + $0xc8] sm:$0xff] }
 0x1d6   : > { %v931_v47 = vsub.f32 1.5, %v930_v43  ;;  %v926_v51 = vsel %vm1850_vm6, %v1553_v26, %v922_v46 }
 0x1d7   : > { %v911_v50 = vsub.f32 1.5, %v910_v44  ;;  %v939_v53 = vmul.f32 %v926_v51, %v891_v45  ;;  %v906_v54 = vsel %vm905_vm9, %v1555_v27, %v902_v49  ;;  %v958_v49 = vld [vmem:[#allocation2 + $0x28] sm:$0xff] }
 0x1d8   : > { %v932_v52 = vmul.f32 %v1557_v29, %v931_v47  ;;  %v937_v57 = vmul.f32 %v906_v54, %v889_v48  ;;  %v957_v48 = vld [vmem:[#allocation2 + $0x20] sm:$0xff] }
 0x1d9   : > { %v912_v56 = vmul.f32 %v1559_v31, %v911_v50  ;;  %981 = vperm.xlu1 %1550, %v939_v53   ;;  %v947_v9 = vmul.f32 %v939_v53, %v1834_v2  ;;  %v963_v2 = vld [vmem:[#allocation2 + $0x50] sm:$0xff] }
 0x1da   : > { %971 = vperm.xlu0 %1549, %v937_v57   ;;  %v936_v63 = vsel %vm935_vm13, %v1557_v29, %v932_v52  ;;  %v945_v0 = vmul.f32 %v937_v57, %v1836_v6  ;;  %v944_v6 = vld [vmem:[%s1966_s3 + $0x18] sm:$0xff]  ;;  %v959_v50 = vld [vmem:[#allocation2 + $0x30] sm:$0xff]  ;;  %v966_v57 = vld [vmem:[#allocation2 + $0x68] sm:$0xff] }
 0x1db   : > { %v916_v60 = vsel %vm915_vm12, %v1559_v31, %v912_v56  ;;  %v940_v4 = vmul.f32 %v936_v63, %v892_v62  ;;  %v951_v14 = vsub.f32 %v943_v12, %v947_v9  ;;  %v965_v56 = vld [vmem:[#allocation2 + $0x60] sm:$0xff]  ;;  %v960_v63 = vld [vmem:[#allocation2 + $0x38] sm:$0xff] }
 0x1dc   : > { %v938_v1 = vmul.f32 %v916_v60, %v890_v59  ;;  %v949_v3 = vsub.f32 %v941_v61, %v945_v0  ;;  %v1078_v0 = vld [vmem:[#allocation2 + $0xa0] sm:$0xff] }
 0x1dd   : > { %v948_v8 = vmul.f32 %v940_v4, %v1840_v10  ;;  %v961_v10 = vld [vmem:[#allocation2 + $0x40] sm:$0xff] }
 0x1de   : > { %1007 = vperm.xlu2 %1551, %v949_v3   ;;  %v946_v5 = vmul.f32 %v938_v1, %v1844_v15  ;;  %v953_v15 = vld [vmem:[#allocation2] sm:$0xff] }
 0x1df   : > { %v952_v13 = vsub.f32 %v944_v6, %v948_v8  ;;  %v1081_v8 = vld [vmem:[#allocation2 + $0xb8] sm:$0xff] }
 0x1e0   : > { %v950_v11 = vsub.f32 %v942_v7, %v946_v5  ;;  %v1079_v5 = vld [vmem:[#allocation2 + $0xa8] sm:$0xff]  ;;  %v1080_v7 = vld [vmem:[#allocation2 + $0xb0] sm:$0xff] }
 0x1e1   : > { %986 = vperm.xlu1 %1550, %v940_v4  }
 0x1e2   : > { %976 = vperm.xlu0 %1549, %v938_v1  }
 0x1e6   : > { %1012 = vperm.xlu2 %1551, %v950_v11  }
 0x1e9   : > { %1022 = vperm.xlu1 %1550, %v952_v13  }
 0x1ea   : > { %1017 = vperm.xlu0 %1549, %v951_v14  }
 0x238   : > { %v1008_v25 = vpop.permute.xlu2 %1007 }
 0x24b   : > { %v1884_v20 = vpop.permute.xlu1 %981 }
 0x24c   : > { %v972_v24 = vpop.permute.xlu0 %971  ;;  %v1887_v26 = vmul.f32 %v1884_v20, %v961_v10  ;;  %v1890_v27 = vmul.f32 %v1884_v20, %v962_v17  ;;  %v1893_v28 = vmul.f32 %v1884_v20, %v963_v2  ;;  %v1896_v29 = vmul.f32 %v1884_v20, %v964_v55 }
 0x24d   : > { %v989_v30 = vmul.f32 %v972_v24, %v953_v15  ;;  %v990_v31 = vmul.f32 %v972_v24, %v954_v16  ;;  %v991_v32 = vmul.f32 %v972_v24, %v955_v58  ;;  %v992_v34 = vmul.f32 %v972_v24, %v956_v18 }
 0x24e   : > { %v1090_v35 = vmul.f32 %v1074_v19, %v972_v24  ;;  %v1091_v37 = vmul.f32 %v1075_v21, %v972_v24  ;;  %v1092_v38 = vmul.f32 %v1076_v22, %v972_v24  ;;  %v1093_v39 = vmul.f32 %v1077_v23, %v972_v24  ;;  %v1013_v21 = vpop.permute.xlu2 %1012 }
 0x24f   : > { %v1025_v40 = vadd.f32 %v1008_v25, %v989_v30  ;;  %v1026_v41 = vadd.f32 %v1008_v25, %v990_v31  ;;  %v1027_v42 = vadd.f32 %v1008_v25, %v991_v32  ;;  %v1028_v43 = vadd.f32 %v1008_v25, %v992_v34 }
 0x250   : > { %v1106_v44 = vadd.f32 %v1090_v35, %v1008_v25  ;;  %v1107_v45 = vadd.f32 %v1091_v37, %v1008_v25  ;;  %v1108_v46 = vadd.f32 %v1092_v38, %v1008_v25  ;;  %v1109_v47 = vadd.f32 %v1093_v39, %v1008_v25  ;;  %v967_v35 = vld [vmem:[#allocation2 + $0x70] sm:$0xff]  ;;  %v968_v37 = vld [vmem:[#allocation2 + $0x78] sm:$0xff] }
 0x251   : > { %v1041_v51 = vmax.f32 %v1025_v40, 0.0  ;;  %v1042_v52 = vmax.f32 %v1026_v41, 0.0  ;;  %v1043_v53 = vmax.f32 %v1027_v42, 0.0  ;;  %v1044_v54 = vmax.f32 %v1028_v43, 0.0  ;;  %v1086_v42 = vld [vmem:[#allocation2 + $0xe0] sm:$0xff]  ;;  %v1087_v43 = vld [vmem:[#allocation2 + $0xe8] sm:$0xff] }
 0x252   : > { %v1122_v59 = vmax.f32 %v1106_v44, 0.0  ;;  %v1123_v60 = vmax.f32 %v1107_v45, 0.0  ;;  %v1124_v61 = vmax.f32 %v1108_v46, 0.0  ;;  %v1125_v62 = vmax.f32 %v1109_v47, 0.0  ;;  %v1088_v46 = vld [vmem:[#allocation2 + $0xf0] sm:$0xff]  ;;  %v1089_v47 = vld [vmem:[#allocation2 + $0xf8] sm:$0xff] }
 0x253   : > { %v1057_v1 = vpack.c.bf16 %v1042_v52, %v1041_v51  ;;  %v1058_v3 = vpack.c.bf16 %v1044_v54, %v1043_v53  ;;  %v987_v4 = vpop.permute.xlu1 %986  ;;  %v1899_v9 = vmul.f32 %v1082_v33, %v1884_v20  ;;  %v1902_v6 = vmul.f32 %v1083_v36, %v1884_v20 }
 0x254   : > { %v1138_v11 = vpack.c.bf16 %v1123_v60, %v1122_v59  ;;  %v1139_v12 = vpack.c.bf16 %v1125_v62, %v1124_v61  ;;  %v977_v13 = vpop.permute.xlu0 %976  ;;  %v1001_v14 = vmul.f32 %v987_v4, %v965_v56  ;;  %v1002_v15 = vmul.f32 %v987_v4, %v966_v57 }
 0x255   : > { %1065 = vst [vmem:[%s1967_s4] sm:$0xff] %v1057_v1  ;;  %v993_v16 = vmul.f32 %v977_v13, %v957_v48  ;;  %v994_v10 = vmul.f32 %v977_v13, %v958_v49  ;;  %v995_v17 = vmul.f32 %v977_v13, %v959_v50  ;;  %v996_v2 = vmul.f32 %v977_v13, %v960_v63 }
 0x256   : > { %1066 = vst [vmem:[%s1967_s4 + $0x8] sm:$0xff] %v1058_v3  ;;  %v1094_v55 = vmul.f32 %v1078_v0, %v977_v13  ;;  %v1095_v58 = vmul.f32 %v1079_v5, %v977_v13  ;;  %v1096_v18 = vmul.f32 %v1080_v7, %v977_v13  ;;  %v1097_v19 = vmul.f32 %v1081_v8, %v977_v13  ;;  %v1084_v5 = vld [vmem:[#allocation2 + $0xd0] sm:$0xff] }
 0x257   : > { %1146 = vst [vmem:[%s1967_s4 + $0x10] sm:$0xff] %v1138_v11  ;;  %v1029_v22 = vadd.f32 %v1013_v21, %v993_v16  ;;  %v1030_v23 = vadd.f32 %v1013_v21, %v994_v10  ;;  %v1031_v24 = vadd.f32 %v1013_v21, %v995_v17  ;;  %v1032_v25 = vadd.f32 %v1013_v21, %v996_v2 }
 0x258   : > { %1147 = vst [vmem:[%s1967_s4 + $0x18] sm:$0xff] %v1139_v12  ;;  %v1110_v30 = vadd.f32 %v1094_v55, %v1013_v21  ;;  %v1111_v31 = vadd.f32 %v1095_v58, %v1013_v21  ;;  %v1112_v32 = vadd.f32 %v1096_v18, %v1013_v21  ;;  %v1113_v34 = vadd.f32 %v1097_v19, %v1013_v21 }
 0x259   : > { %v1045_v38 = vmax.f32 %v1029_v22, 0.0  ;;  %v1046_v39 = vmax.f32 %v1030_v23, 0.0  ;;  %v1047_v40 = vmax.f32 %v1031_v24, 0.0  ;;  %v1048_v41 = vmax.f32 %v1032_v25, 0.0 }
 0x25a   : > { %v1126_v33 = vmax.f32 %v1110_v30, 0.0  ;;  %v1127_v36 = vmax.f32 %v1111_v31, 0.0  ;;  %v1128_v44 = vmax.f32 %v1112_v32, 0.0  ;;  %v1129_v45 = vmax.f32 %v1113_v34, 0.0 }
 0x25b   : > { %v1059_v48 = vpack.c.bf16 %v1046_v39, %v1045_v38  ;;  %v1060_v49 = vpack.c.bf16 %v1048_v41, %v1047_v40  ;;  %v1003_v50 = vmul.f32 %v987_v4, %v967_v35  ;;  %v1004_v51 = vmul.f32 %v987_v4, %v968_v37  ;;  %v1023_v52 = vpop.permute.xlu1 %1022 }
 0x25c   : > { %v1140_v53 = vpack.c.bf16 %v1127_v36, %v1126_v33  ;;  %v1141_v54 = vpack.c.bf16 %v1129_v45, %v1128_v44  ;;  %v1102_v56 = vmul.f32 %v1086_v42, %v987_v4  ;;  %v1103_v57 = vmul.f32 %v1087_v43, %v987_v4  ;;  %v1018_v13 = vpop.permute.xlu0 %1017 }
 0x25d   : > { %1067 = vst [vmem:[%s1967_s4 + $0x20] sm:$0xff] %v1059_v48  ;;  %v1104_v59 = vmul.f32 %v1088_v46, %v987_v4  ;;  %v1105_v60 = vmul.f32 %v1089_v47, %v987_v4  ;;  %v1037_v61 = vadd.f32 %v1023_v52, %v1001_v14  ;;  %v1038_v62 = vadd.f32 %v1023_v52, %v1002_v15  ;;  %v1085_v4 = vld [vmem:[#allocation2 + $0xd8] sm:$0xff] }
 0x25e   : > { %1068 = vst [vmem:[%s1967_s4 + $0x28] sm:$0xff] %v1060_v49  ;;  %v1039_v63 = vadd.f32 %v1023_v52, %v1003_v50  ;;  %v1040_v0 = vadd.f32 %v1023_v52, %v1004_v51  ;;  %v1118_v1 = vadd.f32 %v1102_v56, %v1023_v52  ;;  %v1119_v3 = vadd.f32 %v1103_v57, %v1023_v52 }
 0x25f   : > { %1148 = vst [vmem:[%s1967_s4 + $0x30] sm:$0xff] %v1140_v53  ;;  %v1053_v7 = vmax.f32 %v1037_v61, 0.0  ;;  %v1054_v8 = vmax.f32 %v1038_v62, 0.0  ;;  %v1120_v11 = vadd.f32 %v1104_v59, %v1023_v52  ;;  %v1121_v12 = vadd.f32 %v1105_v60, %v1023_v52 }
 0x260   : > { %1149 = vst [vmem:[%s1967_s4 + $0x38] sm:$0xff] %v1141_v54  ;;  %v1055_v14 = vmax.f32 %v1039_v63, 0.0  ;;  %v1056_v15 = vmax.f32 %v1040_v0, 0.0  ;;  %v1134_v16 = vmax.f32 %v1118_v1, 0.0  ;;  %v1135_v10 = vmax.f32 %v1119_v3, 0.0 }
 0x261   : > { %v1063_v17 = vpack.c.bf16 %v1054_v8, %v1053_v7  ;;  %v1136_v2 = vmax.f32 %v1120_v11, 0.0  ;;  %v1137_v55 = vmax.f32 %v1121_v12, 0.0  ;;  %v1100_v58 = vmul.f32 %v1084_v5, %v1884_v20 }
 0x262   : > { %v1064_v18 = vpack.c.bf16 %v1056_v15, %v1055_v14  ;;  %v1144_v19 = vpack.c.bf16 %v1135_v10, %v1134_v16  ;;  %v1101_v21 = vmul.f32 %v1085_v4, %v1884_v20  ;;  %v1033_v22 = vadd.f32 %v1018_v13, %v1887_v26 }
 0x263   : > { %1071 = vst [vmem:[%s1967_s4 + $0x60] sm:$0xff] %v1063_v17  ;;  %v1145_v23 = vpack.c.bf16 %v1137_v55, %v1136_v2  ;;  %v1034_v24 = vadd.f32 %v1018_v13, %v1890_v27  ;;  %v1035_v25 = vadd.f32 %v1018_v13, %v1893_v28  ;;  %v1036_v30 = vadd.f32 %v1018_v13, %v1896_v29 }
 0x264   : > { %1072 = vst [vmem:[%s1967_s4 + $0x68] sm:$0xff] %v1064_v18  ;;  %v1049_v31 = vmax.f32 %v1033_v22, 0.0  ;;  %v1114_v20 = vadd.f32 %v1899_v9, %v1018_v13  ;;  %v1115_v26 = vadd.f32 %v1902_v6, %v1018_v13  ;;  %v1116_v32 = vadd.f32 %v1100_v58, %v1018_v13 }
 0x265   : > { %1152 = vst [vmem:[%s1967_s4 + $0x70] sm:$0xff] %v1144_v19  ;;  %v1050_v34 = vmax.f32 %v1034_v24, 0.0  ;;  %v1051_v27 = vmax.f32 %v1035_v25, 0.0  ;;  %v1052_v35 = vmax.f32 %v1036_v30, 0.0  ;;  %v1117_v28 = vadd.f32 %v1101_v21, %v1018_v13 }
 0x266   : > { %1153 = vst [vmem:[%s1967_s4 + $0x78] sm:$0xff] %v1145_v23  ;;  %v1130_v29 = vmax.f32 %v1114_v20, 0.0  ;;  %v1131_v37 = vmax.f32 %v1115_v26, 0.0  ;;  %v1132_v38 = vmax.f32 %v1116_v32, 0.0 }
 0x267   : > { %v1061_v39 = vpack.c.bf16 %v1050_v34, %v1049_v31  ;;  %v1062_v9 = vpack.c.bf16 %v1052_v35, %v1051_v27  ;;  %v1133_v40 = vmax.f32 %v1117_v28, 0.0 }
 0x268   : > { %v1142_v6 = vpack.c.bf16 %v1131_v37, %v1130_v29 }
 0x269   : > { %1069 = vst [vmem:[%s1967_s4 + $0x40] sm:$0xff] %v1061_v39  ;;  %v1143_v41 = vpack.c.bf16 %v1133_v40, %v1132_v38 }
 0x26a   : > { %1070 = vst [vmem:[%s1967_s4 + $0x48] sm:$0xff] %v1062_v9 }
 0x26b   : > { %1150 = vst [vmem:[%s1967_s4 + $0x50] sm:$0xff] %v1142_v6 }
 0x26c   : > { %1151 = vst [vmem:[%s1967_s4 + $0x58] sm:$0xff] %v1143_v41 }
 0x26d PF: > { %s14_s15 = sadd.s32 1, %s1566_s15  }
 0x26e   : > { %p11_p6 = scmp.ge.s32.totalorder %s14_s15, 4  }
 0x270   :  { %13 = sbr.rel (!%p11_p6) target bundleno = 1 (0x1), region = 72 }

// kernel: dqn_forward.5
= control target key start
LH: loop header
LB: loop body
LE: loop exit
PB: predicated region body
PF: predicated region fallthrough
CT: control target
= control target key end

     0   :  { %vm21_vm0 = vcmask 7168   ;;  %s2462_s0 = inlined_call_operand.vmem [shape: bf16[256,512], index: 0, kind: input, shape index: {}]   ;;  %s2463_s1 = inlined_call_operand.vmem [shape: bf16[64,512], index: 1, kind: input, shape index: {}]   ;;  %s2464_s2 = inlined_call_operand.vmem [shape: f32[64,1], index: 2, kind: input, shape index: {}]   ;;  %s2465_s3 = inlined_call_operand.vmem [shape: f32[64,1], index: 3, kind: input, shape index: {}]   ;;  %s2466_s4 = inlined_call_operand.vmem [shape: bf16[64,256], index: 4, kind: output, shape index: {}]  }
   0x1   :  { %v1403_v0 = vld [vmem:[%s2462_s0 + $0xe0] sm:$0xf]  ;;  %v1591_v1 = vld [vmem:[%s2462_s0 + $0xec] sm:$0xf0]  ;;  %v1589_v2 = vld [vmem:[%s2462_s0 + $0xe4] sm:$0xf] }
   0x2   :  { %v1404_v3 = vor.u32 %v1591_v1, %v1403_v0  ;;  %v1405_v4 = vld [vmem:[%s2462_s0 + $0xf0] sm:$0xf0]  ;;  %v1411_v5 = vld [vmem:[%s2462_s0 + $0xe8] sm:$0xf]  ;;  %v1592_v6 = vld [vmem:[%s2462_s0 + $0xf4] sm:$0xf0] }
   0x3   :  { %v1408_v7 = vor.u32 %v1589_v2, %v1405_v4  ;;  %v1412_v8 = vor.u32 %v1592_v6, %v1411_v5  ;;  %v1590_v9 = vld [vmem:[%s2462_s0 + $0xec] sm:$0xf]  ;;  %v1413_v10 = vld [vmem:[%s2462_s0 + $0xf8] sm:$0xf0]  ;;  %v1387_v12 = vld [vmem:[%s2462_s0 + $0xc0] sm:$0xf] }
   0x4   :  { %518 = vmatpush.bf16.xpose.msra.mxu0 %v1404_v3  ;;  %v1416_v11 = vor.u32 %v1590_v9, %v1413_v10  ;;  %v1587_v13 = vld [vmem:[%s2462_s0 + $0xcc] sm:$0xf0]  ;;  %v1585_v14 = vld [vmem:[%s2462_s0 + $0xc4] sm:$0xf]  ;;  %v1389_v15 = vld [vmem:[%s2462_s0 + $0xd0] sm:$0xf0] }
   0x5   :  { %547 = vmatpush.bf16.xpose.msra.mxu1 %v1408_v7  ;;  %576 = vmatpush.bf16.xpose.msra.mxu2 %v1412_v8  ;;  %v1395_v16 = vld [vmem:[%s2462_s0 + $0xc8] sm:$0xf]  ;;  %v1588_v17 = vld [vmem:[%s2462_s0 + $0xd4] sm:$0xf0]  ;;  %v1586_v18 = vld [vmem:[%s2462_s0 + $0xcc] sm:$0xf]  ;;  %v1388_v20 = vor.u32 %v1587_v13, %v1387_v12  ;;  %v1392_v21 = vor.u32 %v1585_v14, %v1389_v15 }
   0x6   :  { %605 = vmatpush.bf16.xpose.msra.mxu3 %v1416_v11  ;;  %v1397_v19 = vld [vmem:[%s2462_s0 + $0xd8] sm:$0xf0]  ;;  %v1396_v22 = vor.u32 %v1588_v17, %v1395_v16  ;;  %v1371_v24 = vld [vmem:[%s2462_s0 + $0xa0] sm:$0xf]  ;;  %v1583_v25 = vld [vmem:[%s2462_s0 + $0xac] sm:$0xf0] }
   0x7   :  { %v1400_v23 = vor.u32 %v1586_v18, %v1397_v19  ;;  %v1581_v26 = vld [vmem:[%s2462_s0 + $0xa4] sm:$0xf]  ;;  %v1373_v27 = vld [vmem:[%s2462_s0 + $0xb0] sm:$0xf0]  ;;  %v1379_v28 = vld [vmem:[%s2462_s0 + $0xa8] sm:$0xf]  ;;  %v1372_v32 = vor.u32 %v1583_v25, %v1371_v24 }
   0x8   :  { %v1584_v29 = vld [vmem:[%s2462_s0 + $0xb4] sm:$0xf0]  ;;  %v1582_v30 = vld [vmem:[%s2462_s0 + $0xac] sm:$0xf]  ;;  %v1381_v31 = vld [vmem:[%s2462_s0 + $0xb8] sm:$0xf0]  ;;  %v1376_v33 = vor.u32 %v1581_v26, %v1373_v27 }
   0x9   :  { %v1380_v34 = vor.u32 %v1584_v29, %v1379_v28  ;;  %v1384_v35 = vor.u32 %v1582_v30, %v1381_v31  ;;  %v1355_v36 = vld [vmem:[%s2462_s0 + $0x80] sm:$0xf]  ;;  %v1579_v37 = vld [vmem:[%s2462_s0 + $0x8c] sm:$0xf0]  ;;  %v1577_v38 = vld [vmem:[%s2462_s0 + $0x84] sm:$0xf] }
   0xa   :  { %v1357_v39 = vld [vmem:[%s2462_s0 + $0x90] sm:$0xf0]  ;;  %v1363_v40 = vld [vmem:[%s2462_s0 + $0x88] sm:$0xf]  ;;  %v1580_v41 = vld [vmem:[%s2462_s0 + $0x94] sm:$0xf0]  ;;  %v1356_v44 = vor.u32 %v1579_v37, %v1355_v36 }
   0xb   :  { %v1578_v42 = vld [vmem:[%s2462_s0 + $0x8c] sm:$0xf]  ;;  %v1365_v43 = vld [vmem:[%s2462_s0 + $0x98] sm:$0xf0]  ;;  %v1360_v45 = vor.u32 %v1577_v38, %v1357_v39  ;;  %v1364_v46 = vor.u32 %v1580_v41, %v1363_v40  ;;  %v1339_v48 = vld [vmem:[%s2462_s0 + $0x60] sm:$0xf] }
   0xc   :  { %519 = vmatpush.bf16.xpose.msra.mxu0 %v1388_v20  ;;  %v1368_v47 = vor.u32 %v1578_v42, %v1365_v43  ;;  %v1575_v49 = vld [vmem:[%s2462_s0 + $0x6c] sm:$0xf0]  ;;  %v1573_v50 = vld [vmem:[%s2462_s0 + $0x64] sm:$0xf]  ;;  %v1341_v51 = vld [vmem:[%s2462_s0 + $0x70] sm:$0xf0] }
   0xd   :  { %548 = vmatpush.bf16.xpose.msra.mxu1 %v1392_v21  ;;  %577 = vmatpush.bf16.xpose.msra.mxu2 %v1396_v22  ;;  %v1347_v52 = vld [vmem:[%s2462_s0 + $0x68] sm:$0xf]  ;;  %v1576_v53 = vld [vmem:[%s2462_s0 + $0x74] sm:$0xf0]  ;;  %v1574_v54 = vld [vmem:[%s2462_s0 + $0x6c] sm:$0xf]  ;;  %v1340_v56 = vor.u32 %v1575_v49, %v1339_v48  ;;  %v1344_v57 = vor.u32 %v1573_v50, %v1341_v51 }
   0xe   :  { %606 = vmatpush.bf16.xpose.msra.mxu3 %v1400_v23  ;;  %v1349_v55 = vld [vmem:[%s2462_s0 + $0x78] sm:$0xf0]  ;;  %v1348_v58 = vor.u32 %v1576_v53, %v1347_v52  ;;  %v1323_v60 = vld [vmem:[%s2462_s0 + $0x40] sm:$0xf]  ;;  %v1571_v61 = vld [vmem:[%s2462_s0 + $0x4c] sm:$0xf0] }
   0xf   :  { %v1352_v59 = vor.u32 %v1574_v54, %v1349_v55  ;;  %v1569_v62 = vld [vmem:[%s2462_s0 + $0x44] sm:$0xf]  ;;  %v1325_v63 = vld [vmem:[%s2462_s0 + $0x50] sm:$0xf0]  ;;  %v1331_v0 = vld [vmem:[%s2462_s0 + $0x48] sm:$0xf]  ;;  %v1324_v4 = vor.u32 %v1571_v61, %v1323_v60 }
  0x10   :  { %v1572_v1 = vld [vmem:[%s2462_s0 + $0x54] sm:$0xf0]  ;;  %v1570_v2 = vld [vmem:[%s2462_s0 + $0x4c] sm:$0xf]  ;;  %v1333_v3 = vld [vmem:[%s2462_s0 + $0x58] sm:$0xf0]  ;;  %v1328_v5 = vor.u32 %v1569_v62, %v1325_v63 }
  0x11   :  { %v1332_v6 = vor.u32 %v1572_v1, %v1331_v0  ;;  %v1336_v7 = vor.u32 %v1570_v2, %v1333_v3  ;;  %v1307_v8 = vld [vmem:[%s2462_s0 + $0x20] sm:$0xf]  ;;  %v1567_v9 = vld [vmem:[%s2462_s0 + $0x2c] sm:$0xf0]  ;;  %v1565_v10 = vld [vmem:[%s2462_s0 + $0x24] sm:$0xf] }
  0x12   :  { %v1309_v11 = vld [vmem:[%s2462_s0 + $0x30] sm:$0xf0]  ;;  %v1315_v12 = vld [vmem:[%s2462_s0 + $0x28] sm:$0xf]  ;;  %v1568_v13 = vld [vmem:[%s2462_s0 + $0x34] sm:$0xf0]  ;;  %v1308_v16 = vor.u32 %v1567_v9, %v1307_v8 }
  0x13   :  { %v1566_v14 = vld [vmem:[%s2462_s0 + $0x2c] sm:$0xf]  ;;  %v1317_v15 = vld [vmem:[%s2462_s0 + $0x38] sm:$0xf0]  ;;  %v1312_v17 = vor.u32 %v1565_v10, %v1309_v11  ;;  %v1316_v18 = vor.u32 %v1568_v13, %v1315_v12  ;;  %v1291_v20 = vld [vmem:[%s2462_s0] sm:$0xf] }
  0x14   :  { %520 = vmatpush.bf16.xpose.msra.mxu0 %v1372_v32  ;;  %v1320_v19 = vor.u32 %v1566_v14, %v1317_v15  ;;  %v1563_v21 = vld [vmem:[%s2462_s0 + $0xc] sm:$0xf0]  ;;  %v1561_v22 = vld [vmem:[%s2462_s0 + $0x4] sm:$0xf]  ;;  %v1293_v23 = vld [vmem:[%s2462_s0 + $0x10] sm:$0xf0] }
  0x15   :  { %549 = vmatpush.bf16.xpose.msra.mxu1 %v1376_v33  ;;  %578 = vmatpush.bf16.xpose.msra.mxu2 %v1380_v34  ;;  %v1299_v24 = vld [vmem:[%s2462_s0 + $0x8] sm:$0xf]  ;;  %v1564_v25 = vld [vmem:[%s2462_s0 + $0x14] sm:$0xf0]  ;;  %v1562_v26 = vld [vmem:[%s2462_s0 + $0xc] sm:$0xf]  ;;  %v1292_v31 = vor.u32 %v1563_v21, %v1291_v20 }
  0x16   :  { %607 = vmatpush.bf16.xpose.msra.mxu3 %v1384_v35  ;;  %v1301_v27 = vld [vmem:[%s2462_s0 + $0x18] sm:$0xf0]  ;;  %v1539_v28 = vld [vmem:[%s2462_s0 + $0x1e8] sm:$0xf]  ;;  %v1624_v29 = vld [vmem:[%s2462_s0 + $0x1f4] sm:$0xf0]  ;;  %v1296_v35 = vor.u32 %v1561_v22, %v1293_v23  ;;  %v1300_v36 = vor.u32 %v1564_v25, %v1299_v24 }
  0x17   :  { %v1531_v30 = vld [vmem:[%s2462_s0 + $0x1e0] sm:$0xf]  ;;  %v1623_v32 = vld [vmem:[%s2462_s0 + $0x1ec] sm:$0xf0]  ;;  %v1621_v33 = vld [vmem:[%s2462_s0 + $0x1e4] sm:$0xf]  ;;  %v1304_v39 = vor.u32 %v1562_v26, %v1301_v27  ;;  %v1540_v40 = vor.u32 %v1624_v29, %v1539_v28 }
  0x18   :  { %v1533_v34 = vld [vmem:[%s2462_s0 + $0x1f0] sm:$0xf0]  ;;  %v1622_v37 = vld [vmem:[%s2462_s0 + $0x1ec] sm:$0xf]  ;;  %v1541_v38 = vld [vmem:[%s2462_s0 + $0x1f8] sm:$0xf0]  ;;  %v1532_v41 = vor.u32 %v1623_v32, %v1531_v30 }
  0x19   :  { %v1536_v42 = vor.u32 %v1621_v33, %v1533_v34  ;;  %v1227_v43 = vld [vmem:[%s2463_s1] sm:$0xf]  ;;  %v1235_v48 = vld [vmem:[%s2463_s1 + $0x8] sm:$0xf]  ;;  %v1548_v49 = vld [vmem:[%s2463_s1 + $0x14] sm:$0xf0] }
  0x1a   :  { %v1546_v50 = vld [vmem:[%s2463_s1 + $0xc] sm:$0xf]  ;;  %v1237_v51 = vld [vmem:[%s2463_s1 + $0x18] sm:$0xf0]  ;;  %v1523_v53 = vld [vmem:[%s2462_s0 + $0x1c8] sm:$0xf] }
  0x1b   :  { %v1620_v54 = vld [vmem:[%s2462_s0 + $0x1d4] sm:$0xf0]  ;;  %v1515_v55 = vld [vmem:[%s2462_s0 + $0x1c0] sm:$0xf]  ;;  %v1517_v60 = vld [vmem:[%s2462_s0 + $0x1d0] sm:$0xf0]  ;;  %v1937_v61 = vor.u32 %v1546_v50, %v1237_v51 }
  0x1c   :  { %521 = vmatpush.bf16.xpose.msra.mxu0 %v1356_v44  ;;  %v1547_v44 = vld [vmem:[%s2463_s1 + $0xc] sm:$0xf0]  ;;  %v1618_v62 = vld [vmem:[%s2462_s0 + $0x1cc] sm:$0xf]  ;;  %v1525_v63 = vld [vmem:[%s2462_s0 + $0x1d8] sm:$0xf0]  ;;  %v1524_v0 = vor.u32 %v1620_v54, %v1523_v53 }
  0x1d   :  { %550 = vmatpush.bf16.xpose.msra.mxu1 %v1360_v45  ;;  %579 = vmatpush.bf16.xpose.msra.mxu2 %v1364_v46  ;;  %v1545_v45 = vld [vmem:[%s2463_s1 + $0x4] sm:$0xf]  ;;  %v1544_v46 = vor.u32 %v1622_v37, %v1541_v38  ;;  %v1913_v52 = vor.u32 %v1547_v44, %v1227_v43  ;;  %v1528_v3 = vor.u32 %v1618_v62, %v1525_v63  ;;  %v1501_v9 = vld [vmem:[%s2462_s0 + $0x1b0] sm:$0xf0]  ;;  %v1614_v10 = vld [vmem:[%s2462_s0 + $0x1ac] sm:$0xf] }
  0x1e   :  { %608 = vmatpush.bf16.xpose.msra.mxu3 %v1368_v47  ;;  %v1229_v47 = vld [vmem:[%s2463_s1 + $0x10] sm:$0xf0]  ;;  %v1613_v8 = vld [vmem:[%s2462_s0 + $0x1a4] sm:$0xf]  ;;  %v1509_v11 = vld [vmem:[%s2462_s0 + $0x1b8] sm:$0xf0] }
  0x1f   :  { %v1504_v14 = vor.u32 %v1613_v8, %v1501_v9  ;;  %v1243_v15 = vld [vmem:[%s2463_s1 + $0x20] sm:$0xf]  ;;  %v1251_v20 = vld [vmem:[%s2463_s1 + $0x28] sm:$0xf]  ;;  %v1552_v21 = vld [vmem:[%s2463_s1 + $0x34] sm:$0xf0] }
  0x20   :  { %v1550_v22 = vld [vmem:[%s2463_s1 + $0x2c] sm:$0xf]  ;;  %v1253_v23 = vld [vmem:[%s2463_s1 + $0x38] sm:$0xf0]  ;;  %v1491_v25 = vld [vmem:[%s2462_s0 + $0x188] sm:$0xf]  ;;  %v2010_v29 = vor.u32 %v1552_v21, %v1251_v20 }
  0x21   :  { %v1612_v26 = vld [vmem:[%s2462_s0 + $0x194] sm:$0xf0]  ;;  %v1483_v27 = vld [vmem:[%s2462_s0 + $0x180] sm:$0xf]  ;;  %v1611_v30 = vld [vmem:[%s2462_s0 + $0x18c] sm:$0xf0]  ;;  %v2021_v33 = vor.u32 %v1550_v22, %v1253_v23 }
  0x22   :  { %v1485_v32 = vld [vmem:[%s2462_s0 + $0x190] sm:$0xf0]  ;;  %v1610_v34 = vld [vmem:[%s2462_s0 + $0x18c] sm:$0xf]  ;;  %v1484_v37 = vor.u32 %v1611_v30, %v1483_v27  ;;  %v1607_v43 = vld [vmem:[%s2462_s0 + $0x16c] sm:$0xf0] }
  0x23   :  { %v1605_v44 = vld [vmem:[%s2462_s0 + $0x164] sm:$0xf]  ;;  %v1259_v51 = vld [vmem:[%s2463_s1 + $0x40] sm:$0xf]  ;;  %v1555_v53 = vld [vmem:[%s2463_s1 + $0x4c] sm:$0xf0] }
  0x24   :  { %522 = vmatpush.bf16.xpose.msra.mxu0 %v1340_v56  ;;  %v1924_v56 = vor.u32 %v1545_v45, %v1229_v47  ;;  %v1469_v45 = vld [vmem:[%s2462_s0 + $0x170] sm:$0xf0]  ;;  %v1477_v47 = vld [vmem:[%s2462_s0 + $0x178] sm:$0xf0]  ;;  %v1553_v54 = vld [vmem:[%s2463_s1 + $0x44] sm:$0xf] }
  0x25   :  { %551 = vmatpush.bf16.xpose.msra.mxu1 %v1344_v57  ;;  %580 = vmatpush.bf16.xpose.msra.mxu2 %v1348_v58  ;;  %v1926_v57 = vor.u32 %v1548_v49, %v1235_v48  ;;  %v1619_v58 = vld [vmem:[%s2462_s0 + $0x1cc] sm:$0xf0]  ;;  %v1472_v50 = vor.u32 %v1605_v44, %v1469_v45  ;;  %v1554_v62 = vld [vmem:[%s2463_s1 + $0x4c] sm:$0xf]  ;;  %v1269_v63 = vld [vmem:[%s2463_s1 + $0x58] sm:$0xf0] }
  0x26   :  { %609 = vmatpush.bf16.xpose.msra.mxu3 %v1352_v59  ;;  %v1617_v59 = vld [vmem:[%s2462_s0 + $0x1c4] sm:$0xf]  ;;  %v1516_v1 = vor.u32 %v1619_v58, %v1515_v55  ;;  %v1261_v58 = vld [vmem:[%s2463_s1 + $0x50] sm:$0xf0]  ;;  %v2105_v9 = vor.u32 %v1554_v62, %v1269_v63  ;;  %v1598_v22 = vld [vmem:[%s2462_s0 + $0x12c] sm:$0xf] }
  0x27   :  { %v1520_v2 = vor.u32 %v1617_v59, %v1517_v60  ;;  %v1267_v59 = vld [vmem:[%s2463_s1 + $0x48] sm:$0xf]  ;;  %v1556_v60 = vld [vmem:[%s2463_s1 + $0x54] sm:$0xf0]  ;;  %v1453_v8 = vld [vmem:[%s2462_s0 + $0x150] sm:$0xf0] }
  0x28   :  { %v1597_v20 = vld [vmem:[%s2462_s0 + $0x124] sm:$0xf]  ;;  %v1437_v21 = vld [vmem:[%s2462_s0 + $0x130] sm:$0xf0]  ;;  %v1445_v23 = vld [vmem:[%s2462_s0 + $0x138] sm:$0xf0] }
  0x29   :  { %v1440_v27 = vor.u32 %v1597_v20, %v1437_v21  ;;  %v1275_v30 = vld [vmem:[%s2463_s1 + $0x60] sm:$0xf] }
  0x2c   :  { %523 = vmatpush.bf16.xpose.msra.mxu0 %v1324_v4  ;;  %v1507_v4 = vld [vmem:[%s2462_s0 + $0x1a8] sm:$0xf] }
  0x2d   :  { %552 = vmatpush.bf16.xpose.msra.mxu1 %v1328_v5  ;;  %581 = vmatpush.bf16.xpose.msra.mxu2 %v1332_v6  ;;  %v1616_v5 = vld [vmem:[%s2462_s0 + $0x1b4] sm:$0xf0]  ;;  %v1499_v6 = vld [vmem:[%s2462_s0 + $0x1a0] sm:$0xf] }
  0x2e   :  { %610 = vmatpush.bf16.xpose.msra.mxu3 %v1336_v7  ;;  %v1615_v7 = vld [vmem:[%s2462_s0 + $0x1ac] sm:$0xf0]  ;;  %v1508_v12 = vor.u32 %v1616_v5, %v1507_v4  ;;  %v2092_v4 = vor.u32 %v1553_v54, %v1261_v58  ;;  %v2094_v5 = vor.u32 %v1556_v60, %v1267_v59 }
  0x2f   :  { %v1500_v13 = vor.u32 %v1615_v7, %v1499_v6  ;;  %v1603_v6 = vld [vmem:[%s2462_s0 + $0x14c] sm:$0xf0]  ;;  %v1601_v7 = vld [vmem:[%s2462_s0 + $0x144] sm:$0xf] }
  0x34   :  { %524 = vmatpush.bf16.xpose.msra.mxu0 %v1308_v16  ;;  %v1551_v16 = vld [vmem:[%s2463_s1 + $0x2c] sm:$0xf0] }
  0x35   :  { %553 = vmatpush.bf16.xpose.msra.mxu1 %v1312_v17  ;;  %582 = vmatpush.bf16.xpose.msra.mxu2 %v1316_v18  ;;  %v1549_v17 = vld [vmem:[%s2463_s1 + $0x24] sm:$0xf]  ;;  %v1512_v18 = vor.u32 %v1614_v10, %v1509_v11  ;;  %v1997_v24 = vor.u32 %v1551_v16, %v1243_v15  ;;  %v1602_v10 = vld [vmem:[%s2462_s0 + $0x14c] sm:$0xf]  ;;  %v1461_v11 = vld [vmem:[%s2462_s0 + $0x158] sm:$0xf0] }
  0x36   :  { %611 = vmatpush.bf16.xpose.msra.mxu3 %v1320_v19  ;;  %v1245_v19 = vld [vmem:[%s2463_s1 + $0x30] sm:$0xf0]  ;;  %v1464_v15 = vor.u32 %v1602_v10, %v1461_v11  ;;  %v1443_v16 = vld [vmem:[%s2462_s0 + $0x128] sm:$0xf] }
  0x37   :  { %v2008_v28 = vor.u32 %v1549_v17, %v1245_v19  ;;  %v1600_v17 = vld [vmem:[%s2462_s0 + $0x134] sm:$0xf0]  ;;  %v1599_v19 = vld [vmem:[%s2462_s0 + $0x12c] sm:$0xf0] }
  0x3c   :  { %525 = vmatpush.bf16.xpose.msra.mxu0 %v1292_v31  ;;  %v1609_v31 = vld [vmem:[%s2462_s0 + $0x184] sm:$0xf] }
  0x3d   :  { %554 = vmatpush.bf16.xpose.msra.mxu1 %v1296_v35  ;;  %583 = vmatpush.bf16.xpose.msra.mxu2 %v1300_v36  ;;  %v1493_v35 = vld [vmem:[%s2462_s0 + $0x198] sm:$0xf0]  ;;  %v1492_v36 = vor.u32 %v1612_v26, %v1491_v25  ;;  %v1488_v38 = vor.u32 %v1609_v31, %v1485_v32  ;;  %v1444_v25 = vor.u32 %v1600_v17, %v1443_v16  ;;  %v1559_v31 = vld [vmem:[%s2463_s1 + $0x6c] sm:$0xf0]  ;;  %v1557_v32 = vld [vmem:[%s2463_s1 + $0x64] sm:$0xf] }
  0x3e   :  { %612 = vmatpush.bf16.xpose.msra.mxu3 %v1304_v39  ;;  %v1496_v39 = vor.u32 %v1610_v34, %v1493_v35  ;;  %v1448_v34 = vor.u32 %v1598_v22, %v1445_v23  ;;  %v1277_v35 = vld [vmem:[%s2463_s1 + $0x70] sm:$0xf0] }
  0x3f   :  { %v1280_v44 = vor.u32 %v1557_v32, %v1277_v35 }
  0x43   :  { %526 = vmatmul.bf16.vlgmr.msra.gmra.mxu0 %v1913_v52 }
  0x44   :  { %634 = vmatpush.bf16.xpose.msrb.mxu0 %v1532_v41  ;;  %555 = vmatmul.bf16.vlgmr.msra.gmra.mxu1 %v1924_v56  ;;  %v1608_v41 = vld [vmem:[%s2462_s0 + $0x174] sm:$0xf0] }
  0x45   :  { %692 = vmatpush.bf16.xpose.msrb.mxu2 %v1540_v40  ;;  %663 = vmatpush.bf16.xpose.msrb.mxu1 %v1536_v42  ;;  %v1475_v40 = vld [vmem:[%s2462_s0 + $0x168] sm:$0xf]  ;;  %v1467_v42 = vld [vmem:[%s2462_s0 + $0x160] sm:$0xf] }
  0x46   :  { %721 = vmatpush.bf16.xpose.msrb.mxu3 %v1544_v46  ;;  %584 = vmatmul.bf16.vlgmr.msra.gmra.mxu2 %v1926_v57  ;;  %v1606_v46 = vld [vmem:[%s2462_s0 + $0x16c] sm:$0xf]  ;;  %v1476_v48 = vor.u32 %v1608_v41, %v1475_v40  ;;  %v1468_v49 = vor.u32 %v1607_v43, %v1467_v42  ;;  %v1276_v40 = vor.u32 %v1559_v31, %v1275_v30  ;;  %v1427_v41 = vld [vmem:[%s2462_s0 + $0x108] sm:$0xf]  ;;  %v1596_v42 = vld [vmem:[%s2462_s0 + $0x114] sm:$0xf0] }
  0x47   :  { %613 = vmatmul.bf16.vlgmr.msra.gmra.mxu3 %v1937_v61  ;;  %v1480_v55 = vor.u32 %v1606_v46, %v1477_v47  ;;  %v1419_v43 = vld [vmem:[%s2462_s0 + $0x100] sm:$0xf]  ;;  %v1595_v46 = vld [vmem:[%s2462_s0 + $0x10c] sm:$0xf0]  ;;  %v1593_v47 = vld [vmem:[%s2462_s0 + $0x104] sm:$0xf] }
  0x48   :  { %v1420_v54 = vor.u32 %v1595_v46, %v1419_v43 }
  0x4c   :  { %635 = vmatpush.bf16.xpose.msrb.mxu0 %v1516_v1  ;;  %v1459_v1 = vld [vmem:[%s2462_s0 + $0x148] sm:$0xf] }
  0x4d   :  { %693 = vmatpush.bf16.xpose.msrb.mxu2 %v1524_v0  ;;  %664 = vmatpush.bf16.xpose.msrb.mxu1 %v1520_v2  ;;  %v2081_v0 = vor.u32 %v1555_v53, %v1259_v51  ;;  %v1604_v2 = vld [vmem:[%s2462_s0 + $0x154] sm:$0xf0]  ;;  %v1429_v51 = vld [vmem:[%s2462_s0 + $0x118] sm:$0xf0]  ;;  %v1428_v53 = vor.u32 %v1596_v42, %v1427_v41 }
  0x4e   :  { %722 = vmatpush.bf16.xpose.msrb.mxu3 %v1528_v3  ;;  %v1451_v3 = vld [vmem:[%s2462_s0 + $0x140] sm:$0xf] }
  0x53   :  { %531 = vmatmul.bf16.gmra.mxu0 %v1997_v24 }
  0x54   :  { %636 = vmatpush.bf16.xpose.msrb.mxu0 %v1500_v13  ;;  %560 = vmatmul.bf16.gmra.mxu1 %v2008_v28  ;;  %v1452_v13 = vor.u32 %v1603_v6, %v1451_v3 }
  0x55   :  { %694 = vmatpush.bf16.xpose.msrb.mxu2 %v1508_v12  ;;  %665 = vmatpush.bf16.xpose.msrb.mxu1 %v1504_v14  ;;  %v1460_v12 = vor.u32 %v1604_v2, %v1459_v1  ;;  %v1456_v14 = vor.u32 %v1601_v7, %v1453_v8 }
  0x56   :  { %723 = vmatpush.bf16.xpose.msrb.mxu3 %v1512_v18  ;;  %589 = vmatmul.bf16.gmra.mxu2 %v2010_v29  ;;  %v1435_v18 = vld [vmem:[%s2462_s0 + $0x120] sm:$0xf] }
  0x57   :  { %618 = vmatmul.bf16.gmra.mxu3 %v2021_v33  ;;  %v1436_v26 = vor.u32 %v1599_v19, %v1435_v18 }
  0x5c   :  { %637 = vmatpush.bf16.xpose.msrb.mxu0 %v1484_v37  ;;  %v1560_v37 = vld [vmem:[%s2463_s1 + $0x74] sm:$0xf0] }
  0x5d   :  { %695 = vmatpush.bf16.xpose.msrb.mxu2 %v1492_v36  ;;  %666 = vmatpush.bf16.xpose.msrb.mxu1 %v1488_v38  ;;  %v1283_v36 = vld [vmem:[%s2463_s1 + $0x68] sm:$0xf]  ;;  %v1558_v38 = vld [vmem:[%s2463_s1 + $0x6c] sm:$0xf] }
  0x5e   :  { %724 = vmatpush.bf16.xpose.msrb.mxu3 %v1496_v39  ;;  %v1285_v39 = vld [vmem:[%s2463_s1 + $0x78] sm:$0xf0]  ;;  %v1284_v45 = vor.u32 %v1560_v37, %v1283_v36 }
  0x63   :  { %536 = vmatmul.bf16.gmra.mxu0 %v2081_v0 }
  0x64   :  { %638 = vmatpush.bf16.xpose.msrb.mxu0 %v1468_v49  ;;  %565 = vmatmul.bf16.gmra.mxu1 %v2092_v4  ;;  %v1288_v49 = vor.u32 %v1558_v38, %v1285_v39 }
  0x65   :  { %696 = vmatpush.bf16.xpose.msrb.mxu2 %v1476_v48  ;;  %667 = vmatpush.bf16.xpose.msrb.mxu1 %v1472_v50  ;;  %v1421_v48 = vld [vmem:[%s2462_s0 + $0x110] sm:$0xf0]  ;;  %v1594_v50 = vld [vmem:[%s2462_s0 + $0x10c] sm:$0xf] }
  0x66   :  { %725 = vmatpush.bf16.xpose.msrb.mxu3 %v1480_v55  ;;  %594 = vmatmul.bf16.gmra.mxu2 %v2094_v5  ;;  %v1424_v55 = vor.u32 %v1593_v47, %v1421_v48  ;;  %v1432_v58 = vor.u32 %v1594_v50, %v1429_v51 }
  0x67   :  { %623 = vmatmul.bf16.gmra.mxu3 %v2105_v9 }
  0x6c   :  { %639 = vmatpush.bf16.xpose.msrb.mxu0 %v1452_v13 }
  0x6d   :  { %697 = vmatpush.bf16.xpose.msrb.mxu2 %v1460_v12  ;;  %668 = vmatpush.bf16.xpose.msrb.mxu1 %v1456_v14 }
  0x6e   :  { %726 = vmatpush.bf16.xpose.msrb.mxu3 %v1464_v15 }
  0x73   :  { %541 = vmatmul.bf16.gmra.mxu0 %v1276_v40 }
  0x74   :  { %640 = vmatpush.bf16.xpose.msrb.mxu0 %v1436_v26  ;;  %570 = vmatmul.bf16.gmra.mxu1 %v1280_v44 }
  0x75   :  { %698 = vmatpush.bf16.xpose.msrb.mxu2 %v1444_v25  ;;  %669 = vmatpush.bf16.xpose.msrb.mxu1 %v1440_v27 }
  0x76   :  { %727 = vmatpush.bf16.xpose.msrb.mxu3 %v1448_v34  ;;  %599 = vmatmul.bf16.gmra.mxu2 %v1284_v45 }
  0x77   :  { %628 = vmatmul.bf16.gmra.mxu3 %v1288_v49 }
  0x7c   :  { %641 = vmatpush.bf16.xpose.msrb.mxu0 %v1420_v54 }
  0x7d   :  { %699 = vmatpush.bf16.xpose.msrb.mxu2 %v1428_v53  ;;  %670 = vmatpush.bf16.xpose.msrb.mxu1 %v1424_v55 }
  0x7e   :  { %728 = vmatpush.bf16.xpose.msrb.mxu3 %v1432_v58 }
  0x83   :  { %642 = vmatmul.bf16.vlgmr.msrb.gmra.mxu0 %v1913_v52 }
  0x84   :  { %671 = vmatmul.bf16.vlgmr.msrb.gmra.mxu1 %v1924_v56 }
  0x86   :  { %700 = vmatmul.bf16.vlgmr.msrb.gmra.mxu2 %v1926_v57 }
  0x87   :  { %729 = vmatmul.bf16.vlgmr.msrb.gmra.mxu3 %v1937_v61 }
  0x93   :  { %647 = vmatmul.bf16.gmra.mxu0 %v1997_v24 }
  0x94   :  { %676 = vmatmul.bf16.gmra.mxu1 %v2008_v28 }
  0x96   :  { %705 = vmatmul.bf16.gmra.mxu2 %v2010_v29 }
  0x97   :  { %734 = vmatmul.bf16.gmra.mxu3 %v2021_v33 }
  0xa3   :  { %652 = vmatmul.bf16.gmra.mxu0 %v2081_v0 }
  0xa4   :  { %681 = vmatmul.bf16.gmra.mxu1 %v2092_v4 }
  0xa6   :  { %710 = vmatmul.bf16.gmra.mxu2 %v2094_v5 }
  0xa7   :  { %739 = vmatmul.bf16.gmra.mxu3 %v2105_v9 }
  0xb3   :  { %657 = vmatmul.bf16.gmra.mxu0 %v1276_v40 }
  0xb4   :  { %686 = vmatmul.bf16.gmra.mxu1 %v1280_v44 }
  0xb6   :  { %715 = vmatmul.bf16.gmra.mxu2 %v1284_v45 }
  0xb7   :  { %744 = vmatmul.bf16.gmra.mxu3 %v1288_v49 }
  0xc0   :  { %v527_v52 = vpop.f32.mrf.mxu0 }
  0xc1   :  { %v556_v56 = vpop.f32.mrf.mxu1 }
  0xc2   :  { %v557_v57 = vadd.f32 %v556_v56, %v527_v52 }
  0xc8   :  { %v529_v29 = vpop.f32.mrf.mxu0 }
  0xc9   :  { %v585_v61 = vpop.f32.mrf.mxu2  ;;  %v558_v33 = vpop.f32.mrf.mxu1 }
  0xca   :  { %v586_v24 = vadd.f32 %v585_v61, %v557_v57  ;;  %v614_v28 = vpop.f32.mrf.mxu3  ;;  %v559_v60 = vadd.f32 %v558_v33, %v529_v29 }
  0xcc   :  { %v2201_v59 = vadd.f32 %v614_v28, %v586_v24 }
  0xce   :  { %v826_v57 = vmul.f32 %v2201_v59, %v2201_v59 }
  0xd0   :  { %v532_v1 = vpop.f32.mrf.mxu0 }
  0xd1   :  { %v587_v62 = vpop.f32.mrf.mxu2  ;;  %v561_v2 = vpop.f32.mrf.mxu1 }
  0xd2   :  { %v588_v63 = vadd.f32 %v587_v62, %v559_v60  ;;  %v616_v0 = vpop.f32.mrf.mxu3  ;;  %v562_v4 = vadd.f32 %v561_v2, %v532_v1 }
  0xd4   :  { %v2203_v3 = vadd.f32 %v616_v0, %v588_v63 }
  0xd8   :  { %v534_v8 = vpop.f32.mrf.mxu0 }
  0xd9   :  { %v590_v5 = vpop.f32.mrf.mxu2  ;;  %v563_v9 = vpop.f32.mrf.mxu1 }
  0xda   :  { %v591_v6 = vadd.f32 %v590_v5, %v562_v4  ;;  %v619_v7 = vpop.f32.mrf.mxu3  ;;  %v564_v11 = vadd.f32 %v563_v9, %v534_v8 }
  0xdc   :  { %v2205_v10 = vadd.f32 %v619_v7, %v591_v6 }
  0xe0   :  { %v537_v15 = vpop.f32.mrf.mxu0 }
  0xe1   :  { %v592_v12 = vpop.f32.mrf.mxu2  ;;  %v566_v16 = vpop.f32.mrf.mxu1 }
  0xe2   :  { %v593_v13 = vadd.f32 %v592_v12, %v564_v11  ;;  %v621_v14 = vpop.f32.mrf.mxu3  ;;  %v567_v18 = vadd.f32 %v566_v16, %v537_v15  ;;  %v828_v12 = vmul.f32 %v2203_v3, %v2203_v3 }
  0xe4   :  { %v2207_v17 = vadd.f32 %v621_v14, %v593_v13 }
  0xe8   :  { %v539_v22 = vpop.f32.mrf.mxu0 }
  0xe9   :  { %v595_v19 = vpop.f32.mrf.mxu2  ;;  %v568_v23 = vpop.f32.mrf.mxu1 }
  0xea   :  { %v596_v20 = vadd.f32 %v595_v19, %v567_v18  ;;  %v624_v21 = vpop.f32.mrf.mxu3  ;;  %v569_v26 = vadd.f32 %v568_v23, %v539_v22 }
  0xec   :  { %v2209_v25 = vadd.f32 %v624_v21, %v596_v20 }
  0xf0   :  { %v542_v32 = vpop.f32.mrf.mxu0 }
  0xf1   :  { %v597_v27 = vpop.f32.mrf.mxu2  ;;  %v571_v34 = vpop.f32.mrf.mxu1 }
  0xf2   :  { %v598_v30 = vadd.f32 %v597_v27, %v569_v26  ;;  %v626_v31 = vpop.f32.mrf.mxu3  ;;  %v572_v36 = vadd.f32 %v571_v34, %v542_v32  ;;  %v830_v26 = vmul.f32 %v2205_v10, %v2205_v10 }
  0xf4   :  { %v2211_v35 = vadd.f32 %v626_v31, %v598_v30  ;;  %v832_v31 = vmul.f32 %v2207_v17, %v2207_v17 }
  0xf8   :  { %v544_v40 = vpop.f32.mrf.mxu0 }
  0xf9   :  { %v600_v37 = vpop.f32.mrf.mxu2  ;;  %v573_v41 = vpop.f32.mrf.mxu1 }
  0xfa   :  { %v601_v38 = vadd.f32 %v600_v37, %v572_v36  ;;  %v629_v39 = vpop.f32.mrf.mxu3  ;;  %v574_v43 = vadd.f32 %v573_v41, %v544_v40  ;;  %v1646_v41 = vmov 0.0  }
  0xfb   :  { %22 = vst.msk [vmem:[#allocation3] sm:$0xff] %vm21_vm0, %v1646_v41 }
  0xfc   :  { %v2213_v42 = vadd.f32 %v629_v39, %v601_v38  ;;  %23 = vst.msk [vmem:[#allocation3 + $0x8] sm:$0xff] %vm21_vm0, %v1646_v41 }
  0xfd   :  { %24 = vst.msk [vmem:[#allocation3 + $0x10] sm:$0xff] %vm21_vm0, %v1646_v41 }
  0xfe   :  { %25 = vst.msk [vmem:[#allocation3 + $0x18] sm:$0xff] %vm21_vm0, %v1646_v41 }
  0xff   :  { %26 = vst.msk [vmem:[#allocation3 + $0x20] sm:$0xff] %vm21_vm0, %v1646_v41 }
 0x100   :  { %v643_v47 = vpop.f32.mrf.mxu0  ;;  %27 = vst.msk [vmem:[#allocation3 + $0x28] sm:$0xff] %vm21_vm0, %v1646_v41 }
 0x101   :  { %v602_v44 = vpop.f32.mrf.mxu2  ;;  %v672_v48 = vpop.f32.mrf.mxu1  ;;  %28 = vst.msk [vmem:[#allocation3 + $0x30] sm:$0xff] %vm21_vm0, %v1646_v41 }
 0x102   :  { %v603_v45 = vadd.f32 %v602_v44, %v574_v43  ;;  %v631_v46 = vpop.f32.mrf.mxu3  ;;  %v673_v50 = vadd.f32 %v672_v48, %v643_v47  ;;  %29 = vst.msk [vmem:[#allocation3 + $0x38] sm:$0xff] %vm21_vm0, %v1646_v41 }
 0x103   :  { %30 = vst.msk [vmem:[#allocation4] sm:$0xff] %vm21_vm0, %v1646_v41 }
 0x104   :  { %v2215_v49 = vadd.f32 %v631_v46, %v603_v45  ;;  %v834_v45 = vmul.f32 %v2209_v25, %v2209_v25  ;;  %31 = vst.msk [vmem:[#allocation4 + $0x8] sm:$0xff] %vm21_vm0, %v1646_v41 }
 0x105   :  { %32 = vst.msk [vmem:[#allocation4 + $0x10] sm:$0xff] %vm21_vm0, %v1646_v41 }
 0x106   :  { %33 = vst.msk [vmem:[#allocation4 + $0x18] sm:$0xff] %vm21_vm0, %v1646_v41 }
 0x107   :  { %34 = vst.msk [vmem:[#allocation4 + $0x20] sm:$0xff] %vm21_vm0, %v1646_v41 }
 0x108   :  { %v645_v55 = vpop.f32.mrf.mxu0  ;;  %35 = vst.msk [vmem:[#allocation4 + $0x28] sm:$0xff] %vm21_vm0, %v1646_v41 }
 0x109   :  { %v701_v51 = vpop.f32.mrf.mxu2  ;;  %v674_v58 = vpop.f32.mrf.mxu1  ;;  %36 = vst.msk [vmem:[#allocation4 + $0x30] sm:$0xff] %vm21_vm0, %v1646_v41 }
 0x10a   :  { %v702_v53 = vadd.f32 %v701_v51, %v673_v50  ;;  %v730_v54 = vpop.f32.mrf.mxu3  ;;  %v675_v24 = vadd.f32 %v674_v58, %v645_v55  ;;  %37 = vst.msk [vmem:[#allocation4 + $0x38] sm:$0xff] %vm21_vm0, %v1646_v41 }
 0x10c   :  { %v2217_v52 = vadd.f32 %v730_v54, %v702_v53 }
 0x10e   :  { %v777_v56 = vadd.f32 %v2217_v52, %v2201_v59  ;;  %v827_v61 = vmul.f32 %v2217_v52, %v2217_v52 }
 0x110   :  { %778 = vadd.xlane.f32.xlu0 %v777_v56  ;;  %v842_v28 = vadd.f32 %v827_v61, %v826_v57  ;;  %v648_v62 = vpop.f32.mrf.mxu0  ;;  %v836_v61 = vmul.f32 %v2211_v35, %v2211_v35 }
 0x111   :  { %v703_v29 = vpop.f32.mrf.mxu2  ;;  %v677_v63 = vpop.f32.mrf.mxu1 }
 0x112   :  { %v704_v33 = vadd.f32 %v703_v29, %v675_v24  ;;  %v732_v60 = vpop.f32.mrf.mxu3  ;;  %843 = vadd.xlane.f32.xlu2 %v842_v28  ;;  %v678_v1 = vadd.f32 %v677_v63, %v648_v62 }
 0x114   :  { %v2225_v0 = vadd.f32 %v732_v60, %v704_v33 }
 0x116   :  { %v780_v2 = vadd.f32 %v2225_v0, %v2203_v3  ;;  %v829_v8 = vmul.f32 %v2225_v0, %v2225_v0 }
 0x118   :  { %781 = vadd.xlane.f32.xlu0 %v780_v2  ;;  %v650_v7 = vpop.f32.mrf.mxu0  ;;  %v845_v14 = vadd.f32 %v829_v8, %v828_v12 }
 0x119   :  { %v706_v4 = vpop.f32.mrf.mxu2  ;;  %v679_v9 = vpop.f32.mrf.mxu1 }
 0x11a   :  { %v707_v5 = vadd.f32 %v706_v4, %v678_v1  ;;  %v735_v6 = vpop.f32.mrf.mxu3  ;;  %v680_v15 = vadd.f32 %v679_v9, %v650_v7 }
 0x11c   :  { %v2231_v11 = vadd.f32 %v735_v6, %v707_v5  ;;  %v838_v5 = vmul.f32 %v2213_v42, %v2213_v42 }
 0x11e   :  { %v783_v13 = vadd.f32 %v2231_v11, %v2205_v10  ;;  %v831_v21 = vmul.f32 %v2231_v11, %v2231_v11 }
 0x120   :  { %784 = vadd.xlane.f32.xlu1 %v783_v13  ;;  %846 = vadd.xlane.f32.xlu0 %v845_v14  ;;  %v653_v20 = vpop.f32.mrf.mxu0  ;;  %v848_v30 = vadd.f32 %v831_v21, %v830_v26 }
 0x121   :  { %v708_v16 = vpop.f32.mrf.mxu2  ;;  %v682_v22 = vpop.f32.mrf.mxu1 }
 0x122   :  { %v709_v18 = vadd.f32 %v708_v16, %v680_v15  ;;  %v737_v19 = vpop.f32.mrf.mxu3  ;;  %v683_v27 = vadd.f32 %v682_v22, %v653_v20  ;;  %v840_v16 = vmul.f32 %v2215_v49, %v2215_v49  ;;  %v769_v20 = vld [vmem:[#allocation3] sm:$0xff] }
 0x123   :  { %v818_v22 = vld [vmem:[#allocation4] sm:$0xff] }
 0x124   :  { %v2239_v23 = vadd.f32 %v737_v19, %v709_v18 }
 0x126   :  { %v833_v32 = vmul.f32 %v2239_v23, %v2239_v23  ;;  %v786_v44 = vadd.f32 %v2239_v23, %v2207_v17 }
 0x128   :  { %849 = vadd.xlane.f32.xlu1 %v848_v30  ;;  %v851_v34 = vadd.f32 %v833_v32, %v832_v31  ;;  %v655_v39 = vpop.f32.mrf.mxu0  ;;  %v770_v31 = vld [vmem:[#allocation3 + $0x8] sm:$0xff]  ;;  %v1647_v32 = vmov 0  }
 0x129   :  { %v711_v36 = vpop.f32.mrf.mxu2  ;;  %v684_v40 = vpop.f32.mrf.mxu1  ;;  %1627 = vset.pattern.permute.xlu1 %v1647_v32  ;;  %1628 = vset.pattern.permute.xlu2 %v1647_v32 }
 0x12a   :  { %v712_v37 = vadd.f32 %v711_v36, %v683_v27  ;;  %v740_v38 = vpop.f32.mrf.mxu3  ;;  %852 = vadd.xlane.f32.xlu2 %v851_v34  ;;  %v685_v47 = vadd.f32 %v684_v40, %v655_v39  ;;  %1629 = vset.pattern.permute.xlu0 %v1647_v32 }
 0x12c   :  { %v2248_v43 = vadd.f32 %v740_v38, %v712_v37 }
 0x12e   :  { %v835_v46 = vmul.f32 %v2248_v43, %v2248_v43  ;;  %v789_v48 = vadd.f32 %v2248_v43, %v2209_v25 }
 0x130   :  { %787 = vadd.xlane.f32.xlu1 %v786_v44  ;;  %v854_v50 = vadd.f32 %v835_v46, %v834_v45  ;;  %v658_v55 = vpop.f32.mrf.mxu0  ;;  %v771_v44 = vld [vmem:[#allocation3 + $0x10] sm:$0xff]  ;;  %v819_v45 = vld [vmem:[#allocation4 + $0x8] sm:$0xff] }
 0x131   :  { %v713_v51 = vpop.f32.mrf.mxu2  ;;  %v687_v58 = vpop.f32.mrf.mxu1 }
 0x132   :  { %v714_v53 = vadd.f32 %v713_v51, %v685_v47  ;;  %v742_v54 = vpop.f32.mrf.mxu3  ;;  %790 = vadd.xlane.f32.xlu2 %v789_v48  ;;  %855 = vadd.xlane.f32.xlu0 %v854_v50  ;;  %v688_v57 = vadd.f32 %v687_v58, %v658_v55  ;;  %v820_v55 = vld [vmem:[#allocation4 + $0x10] sm:$0xff] }
 0x134   :  { %v2266_v56 = vadd.f32 %v742_v54, %v714_v53 }
 0x136   :  { %v837_v24 = vmul.f32 %v2266_v56, %v2266_v56  ;;  %v792_v29 = vadd.f32 %v2266_v56, %v2211_v35 }
 0x138   :  { %v857_v28 = vadd.f32 %v837_v24, %v836_v61  ;;  %v660_v1 = vpop.f32.mrf.mxu0 }
 0x139   :  { %v716_v33 = vpop.f32.mrf.mxu2  ;;  %v689_v2 = vpop.f32.mrf.mxu1 }
 0x13a   :  { %v717_v60 = vadd.f32 %v716_v33, %v688_v57  ;;  %v745_v62 = vpop.f32.mrf.mxu3  ;;  %858 = vadd.xlane.f32.xlu1 %v857_v28  ;;  %793 = vadd.xlane.f32.xlu2 %v792_v29  ;;  %v690_v7 = vadd.f32 %v689_v2, %v660_v1  ;;  %v821_v57 = vld [vmem:[#allocation4 + $0x18] sm:$0xff] }
 0x13c   :  { %v2281_v63 = vadd.f32 %v745_v62, %v717_v60 }
 0x13e   :  { %v795_v4 = vadd.f32 %v2281_v63, %v2213_v42  ;;  %v839_v6 = vmul.f32 %v2281_v63, %v2281_v63 }
 0x140   :  { %796 = vadd.xlane.f32.xlu0 %v795_v4  ;;  %v860_v8 = vadd.f32 %v839_v6, %v838_v5  ;;  %v772_v6 = vld [vmem:[#allocation3 + $0x18] sm:$0xff] }
 0x141   :  { %v718_v9 = vpop.f32.mrf.mxu2 }
 0x142   :  { %v719_v12 = vadd.f32 %v718_v9, %v690_v7  ;;  %861 = vadd.xlane.f32.xlu2 %v860_v8  ;;  %v747_v13 = vpop.f32.mrf.mxu3 }
 0x144   :  { %v2289_v14 = vadd.f32 %v747_v13, %v719_v12  ;;  %v773_v13 = vld [vmem:[#allocation3 + $0x20] sm:$0xff] }
 0x146   :  { %v798_v15 = vadd.f32 %v2289_v14, %v2215_v49  ;;  %v841_v18 = vmul.f32 %v2289_v14, %v2289_v14 }
 0x148   :  { %799 = vadd.xlane.f32.xlu1 %v798_v15  ;;  %v863_v19 = vadd.f32 %v841_v18, %v840_v16  ;;  %v822_v15 = vld [vmem:[#allocation4 + $0x20] sm:$0xff] }
 0x14a   :  { %864 = vadd.xlane.f32.xlu0 %v863_v19 }
 0x183   :  { %v779_v21 = vpop.xlane.xlu0 %778 }
 0x184   :  { %v801_v26 = vadd.f32 %v779_v21, %v769_v20 }
 0x185   :  { %v844_v27 = vpop.xlane.xlu2 %843 }
 0x186   :  { %810 = vst.msk [vmem:[#allocation3] sm:$0xff] %vm21_vm0, %v801_v26  ;;  %v866_v30 = vadd.f32 %v844_v27, %v818_v22  ;;  %v933_v22 = vld [vmem:[%s2464_s2] sm:$0xff] }
 0x188   :  { %874 = vst.msk [vmem:[#allocation4] sm:$0xff] %vm21_vm0, %v866_v30 }
 0x18b   :  { %v782_v34 = vpop.xlane.xlu0 %781 }
 0x18c   :  { %v802_v36 = vadd.f32 %v782_v34, %v770_v31 }
 0x18d   :  { %v885_v37 = vld [vmem:[#allocation3] sm:$0xff] }
 0x18e   :  { %811 = vst.msk [vmem:[#allocation3 + $0x8] sm:$0xff] %vm21_vm0, %v802_v36  ;;  %v2300_v38 = vmul.f32 0.0061728396, %v885_v37 }
 0x18f   :  { %v901_v39 = vld [vmem:[#allocation4] sm:$0xff] }
 0x190   :  { %v909_v40 = vmul.f32 0.0061728396, %v901_v39  ;;  %v917_v41 = vmul.f32 %v2300_v38, %v2300_v38 }
 0x192   :  { %v925_v46 = vsub.f32 %v909_v40, %v917_v41 }
 0x193   :  { %v785_v47 = vpop.xlane.xlu1 %784  ;;  %v847_v48 = vpop.xlane.xlu0 %846 }
 0x194   :  { %v803_v50 = vadd.f32 %v785_v47, %v771_v44  ;;  %v867_v51 = vadd.f32 %v847_v48, %v819_v45  ;;  %v941_v53 = vadd.f32 1e-05, %v925_v46  ;;  %v823_v44 = vld [vmem:[#allocation4 + $0x28] sm:$0xff] }
 0x195   :  { %v886_v54 = vld [vmem:[#allocation3 + $0x8] sm:$0xff] }
 0x196   :  { %812 = vst.msk [vmem:[#allocation3 + $0x10] sm:$0xff] %vm21_vm0, %v803_v50  ;;  %1630 = vrsqrt.f32 %v941_v53  ;;  %v2306_v61 = vmul.f32 0.0061728396, %v886_v54  ;;  %vm955_vm2 = vweird.f32 %v941_v53  ;;  %v774_v45 = vld [vmem:[#allocation3 + $0x28] sm:$0xff] }
 0x197   :  { %875 = vst.msk [vmem:[#allocation4 + $0x8] sm:$0xff] %vm21_vm0, %v867_v51 }
 0x198   :  { %v918_v4 = vmul.f32 %v2306_v61, %v2306_v61 }
 0x19b   :  { %v850_v58 = vpop.xlane.xlu1 %849 }
 0x19c   :  { %v1631_v24 = vpop.eup %1630  ;;  %v868_v28 = vadd.f32 %v850_v58, %v820_v55 }
 0x19d   :  { %v853_v29 = vpop.xlane.xlu2 %852  ;;  %v950_v33 = vmul.f32 %v1631_v24, %v941_v53  ;;  %v887_v5 = vld [vmem:[#allocation3 + $0x10] sm:$0xff]  ;;  %vm956_vm1 = vweird.f32 %v1631_v24  ;;  %v1037_v53 = vld [vmem:[%s2465_s3] sm:$0xff] }
 0x19e   :  { %876 = vst.msk [vmem:[#allocation4 + $0x10] sm:$0xff] %vm21_vm0, %v868_v28  ;;  %v869_v60 = vadd.f32 %v853_v29, %v821_v57  ;;  %v902_v62 = vld [vmem:[#allocation4 + $0x8] sm:$0xff]  ;;  %v2312_v9 = vmul.f32 0.0061728396, %v887_v5  ;;  %vm957_vm3 = vmor %vm955_vm2, %vm956_vm1 }
 0x19f   :  { %v951_v1 = vmul.f32 %v1631_v24, %v950_v33  ;;  %v910_v2 = vmul.f32 0.0061728396, %v902_v62 }
 0x1a0   :  { %877 = vst.msk [vmem:[#allocation4 + $0x18] sm:$0xff] %vm21_vm0, %v869_v60  ;;  %v919_v34 = vmul.f32 %v2312_v9, %v2312_v9 }
 0x1a1   :  { %v952_v7 = vmul.f32 0.5, %v951_v1  ;;  %v926_v8 = vsub.f32 %v910_v2, %v918_v4  ;;  %v775_v2 = vld [vmem:[#allocation3 + $0x30] sm:$0xff] }
 0x1a3   :  { %v788_v12 = vpop.xlane.xlu1 %787  ;;  %v953_v16 = vsub.f32 1.5, %v952_v7  ;;  %v2314_v18 = vadd.f32 1e-05, %v926_v8 }
 0x1a4   :  { %v804_v19 = vadd.f32 %v788_v12, %v772_v6 }
 0x1a5   :  { %v791_v20 = vpop.xlane.xlu2 %790  ;;  %v856_v21 = vpop.xlane.xlu0 %855  ;;  %v954_v26 = vmul.f32 %v1631_v24, %v953_v16  ;;  %1632 = vrsqrt.f32 %v2314_v18  ;;  %v903_v27 = vld [vmem:[#allocation4 + $0x10] sm:$0xff]  ;;  %vm965_vm5 = vweird.f32 %v2314_v18 }
 0x1a6   :  { %813 = vst.msk [vmem:[#allocation3 + $0x18] sm:$0xff] %vm21_vm0, %v804_v19  ;;  %v805_v30 = vadd.f32 %v791_v20, %v773_v13  ;;  %v870_v31 = vadd.f32 %v856_v21, %v822_v15  ;;  %v911_v32 = vmul.f32 0.0061728396, %v903_v27  ;;  %v824_v13 = vld [vmem:[#allocation4 + $0x30] sm:$0xff]  ;;  %v934_v19 = vld [vmem:[%s2464_s2 + $0x8] sm:$0xff] }
 0x1a7   :  { %v958_v36 = vsel %vm957_vm3, %v1631_v24, %v954_v26  ;;  %v904_v48 = vld [vmem:[#allocation4 + $0x18] sm:$0xff] }
 0x1a8   :  { %814 = vst.msk [vmem:[#allocation3 + $0x20] sm:$0xff] %vm21_vm0, %v805_v30  ;;  %v1029_v37 = vmul.f32 %v958_v36, %v933_v22  ;;  %v927_v39 = vsub.f32 %v911_v32, %v919_v34  ;;  %v912_v28 = vmul.f32 0.0061728396, %v904_v48  ;;  %v1038_v36 = vld [vmem:[%s2465_s3 + $0x8] sm:$0xff] }
 0x1a9   :  { %878 = vst.msk [vmem:[#allocation4 + $0x20] sm:$0xff] %vm21_vm0, %v870_v31 }
 0x1aa   :  { %1079 = vperm.xlu1 %1627, %v1029_v37   ;;  %v2325_v40 = vadd.f32 1e-05, %v927_v39  ;;  %v1045_v46 = vmul.f32 %v1029_v37, %v2300_v38  ;;  %v776_v39 = vld [vmem:[#allocation3 + $0x38] sm:$0xff] }
 0x1ab   :  { %v1633_v41 = vpop.eup %1632 }
 0x1ac   :  { %v960_v47 = vmul.f32 %v1633_v41, %v2314_v18  ;;  %1634 = vrsqrt.f32 %v2325_v40  ;;  %v1053_v38 = vsub.f32 %v1037_v53, %v1045_v46  ;;  %vm966_vm4 = vweird.f32 %v1633_v41 }
 0x1ad   :  { %v859_v50 = vpop.xlane.xlu1 %858  ;;  %v794_v51 = vpop.xlane.xlu2 %793  ;;  %v888_v54 = vld [vmem:[#allocation3 + $0x18] sm:$0xff]  ;;  %vm967_vm6 = vmor %vm965_vm5, %vm966_vm4  ;;  %vm975_vm8 = vweird.f32 %v2325_v40 }
 0x1ae   :  { %v871_v55 = vadd.f32 %v859_v50, %v823_v44  ;;  %v806_v58 = vadd.f32 %v794_v51, %v774_v45  ;;  %v961_v57 = vmul.f32 %v1633_v41, %v960_v47  ;;  %v2333_v24 = vmul.f32 0.0061728396, %v888_v54  ;;  %v825_v50 = vld [vmem:[#allocation4 + $0x38] sm:$0xff]  ;;  %v935_v51 = vld [vmem:[%s2464_s2 + $0x10] sm:$0xff] }
 0x1af   :  { %v889_v29 = vld [vmem:[#allocation3 + $0x20] sm:$0xff] }
 0x1b0   :  { %879 = vst.msk [vmem:[#allocation4 + $0x28] sm:$0xff] %vm21_vm0, %v871_v55  ;;  %v962_v33 = vmul.f32 0.5, %v961_v57  ;;  %v920_v60 = vmul.f32 %v2333_v24, %v2333_v24  ;;  %v2338_v62 = vmul.f32 0.0061728396, %v889_v29  ;;  %v905_v1 = vld [vmem:[#allocation4 + $0x20] sm:$0xff] }
 0x1b1   :  { %815 = vst.msk [vmem:[#allocation3 + $0x28] sm:$0xff] %vm21_vm0, %v806_v58  ;;  %v913_v7 = vmul.f32 0.0061728396, %v905_v1 }
 0x1b2   :  { %v1635_v4 = vpop.eup %1634  ;;  %1135 = vperm.xlu1 %1627, %v1053_v38   ;;  %v963_v5 = vsub.f32 1.5, %v962_v33  ;;  %v928_v6 = vsub.f32 %v912_v28, %v920_v60  ;;  %v921_v8 = vmul.f32 %v2338_v62, %v2338_v62 }
 0x1b3   :  { %v797_v12 = vpop.xlane.xlu0 %796  ;;  %v970_v15 = vmul.f32 %v1635_v4, %v2325_v40  ;;  %vm976_vm7 = vweird.f32 %v1635_v4 }
 0x1b4   :  { %v807_v16 = vadd.f32 %v797_v12, %v775_v2  ;;  %v964_v20 = vmul.f32 %v1633_v41, %v963_v5  ;;  %v2348_v21 = vadd.f32 1e-05, %v928_v6  ;;  %v929_v22 = vsub.f32 %v913_v7, %v921_v8  ;;  %vm977_vm9 = vmor %vm975_vm8, %vm976_vm7  ;;  %v1039_v5 = vld [vmem:[%s2465_s3 + $0x10] sm:$0xff] }
 0x1b5   :  { %v862_v26 = vpop.xlane.xlu2 %861  ;;  %v971_v27 = vmul.f32 %v1635_v4, %v970_v15 }
 0x1b6   :  { %816 = vst.msk [vmem:[#allocation3 + $0x30] sm:$0xff] %vm21_vm0, %v807_v16  ;;  %v872_v30 = vadd.f32 %v862_v26, %v824_v13  ;;  %v968_v31 = vsel %vm967_vm6, %v1633_v41, %v964_v20  ;;  %1636 = vrsqrt.f32 %v2348_v21  ;;  %v2353_v34 = vadd.f32 1e-05, %v929_v22 }
 0x1b7   :  { %v1030_v18 = vmul.f32 %v968_v31, %v934_v19  ;;  %v972_v32 = vmul.f32 0.5, %v971_v27  ;;  %v906_v41 = vld [vmem:[#allocation4 + $0x28] sm:$0xff]  ;;  %vm985_vm11 = vweird.f32 %v2348_v21 }
 0x1b8   :  { %880 = vst.msk [vmem:[#allocation4 + $0x30] sm:$0xff] %vm21_vm0, %v872_v30  ;;  %v890_v37 = vld [vmem:[#allocation3 + $0x28] sm:$0xff]  ;;  %1638 = vrsqrt.f32 %v2353_v34  ;;  %vm995_vm14 = vweird.f32 %v2353_v34 }
 0x1b9   :  { %1084 = vperm.xlu2 %1628, %v1030_v18   ;;  %v1046_v44 = vmul.f32 %v1030_v18, %v2306_v61  ;;  %v973_v45 = vsub.f32 1.5, %v972_v32  ;;  %v2361_v46 = vmul.f32 0.0061728396, %v890_v37  ;;  %v914_v61 = vmul.f32 0.0061728396, %v906_v41  ;;  %v937_v41 = vld [vmem:[%s2464_s2 + $0x20] sm:$0xff] }
 0x1bb   :  { %v800_v47 = vpop.xlane.xlu1 %799  ;;  %v1054_v48 = vsub.f32 %v1038_v36, %v1046_v44  ;;  %v974_v53 = vmul.f32 %v1635_v4, %v973_v45  ;;  %v922_v58 = vmul.f32 %v2361_v46, %v2361_v46 }
 0x1bc   :  { %v1637_v54 = vpop.eup %1636  ;;  %v808_v55 = vadd.f32 %v800_v47, %v776_v39 }
 0x1bd   :  { %1140 = vperm.xlu0 %1629, %v1054_v48   ;;  %v865_v57 = vpop.xlane.xlu0 %864  ;;  %v978_v28 = vsel %vm977_vm9, %v1635_v4, %v974_v53  ;;  %v980_v29 = vmul.f32 %v1637_v54, %v2348_v21  ;;  %v891_v38 = vld [vmem:[#allocation3 + $0x30] sm:$0xff]  ;;  %v930_v1 = vsub.f32 %v914_v61, %v922_v58  ;;  %vm986_vm10 = vweird.f32 %v1637_v54 }
 0x1be   :  { %817 = vst.msk [vmem:[#allocation3 + $0x38] sm:$0xff] %vm21_vm0, %v808_v55  ;;  %v873_v33 = vadd.f32 %v865_v57, %v825_v50  ;;  %v1031_v60 = vmul.f32 %v978_v28, %v935_v51  ;;  %v2371_v2 = vmul.f32 0.0061728396, %v891_v38  ;;  %v1639_v40 = vpop.eup %1638  ;;  %vm987_vm12 = vmor %vm985_vm11, %vm986_vm10  ;;  %v1040_v50 = vld [vmem:[%s2465_s3 + $0x18] sm:$0xff]  ;;  %v1041_v57 = vld [vmem:[%s2465_s3 + $0x20] sm:$0xff] }
 0x1bf   :  { %v981_v6 = vmul.f32 %v1637_v54, %v980_v29  ;;  %v907_v7 = vld [vmem:[#allocation4 + $0x30] sm:$0xff]  ;;  %v990_v8 = vmul.f32 %v1639_v40, %v2353_v34  ;;  %v946_v12 = vadd.f32 1e-05, %v930_v1  ;;  %vm996_vm13 = vweird.f32 %v1639_v40 }
 0x1c0   :  { %881 = vst.msk [vmem:[#allocation4 + $0x38] sm:$0xff] %vm21_vm0, %v873_v33  ;;  %v1047_v4 = vmul.f32 %v1031_v60, %v2312_v9  ;;  %v915_v15 = vmul.f32 0.0061728396, %v907_v7  ;;  %v923_v16 = vmul.f32 %v2371_v2, %v2371_v2  ;;  %v936_v9 = vld [vmem:[%s2464_s2 + $0x18] sm:$0xff]  ;;  %vm997_vm15 = vmor %vm995_vm14, %vm996_vm13 }
 0x1c1   :  { %v982_v13 = vmul.f32 0.5, %v981_v6  ;;  %v991_v20 = vmul.f32 %v1639_v40, %v990_v8  ;;  %1640 = vrsqrt.f32 %v946_v12  ;;  %vm1005_vm1 = vweird.f32 %v946_v12 }
 0x1c2   :  { %v1055_v19 = vsub.f32 %v1039_v5, %v1047_v4  ;;  %v931_v26 = vsub.f32 %v915_v15, %v923_v16  ;;  %v938_v5 = vld [vmem:[%s2464_s2 + $0x28] sm:$0xff] }
 0x1c3   :  { %v983_v22 = vsub.f32 1.5, %v982_v13  ;;  %v992_v27 = vmul.f32 0.5, %v991_v20  ;;  %v939_v20 = vld [vmem:[%s2464_s2 + $0x30] sm:$0xff] }
 0x1c4   :  { %1145 = vperm.xlu2 %1628, %v1055_v19   ;;  %v947_v31 = vadd.f32 1e-05, %v931_v26 }
 0x1c5   :  { %1089 = vperm.xlu0 %1629, %v1031_v60   ;;  %v984_v30 = vmul.f32 %v1637_v54, %v983_v22  ;;  %v892_v18 = vld [vmem:[#allocation3 + $0x38] sm:$0xff]  ;;  %v993_v32 = vsub.f32 1.5, %v992_v27 }
 0x1c6   :  { %v2385_v36 = vmul.f32 0.0061728396, %v892_v18  ;;  %1642 = vrsqrt.f32 %v947_v31  ;;  %vm1015_vm4 = vweird.f32 %v947_v31 }
 0x1c7   :  { %v988_v37 = vsel %vm987_vm12, %v1637_v54, %v984_v30  ;;  %v908_v39 = vld [vmem:[#allocation4 + $0x38] sm:$0xff]  ;;  %v1641_v44 = vpop.eup %1640  ;;  %v994_v47 = vmul.f32 %v1639_v40, %v993_v32 }
 0x1c8   :  { %v1032_v45 = vmul.f32 %v988_v37, %v936_v9  ;;  %v916_v21 = vmul.f32 0.0061728396, %v908_v39  ;;  %v924_v48 = vmul.f32 %v2385_v36, %v2385_v36  ;;  %v1000_v51 = vmul.f32 %v1641_v44, %v946_v12  ;;  %v940_v9 = vld [vmem:[%s2464_s2 + $0x38] sm:$0xff]  ;;  %v1043_v37 = vld [vmem:[%s2465_s3 + $0x30] sm:$0xff] }
 0x1c9   :  { %v998_v53 = vsel %vm997_vm15, %v1639_v40, %v994_v47  ;;  %vm1006_vm0 = vweird.f32 %v1641_v44  ;;  %v1044_v39 = vld [vmem:[%s2465_s3 + $0x38] sm:$0xff] }
 0x1ca   :  { %v1048_v34 = vmul.f32 %v1032_v45, %v2333_v24  ;;  %v932_v54 = vsub.f32 %v916_v21, %v924_v48  ;;  %v1033_v55 = vmul.f32 %v998_v53, %v937_v41  ;;  %v1001_v61 = vmul.f32 %v1641_v44, %v1000_v51  ;;  %vm1007_vm2 = vmor %vm1005_vm1, %vm1006_vm0  ;;  %v1042_v21 = vld [vmem:[%s2465_s3 + $0x28] sm:$0xff] }
 0x1cc   :  { %1094 = vperm.xlu2 %1628, %v1032_v45   ;;  %v1056_v58 = vsub.f32 %v1040_v50, %v1048_v34  ;;  %v948_v28 = vadd.f32 1e-05, %v932_v54  ;;  %v1643_v29 = vpop.eup %1642  ;;  %v1049_v38 = vmul.f32 %v1033_v55, %v2338_v62  ;;  %v1002_v33 = vmul.f32 0.5, %v1001_v61 }
 0x1cd   :  { %v1010_v60 = vmul.f32 %v1643_v29, %v947_v31  ;;  %vm1016_vm3 = vweird.f32 %v1643_v29 }
 0x1ce   :  { %1150 = vperm.xlu1 %1627, %v1056_v58   ;;  %1644 = vrsqrt.f32 %v948_v28  ;;  %v1057_v1 = vsub.f32 %v1041_v57, %v1049_v38  ;;  %v1003_v24 = vsub.f32 1.5, %v1002_v33  ;;  %vm1017_vm5 = vmor %vm1015_vm4, %vm1016_vm3  ;;  %vm1025_vm7 = vweird.f32 %v948_v28 }
 0x1cf   :  { %v1011_v40 = vmul.f32 %v1643_v29, %v1010_v60 }
 0x1d0   :  { %1155 = vperm.xlu0 %1629, %v1057_v1   ;;  %v1004_v6 = vmul.f32 %v1641_v44, %v1003_v24 }
 0x1d1   :  { %v1012_v7 = vmul.f32 0.5, %v1011_v40 }
 0x1d2   :  { %v1008_v4 = vsel %vm1007_vm2, %v1641_v44, %v1004_v6 }
 0x1d3   :  { %v1034_v62 = vmul.f32 %v1008_v4, %v938_v5  ;;  %v1013_v13 = vsub.f32 1.5, %v1012_v7 }
 0x1d4   :  { %v1645_v8 = vpop.eup %1644 }
 0x1d5   :  { %v1020_v15 = vmul.f32 %v1645_v8, %v948_v28  ;;  %1104 = vperm.xlu2 %1628, %v1034_v62   ;;  %v1014_v16 = vmul.f32 %v1643_v29, %v1013_v13  ;;  %vm1026_vm6 = vweird.f32 %v1645_v8  ;;  %v1050_v47 = vmul.f32 %v1034_v62, %v2361_v46 }
 0x1d6   :  { %1099 = vperm.xlu1 %1627, %v1033_v55   ;;  %vm1027_vm8 = vmor %vm1025_vm7, %vm1026_vm6 }
 0x1d7   :  { %v1021_v19 = vmul.f32 %v1645_v8, %v1020_v15  ;;  %v1018_v22 = vsel %vm1017_vm5, %v1643_v29, %v1014_v16 }
 0x1d8   :  { %v1035_v27 = vmul.f32 %v1018_v22, %v939_v20 }
 0x1d9   :  { %v1022_v12 = vmul.f32 0.5, %v1021_v19 }
 0x1da   :  { %v1051_v32 = vmul.f32 %v1035_v27, %v2371_v2  ;;  %v1058_v2 = vsub.f32 %v1042_v21, %v1050_v47 }
 0x1db   :  { %v1023_v26 = vsub.f32 1.5, %v1022_v12 }
 0x1dc   :  { %v1059_v45 = vsub.f32 %v1043_v37, %v1051_v32 }
 0x1dd   :  { %v1024_v30 = vmul.f32 %v1645_v8, %v1023_v26 }
 0x1de   :  { %1109 = vperm.xlu1 %1627, %v1035_v27  }
 0x1df   :  { %v1028_v31 = vsel %vm1027_vm8, %v1645_v8, %v1024_v30 }
 0x1e0   :  { %v1036_v18 = vmul.f32 %v1028_v31, %v940_v9 }
 0x1e2   :  { %1114 = vperm.xlu2 %1628, %v1036_v18   ;;  %v1052_v44 = vmul.f32 %v1036_v18, %v2385_v36 }
 0x1e4   :  { %v1060_v41 = vsub.f32 %v1044_v39, %v1052_v44 }
 0x1e6   :  { %1165 = vperm.xlu1 %1627, %v1059_v45   ;;  %1170 = vperm.xlu0 %1629, %v1060_v41  }
 0x1ea   :  { %1160 = vperm.xlu2 %1628, %v1058_v2  }
 0x213   :  { %v1085_v48 = vpop.permute.xlu2 %1084 }
 0x214   :  { %v1119_v28 = vmul.f32 %v1085_v48, %v2203_v3  ;;  %v1120_v29 = vmul.f32 %v1085_v48, %v2225_v0 }
 0x21c   :  { %v1080_v50 = vpop.permute.xlu1 %1079 }
 0x21d   :  { %v1117_v34 = vmul.f32 %v1080_v50, %v2201_v59  ;;  %v1118_v53 = vmul.f32 %v1080_v50, %v2217_v52 }
 0x21e   :  { %v1146_v51 = vpop.permute.xlu2 %1145 }
 0x224   :  { %v1136_v36 = vpop.permute.xlu1 %1135 }
 0x225   :  { %v1173_v54 = vadd.f32 %v1136_v36, %v1117_v34  ;;  %v1174_v55 = vadd.f32 %v1136_v36, %v1118_v53 }
 0x226   :  { %v1095_v57 = vpop.permute.xlu2 %1094 }
 0x227   :  { %v1189_v61 = vmax.f32 %v1173_v54, 0.0  ;;  %v1190_v46 = vmax.f32 %v1174_v55, 0.0  ;;  %v1123_v13 = vmul.f32 %v1095_v57, %v2207_v17  ;;  %v1124_v15 = vmul.f32 %v1095_v57, %v2239_v23 }
 0x229   :  { %v1205_v58 = vpack.c.bf16 %v1190_v46, %v1189_v61 }
 0x22b   :  { %1213 = vst [vmem:[%s2466_s4] sm:$0xff] %v1205_v58 }
 0x22f   :  { %v1141_v38 = vpop.permute.xlu0 %1140  ;;  %v1105_v1 = vpop.permute.xlu2 %1104 }
 0x230   :  { %v1175_v33 = vadd.f32 %v1141_v38, %v1119_v28  ;;  %v1176_v59 = vadd.f32 %v1141_v38, %v1120_v29 }
 0x232   :  { %v1191_v60 = vmax.f32 %v1175_v33, 0.0  ;;  %v1192_v52 = vmax.f32 %v1176_v59, 0.0 }
 0x234   :  { %v1206_v24 = vpack.c.bf16 %v1192_v52, %v1191_v60 }
 0x236   :  { %1214 = vst [vmem:[%s2466_s4 + $0x8] sm:$0xff] %v1206_v24 }
 0x237   :  { %v1090_v40 = vpop.permute.xlu0 %1089 }
 0x238   :  { %v1121_v5 = vmul.f32 %v1090_v40, %v2205_v10  ;;  %v1122_v6 = vmul.f32 %v1090_v40, %v2231_v11  ;;  %v1127_v10 = vmul.f32 %v1105_v1, %v2211_v35  ;;  %v1128_v11 = vmul.f32 %v1105_v1, %v2266_v56 }
 0x23a   :  { %v1177_v7 = vadd.f32 %v1146_v51, %v1121_v5  ;;  %v1178_v3 = vadd.f32 %v1146_v51, %v1122_v6 }
 0x23c   :  { %v1193_v4 = vmax.f32 %v1177_v7, 0.0  ;;  %v1194_v0 = vmax.f32 %v1178_v3, 0.0  ;;  %v1115_v8 = vpop.permute.xlu2 %1114 }
 0x23d   :  { %v1131_v21 = vmul.f32 %v1115_v8, %v2215_v49 }
 0x23e   :  { %v1207_v62 = vpack.c.bf16 %v1194_v0, %v1193_v4 }
 0x240   :  { %1215 = vst [vmem:[%s2466_s4 + $0x10] sm:$0xff] %v1207_v62  ;;  %v1151_v16 = vpop.permute.xlu1 %1150 }
 0x241   :  { %v1179_v19 = vadd.f32 %v1151_v16, %v1123_v13  ;;  %v1180_v20 = vadd.f32 %v1151_v16, %v1124_v15 }
 0x242   :  { %v1156_v37 = vpop.permute.xlu0 %1155 }
 0x243   :  { %v1195_v22 = vmax.f32 %v1179_v19, 0.0  ;;  %v1196_v12 = vmax.f32 %v1180_v20, 0.0 }
 0x244   :  { %v1161_v26 = vpop.permute.xlu2 %1160 }
 0x245   :  { %v1208_v27 = vpack.c.bf16 %v1196_v12, %v1195_v22  ;;  %v1183_v9 = vadd.f32 %v1161_v26, %v1127_v10  ;;  %v1184_v30 = vadd.f32 %v1161_v26, %v1128_v11 }
 0x247   :  { %1216 = vst [vmem:[%s2466_s4 + $0x18] sm:$0xff] %v1208_v27  ;;  %v1199_v17 = vmax.f32 %v1183_v9, 0.0  ;;  %v1200_v23 = vmax.f32 %v1184_v30, 0.0 }
 0x248   :  { %v1100_v31 = vpop.permute.xlu1 %1099 }
 0x249   :  { %v1210_v18 = vpack.c.bf16 %v1200_v23, %v1199_v17  ;;  %v1125_v32 = vmul.f32 %v1100_v31, %v2209_v25  ;;  %v1126_v35 = vmul.f32 %v1100_v31, %v2248_v43  ;;  %v1132_v25 = vmul.f32 %v1115_v8, %v2289_v14 }
 0x24b   :  { %1218 = vst [vmem:[%s2466_s4 + $0x28] sm:$0xff] %v1210_v18  ;;  %v1181_v56 = vadd.f32 %v1156_v37, %v1125_v32  ;;  %v1182_v39 = vadd.f32 %v1156_v37, %v1126_v35 }
 0x24d   :  { %v1197_v44 = vmax.f32 %v1181_v56, 0.0  ;;  %v1198_v45 = vmax.f32 %v1182_v39, 0.0 }
 0x24f   :  { %v1209_v41 = vpack.c.bf16 %v1198_v45, %v1197_v44 }
 0x250   :  { %v1110_v47 = vpop.permute.xlu1 %1109 }
 0x251   :  { %1217 = vst [vmem:[%s2466_s4 + $0x20] sm:$0xff] %v1209_v41  ;;  %v1129_v43 = vmul.f32 %v1110_v47, %v2213_v42  ;;  %v1130_v2 = vmul.f32 %v1110_v47, %v2281_v63 }
 0x258   :  { %v1166_v48 = vpop.permute.xlu1 %1165  ;;  %v1171_v50 = vpop.permute.xlu0 %1170 }
 0x259   :  { %v1185_v51 = vadd.f32 %v1166_v48, %v1129_v43  ;;  %v1186_v34 = vadd.f32 %v1166_v48, %v1130_v2  ;;  %v1187_v53 = vadd.f32 %v1171_v50, %v1131_v21  ;;  %v1188_v36 = vadd.f32 %v1171_v50, %v1132_v25 }
 0x25b   :  { %v1201_v54 = vmax.f32 %v1185_v51, 0.0  ;;  %v1202_v55 = vmax.f32 %v1186_v34, 0.0  ;;  %v1203_v61 = vmax.f32 %v1187_v53, 0.0  ;;  %v1204_v46 = vmax.f32 %v1188_v36, 0.0 }
 0x25d   :  { %v1211_v58 = vpack.c.bf16 %v1202_v55, %v1201_v54  ;;  %v1212_v57 = vpack.c.bf16 %v1204_v46, %v1203_v61 }
 0x25f   :  { %1219 = vst [vmem:[%s2466_s4 + $0x30] sm:$0xff] %v1211_v58 }
 0x260   :  { %1220 = vst [vmem:[%s2466_s4 + $0x38] sm:$0xff] %v1212_v57 }

// kernel: dqn_forward.6
= control target key start
LH: loop header
LB: loop body
LE: loop exit
PB: predicated region body
PF: predicated region fallthrough
CT: control target
= control target key end

     0   :  { %vm410_vm0 = vcmask 523264   ;;  %vm21_vm1 = vcmask 7168   ;;  %s2009_s0 = inlined_call_operand.vmem [shape: bf16[128,576], index: 0, kind: input, shape index: {}]   ;;  %s2010_s1 = inlined_call_operand.vmem [shape: bf16[64,576], index: 1, kind: input, shape index: {}]   ;;  %s2011_s2 = inlined_call_operand.vmem [shape: f32[64,1], index: 2, kind: input, shape index: {}]   ;;  %s2012_s3 = inlined_call_operand.vmem [shape: f32[64,1], index: 3, kind: input, shape index: {}]   ;;  %s2013_s4 = inlined_call_operand.vmem [shape: bf16[64,128], index: 4, kind: output, shape index: {}]  }
   0x1   :  { %v1224_v0 = vld [vmem:[%s2009_s0 + $0x118] sm:$0xf]  ;;  %v1303_v1 = vld [vmem:[%s2009_s0 + $0x128] sm:$0xf0]  ;;  %v1301_v2 = vld [vmem:[%s2009_s0 + $0x11c] sm:$0xf] }
   0x2   :  { %v1225_v3 = vor.u32 %v1303_v1, %v1224_v0  ;;  %v1226_v4 = vld [vmem:[%s2009_s0 + $0x12c] sm:$0xf0]  ;;  %v1232_v5 = vld [vmem:[%s2009_s0 + $0x120] sm:$0xf]  ;;  %v1304_v6 = vld [vmem:[%s2009_s0 + $0x130] sm:$0xf0] }
   0x3   :  { %v1229_v7 = vor.u32 %v1301_v2, %v1226_v4  ;;  %v1233_v8 = vor.u32 %v1304_v6, %v1232_v5  ;;  %v1302_v9 = vld [vmem:[%s2009_s0 + $0x124] sm:$0xf]  ;;  %v1234_v10 = vld [vmem:[%s2009_s0 + $0x134] sm:$0xf0]  ;;  %v1204_v12 = vld [vmem:[%s2009_s0 + $0xf0] sm:$0xf] }
   0x4   :  { %447 = vmatpush.bf16.xpose.msra.mxu0 %v1225_v3  ;;  %v1237_v11 = vor.u32 %v1302_v9, %v1234_v10  ;;  %v1298_v13 = vld [vmem:[%s2009_s0 + $0x100] sm:$0xf0]  ;;  %v1296_v14 = vld [vmem:[%s2009_s0 + $0xf4] sm:$0xf]  ;;  %v1206_v15 = vld [vmem:[%s2009_s0 + $0x104] sm:$0xf0] }
   0x5   :  { %476 = vmatpush.bf16.xpose.msra.mxu1 %v1229_v7  ;;  %505 = vmatpush.bf16.xpose.msra.mxu2 %v1233_v8  ;;  %v1212_v16 = vld [vmem:[%s2009_s0 + $0xf8] sm:$0xf]  ;;  %v1299_v17 = vld [vmem:[%s2009_s0 + $0x108] sm:$0xf0]  ;;  %v1297_v18 = vld [vmem:[%s2009_s0 + $0xfc] sm:$0xf]  ;;  %v1205_v20 = vor.u32 %v1298_v13, %v1204_v12  ;;  %v1209_v21 = vor.u32 %v1296_v14, %v1206_v15 }
   0x6   :  { %534 = vmatpush.bf16.xpose.msra.mxu3 %v1237_v11  ;;  %v1214_v19 = vld [vmem:[%s2009_s0 + $0x10c] sm:$0xf0]  ;;  %v1213_v22 = vor.u32 %v1299_v17, %v1212_v16  ;;  %v1184_v24 = vld [vmem:[%s2009_s0 + $0xc8] sm:$0xf]  ;;  %v1293_v25 = vld [vmem:[%s2009_s0 + $0xd8] sm:$0xf0] }
   0x7   :  { %v1217_v23 = vor.u32 %v1297_v18, %v1214_v19  ;;  %v1291_v26 = vld [vmem:[%s2009_s0 + $0xcc] sm:$0xf]  ;;  %v1186_v27 = vld [vmem:[%s2009_s0 + $0xdc] sm:$0xf0]  ;;  %v1192_v28 = vld [vmem:[%s2009_s0 + $0xd0] sm:$0xf]  ;;  %v1185_v32 = vor.u32 %v1293_v25, %v1184_v24 }
   0x8   :  { %v1294_v29 = vld [vmem:[%s2009_s0 + $0xe0] sm:$0xf0]  ;;  %v1292_v30 = vld [vmem:[%s2009_s0 + $0xd4] sm:$0xf]  ;;  %v1194_v31 = vld [vmem:[%s2009_s0 + $0xe4] sm:$0xf0]  ;;  %v1189_v33 = vor.u32 %v1291_v26, %v1186_v27 }
   0x9   :  { %v1193_v34 = vor.u32 %v1294_v29, %v1192_v28  ;;  %v1197_v35 = vor.u32 %v1292_v30, %v1194_v31  ;;  %v1164_v36 = vld [vmem:[%s2009_s0 + $0xa0] sm:$0xf]  ;;  %v1288_v37 = vld [vmem:[%s2009_s0 + $0xb0] sm:$0xf0]  ;;  %v1286_v38 = vld [vmem:[%s2009_s0 + $0xa4] sm:$0xf] }
   0xa   :  { %v1166_v39 = vld [vmem:[%s2009_s0 + $0xb4] sm:$0xf0]  ;;  %v1172_v40 = vld [vmem:[%s2009_s0 + $0xa8] sm:$0xf]  ;;  %v1289_v41 = vld [vmem:[%s2009_s0 + $0xb8] sm:$0xf0]  ;;  %v1165_v44 = vor.u32 %v1288_v37, %v1164_v36 }
   0xb   :  { %v1287_v42 = vld [vmem:[%s2009_s0 + $0xac] sm:$0xf]  ;;  %v1174_v43 = vld [vmem:[%s2009_s0 + $0xbc] sm:$0xf0]  ;;  %v1169_v45 = vor.u32 %v1286_v38, %v1166_v39  ;;  %v1173_v46 = vor.u32 %v1289_v41, %v1172_v40  ;;  %v1144_v48 = vld [vmem:[%s2009_s0 + $0x78] sm:$0xf] }
   0xc   :  { %448 = vmatpush.bf16.xpose.msra.mxu0 %v1205_v20  ;;  %v1177_v47 = vor.u32 %v1287_v42, %v1174_v43  ;;  %v1283_v49 = vld [vmem:[%s2009_s0 + $0x88] sm:$0xf0]  ;;  %v1281_v50 = vld [vmem:[%s2009_s0 + $0x7c] sm:$0xf]  ;;  %v1146_v51 = vld [vmem:[%s2009_s0 + $0x8c] sm:$0xf0] }
   0xd   :  { %477 = vmatpush.bf16.xpose.msra.mxu1 %v1209_v21  ;;  %506 = vmatpush.bf16.xpose.msra.mxu2 %v1213_v22  ;;  %v1152_v52 = vld [vmem:[%s2009_s0 + $0x80] sm:$0xf]  ;;  %v1284_v53 = vld [vmem:[%s2009_s0 + $0x90] sm:$0xf0]  ;;  %v1282_v54 = vld [vmem:[%s2009_s0 + $0x84] sm:$0xf]  ;;  %v1145_v56 = vor.u32 %v1283_v49, %v1144_v48  ;;  %v1149_v57 = vor.u32 %v1281_v50, %v1146_v51 }
   0xe   :  { %535 = vmatpush.bf16.xpose.msra.mxu3 %v1217_v23  ;;  %v1154_v55 = vld [vmem:[%s2009_s0 + $0x94] sm:$0xf0]  ;;  %v1153_v58 = vor.u32 %v1284_v53, %v1152_v52  ;;  %v1124_v60 = vld [vmem:[%s2009_s0 + $0x50] sm:$0xf]  ;;  %v1278_v61 = vld [vmem:[%s2009_s0 + $0x60] sm:$0xf0] }
   0xf   :  { %v1157_v59 = vor.u32 %v1282_v54, %v1154_v55  ;;  %v1276_v62 = vld [vmem:[%s2009_s0 + $0x54] sm:$0xf]  ;;  %v1126_v63 = vld [vmem:[%s2009_s0 + $0x64] sm:$0xf0]  ;;  %v1132_v0 = vld [vmem:[%s2009_s0 + $0x58] sm:$0xf]  ;;  %v1125_v4 = vor.u32 %v1278_v61, %v1124_v60 }
  0x10   :  { %v1279_v1 = vld [vmem:[%s2009_s0 + $0x68] sm:$0xf0]  ;;  %v1277_v2 = vld [vmem:[%s2009_s0 + $0x5c] sm:$0xf]  ;;  %v1134_v3 = vld [vmem:[%s2009_s0 + $0x6c] sm:$0xf0]  ;;  %v1129_v5 = vor.u32 %v1276_v62, %v1126_v63 }
  0x11   :  { %v1133_v6 = vor.u32 %v1279_v1, %v1132_v0  ;;  %v1137_v7 = vor.u32 %v1277_v2, %v1134_v3  ;;  %v1104_v8 = vld [vmem:[%s2009_s0 + $0x28] sm:$0xf]  ;;  %v1273_v9 = vld [vmem:[%s2009_s0 + $0x38] sm:$0xf0]  ;;  %v1271_v10 = vld [vmem:[%s2009_s0 + $0x2c] sm:$0xf] }
  0x12   :  { %v1106_v11 = vld [vmem:[%s2009_s0 + $0x3c] sm:$0xf0]  ;;  %v1112_v12 = vld [vmem:[%s2009_s0 + $0x30] sm:$0xf]  ;;  %v1274_v13 = vld [vmem:[%s2009_s0 + $0x40] sm:$0xf0]  ;;  %v1105_v16 = vor.u32 %v1273_v9, %v1104_v8 }
  0x13   :  { %v1272_v14 = vld [vmem:[%s2009_s0 + $0x34] sm:$0xf]  ;;  %v1114_v15 = vld [vmem:[%s2009_s0 + $0x44] sm:$0xf0]  ;;  %v1109_v17 = vor.u32 %v1271_v10, %v1106_v11  ;;  %v1113_v18 = vor.u32 %v1274_v13, %v1112_v12  ;;  %v1305_v21 = vld [vmem:[%s2009_s0 + $0x138] sm:$0xf0] }
  0x14   :  { %449 = vmatpush.bf16.xpose.msra.mxu0 %v1185_v32  ;;  %v1117_v19 = vor.u32 %v1272_v14, %v1114_v15  ;;  %v1240_v20 = vld [vmem:[%s2009_s0 + $0x128] sm:$0xf]  ;;  %v1084_v22 = vld [vmem:[%s2009_s0] sm:$0xf]  ;;  %v1268_v23 = vld [vmem:[%s2009_s0 + $0x10] sm:$0xf0] }
  0x15   :  { %478 = vmatpush.bf16.xpose.msra.mxu1 %v1189_v33  ;;  %507 = vmatpush.bf16.xpose.msra.mxu2 %v1193_v34  ;;  %v1266_v24 = vld [vmem:[%s2009_s0 + $0x4] sm:$0xf]  ;;  %v1086_v25 = vld [vmem:[%s2009_s0 + $0x14] sm:$0xf0]  ;;  %v1092_v26 = vld [vmem:[%s2009_s0 + $0x8] sm:$0xf]  ;;  %v1241_v30 = vor.u32 %v1305_v21, %v1240_v20  ;;  %v1085_v31 = vor.u32 %v1268_v23, %v1084_v22 }
  0x16   :  { %536 = vmatpush.bf16.xpose.msra.mxu3 %v1197_v35  ;;  %v1269_v27 = vld [vmem:[%s2009_s0 + $0x18] sm:$0xf0]  ;;  %v1267_v28 = vld [vmem:[%s2009_s0 + $0xc] sm:$0xf]  ;;  %v1094_v29 = vld [vmem:[%s2009_s0 + $0x1c] sm:$0xf0]  ;;  %v1089_v32 = vor.u32 %v1266_v24, %v1086_v25 }
  0x17   :  { %v1093_v33 = vor.u32 %v1269_v27, %v1092_v26  ;;  %v1097_v34 = vor.u32 %v1267_v28, %v1094_v29  ;;  %v1004_v35 = vld [vmem:[%s2010_s1] sm:$0xf]  ;;  %v1248_v36 = vld [vmem:[%s2010_s1 + $0x10] sm:$0xf0]  ;;  %v445_v37 = vsel %vm410_vm0, %v1241_v30, 0 }
  0x18   :  { %v1246_v38 = vld [vmem:[%s2010_s1 + $0x4] sm:$0xf]  ;;  %v1220_v39 = vld [vmem:[%s2009_s0 + $0x100] sm:$0xf]  ;;  %v1300_v40 = vld [vmem:[%s2009_s0 + $0x110] sm:$0xf0] }
  0x19   :  { %v1006_v41 = vld [vmem:[%s2010_s1 + $0x14] sm:$0xf0]  ;;  %v1012_v42 = vld [vmem:[%s2010_s1 + $0x8] sm:$0xf]  ;;  %v1249_v43 = vld [vmem:[%s2010_s1 + $0x18] sm:$0xf0] }
  0x1a   :  { %v1009_v48 = vor.u32 %v1246_v38, %v1006_v41  ;;  %v1013_v49 = vor.u32 %v1249_v43, %v1012_v42  ;;  %v1200_v52 = vld [vmem:[%s2009_s0 + $0xd8] sm:$0xf]  ;;  %v1295_v53 = vld [vmem:[%s2009_s0 + $0xe8] sm:$0xf0]  ;;  %v1024_v55 = vld [vmem:[%s2010_s1 + $0x28] sm:$0xf] }
  0x1b   :  { %v1201_v54 = vor.u32 %v1295_v53, %v1200_v52  ;;  %v1290_v60 = vld [vmem:[%s2009_s0 + $0xc0] sm:$0xf0]  ;;  %v1026_v61 = vld [vmem:[%s2010_s1 + $0x3c] sm:$0xf0]  ;;  %v1032_v62 = vld [vmem:[%s2010_s1 + $0x30] sm:$0xf] }
  0x1c   :  { %450 = vmatpush.bf16.xpose.msra.mxu0 %v1165_v44  ;;  %v1247_v44 = vld [vmem:[%s2010_s1 + $0xc] sm:$0xf]  ;;  %v1254_v63 = vld [vmem:[%s2010_s1 + $0x40] sm:$0xf0]  ;;  %v1252_v0 = vld [vmem:[%s2010_s1 + $0x34] sm:$0xf] }
  0x1d   :  { %479 = vmatpush.bf16.xpose.msra.mxu1 %v1169_v45  ;;  %508 = vmatpush.bf16.xpose.msra.mxu2 %v1173_v46  ;;  %v1014_v45 = vld [vmem:[%s2010_s1 + $0x1c] sm:$0xf0]  ;;  %v1005_v46 = vor.u32 %v1248_v36, %v1004_v35  ;;  %v1034_v1 = vld [vmem:[%s2010_s1 + $0x44] sm:$0xf0]  ;;  %v1285_v9 = vld [vmem:[%s2009_s0 + $0x98] sm:$0xf0] }
  0x1e   :  { %537 = vmatpush.bf16.xpose.msra.mxu3 %v1177_v47  ;;  %v1221_v47 = vor.u32 %v1300_v40, %v1220_v39  ;;  %v1017_v50 = vor.u32 %v1247_v44, %v1014_v45  ;;  %v1160_v8 = vld [vmem:[%s2009_s0 + $0x88] sm:$0xf]  ;;  %v1044_v11 = vld [vmem:[%s2010_s1 + $0x50] sm:$0xf]  ;;  %v1258_v12 = vld [vmem:[%s2010_s1 + $0x60] sm:$0xf0] }
  0x1f   :  { %v1161_v10 = vor.u32 %v1285_v9, %v1160_v8  ;;  %v1256_v14 = vld [vmem:[%s2010_s1 + $0x54] sm:$0xf]  ;;  %v1140_v15 = vld [vmem:[%s2009_s0 + $0x60] sm:$0xf]  ;;  %v1257_v20 = vld [vmem:[%s2010_s1 + $0x5c] sm:$0xf]  ;;  %v1045_v22 = vor.u32 %v1258_v12, %v1044_v11 }
  0x20   :  { %v442_v51 = vsel %vm410_vm0, %v1221_v47, 0  ;;  %v1054_v21 = vld [vmem:[%s2010_s1 + $0x6c] sm:$0xf0]  ;;  %v1120_v28 = vld [vmem:[%s2009_s0 + $0x38] sm:$0xf] }
  0x21   :  { %v433_v13 = vsel %vm410_vm0, %v1161_v10, 0  ;;  %v1057_v26 = vor.u32 %v1257_v20, %v1054_v21  ;;  %v1275_v29 = vld [vmem:[%s2009_s0 + $0x48] sm:$0xf0]  ;;  %v1100_v35 = vld [vmem:[%s2009_s0 + $0x10] sm:$0xf] }
  0x22   :  { %v1121_v30 = vor.u32 %v1275_v29, %v1120_v28  ;;  %v1270_v36 = vld [vmem:[%s2009_s0 + $0x20] sm:$0xf0]  ;;  %v1072_v38 = vld [vmem:[%s2010_s1 + $0x80] sm:$0xf]  ;;  %v1264_v39 = vld [vmem:[%s2010_s1 + $0x90] sm:$0xf0] }
  0x23   :  { %v1262_v40 = vld [vmem:[%s2010_s1 + $0x84] sm:$0xf]  ;;  %v1074_v41 = vld [vmem:[%s2010_s1 + $0x94] sm:$0xf0]  ;;  %v1101_v43 = vor.u32 %v1270_v36, %v1100_v35  ;;  %v1073_v45 = vor.u32 %v1264_v39, %v1072_v38  ;;  %v1060_v52 = vld [vmem:[%s2010_s1 + $0x60] sm:$0xf] }
  0x24   :  { %451 = vmatpush.bf16.xpose.msra.mxu0 %v1145_v56  ;;  %v1253_v56 = vld [vmem:[%s2010_s1 + $0x38] sm:$0xf0]  ;;  %v1260_v53 = vld [vmem:[%s2010_s1 + $0x70] sm:$0xf0] }
  0x25   :  { %480 = vmatpush.bf16.xpose.msra.mxu1 %v1149_v57  ;;  %509 = vmatpush.bf16.xpose.msra.mxu2 %v1153_v58  ;;  %v439_v57 = vsel %vm410_vm0, %v1201_v54, 0  ;;  %v1251_v58 = vld [vmem:[%s2010_s1 + $0x2c] sm:$0xf]  ;;  %v1025_v2 = vor.u32 %v1253_v56, %v1024_v55  ;;  %v424_v47 = vsel %vm410_vm0, %v1101_v43, 0  ;;  %v1080_v54 = vld [vmem:[%s2010_s1 + $0x88] sm:$0xf] }
  0x26   :  { %538 = vmatpush.bf16.xpose.msra.mxu3 %v1157_v59  ;;  %v1180_v59 = vld [vmem:[%s2009_s0 + $0xb0] sm:$0xf]  ;;  %v1265_v55 = vld [vmem:[%s2010_s1 + $0x98] sm:$0xf0] }
  0x27   :  { %v1181_v3 = vor.u32 %v1290_v60, %v1180_v59  ;;  %v1081_v59 = vor.u32 %v1265_v55, %v1080_v54  ;;  %v1374_v55 = vmov 0.0  }
  0x28   :  { %24 = vst.msk [vmem:[#allocation3 + $0x10] sm:$0xff] %vm21_vm1, %v1374_v55 }
  0x29   :  { %22 = vst.msk [vmem:[#allocation3] sm:$0xff] %vm21_vm1, %v1374_v55 }
  0x2a   :  { %23 = vst.msk [vmem:[#allocation3 + $0x8] sm:$0xff] %vm21_vm1, %v1374_v55 }
  0x2b   :  { %25 = vst.msk [vmem:[#allocation3 + $0x18] sm:$0xff] %vm21_vm1, %v1374_v55 }
  0x2c   :  { %452 = vmatpush.bf16.xpose.msra.mxu0 %v1125_v4  ;;  %v1029_v4 = vor.u32 %v1251_v58, %v1026_v61  ;;  %v1061_v58 = vor.u32 %v1260_v53, %v1060_v52  ;;  %26 = vst.msk [vmem:[#allocation3 + $0x20] sm:$0xff] %vm21_vm1, %v1374_v55 }
  0x2d   :  { %481 = vmatpush.bf16.xpose.msra.mxu1 %v1129_v5  ;;  %510 = vmatpush.bf16.xpose.msra.mxu2 %v1133_v6  ;;  %v1033_v5 = vor.u32 %v1254_v63, %v1032_v62  ;;  %v1037_v6 = vor.u32 %v1252_v0, %v1034_v1  ;;  %27 = vst.msk [vmem:[#allocation3 + $0x28] sm:$0xff] %vm21_vm1, %v1374_v55 }
  0x2e   :  { %539 = vmatpush.bf16.xpose.msra.mxu3 %v1137_v7  ;;  %v436_v7 = vsel %vm410_vm0, %v1181_v3, 0  ;;  %28 = vst.msk [vmem:[#allocation3 + $0x30] sm:$0xff] %vm21_vm1, %v1374_v55 }
  0x2f   :  { %29 = vst.msk [vmem:[#allocation3 + $0x38] sm:$0xff] %vm21_vm1, %v1374_v55 }
  0x30   :  { %30 = vst.msk [vmem:[#allocation4] sm:$0xff] %vm21_vm1, %v1374_v55 }
  0x31   :  { %31 = vst.msk [vmem:[#allocation4 + $0x8] sm:$0xff] %vm21_vm1, %v1374_v55 }
  0x32   :  { %32 = vst.msk [vmem:[#allocation4 + $0x10] sm:$0xff] %vm21_vm1, %v1374_v55 }
  0x33   :  { %33 = vst.msk [vmem:[#allocation4 + $0x18] sm:$0xff] %vm21_vm1, %v1374_v55 }
  0x34   :  { %453 = vmatpush.bf16.xpose.msra.mxu0 %v1105_v16  ;;  %v1280_v16 = vld [vmem:[%s2009_s0 + $0x70] sm:$0xf0]  ;;  %34 = vst.msk [vmem:[#allocation4 + $0x20] sm:$0xff] %vm21_vm1, %v1374_v55 }
  0x35   :  { %482 = vmatpush.bf16.xpose.msra.mxu1 %v1109_v17  ;;  %511 = vmatpush.bf16.xpose.msra.mxu2 %v1113_v18  ;;  %v1046_v17 = vld [vmem:[%s2010_s1 + $0x64] sm:$0xf0]  ;;  %v1052_v18 = vld [vmem:[%s2010_s1 + $0x58] sm:$0xf]  ;;  %v1141_v23 = vor.u32 %v1280_v16, %v1140_v15  ;;  %35 = vst.msk [vmem:[#allocation4 + $0x28] sm:$0xff] %vm21_vm1, %v1374_v55 }
  0x36   :  { %540 = vmatpush.bf16.xpose.msra.mxu3 %v1117_v19  ;;  %v1259_v19 = vld [vmem:[%s2010_s1 + $0x68] sm:$0xf0]  ;;  %v1049_v24 = vor.u32 %v1256_v14, %v1046_v17  ;;  %36 = vst.msk [vmem:[#allocation4 + $0x30] sm:$0xff] %vm21_vm1, %v1374_v55 }
  0x37   :  { %v1053_v25 = vor.u32 %v1259_v19, %v1052_v18  ;;  %v430_v27 = vsel %vm410_vm0, %v1141_v23, 0  ;;  %37 = vst.msk [vmem:[#allocation4 + $0x38] sm:$0xff] %vm21_vm1, %v1374_v55 }
  0x3c   :  { %454 = vmatpush.bf16.xpose.msra.mxu0 %v1085_v31  ;;  %v1064_v31 = vld [vmem:[%s2010_s1 + $0x78] sm:$0xf] }
  0x3d   :  { %483 = vmatpush.bf16.xpose.msra.mxu1 %v1089_v32  ;;  %512 = vmatpush.bf16.xpose.msra.mxu2 %v1093_v33  ;;  %v1263_v32 = vld [vmem:[%s2010_s1 + $0x88] sm:$0xf0]  ;;  %v427_v33 = vsel %vm410_vm0, %v1121_v30, 0 }
  0x3e   :  { %541 = vmatpush.bf16.xpose.msra.mxu3 %v1097_v34  ;;  %v1261_v34 = vld [vmem:[%s2010_s1 + $0x7c] sm:$0xf]  ;;  %v1065_v42 = vor.u32 %v1263_v32, %v1064_v31 }
  0x43   :  { %455 = vmatmul.bf16.vlgmr.msra.gmra.mxu0 %v1005_v46  ;;  %v1077_v46 = vor.u32 %v1262_v40, %v1074_v41 }
  0x44   :  { %563 = vmatpush.bf16.xpose.msrb.mxu0 %v445_v37  ;;  %484 = vmatmul.bf16.vlgmr.msra.gmra.mxu1 %v1009_v48  ;;  %v1020_v48 = vld [vmem:[%s2010_s1 + $0x10] sm:$0xf] }
  0x45   :  { %1329 = vmatpush.bf16.xpose.msrb.mxu1 %v445_v37  ;;  %1330 = vmatpush.bf16.xpose.msrb.mxu2 %v445_v37 }
  0x46   :  { %1331 = vmatpush.bf16.xpose.msrb.mxu3 %v445_v37  ;;  %513 = vmatmul.bf16.vlgmr.msra.gmra.mxu2 %v1013_v49  ;;  %v1066_v37 = vld [vmem:[%s2010_s1 + $0x8c] sm:$0xf0]  ;;  %v1250_v49 = vld [vmem:[%s2010_s1 + $0x20] sm:$0xf0] }
  0x47   :  { %542 = vmatmul.bf16.vlgmr.msra.gmra.mxu3 %v1017_v50  ;;  %v1069_v44 = vor.u32 %v1261_v34, %v1066_v37  ;;  %v1040_v50 = vld [vmem:[%s2010_s1 + $0x38] sm:$0xf]  ;;  %v1021_v56 = vor.u32 %v1250_v49, %v1020_v48 }
  0x4c   :  { %564 = vmatpush.bf16.xpose.msrb.mxu0 %v442_v51 }
  0x4d   :  { %1332 = vmatpush.bf16.xpose.msrb.mxu1 %v442_v51  ;;  %1333 = vmatpush.bf16.xpose.msrb.mxu2 %v442_v51 }
  0x4e   :  { %1334 = vmatpush.bf16.xpose.msrb.mxu3 %v442_v51  ;;  %v1255_v51 = vld [vmem:[%s2010_s1 + $0x48] sm:$0xf0] }
  0x53   :  { %460 = vmatmul.bf16.gmra.mxu0 %v1025_v2 }
  0x54   :  { %565 = vmatpush.bf16.xpose.msrb.mxu0 %v439_v57  ;;  %489 = vmatmul.bf16.gmra.mxu1 %v1029_v4 }
  0x55   :  { %1335 = vmatpush.bf16.xpose.msrb.mxu1 %v439_v57  ;;  %1336 = vmatpush.bf16.xpose.msrb.mxu2 %v439_v57 }
  0x56   :  { %1337 = vmatpush.bf16.xpose.msrb.mxu3 %v439_v57  ;;  %518 = vmatmul.bf16.gmra.mxu2 %v1033_v5  ;;  %v1041_v57 = vor.u32 %v1255_v51, %v1040_v50 }
  0x57   :  { %547 = vmatmul.bf16.gmra.mxu3 %v1037_v6 }
  0x5c   :  { %566 = vmatpush.bf16.xpose.msrb.mxu0 %v436_v7 }
  0x5d   :  { %1338 = vmatpush.bf16.xpose.msrb.mxu1 %v436_v7  ;;  %1339 = vmatpush.bf16.xpose.msrb.mxu2 %v436_v7 }
  0x5e   :  { %1340 = vmatpush.bf16.xpose.msrb.mxu3 %v436_v7 }
  0x63   :  { %465 = vmatmul.bf16.gmra.mxu0 %v1045_v22 }
  0x64   :  { %567 = vmatpush.bf16.xpose.msrb.mxu0 %v433_v13  ;;  %494 = vmatmul.bf16.gmra.mxu1 %v1049_v24 }
  0x65   :  { %1341 = vmatpush.bf16.xpose.msrb.mxu1 %v433_v13  ;;  %1342 = vmatpush.bf16.xpose.msrb.mxu2 %v433_v13 }
  0x66   :  { %1343 = vmatpush.bf16.xpose.msrb.mxu3 %v433_v13  ;;  %523 = vmatmul.bf16.gmra.mxu2 %v1053_v25 }
  0x67   :  { %552 = vmatmul.bf16.gmra.mxu3 %v1057_v26 }
  0x6c   :  { %568 = vmatpush.bf16.xpose.msrb.mxu0 %v430_v27 }
  0x6d   :  { %1344 = vmatpush.bf16.xpose.msrb.mxu1 %v430_v27  ;;  %1345 = vmatpush.bf16.xpose.msrb.mxu2 %v430_v27 }
  0x6e   :  { %1346 = vmatpush.bf16.xpose.msrb.mxu3 %v430_v27 }
  0x73   :  { %470 = vmatmul.bf16.gmra.mxu0 %v1065_v42 }
  0x74   :  { %569 = vmatpush.bf16.xpose.msrb.mxu0 %v427_v33  ;;  %499 = vmatmul.bf16.gmra.mxu1 %v1069_v44 }
  0x75   :  { %1347 = vmatpush.bf16.xpose.msrb.mxu1 %v427_v33  ;;  %1348 = vmatpush.bf16.xpose.msrb.mxu2 %v427_v33 }
  0x76   :  { %1349 = vmatpush.bf16.xpose.msrb.mxu3 %v427_v33  ;;  %528 = vmatmul.bf16.gmra.mxu2 %v1073_v45 }
  0x77   :  { %557 = vmatmul.bf16.gmra.mxu3 %v1077_v46 }
  0x7c   :  { %570 = vmatpush.bf16.xpose.msrb.mxu0 %v424_v47 }
  0x7d   :  { %1350 = vmatpush.bf16.xpose.msrb.mxu1 %v424_v47  ;;  %1351 = vmatpush.bf16.xpose.msrb.mxu2 %v424_v47 }
  0x7e   :  { %1352 = vmatpush.bf16.xpose.msrb.mxu3 %v424_v47 }
  0x83   :  { %1242 = vmatmul.msk.bf16.vlgmr.msrb.gmra.mxu0 %vm410_vm0, %v1021_v56 }
  0x84   :  { %1243 = vmatmul.msk.bf16.vlgmr.msrb.gmra.mxu1 %vm410_vm0, %v1041_v57 }
  0x86   :  { %1244 = vmatmul.msk.bf16.vlgmr.msrb.gmra.mxu2 %vm410_vm0, %v1061_v58 }
  0x87   :  { %1245 = vmatmul.msk.bf16.vlgmr.msrb.gmra.mxu3 %vm410_vm0, %v1081_v59 }
  0xc0   :  { %v456_v60 = vpop.f32.mrf.mxu0 }
  0xc1   :  { %v485_v61 = vpop.f32.mrf.mxu1 }
  0xc2   :  { %v486_v26 = vadd.f32 %v485_v61, %v456_v60 }
  0xc8   :  { %v458_v0 = vpop.f32.mrf.mxu0 }
  0xc9   :  { %v514_v62 = vpop.f32.mrf.mxu2  ;;  %v487_v1 = vpop.f32.mrf.mxu1 }
  0xca   :  { %v543_v63 = vpop.f32.mrf.mxu3  ;;  %v488_v2 = vadd.f32 %v487_v1, %v458_v0  ;;  %v515_v29 = vadd.f32 %v514_v62, %v486_v26  ;;  %v606_v26 = vld [vmem:[#allocation3 + $0x20] sm:$0xff] }
  0xcc   :  { %v544_v31 = vadd.f32 %v543_v63, %v515_v29 }
  0xd0   :  { %v461_v5 = vpop.f32.mrf.mxu0 }
  0xd1   :  { %v516_v3 = vpop.f32.mrf.mxu2  ;;  %v490_v6 = vpop.f32.mrf.mxu1 }
  0xd2   :  { %v1773_v4 = vpop.f32.mrf.mxu3  ;;  %v491_v28 = vadd.f32 %v490_v6, %v461_v5  ;;  %v517_v52 = vadd.f32 %v516_v3, %v488_v2 }
  0xd4   :  { %v546_v58 = vadd.f32 %v1773_v4, %v517_v52 }
  0xd8   :  { %v463_v9 = vpop.f32.mrf.mxu0 }
  0xd9   :  { %v519_v7 = vpop.f32.mrf.mxu2  ;;  %v492_v10 = vpop.f32.mrf.mxu1 }
  0xda   :  { %v548_v8 = vpop.f32.mrf.mxu3  ;;  %v520_v30 = vadd.f32 %v519_v7, %v491_v28  ;;  %v493_v44 = vadd.f32 %v492_v10, %v463_v9 }
  0xdc   :  { %v549_v33 = vadd.f32 %v548_v8, %v520_v30 }
  0xe0   :  { %v466_v13 = vpop.f32.mrf.mxu0 }
  0xe1   :  { %v521_v11 = vpop.f32.mrf.mxu2  ;;  %v495_v14 = vpop.f32.mrf.mxu1 }
  0xe2   :  { %v550_v12 = vpop.f32.mrf.mxu3  ;;  %v496_v40 = vadd.f32 %v495_v14, %v466_v13  ;;  %v522_v48 = vadd.f32 %v521_v11, %v493_v44  ;;  %v602_v13 = vld [vmem:[#allocation3] sm:$0xff]  ;;  %v604_v14 = vld [vmem:[#allocation3 + $0x10] sm:$0xff]  ;;  %v646_v44 = vld [vmem:[#allocation4 + $0x18] sm:$0xff] }
  0xe4   :  { %v551_v56 = vadd.f32 %v550_v12, %v522_v48 }
  0xe8   :  { %v468_v17 = vpop.f32.mrf.mxu0 }
  0xe9   :  { %v524_v15 = vpop.f32.mrf.mxu2  ;;  %v497_v18 = vpop.f32.mrf.mxu1 }
  0xea   :  { %v553_v16 = vpop.f32.mrf.mxu3  ;;  %v525_v43 = vadd.f32 %v524_v15, %v496_v40  ;;  %v498_v62 = vadd.f32 %v497_v18, %v468_v17  ;;  %v603_v40 = vld [vmem:[#allocation3 + $0x8] sm:$0xff] }
  0xec   :  { %v554_v49 = vadd.f32 %v553_v16, %v525_v43  ;;  %v643_v16 = vld [vmem:[#allocation4] sm:$0xff] }
  0xf0   :  { %v471_v21 = vpop.f32.mrf.mxu0 }
  0xf1   :  { %v1775_v19 = vpop.f32.mrf.mxu2  ;;  %v500_v22 = vpop.f32.mrf.mxu1 }
  0xf2   :  { %v1777_v20 = vpop.f32.mrf.mxu3  ;;  %v501_v36 = vadd.f32 %v500_v22, %v471_v21  ;;  %v527_v1 = vadd.f32 %v1775_v19, %v498_v62  ;;  %v608_v22 = vld [vmem:[#allocation3 + $0x30] sm:$0xff] }
  0xf4   :  { %v556_v5 = vadd.f32 %v1777_v20, %v527_v1 }
  0xf8   :  { %v473_v25 = vpop.f32.mrf.mxu0 }
  0xf9   :  { %v529_v23 = vpop.f32.mrf.mxu2  ;;  %v502_v27 = vpop.f32.mrf.mxu1 }
  0xfa   :  { %v558_v24 = vpop.f32.mrf.mxu3  ;;  %v530_v41 = vadd.f32 %v529_v23, %v501_v36  ;;  %v503_v61 = vadd.f32 %v502_v27, %v473_v25  ;;  %v1375_v23 = vmov 0  }
  0xfb   :  { %1355 = vset.pattern.permute.xlu1 %v1375_v23  ;;  %1356 = vset.pattern.permute.xlu0 %v1375_v23 }
  0xfc   :  { %v559_v45 = vadd.f32 %v558_v24, %v530_v41  ;;  %v645_v24 = vld [vmem:[#allocation4 + $0x10] sm:$0xff]  ;;  %1357 = vset.pattern.permute.xlu2 %v1375_v23  ;;  %v605_v41 = vld [vmem:[#allocation3 + $0x18] sm:$0xff] }
  0xfd   :  { %v649_v23 = vld [vmem:[#allocation4 + $0x30] sm:$0xff] }
 0x100   :  { %v572_v35 = vpop.f32.mrf.mxu0 }
 0x101   :  { %v531_v32 = vpop.f32.mrf.mxu2  ;;  %v1779_v37 = vadd.f32 %v572_v35, %v544_v31  ;;  %v577_v38 = vpop.f32.mrf.mxu1 }
 0x102   :  { %v560_v34 = vpop.f32.mrf.mxu3  ;;  %v1781_v39 = vadd.f32 %v577_v38, %v549_v33  ;;  %v532_v0 = vadd.f32 %v531_v32, %v503_v61  ;;  %v609_v61 = vld [vmem:[#allocation3 + $0x38] sm:$0xff] }
 0x103   :  { %610 = vadd.xlane.f32.xlu0 %v1779_v37  ;;  %v651_v42 = vmul.f32 %v1779_v37, %v1779_v37 }
 0x104   :  { %614 = vadd.xlane.f32.xlu1 %v1781_v39  ;;  %v653_v51 = vmul.f32 %v1781_v39, %v1781_v39  ;;  %v561_v3 = vadd.f32 %v560_v34, %v532_v0 }
 0x105   :  { %659 = vadd.xlane.f32.xlu2 %v651_v42 }
 0x108   :  { %v574_v57 = vpop.f32.mrf.mxu0 }
 0x109   :  { %v582_v46 = vpop.f32.mrf.mxu2  ;;  %v579_v54 = vpop.f32.mrf.mxu1  ;;  %v1803_v60 = vadd.f32 %v574_v57, %v546_v58  ;;  %v647_v57 = vld [vmem:[#allocation4 + $0x20] sm:$0xff] }
 0x10a   :  { %v587_v47 = vpop.f32.mrf.mxu3  ;;  %v1791_v53 = vadd.f32 %v582_v46, %v554_v49  ;;  %v1799_v59 = vadd.f32 %v579_v54, %v551_v56 }
 0x10b   :  { %v1787_v50 = vadd.f32 %v587_v47, %v559_v45  ;;  %v652_v9 = vmul.f32 %v1803_v60, %v1803_v60 }
 0x10c   :  { %663 = vadd.xlane.f32.xlu1 %v653_v51  ;;  %v654_v63 = vmul.f32 %v1799_v59, %v1799_v59  ;;  %v655_v6 = vmul.f32 %v1791_v53, %v1791_v53 }
 0x10d   :  { %622 = vadd.xlane.f32.xlu0 %v1787_v50  ;;  %618 = vadd.xlane.f32.xlu2 %v1791_v53  ;;  %v657_v11 = vmul.f32 %v1787_v50, %v1787_v50 }
 0x111   :  { %v584_v4 = vpop.f32.mrf.mxu2 }
 0x112   :  { %v589_v2 = vpop.f32.mrf.mxu3  ;;  %v1825_v8 = vadd.f32 %v584_v4, %v556_v5 }
 0x113   :  { %v1822_v7 = vadd.f32 %v589_v2, %v561_v3 }
 0x114   :  { %616 = vadd.xlane.f32.xlu1 %v1799_v59  ;;  %v656_v10 = vmul.f32 %v1825_v8, %v1825_v8 }
 0x115   :  { %612 = vadd.xlane.f32.xlu0 %v1803_v60  ;;  %665 = vadd.xlane.f32.xlu2 %v654_v63  ;;  %v658_v12 = vmul.f32 %v1822_v7, %v1822_v7  ;;  %v607_v63 = vld [vmem:[#allocation3 + $0x28] sm:$0xff] }
 0x11c   :  { %624 = vadd.xlane.f32.xlu1 %v1822_v7 }
 0x11d   :  { %667 = vadd.xlane.f32.xlu0 %v655_v6  ;;  %620 = vadd.xlane.f32.xlu2 %v1825_v8 }
 0x124   :  { %669 = vadd.xlane.f32.xlu1 %v656_v10 }
 0x125   :  { %661 = vadd.xlane.f32.xlu0 %v652_v9  ;;  %671 = vadd.xlane.f32.xlu2 %v657_v11 }
 0x12d   :  { %673 = vadd.xlane.f32.xlu0 %v658_v12 }
 0x176   :  { %v611_v15 = vpop.xlane.xlu0 %610 }
 0x177   :  { %v615_v17 = vpop.xlane.xlu1 %614  ;;  %v626_v18 = vadd.f32 %v611_v15, %v602_v13 }
 0x178   :  { %v628_v19 = vadd.f32 %v615_v17, %v604_v14  ;;  %v660_v20 = vpop.xlane.xlu2 %659 }
 0x179   :  { %635 = vst.msk [vmem:[#allocation3] sm:$0xff] %vm21_vm1, %v626_v18  ;;  %v675_v21 = vadd.f32 %v660_v20, %v643_v16  ;;  %v644_v16 = vld [vmem:[#allocation4 + $0x8] sm:$0xff] }
 0x17a   :  { %637 = vst.msk [vmem:[#allocation3 + $0x10] sm:$0xff] %vm21_vm1, %v628_v19  ;;  %v648_v19 = vld [vmem:[#allocation4 + $0x28] sm:$0xff] }
 0x17b   :  { %683 = vst.msk [vmem:[#allocation4] sm:$0xff] %vm21_vm1, %v675_v21 }
 0x17f   :  { %v664_v27 = vpop.xlane.xlu1 %663 }
 0x180   :  { %v623_v25 = vpop.xlane.xlu0 %622  ;;  %v677_v29 = vadd.f32 %v664_v27, %v645_v24  ;;  %v619_v30 = vpop.xlane.xlu2 %618  ;;  %v694_v31 = vld [vmem:[#allocation3] sm:$0xff] }
 0x181   :  { %v632_v28 = vadd.f32 %v623_v25, %v608_v22  ;;  %v630_v32 = vadd.f32 %v619_v30, %v606_v26  ;;  %v1842_v33 = vmul.f32 0.010204081, %v694_v31  ;;  %v696_v38 = vld [vmem:[#allocation3 + $0x10] sm:$0xff]  ;;  %v742_v31 = vld [vmem:[%s2011_s2] sm:$0xff] }
 0x182   :  { %685 = vst.msk [vmem:[#allocation4 + $0x10] sm:$0xff] %vm21_vm1, %v677_v29  ;;  %v710_v34 = vld [vmem:[#allocation4] sm:$0xff]  ;;  %v1848_v45 = vmul.f32 0.010204081, %v696_v38 }
 0x183   :  { %641 = vst.msk [vmem:[#allocation3 + $0x30] sm:$0xff] %vm21_vm1, %v632_v28  ;;  %v718_v35 = vmul.f32 0.010204081, %v710_v34  ;;  %v726_v36 = vmul.f32 %v1842_v33, %v1842_v33 }
 0x184   :  { %639 = vst.msk [vmem:[#allocation3 + $0x20] sm:$0xff] %vm21_vm1, %v630_v32  ;;  %v728_v56 = vmul.f32 %v1848_v45, %v1848_v45 }
 0x185   :  { %v734_v42 = vsub.f32 %v718_v35, %v726_v36 }
 0x187   :  { %v617_v46 = vpop.xlane.xlu1 %616  ;;  %v750_v48 = vadd.f32 1e-05, %v734_v42 }
 0x188   :  { %v613_v43 = vpop.xlane.xlu0 %612  ;;  %v629_v49 = vadd.f32 %v617_v46, %v605_v41  ;;  %v666_v51 = vpop.xlane.xlu2 %665 }
 0x189   :  { %v627_v47 = vadd.f32 %v613_v43, %v603_v40  ;;  %v678_v52 = vadd.f32 %v666_v51, %v646_v44  ;;  %1358 = vrsqrt.f32 %v750_v48  ;;  %v712_v54 = vld [vmem:[#allocation4 + $0x10] sm:$0xff]  ;;  %vm764_vm3 = vweird.f32 %v750_v48  ;;  %v650_v51 = vld [vmem:[#allocation4 + $0x38] sm:$0xff] }
 0x18a   :  { %638 = vst.msk [vmem:[#allocation3 + $0x18] sm:$0xff] %vm21_vm1, %v629_v49  ;;  %v720_v55 = vmul.f32 0.010204081, %v712_v54 }
 0x18b   :  { %636 = vst.msk [vmem:[#allocation3 + $0x8] sm:$0xff] %vm21_vm1, %v627_v47  ;;  %v698_v12 = vld [vmem:[#allocation3 + $0x20] sm:$0xff] }
 0x18c   :  { %686 = vst.msk [vmem:[#allocation4 + $0x18] sm:$0xff] %vm21_vm1, %v678_v52  ;;  %v736_v58 = vsub.f32 %v720_v55, %v728_v56  ;;  %v1865_v20 = vmul.f32 0.010204081, %v698_v12 }
 0x18e   :  { %v1855_v0 = vadd.f32 1e-05, %v736_v58  ;;  %v730_v41 = vmul.f32 %v1865_v20, %v1865_v20 }
 0x18f   :  { %v1359_v1 = vpop.eup %1358  ;;  %v625_v2 = vpop.xlane.xlu1 %624 }
 0x190   :  { %v668_v62 = vpop.xlane.xlu0 %667  ;;  %v633_v4 = vadd.f32 %v625_v2, %v609_v61  ;;  %v621_v5 = vpop.xlane.xlu2 %620  ;;  %v759_v6 = vmul.f32 %v1359_v1, %v750_v48  ;;  %1360 = vrsqrt.f32 %v1855_v0  ;;  %vm765_vm2 = vweird.f32 %v1359_v1  ;;  %v700_v48 = vld [vmem:[#allocation3 + $0x30] sm:$0xff]  ;;  %v846_v2 = vld [vmem:[%s2012_s3] sm:$0xff] }
 0x191   :  { %v679_v3 = vadd.f32 %v668_v62, %v647_v57  ;;  %v631_v9 = vadd.f32 %v621_v5, %v607_v63  ;;  %v697_v10 = vld [vmem:[#allocation3 + $0x18] sm:$0xff]  ;;  %vm766_vm4 = vmor %vm764_vm3, %vm765_vm2  ;;  %vm784_vm6 = vweird.f32 %v1855_v0  ;;  %v1884_v57 = vmul.f32 0.010204081, %v700_v48  ;;  %v744_v62 = vld [vmem:[%s2011_s2 + $0x10] sm:$0xff] }
 0x192   :  { %642 = vst.msk [vmem:[#allocation3 + $0x38] sm:$0xff] %vm21_vm1, %v633_v4  ;;  %v760_v11 = vmul.f32 %v1359_v1, %v759_v6  ;;  %v1860_v13 = vmul.f32 0.010204081, %v697_v10  ;;  %v695_v43 = vld [vmem:[#allocation3 + $0x8] sm:$0xff]  ;;  %v746_v48 = vld [vmem:[%s2011_s2 + $0x20] sm:$0xff] }
 0x193   :  { %687 = vst.msk [vmem:[#allocation4 + $0x20] sm:$0xff] %vm21_vm1, %v679_v3  ;;  %v713_v14 = vld [vmem:[#allocation4 + $0x18] sm:$0xff]  ;;  %v1881_v55 = vmul.f32 0.010204081, %v695_v43 }
 0x194   :  { %640 = vst.msk [vmem:[#allocation3 + $0x28] sm:$0xff] %vm21_vm1, %v631_v9  ;;  %v721_v15 = vmul.f32 0.010204081, %v713_v14  ;;  %v761_v17 = vmul.f32 0.5, %v760_v11  ;;  %v729_v18 = vmul.f32 %v1860_v13, %v1860_v13 }
 0x195   :  { %v727_v6 = vmul.f32 %v1881_v55, %v1881_v55 }
 0x196   :  { %v1361_v21 = vpop.eup %1360  ;;  %v762_v24 = vsub.f32 1.5, %v761_v17  ;;  %v737_v25 = vsub.f32 %v721_v15, %v729_v18 }
 0x197   :  { %v670_v26 = vpop.xlane.xlu1 %669  ;;  %v779_v28 = vmul.f32 %v1361_v21, %v1855_v0  ;;  %vm785_vm5 = vweird.f32 %v1361_v21 }
 0x198   :  { %v662_v22 = vpop.xlane.xlu0 %661  ;;  %v680_v29 = vadd.f32 %v670_v26, %v648_v19  ;;  %v672_v30 = vpop.xlane.xlu2 %671  ;;  %v763_v32 = vmul.f32 %v1359_v1, %v762_v24  ;;  %v1871_v35 = vadd.f32 1e-05, %v737_v25  ;;  %vm786_vm7 = vmor %vm784_vm6, %vm785_vm5  ;;  %v732_v19 = vmul.f32 %v1884_v57, %v1884_v57 }
 0x199   :  { %v676_v27 = vadd.f32 %v662_v22, %v644_v16  ;;  %v681_v36 = vadd.f32 %v672_v30, %v649_v23  ;;  %v780_v38 = vmul.f32 %v1361_v21, %v779_v28  ;;  %v701_v11 = vld [vmem:[#allocation3 + $0x38] sm:$0xff]  ;;  %v848_v16 = vld [vmem:[%s2012_s3 + $0x10] sm:$0xff] }
 0x19a   :  { %v714_v34 = vld [vmem:[#allocation4 + $0x20] sm:$0xff]  ;;  %688 = vst.msk [vmem:[#allocation4 + $0x28] sm:$0xff] %vm21_vm1, %v680_v29  ;;  %v767_v42 = vsel %vm766_vm4, %v1359_v1, %v763_v32  ;;  %1362 = vrsqrt.f32 %v1871_v35  ;;  %vm794_vm15 = vweird.f32 %v1871_v35 }
 0x19b   :  { %684 = vst.msk [vmem:[#allocation4 + $0x8] sm:$0xff] %vm21_vm1, %v676_v27  ;;  %v722_v40 = vmul.f32 0.010204081, %v714_v34  ;;  %v838_v44 = vmul.f32 %v767_v42, %v742_v31  ;;  %v781_v46 = vmul.f32 0.5, %v780_v38  ;;  %v699_v49 = vld [vmem:[#allocation3 + $0x28] sm:$0xff] }
 0x19c   :  { %689 = vst.msk [vmem:[#allocation4 + $0x30] sm:$0xff] %vm21_vm1, %v681_v36  ;;  %v1886_v58 = vmul.f32 0.010204081, %v699_v49  ;;  %v1911_v27 = vmul.f32 0.010204081, %v701_v11 }
 0x19d   :  { %v738_v47 = vsub.f32 %v722_v40, %v730_v41  ;;  %880 = vperm.xlu1 %1355, %v838_v44   ;;  %v782_v52 = vsub.f32 1.5, %v781_v46  ;;  %v854_v1 = vmul.f32 %v838_v44, %v1842_v33 }
 0x19e   :  { %v731_v14 = vmul.f32 %v1886_v58, %v1886_v58  ;;  %v733_v38 = vmul.f32 %v1911_v27, %v1911_v27 }
 0x19f   :  { %v1879_v54 = vadd.f32 1e-05, %v738_v47  ;;  %v783_v63 = vmul.f32 %v1361_v21, %v782_v52  ;;  %v862_v15 = vsub.f32 %v846_v2, %v854_v1  ;;  %v850_v2 = vld [vmem:[%s2012_s3 + $0x20] sm:$0xff] }
 0x1a0   :  { %v674_v56 = vpop.xlane.xlu0 %673  ;;  %v1896_v3 = vpop.eup %1362 }
 0x1a1   :  { %v682_v61 = vadd.f32 %v674_v56, %v650_v51  ;;  %1364 = vrsqrt.f32 %v1879_v54  ;;  %v787_v4 = vsel %vm786_vm7, %v1361_v21, %v783_v63  ;;  %v715_v9 = vld [vmem:[#allocation4 + $0x28] sm:$0xff]  ;;  %v789_v22 = vmul.f32 %v1896_v3, %v1871_v35  ;;  %v748_v35 = vld [vmem:[%s2011_s2 + $0x30] sm:$0xff] }
 0x1a2   :  { %v711_v0 = vld [vmem:[#allocation4 + $0x8] sm:$0xff]  ;;  %v840_v10 = vmul.f32 %v787_v4, %v744_v62  ;;  %v723_v12 = vmul.f32 0.010204081, %v715_v9  ;;  %vm804_vm9 = vweird.f32 %v1879_v54  ;;  %vm795_vm11 = vweird.f32 %v1896_v3 }
 0x1a3   :  { %690 = vst.msk [vmem:[#allocation4 + $0x38] sm:$0xff] %vm21_vm1, %v682_v61  ;;  %v719_v5 = vmul.f32 0.010204081, %v711_v0  ;;  %v716_v33 = vld [vmem:[#allocation4 + $0x30] sm:$0xff]  ;;  %vm1941_vm0 = vmor %vm794_vm15, %vm795_vm11 }
 0x1a4   :  { %v724_v18 = vmul.f32 0.010204081, %v716_v33  ;;  %890 = vperm.xlu0 %1356, %v840_v10   ;;  %v856_v21 = vmul.f32 %v840_v10, %v1848_v45  ;;  %v739_v23 = vsub.f32 %v723_v12, %v731_v14  ;;  %v790_v45 = vmul.f32 %v1896_v3, %v789_v22  ;;  %v743_v12 = vld [vmem:[%s2011_s2 + $0x8] sm:$0xff] }
 0x1a5   :  { %v735_v17 = vsub.f32 %v719_v5, %v727_v6  ;;  %928 = vperm.xlu1 %1355, %v862_v15  }
 0x1a6   :  { %v740_v26 = vsub.f32 %v724_v18, %v732_v19  ;;  %v864_v28 = vsub.f32 %v848_v16, %v856_v21  ;;  %v1914_v30 = vadd.f32 1e-05, %v739_v23  ;;  %v791_v43 = vmul.f32 0.5, %v790_v45  ;;  %v745_v21 = vld [vmem:[%s2011_s2 + $0x18] sm:$0xff] }
 0x1a7   :  { %v1365_v24 = vpop.eup %1364  ;;  %v751_v25 = vadd.f32 1e-05, %v735_v17 }
 0x1a8   :  { %v799_v29 = vmul.f32 %v1365_v24, %v1879_v54  ;;  %v756_v31 = vadd.f32 1e-05, %v740_v26  ;;  %938 = vperm.xlu2 %1357, %v864_v28   ;;  %vm805_vm8 = vweird.f32 %v1365_v24  ;;  %v792_v63 = vsub.f32 1.5, %v791_v43  ;;  %v847_v26 = vld [vmem:[%s2012_s3 + $0x8] sm:$0xff] }
 0x1a9   :  { %1366 = vrsqrt.f32 %v751_v25  ;;  %vm806_vm10 = vmor %vm804_vm9, %vm805_vm8  ;;  %vm774_vm13 = vweird.f32 %v751_v25  ;;  %vm814_vm8 = vweird.f32 %v1914_v30 }
 0x1aa   :  { %v800_v32 = vmul.f32 %v1365_v24, %v799_v29  ;;  %v717_v34 = vld [vmem:[#allocation4 + $0x38] sm:$0xff]  ;;  %1368 = vrsqrt.f32 %v1914_v30  ;;  %v793_v10 = vmul.f32 %v1896_v3, %v792_v63  ;;  %vm824_vm2 = vweird.f32 %v756_v31  ;;  %v851_v63 = vld [vmem:[%s2012_s3 + $0x28] sm:$0xff] }
 0x1ab   :  { %1370 = vrsqrt.f32 %v756_v31  ;;  %v725_v36 = vmul.f32 0.010204081, %v717_v34 }
 0x1ac   :  { %v801_v40 = vmul.f32 0.5, %v800_v32  ;;  %v797_v22 = vsel %vm1941_vm0, %v1896_v3, %v793_v10 }
 0x1ad   :  { %v741_v41 = vsub.f32 %v725_v36, %v733_v38  ;;  %v841_v45 = vmul.f32 %v797_v22, %v745_v21  ;;  %v749_v36 = vld [vmem:[%s2011_s2 + $0x38] sm:$0xff] }
 0x1ae   :  { %v802_v42 = vsub.f32 1.5, %v801_v40 }
 0x1af   :  { %v1367_v44 = vpop.eup %1366  ;;  %v1920_v46 = vadd.f32 1e-05, %v741_v41  ;;  %v857_v41 = vmul.f32 %v841_v45, %v1860_v13 }
 0x1b0   :  { %v1922_v47 = vpop.eup %1368  ;;  %v803_v49 = vmul.f32 %v1365_v24, %v802_v42  ;;  %v769_v51 = vmul.f32 %v1367_v44, %v751_v25  ;;  %vm775_vm12 = vweird.f32 %v1367_v44 }
 0x1b1   :  { %v1371_v52 = vpop.eup %1370  ;;  %1372 = vrsqrt.f32 %v1920_v46  ;;  %v809_v5 = vmul.f32 %v1922_v47, %v1914_v30  ;;  %vm776_vm1 = vmor %vm774_vm13, %vm775_vm12  ;;  %vm834_vm5 = vweird.f32 %v1920_v46  ;;  %vm815_vm7 = vweird.f32 %v1922_v47 }
 0x1b2   :  { %v807_v56 = vsel %vm806_vm10, %v1365_v24, %v803_v49  ;;  %v770_v61 = vmul.f32 %v1367_v44, %v769_v51  ;;  %v819_v62 = vmul.f32 %v1371_v52, %v756_v31  ;;  %vm825_vm14 = vweird.f32 %v1371_v52  ;;  %vm816_vm9 = vmor %vm814_vm8, %vm815_vm7  ;;  %v747_v51 = vld [vmem:[%s2011_s2 + $0x28] sm:$0xff] }
 0x1b3   :  { %v842_v1 = vmul.f32 %v807_v56, %v746_v48  ;;  %v810_v17 = vmul.f32 %v1922_v47, %v809_v5  ;;  %vm826_vm3 = vmor %vm824_vm2, %vm825_vm14 }
 0x1b4   :  { %v771_v0 = vmul.f32 0.5, %v770_v61  ;;  %v820_v4 = vmul.f32 %v1371_v52, %v819_v62  ;;  %v852_v61 = vld [vmem:[%s2012_s3 + $0x30] sm:$0xff] }
 0x1b5   :  { %900 = vperm.xlu1 %1355, %v842_v1   ;;  %v858_v54 = vmul.f32 %v842_v1, %v1865_v20  ;;  %v811_v29 = vmul.f32 0.5, %v810_v17 }
 0x1b6   :  { %v772_v6 = vsub.f32 1.5, %v771_v0  ;;  %v821_v9 = vmul.f32 0.5, %v820_v4 }
 0x1b7   :  { %v1373_v33 = vpop.eup %1372  ;;  %v866_v11 = vsub.f32 %v850_v2, %v858_v54  ;;  %v812_v40 = vsub.f32 1.5, %v811_v29 }
 0x1b8   :  { %v773_v14 = vmul.f32 %v1367_v44, %v772_v6  ;;  %v822_v15 = vsub.f32 1.5, %v821_v9  ;;  %v829_v16 = vmul.f32 %v1373_v33, %v1920_v46  ;;  %vm835_vm4 = vweird.f32 %v1373_v33 }
 0x1b9   :  { %948 = vperm.xlu0 %1356, %v866_v11   ;;  %vm836_vm6 = vmor %vm834_vm5, %vm835_vm4  ;;  %v813_v48 = vmul.f32 %v1922_v47, %v812_v40 }
 0x1ba   :  { %v777_v18 = vsel %vm776_vm1, %v1367_v44, %v773_v14  ;;  %v823_v19 = vmul.f32 %v1371_v52, %v822_v15  ;;  %v830_v23 = vmul.f32 %v1373_v33, %v829_v16  ;;  %v853_v44 = vld [vmem:[%s2012_s3 + $0x38] sm:$0xff] }
 0x1bb   :  { %v839_v24 = vmul.f32 %v777_v18, %v743_v12 }
 0x1bc   :  { %v827_v25 = vsel %vm826_vm3, %v1371_v52, %v823_v19  ;;  %v831_v28 = vmul.f32 0.5, %v830_v23  ;;  %v817_v52 = vsel %vm816_vm9, %v1922_v47, %v813_v48 }
 0x1bd   :  { %885 = vperm.xlu2 %1357, %v839_v24   ;;  %v844_v31 = vmul.f32 %v827_v25, %v748_v35  ;;  %v855_v32 = vmul.f32 %v839_v24, %v1881_v55  ;;  %v849_v55 = vld [vmem:[%s2012_s3 + $0x18] sm:$0xff]  ;;  %v843_v62 = vmul.f32 %v817_v52, %v747_v51 }
 0x1be   :  { %v832_v34 = vsub.f32 1.5, %v831_v28  ;;  %v865_v46 = vsub.f32 %v849_v55, %v857_v41 }
 0x1bf   :  { %910 = vperm.xlu1 %1355, %v844_v31   ;;  %v863_v3 = vsub.f32 %v847_v26, %v855_v32  ;;  %v860_v56 = vmul.f32 %v844_v31, %v1884_v57  ;;  %v859_v30 = vmul.f32 %v843_v62, %v1886_v58 }
 0x1c0   :  { %v833_v38 = vmul.f32 %v1373_v33, %v832_v34 }
 0x1c1   :  { %933 = vperm.xlu0 %1356, %v863_v3   ;;  %v867_v1 = vsub.f32 %v851_v63, %v859_v30 }
 0x1c2   :  { %v837_v42 = vsel %vm836_vm6, %v1373_v33, %v833_v38 }
 0x1c3   :  { %v845_v43 = vmul.f32 %v837_v42, %v749_v36 }
 0x1c5   :  { %895 = vperm.xlu2 %1357, %v841_v45   ;;  %v861_v49 = vmul.f32 %v845_v43, %v1911_v27  ;;  %v868_v27 = vsub.f32 %v852_v61, %v860_v56 }
 0x1c7   :  { %943 = vperm.xlu1 %1355, %v865_v46   ;;  %v869_v13 = vsub.f32 %v853_v44, %v861_v49 }
 0x1c9   :  { %963 = vperm.xlu0 %1356, %v869_v13  }
 0x1cd   :  { %905 = vperm.xlu2 %1357, %v843_v62  }
 0x1cf   :  { %958 = vperm.xlu1 %1355, %v868_v27  }
 0x1d5   :  { %915 = vperm.xlu2 %1357, %v845_v43  }
 0x1dd   :  { %953 = vperm.xlu2 %1357, %v867_v1  }
 0x202   :  { %v939_v47 = vpop.permute.xlu2 %938 }
 0x20f   :  { %v881_v2 = vpop.permute.xlu1 %880 }
 0x210   :  { %v918_v33 = vmul.f32 %v881_v2, %v1779_v37 }
 0x216   :  { %v891_v5 = vpop.permute.xlu0 %890 }
 0x217   :  { %v886_v57 = vpop.permute.xlu2 %885  ;;  %v929_v4 = vpop.permute.xlu1 %928  ;;  %v920_v15 = vmul.f32 %v891_v5, %v1781_v39 }
 0x218   :  { %v919_v58 = vmul.f32 %v886_v57, %v1803_v60  ;;  %v966_v12 = vadd.f32 %v929_v4, %v918_v33 }
 0x219   :  { %v968_v22 = vadd.f32 %v939_v47, %v920_v15 }
 0x21a   :  { %v974_v17 = vmax.f32 %v966_v12, 0.0 }
 0x21b   :  { %v976_v26 = vmax.f32 %v968_v22, 0.0 }
 0x21f   :  { %v896_v0 = vpop.permute.xlu2 %895 }
 0x220   :  { %v921_v23 = vmul.f32 %v896_v0, %v1799_v59 }
 0x227   :  { %v906_v54 = vpop.permute.xlu2 %905  ;;  %v901_v6 = vpop.permute.xlu1 %900 }
 0x228   :  { %v922_v20 = vmul.f32 %v901_v6, %v1791_v53  ;;  %v923_v18 = vmul.f32 %v906_v54, %v1825_v8 }
 0x22b   :  { %v949_v9 = vpop.permute.xlu0 %948 }
 0x22c   :  { %v970_v35 = vadd.f32 %v949_v9, %v922_v20 }
 0x22e   :  { %v978_v60 = vmax.f32 %v970_v35, 0.0 }
 0x22f   :  { %v916_v10 = vpop.permute.xlu2 %915 }
 0x230   :  { %v925_v31 = vmul.f32 %v916_v10, %v1822_v7 }
 0x231   :  { %v911_v11 = vpop.permute.xlu1 %910 }
 0x232   :  { %v924_v32 = vmul.f32 %v911_v11, %v1787_v50 }
 0x233   :  { %v934_v14 = vpop.permute.xlu0 %933 }
 0x234   :  { %v967_v16 = vadd.f32 %v934_v14, %v919_v58 }
 0x236   :  { %v975_v19 = vmax.f32 %v967_v16, 0.0 }
 0x237   :  { %v954_v21 = vpop.permute.xlu2 %953 }
 0x238   :  { %v1309_v37 = vpack.c.bf16 %v975_v19, %v974_v17  ;;  %v971_v24 = vadd.f32 %v954_v21, %v923_v18 }
 0x239   :  { %v944_v25 = vpop.permute.xlu1 %943 }
 0x23a   :  { %1310 = vst [vmem:[%s2013_s4] sm:$0xff] %v1309_v37   ;;  %v979_v39 = vmax.f32 %v971_v24, 0.0  ;;  %v969_v53 = vadd.f32 %v944_v25, %v921_v23 }
 0x23b   :  { %v964_v8 = vpop.permute.xlu0 %963 }
 0x23c   :  { %v1319_v28 = vpack.c.bf16 %v979_v39, %v978_v60  ;;  %v977_v29 = vmax.f32 %v969_v53, 0.0  ;;  %v973_v45 = vadd.f32 %v964_v8, %v925_v31 }
 0x23e   :  { %1327 = vst [vmem:[%s2013_s4 + $0x10] sm:$0xff] %v1319_v28   ;;  %v1314_v59 = vpack.c.bf16 %v977_v29, %v976_v26  ;;  %v981_v36 = vmax.f32 %v973_v45, 0.0 }
 0x240   :  { %1326 = vst [vmem:[%s2013_s4 + $0x8] sm:$0xff] %v1314_v59  }
 0x241   :  { %v959_v34 = vpop.permute.xlu1 %958 }
 0x242   :  { %v972_v3 = vadd.f32 %v959_v34, %v924_v32 }
 0x244   :  { %v980_v38 = vmax.f32 %v972_v3, 0.0 }
 0x246   :  { %v1324_v40 = vpack.c.bf16 %v981_v36, %v980_v38 }
 0x248   :  { %1328 = vst [vmem:[%s2013_s4 + $0x18] sm:$0xff] %v1324_v40  }

// kernel: dqn_forward.7
= control target key start
LH: loop header
LB: loop body
LE: loop exit
PB: predicated region body
PF: predicated region fallthrough
CT: control target
= control target key end

     0   :  { %s15393_s0 = inlined_call_operand.vmem [shape: bf16[2,3136], index: 0, kind: input, shape index: {}]   ;;  %s15394_s1 = inlined_call_operand.vmem [shape: bf16[3136,512], index: 1, kind: input, shape index: {}]   ;;  %s15395_s2 = inlined_call_operand.vmem [shape: f32[1,512], index: 2, kind: input, shape index: {}]   ;;  %s15396_s3 = inlined_call_operand.vmem [shape: f32[512,6], index: 3, kind: input, shape index: {}]   ;;  %s15397_s4 = inlined_call_operand.vmem [shape: f32[1,6], index: 4, kind: input, shape index: {}]   ;;  %s15398_s5 = inlined_call_operand.hbm [shape: f32[2,6], index: 5, kind: output, shape index: {}]  }
   0x1   :  { %v6384_v0 = vld [vmem:[%s15394_s1 + $0xe0] sm:$0xf]  ;;  %v9440_v1 = vld [vmem:[%s15394_s1 + $0xec] sm:$0xf0] }
   0x2   :  { %v6512_v2 = vld [vmem:[%s15394_s1 + $0x1e0] sm:$0xf]  ;;  %v6385_v3 = vor.u32 %v9440_v1, %v6384_v0  ;;  %v9472_v4 = vld [vmem:[%s15394_s1 + $0x1ec] sm:$0xf0] }
   0x3   :  { %v6640_v5 = vld [vmem:[%s15394_s1 + $0x2e0] sm:$0xf]  ;;  %v9504_v6 = vld [vmem:[%s15394_s1 + $0x2ec] sm:$0xf0]  ;;  %v6513_v7 = vor.u32 %v9472_v4, %v6512_v2 }
   0x4   :  { %v6641_v8 = vor.u32 %v9504_v6, %v6640_v5  ;;  %v6768_v9 = vld [vmem:[%s15394_s1 + $0x3e0] sm:$0xf]  ;;  %v9536_v10 = vld [vmem:[%s15394_s1 + $0x3ec] sm:$0xf0]  ;;  %4800 = vmatpush.bf16.msra.mxu0 %v6385_v3 }
   0x5   :  { %v6368_v11 = vld [vmem:[%s15394_s1 + $0xc0] sm:$0xf]  ;;  %v6769_v12 = vor.u32 %v9536_v10, %v6768_v9  ;;  %v9436_v13 = vld [vmem:[%s15394_s1 + $0xcc] sm:$0xf0]  ;;  %4813 = vmatpush.bf16.msra.mxu1 %v6513_v7 }
   0x6   :  { %v6496_v14 = vld [vmem:[%s15394_s1 + $0x1c0] sm:$0xf]  ;;  %v9468_v15 = vld [vmem:[%s15394_s1 + $0x1cc] sm:$0xf0]  ;;  %4826 = vmatpush.bf16.msra.mxu2 %v6641_v8  ;;  %v6369_v16 = vor.u32 %v9436_v13, %v6368_v11 }
   0x7   :  { %v6497_v17 = vor.u32 %v9468_v15, %v6496_v14  ;;  %v6624_v18 = vld [vmem:[%s15394_s1 + $0x2c0] sm:$0xf]  ;;  %v9500_v19 = vld [vmem:[%s15394_s1 + $0x2cc] sm:$0xf0]  ;;  %4839 = vmatpush.bf16.msra.mxu3 %v6769_v12 }
   0x8   :  { %v6752_v20 = vld [vmem:[%s15394_s1 + $0x3c0] sm:$0xf]  ;;  %v6625_v21 = vor.u32 %v9500_v19, %v6624_v18  ;;  %v9532_v22 = vld [vmem:[%s15394_s1 + $0x3cc] sm:$0xf0]  ;;  %4801 = vmatpush.bf16.msra.mxu0 %v6369_v16 }
   0x9   :  { %v6352_v23 = vld [vmem:[%s15394_s1 + $0xa0] sm:$0xf]  ;;  %v9432_v24 = vld [vmem:[%s15394_s1 + $0xac] sm:$0xf0]  ;;  %v6753_v25 = vor.u32 %v9532_v22, %v6752_v20  ;;  %4814 = vmatpush.bf16.msra.mxu1 %v6497_v17 }
   0xa   :  { %v6480_v26 = vld [vmem:[%s15394_s1 + $0x1a0] sm:$0xf]  ;;  %v9464_v27 = vld [vmem:[%s15394_s1 + $0x1ac] sm:$0xf0]  ;;  %v6353_v29 = vor.u32 %v9432_v24, %v6352_v23  ;;  %4827 = vmatpush.bf16.msra.mxu2 %v6625_v21 }
   0xb   :  { %v6608_v28 = vld [vmem:[%s15394_s1 + $0x2a0] sm:$0xf]  ;;  %v9496_v30 = vld [vmem:[%s15394_s1 + $0x2ac] sm:$0xf0]  ;;  %v6481_v33 = vor.u32 %v9464_v27, %v6480_v26  ;;  %4840 = vmatpush.bf16.msra.mxu3 %v6753_v25 }
   0xc   :  { %v6736_v31 = vld [vmem:[%s15394_s1 + $0x3a0] sm:$0xf]  ;;  %v9528_v32 = vld [vmem:[%s15394_s1 + $0x3ac] sm:$0xf0]  ;;  %v6609_v34 = vor.u32 %v9496_v30, %v6608_v28  ;;  %4802 = vmatpush.bf16.msra.mxu0 %v6353_v29 }
   0xd   :  { %v6336_v35 = vld [vmem:[%s15394_s1 + $0x80] sm:$0xf]  ;;  %v9428_v36 = vld [vmem:[%s15394_s1 + $0x8c] sm:$0xf0]  ;;  %v6737_v38 = vor.u32 %v9528_v32, %v6736_v31  ;;  %4815 = vmatpush.bf16.msra.mxu1 %v6481_v33 }
   0xe   :  { %v6464_v37 = vld [vmem:[%s15394_s1 + $0x180] sm:$0xf]  ;;  %v9460_v39 = vld [vmem:[%s15394_s1 + $0x18c] sm:$0xf0]  ;;  %v6337_v44 = vor.u32 %v9428_v36, %v6336_v35  ;;  %4828 = vmatpush.bf16.msra.mxu2 %v6609_v34 }
   0xf   :  { %v6592_v40 = vld [vmem:[%s15394_s1 + $0x280] sm:$0xf]  ;;  %v9492_v41 = vld [vmem:[%s15394_s1 + $0x28c] sm:$0xf0]  ;;  %v6465_v45 = vor.u32 %v9460_v39, %v6464_v37  ;;  %4841 = vmatpush.bf16.msra.mxu3 %v6737_v38 }
  0x10   :  { %v6720_v42 = vld [vmem:[%s15394_s1 + $0x380] sm:$0xf]  ;;  %v9524_v43 = vld [vmem:[%s15394_s1 + $0x38c] sm:$0xf0]  ;;  %v6593_v46 = vor.u32 %v9492_v41, %v6592_v40  ;;  %4803 = vmatpush.bf16.msra.mxu0 %v6337_v44 }
  0x11   :  { %v6320_v47 = vld [vmem:[%s15394_s1 + $0x60] sm:$0xf]  ;;  %v9424_v48 = vld [vmem:[%s15394_s1 + $0x6c] sm:$0xf0]  ;;  %v6721_v50 = vor.u32 %v9524_v43, %v6720_v42  ;;  %4816 = vmatpush.bf16.msra.mxu1 %v6465_v45 }
  0x12   :  { %v6448_v49 = vld [vmem:[%s15394_s1 + $0x160] sm:$0xf]  ;;  %v9456_v51 = vld [vmem:[%s15394_s1 + $0x16c] sm:$0xf0]  ;;  %v6321_v56 = vor.u32 %v9424_v48, %v6320_v47  ;;  %4829 = vmatpush.bf16.msra.mxu2 %v6593_v46 }
  0x13   :  { %v6576_v52 = vld [vmem:[%s15394_s1 + $0x260] sm:$0xf]  ;;  %v9488_v53 = vld [vmem:[%s15394_s1 + $0x26c] sm:$0xf0]  ;;  %v6449_v57 = vor.u32 %v9456_v51, %v6448_v49  ;;  %4842 = vmatpush.bf16.msra.mxu3 %v6721_v50 }
  0x14   :  { %v6704_v54 = vld [vmem:[%s15394_s1 + $0x360] sm:$0xf]  ;;  %v9520_v55 = vld [vmem:[%s15394_s1 + $0x36c] sm:$0xf0]  ;;  %v6577_v58 = vor.u32 %v9488_v53, %v6576_v52  ;;  %4804 = vmatpush.bf16.msra.mxu0 %v6321_v56 }
  0x15   :  { %v6304_v59 = vld [vmem:[%s15394_s1 + $0x40] sm:$0xf]  ;;  %v9420_v60 = vld [vmem:[%s15394_s1 + $0x4c] sm:$0xf0]  ;;  %v6705_v62 = vor.u32 %v9520_v55, %v6704_v54  ;;  %4817 = vmatpush.bf16.msra.mxu1 %v6449_v57 }
  0x16   :  { %v6432_v61 = vld [vmem:[%s15394_s1 + $0x140] sm:$0xf]  ;;  %v9452_v63 = vld [vmem:[%s15394_s1 + $0x14c] sm:$0xf0]  ;;  %v6305_v4 = vor.u32 %v9420_v60, %v6304_v59  ;;  %4830 = vmatpush.bf16.msra.mxu2 %v6577_v58 }
  0x17   :  { %v6560_v0 = vld [vmem:[%s15394_s1 + $0x240] sm:$0xf]  ;;  %v9484_v1 = vld [vmem:[%s15394_s1 + $0x24c] sm:$0xf0]  ;;  %v6433_v5 = vor.u32 %v9452_v63, %v6432_v61  ;;  %4843 = vmatpush.bf16.msra.mxu3 %v6705_v62 }
  0x18   :  { %v6688_v2 = vld [vmem:[%s15394_s1 + $0x340] sm:$0xf]  ;;  %v9516_v3 = vld [vmem:[%s15394_s1 + $0x34c] sm:$0xf0]  ;;  %v6561_v6 = vor.u32 %v9484_v1, %v6560_v0  ;;  %4805 = vmatpush.bf16.msra.mxu0 %v6305_v4 }
  0x19   :  { %v6288_v7 = vld [vmem:[%s15394_s1 + $0x20] sm:$0xf]  ;;  %v9416_v8 = vld [vmem:[%s15394_s1 + $0x2c] sm:$0xf0]  ;;  %v6689_v10 = vor.u32 %v9516_v3, %v6688_v2  ;;  %4818 = vmatpush.bf16.msra.mxu1 %v6433_v5 }
  0x1a   :  { %v6416_v9 = vld [vmem:[%s15394_s1 + $0x120] sm:$0xf]  ;;  %v9448_v11 = vld [vmem:[%s15394_s1 + $0x12c] sm:$0xf0]  ;;  %v6289_v16 = vor.u32 %v9416_v8, %v6288_v7  ;;  %4831 = vmatpush.bf16.msra.mxu2 %v6561_v6 }
  0x1b   :  { %v6544_v12 = vld [vmem:[%s15394_s1 + $0x220] sm:$0xf]  ;;  %v9480_v13 = vld [vmem:[%s15394_s1 + $0x22c] sm:$0xf0]  ;;  %v6417_v19 = vor.u32 %v9448_v11, %v6416_v9  ;;  %4844 = vmatpush.bf16.msra.mxu3 %v6689_v10 }
  0x1c   :  { %v6672_v14 = vld [vmem:[%s15394_s1 + $0x320] sm:$0xf]  ;;  %v9512_v15 = vld [vmem:[%s15394_s1 + $0x32c] sm:$0xf0]  ;;  %v6545_v20 = vor.u32 %v9480_v13, %v6544_v12  ;;  %4806 = vmatpush.bf16.msra.mxu0 %v6289_v16 }
  0x1d   :  { %v6272_v17 = vld [vmem:[%s15394_s1] sm:$0xf]  ;;  %v9412_v18 = vld [vmem:[%s15394_s1 + $0xc] sm:$0xf0]  ;;  %v6673_v24 = vor.u32 %v9512_v15, %v6672_v14  ;;  %4819 = vmatpush.bf16.msra.mxu1 %v6417_v19 }
  0x1e   :  { %v6400_v21 = vld [vmem:[%s15394_s1 + $0x100] sm:$0xf]  ;;  %v9444_v22 = vld [vmem:[%s15394_s1 + $0x10c] sm:$0xf0]  ;;  %v6273_v31 = vor.u32 %v9412_v18, %v6272_v17  ;;  %4832 = vmatpush.bf16.msra.mxu2 %v6545_v20 }
  0x1f   :  { %v6528_v23 = vld [vmem:[%s15394_s1 + $0x200] sm:$0xf]  ;;  %v9476_v25 = vld [vmem:[%s15394_s1 + $0x20c] sm:$0xf0]  ;;  %v6401_v35 = vor.u32 %v9444_v22, %v6400_v21  ;;  %4845 = vmatpush.bf16.msra.mxu3 %v6673_v24 }
  0x20   :  { %v6656_v26 = vld [vmem:[%s15394_s1 + $0x300] sm:$0xf]  ;;  %v9508_v27 = vld [vmem:[%s15394_s1 + $0x30c] sm:$0xf0]  ;;  %v6529_v36 = vor.u32 %v9476_v25, %v6528_v23  ;;  %4807 = vmatpush.bf16.msra.mxu0 %v6273_v31 }
  0x21   :  { %v6896_v28 = vld [vmem:[%s15394_s1 + $0x4e0] sm:$0xf]  ;;  %v9568_v29 = vld [vmem:[%s15394_s1 + $0x4ec] sm:$0xf0]  ;;  %v6657_v39 = vor.u32 %v9508_v27, %v6656_v26  ;;  %4820 = vmatpush.bf16.msra.mxu1 %v6401_v35 }
  0x22   :  { %v7024_v30 = vld [vmem:[%s15394_s1 + $0x5e0] sm:$0xf]  ;;  %v9600_v32 = vld [vmem:[%s15394_s1 + $0x5ec] sm:$0xf0]  ;;  %v6897_v40 = vor.u32 %v9568_v29, %v6896_v28  ;;  %4833 = vmatpush.bf16.msra.mxu2 %v6529_v36 }
  0x23   :  { %v7152_v33 = vld [vmem:[%s15394_s1 + $0x6e0] sm:$0xf]  ;;  %v9632_v34 = vld [vmem:[%s15394_s1 + $0x6ec] sm:$0xf0]  ;;  %v7025_v41 = vor.u32 %v9600_v32, %v7024_v30  ;;  %4846 = vmatpush.bf16.msra.mxu3 %v6657_v39 }
  0x24   :  { %v7280_v37 = vld [vmem:[%s15394_s1 + $0x7e0] sm:$0xf]  ;;  %v9664_v38 = vld [vmem:[%s15394_s1 + $0x7ec] sm:$0xf0]  ;;  %v7153_v42 = vor.u32 %v9632_v34, %v7152_v33  ;;  %4852 = vmatpush.bf16.msrb.mxu0 %v6897_v40 }
  0x25   :  { %v6880_v43 = vld [vmem:[%s15394_s1 + $0x4c0] sm:$0xf]  ;;  %v9564_v44 = vld [vmem:[%s15394_s1 + $0x4cc] sm:$0xf0]  ;;  %v7281_v46 = vor.u32 %v9664_v38, %v7280_v37  ;;  %4865 = vmatpush.bf16.msrb.mxu1 %v7025_v41 }
  0x26   :  { %v7008_v45 = vld [vmem:[%s15394_s1 + $0x5c0] sm:$0xf]  ;;  %v9596_v47 = vld [vmem:[%s15394_s1 + $0x5cc] sm:$0xf0]  ;;  %v6881_v52 = vor.u32 %v9564_v44, %v6880_v43  ;;  %4878 = vmatpush.bf16.msrb.mxu2 %v7153_v42 }
  0x27   :  { %v7136_v48 = vld [vmem:[%s15394_s1 + $0x6c0] sm:$0xf]  ;;  %v9628_v49 = vld [vmem:[%s15394_s1 + $0x6cc] sm:$0xf0]  ;;  %v7009_v55 = vor.u32 %v9596_v47, %v7008_v45  ;;  %4891 = vmatpush.bf16.msrb.mxu3 %v7281_v46 }
  0x28   :  { %v7264_v50 = vld [vmem:[%s15394_s1 + $0x7c0] sm:$0xf]  ;;  %v9660_v51 = vld [vmem:[%s15394_s1 + $0x7cc] sm:$0xf0]  ;;  %v7137_v56 = vor.u32 %v9628_v49, %v7136_v48  ;;  %4853 = vmatpush.bf16.msrb.mxu0 %v6881_v52 }
  0x29   :  { %v6864_v53 = vld [vmem:[%s15394_s1 + $0x4a0] sm:$0xf]  ;;  %v9560_v54 = vld [vmem:[%s15394_s1 + $0x4ac] sm:$0xf0]  ;;  %v7265_v60 = vor.u32 %v9660_v51, %v7264_v50  ;;  %4866 = vmatpush.bf16.msrb.mxu1 %v7009_v55 }
  0x2a   :  { %v6992_v57 = vld [vmem:[%s15394_s1 + $0x5a0] sm:$0xf]  ;;  %v9592_v58 = vld [vmem:[%s15394_s1 + $0x5ac] sm:$0xf0]  ;;  %v6865_v1 = vor.u32 %v9560_v54, %v6864_v53  ;;  %4879 = vmatpush.bf16.msrb.mxu2 %v7137_v56 }
  0x2b   :  { %v22_v59 = vld [vmem:[%s15393_s0] sm:$0xff]  ;;  %v9624_v62 = vld [vmem:[%s15394_s1 + $0x6ac] sm:$0xf0]  ;;  %v6993_v2 = vor.u32 %v9592_v58, %v6992_v57  ;;  %4892 = vmatpush.bf16.msrb.mxu3 %v7265_v60 }
  0x2c   :  { %v7120_v61 = vld [vmem:[%s15394_s1 + $0x6a0] sm:$0xf]  ;;  %821 = vst [vmem:[#allocation1] ss:$9 sm:$0xff] %v22_v59  ;;  %v9656_v0 = vld [vmem:[%s15394_s1 + $0x7ac] sm:$0xf0]  ;;  %4854 = vmatpush.bf16.msrb.mxu0 %v6865_v1 }
  0x2d   :  { %v7248_v63 = vld [vmem:[%s15394_s1 + $0x7a0] sm:$0xf]  ;;  %v7121_v3 = vor.u32 %v9624_v62, %v7120_v61  ;;  %v9556_v5 = vld [vmem:[%s15394_s1 + $0x48c] sm:$0xf0]  ;;  %4867 = vmatpush.bf16.msrb.mxu1 %v6993_v2  ;;  %v23_v61 = vld [vmem:[%s15393_s0 + $0x8] sm:$0xff] }
  0x2e   :  { %v6848_v4 = vld [vmem:[%s15394_s1 + $0x480] sm:$0xf]  ;;  %v7249_v7 = vor.u32 %v9656_v0, %v7248_v63  ;;  %v9588_v8 = vld [vmem:[%s15394_s1 + $0x58c] sm:$0xf0] }
  0x2f   :  { %v6976_v6 = vld [vmem:[%s15394_s1 + $0x580] sm:$0xf]  ;;  %v9620_v10 = vld [vmem:[%s15394_s1 + $0x68c] sm:$0xf0]  ;;  %v6849_v14 = vor.u32 %v9556_v5, %v6848_v4  ;;  %4880 = vmatpush.bf16.msrb.mxu2 %v7121_v3 }
  0x30   :  { %v7104_v9 = vld [vmem:[%s15394_s1 + $0x680] sm:$0xf]  ;;  %v9652_v12 = vld [vmem:[%s15394_s1 + $0x78c] sm:$0xf0]  ;;  %v6977_v18 = vor.u32 %v9588_v8, %v6976_v6  ;;  %4893 = vmatpush.bf16.msrb.mxu3 %v7249_v7 }
  0x31   :  { %v7232_v11 = vld [vmem:[%s15394_s1 + $0x780] sm:$0xf]  ;;  %v9552_v15 = vld [vmem:[%s15394_s1 + $0x46c] sm:$0xf0]  ;;  %v7105_v19 = vor.u32 %v9620_v10, %v7104_v9  ;;  %4855 = vmatpush.bf16.msrb.mxu0 %v6849_v14 }
  0x32   :  { %v6832_v13 = vld [vmem:[%s15394_s1 + $0x460] sm:$0xf]  ;;  %v9584_v17 = vld [vmem:[%s15394_s1 + $0x56c] sm:$0xf0]  ;;  %v7233_v23 = vor.u32 %v9652_v12, %v7232_v11  ;;  %4868 = vmatpush.bf16.msrb.mxu1 %v6977_v18 }
  0x33   :  { %v6960_v16 = vld [vmem:[%s15394_s1 + $0x560] sm:$0xf]  ;;  %v10562_v20 = vld [vmem:[#allocation1 + $0x12] sm:$0xff]  ;;  %v10575_v26 = vld [vmem:[#allocation1 + $0x9] sm:$0xff]  ;;  %v6833_v29 = vor.u32 %v9552_v15, %v6832_v13  ;;  %4881 = vmatpush.bf16.msrb.mxu2 %v7105_v19 }
  0x34   :  { %v10564_v21 = vld [vmem:[#allocation1] sm:$0xff]  ;;  %v9616_v25 = vld [vmem:[%s15394_s1 + $0x66c] sm:$0xf0]  ;;  %4834 = vmatmul.bf16.vlgmr.msra.gmra.mxu2 %v10562_v20  ;;  %4821 = vmatmul.bf16.vlgmr.msra.gmra.mxu1 %v10575_v26  ;;  %v6961_v30 = vor.u32 %v9584_v17, %v6960_v16  ;;  %v10652_v60 = vld [vmem:[#allocation1 + $0x36] sm:$0xff] }
  0x35   :  { %v10566_v22 = vld [vmem:[#allocation1 + $0x1b] sm:$0xff]  ;;  %v9648_v28 = vld [vmem:[%s15394_s1 + $0x76c] sm:$0xf0]  ;;  %4808 = vmatmul.bf16.vlgmr.msra.gmra.mxu0 %v10564_v21  ;;  %4894 = vmatpush.bf16.msrb.mxu3 %v7233_v23  ;;  %v10657_v0 = vld [vmem:[#allocation1 + $0x24] sm:$0xff] }
  0x36   :  { %v7088_v24 = vld [vmem:[%s15394_s1 + $0x660] sm:$0xf]  ;;  %4847 = vmatmul.bf16.vlgmr.msra.gmra.mxu3 %v10566_v22  ;;  %v9548_v33 = vld [vmem:[%s15394_s1 + $0x44c] sm:$0xf0]  ;;  %4856 = vmatpush.bf16.msrb.mxu0 %v6833_v29 }
  0x37   :  { %v7216_v27 = vld [vmem:[%s15394_s1 + $0x760] sm:$0xf]  ;;  %v7089_v31 = vor.u32 %v9616_v25, %v7088_v24  ;;  %v9580_v36 = vld [vmem:[%s15394_s1 + $0x54c] sm:$0xf0]  ;;  %4869 = vmatpush.bf16.msrb.mxu1 %v6961_v30 }
  0x38   :  { %v6816_v32 = vld [vmem:[%s15394_s1 + $0x440] sm:$0xf]  ;;  %v7217_v35 = vor.u32 %v9648_v28, %v7216_v27  ;;  %v9612_v38 = vld [vmem:[%s15394_s1 + $0x64c] sm:$0xf0] }
  0x39   :  { %v6944_v34 = vld [vmem:[%s15394_s1 + $0x540] sm:$0xf]  ;;  %v9644_v40 = vld [vmem:[%s15394_s1 + $0x74c] sm:$0xf0]  ;;  %v6817_v41 = vor.u32 %v9548_v33, %v6816_v32  ;;  %4882 = vmatpush.bf16.msrb.mxu2 %v7089_v31 }
  0x3a   :  { %v7072_v37 = vld [vmem:[%s15394_s1 + $0x640] sm:$0xf]  ;;  %v6945_v43 = vor.u32 %v9580_v36, %v6944_v34  ;;  %v9544_v45 = vld [vmem:[%s15394_s1 + $0x42c] sm:$0xf0]  ;;  %4895 = vmatpush.bf16.msrb.mxu3 %v7217_v35 }
  0x3b   :  { %v7200_v39 = vld [vmem:[%s15394_s1 + $0x740] sm:$0xf]  ;;  %v7073_v44 = vor.u32 %v9612_v38, %v7072_v37  ;;  %v9576_v47 = vld [vmem:[%s15394_s1 + $0x52c] sm:$0xf0]  ;;  %4857 = vmatpush.bf16.msrb.mxu0 %v6817_v41 }
  0x3c   :  { %v6800_v42 = vld [vmem:[%s15394_s1 + $0x420] sm:$0xf]  ;;  %v7201_v48 = vor.u32 %v9644_v40, %v7200_v39  ;;  %v9608_v50 = vld [vmem:[%s15394_s1 + $0x62c] sm:$0xf0]  ;;  %4870 = vmatpush.bf16.msrb.mxu1 %v6945_v43 }
  0x3d   :  { %v6928_v46 = vld [vmem:[%s15394_s1 + $0x520] sm:$0xf]  ;;  %v9640_v52 = vld [vmem:[%s15394_s1 + $0x72c] sm:$0xf0]  ;;  %v6801_v55 = vor.u32 %v9544_v45, %v6800_v42  ;;  %4883 = vmatpush.bf16.msrb.mxu2 %v7073_v44 }
  0x3e   :  { %v7056_v49 = vld [vmem:[%s15394_s1 + $0x620] sm:$0xf]  ;;  %v9540_v54 = vld [vmem:[%s15394_s1 + $0x40c] sm:$0xf0]  ;;  %v6929_v62 = vor.u32 %v9576_v47, %v6928_v46  ;;  %4896 = vmatpush.bf16.msrb.mxu3 %v7201_v48 }
  0x3f   :  { %v7184_v51 = vld [vmem:[%s15394_s1 + $0x720] sm:$0xf]  ;;  %v9572_v57 = vld [vmem:[%s15394_s1 + $0x50c] sm:$0xf0]  ;;  %v7057_v63 = vor.u32 %v9608_v50, %v7056_v49  ;;  %4858 = vmatpush.bf16.msrb.mxu0 %v6801_v55 }
  0x40   :  { %v6784_v53 = vld [vmem:[%s15394_s1 + $0x400] sm:$0xf]  ;;  %v9604_v59 = vld [vmem:[%s15394_s1 + $0x60c] sm:$0xf0]  ;;  %v7185_v3 = vor.u32 %v9640_v52, %v7184_v51  ;;  %4871 = vmatpush.bf16.msrb.mxu1 %v6929_v62 }
  0x41   :  { %v6912_v56 = vld [vmem:[%s15394_s1 + $0x500] sm:$0xf]  ;;  %v10661_v2 = vld [vmem:[#allocation1 + $0x2d] sm:$0xff]  ;;  %v6785_v9 = vor.u32 %v9540_v54, %v6784_v53  ;;  %4884 = vmatpush.bf16.msrb.mxu2 %v7057_v63 }
  0x42   :  { %v7040_v58 = vld [vmem:[%s15394_s1 + $0x600] sm:$0xf]  ;;  %v9636_v5 = vld [vmem:[%s15394_s1 + $0x70c] sm:$0xf0]  ;;  %v6913_v13 = vor.u32 %v9572_v57, %v6912_v56  ;;  %4897 = vmatpush.bf16.msrb.mxu3 %v7185_v3 }
  0x43   :  { %v10659_v1 = vld [vmem:[#allocation1 + $0x3f] sm:$0xff]  ;;  %v9696_v7 = vld [vmem:[%s15394_s1 + $0x8ec] sm:$0xf0]  ;;  %v7041_v14 = vor.u32 %v9604_v59, %v7040_v58  ;;  %4859 = vmatpush.bf16.msrb.mxu0 %v6785_v9 }
  0x44   :  { %v7168_v4 = vld [vmem:[%s15394_s1 + $0x700] sm:$0xf]  ;;  %831 = vst [vmem:[#allocation1] ss:$9 sm:$0xff] %v23_v61  ;;  %v9728_v10 = vld [vmem:[%s15394_s1 + $0x9ec] sm:$0xf0]  ;;  %4872 = vmatpush.bf16.msrb.mxu1 %v6913_v13 }
  0x45   :  { %v7408_v6 = vld [vmem:[%s15394_s1 + $0x8e0] sm:$0xf]  ;;  %v9760_v12 = vld [vmem:[%s15394_s1 + $0xaec] sm:$0xf0]  ;;  %v7169_v17 = vor.u32 %v9636_v5, %v7168_v4  ;;  %4885 = vmatpush.bf16.msrb.mxu2 %v7041_v14 }
  0x46   :  { %v7536_v8 = vld [vmem:[%s15394_s1 + $0x9e0] sm:$0xf]  ;;  %v9792_v16 = vld [vmem:[%s15394_s1 + $0xbec] sm:$0xf0]  ;;  %v7409_v18 = vor.u32 %v9696_v7, %v7408_v6  ;;  %4860 = vmatmul.bf16.vlgmr.msrb.gmra.mxu0 %v10657_v0 }
  0x47   :  { %v7664_v11 = vld [vmem:[%s15394_s1 + $0xae0] sm:$0xf]  ;;  %v7537_v19 = vor.u32 %v9728_v10, %v7536_v8  ;;  %v9692_v25 = vld [vmem:[%s15394_s1 + $0x8cc] sm:$0xf0]  ;;  %4898 = vmatpush.bf16.msrb.mxu3 %v7169_v17  ;;  %4873 = vmatmul.bf16.vlgmr.msrb.gmra.mxu1 %v10661_v2 }
  0x48   :  { %v7792_v15 = vld [vmem:[%s15394_s1 + $0xbe0] sm:$0xf]  ;;  %v7665_v23 = vor.u32 %v9760_v12, %v7664_v11  ;;  %v9724_v29 = vld [vmem:[%s15394_s1 + $0x9cc] sm:$0xf0]  ;;  %4904 = vmatpush.bf16.msra.mxu0 %v7409_v18  ;;  %4886 = vmatmul.bf16.vlgmr.msrb.gmra.mxu2 %v10652_v60 }
  0x49   :  { %v7392_v24 = vld [vmem:[%s15394_s1 + $0x8c0] sm:$0xf]  ;;  %v7793_v28 = vor.u32 %v9792_v16, %v7792_v15  ;;  %v9756_v31 = vld [vmem:[%s15394_s1 + $0xacc] sm:$0xf0]  ;;  %4917 = vmatpush.bf16.msra.mxu1 %v7537_v19 }
  0x4a   :  { %v7520_v27 = vld [vmem:[%s15394_s1 + $0x9c0] sm:$0xf]  ;;  %v9788_v33 = vld [vmem:[%s15394_s1 + $0xbcc] sm:$0xf0]  ;;  %v7393_v34 = vor.u32 %v9692_v25, %v7392_v24  ;;  %4930 = vmatpush.bf16.msra.mxu2 %v7665_v23  ;;  %4899 = vmatmul.bf16.vlgmr.msrb.gmra.mxu3 %v10659_v1 }
  0x4b   :  { %v7648_v30 = vld [vmem:[%s15394_s1 + $0xac0] sm:$0xf]  ;;  %v7521_v35 = vor.u32 %v9724_v29, %v7520_v27  ;;  %v9688_v38 = vld [vmem:[%s15394_s1 + $0x8ac] sm:$0xf0]  ;;  %4943 = vmatpush.bf16.msra.mxu3 %v7793_v28 }
  0x4c   :  { %v7776_v32 = vld [vmem:[%s15394_s1 + $0xbc0] sm:$0xf]  ;;  %v7649_v36 = vor.u32 %v9756_v31, %v7648_v30  ;;  %v9720_v41 = vld [vmem:[%s15394_s1 + $0x9ac] sm:$0xf0]  ;;  %4905 = vmatpush.bf16.msra.mxu0 %v7393_v34 }
  0x4d   :  { %v7376_v37 = vld [vmem:[%s15394_s1 + $0x8a0] sm:$0xf]  ;;  %v7777_v40 = vor.u32 %v9788_v33, %v7776_v32  ;;  %v9752_v43 = vld [vmem:[%s15394_s1 + $0xaac] sm:$0xf0]  ;;  %4918 = vmatpush.bf16.msra.mxu1 %v7521_v35 }
  0x4e   :  { %v7504_v39 = vld [vmem:[%s15394_s1 + $0x9a0] sm:$0xf]  ;;  %v9784_v45 = vld [vmem:[%s15394_s1 + $0xbac] sm:$0xf0]  ;;  %v7377_v46 = vor.u32 %v9688_v38, %v7376_v37  ;;  %4931 = vmatpush.bf16.msra.mxu2 %v7649_v36 }
  0x4f   :  { %v7632_v42 = vld [vmem:[%s15394_s1 + $0xaa0] sm:$0xf]  ;;  %v7505_v47 = vor.u32 %v9720_v41, %v7504_v39  ;;  %v9684_v50 = vld [vmem:[%s15394_s1 + $0x88c] sm:$0xf0]  ;;  %4944 = vmatpush.bf16.msra.mxu3 %v7777_v40 }
  0x50   :  { %v7760_v44 = vld [vmem:[%s15394_s1 + $0xba0] sm:$0xf]  ;;  %v7633_v48 = vor.u32 %v9752_v43, %v7632_v42  ;;  %v9716_v53 = vld [vmem:[%s15394_s1 + $0x98c] sm:$0xf0]  ;;  %4906 = vmatpush.bf16.msra.mxu0 %v7377_v46 }
  0x51   :  { %v7360_v49 = vld [vmem:[%s15394_s1 + $0x880] sm:$0xf]  ;;  %v7761_v52 = vor.u32 %v9784_v45, %v7760_v44  ;;  %v9748_v55 = vld [vmem:[%s15394_s1 + $0xa8c] sm:$0xf0]  ;;  %4919 = vmatpush.bf16.msra.mxu1 %v7505_v47 }
  0x52   :  { %v7488_v51 = vld [vmem:[%s15394_s1 + $0x980] sm:$0xf]  ;;  %v9780_v57 = vld [vmem:[%s15394_s1 + $0xb8c] sm:$0xf0]  ;;  %v7361_v58 = vor.u32 %v9684_v50, %v7360_v49  ;;  %4932 = vmatpush.bf16.msra.mxu2 %v7633_v48 }
  0x53   :  { %v7616_v54 = vld [vmem:[%s15394_s1 + $0xa80] sm:$0xf]  ;;  %v7489_v59 = vor.u32 %v9716_v53, %v7488_v51  ;;  %v9680_v63 = vld [vmem:[%s15394_s1 + $0x86c] sm:$0xf0]  ;;  %4945 = vmatpush.bf16.msra.mxu3 %v7761_v52 }
  0x54   :  { %v7744_v56 = vld [vmem:[%s15394_s1 + $0xb80] sm:$0xf]  ;;  %v7617_v61 = vor.u32 %v9748_v55, %v7616_v54  ;;  %v9712_v5 = vld [vmem:[%s15394_s1 + $0x96c] sm:$0xf0]  ;;  %4907 = vmatpush.bf16.msra.mxu0 %v7361_v58 }
  0x55   :  { %v7344_v62 = vld [vmem:[%s15394_s1 + $0x860] sm:$0xf]  ;;  %v7745_v4 = vor.u32 %v9780_v57, %v7744_v56  ;;  %v9744_v7 = vld [vmem:[%s15394_s1 + $0xa6c] sm:$0xf0]  ;;  %4920 = vmatpush.bf16.msra.mxu1 %v7489_v59 }
  0x56   :  { %v7472_v3 = vld [vmem:[%s15394_s1 + $0x960] sm:$0xf]  ;;  %v9776_v9 = vld [vmem:[%s15394_s1 + $0xb6c] sm:$0xf0]  ;;  %v7345_v10 = vor.u32 %v9680_v63, %v7344_v62  ;;  %4933 = vmatpush.bf16.msra.mxu2 %v7617_v61 }
  0x57   :  { %v7600_v6 = vld [vmem:[%s15394_s1 + $0xa60] sm:$0xf]  ;;  %v7473_v11 = vor.u32 %v9712_v5, %v7472_v3  ;;  %v9676_v14 = vld [vmem:[%s15394_s1 + $0x84c] sm:$0xf0]  ;;  %4946 = vmatpush.bf16.msra.mxu3 %v7745_v4 }
  0x58   :  { %v7728_v8 = vld [vmem:[%s15394_s1 + $0xb60] sm:$0xf]  ;;  %v7601_v12 = vor.u32 %v9744_v7, %v7600_v6  ;;  %v9708_v17 = vld [vmem:[%s15394_s1 + $0x94c] sm:$0xf0]  ;;  %4908 = vmatpush.bf16.msra.mxu0 %v7345_v10 }
  0x59   :  { %v7328_v13 = vld [vmem:[%s15394_s1 + $0x840] sm:$0xf]  ;;  %v7729_v16 = vor.u32 %v9776_v9, %v7728_v8  ;;  %v9740_v19 = vld [vmem:[%s15394_s1 + $0xa4c] sm:$0xf0]  ;;  %4921 = vmatpush.bf16.msra.mxu1 %v7473_v11 }
  0x5a   :  { %v7456_v15 = vld [vmem:[%s15394_s1 + $0x940] sm:$0xf]  ;;  %v9772_v24 = vld [vmem:[%s15394_s1 + $0xb4c] sm:$0xf0]  ;;  %v7329_v25 = vor.u32 %v9676_v14, %v7328_v13  ;;  %4934 = vmatpush.bf16.msra.mxu2 %v7601_v12 }
  0x5b   :  { %v7584_v18 = vld [vmem:[%s15394_s1 + $0xa40] sm:$0xf]  ;;  %v7457_v27 = vor.u32 %v9708_v17, %v7456_v15  ;;  %v9672_v30 = vld [vmem:[%s15394_s1 + $0x82c] sm:$0xf0]  ;;  %4947 = vmatpush.bf16.msra.mxu3 %v7729_v16 }
  0x5c   :  { %v7712_v23 = vld [vmem:[%s15394_s1 + $0xb40] sm:$0xf]  ;;  %v7585_v28 = vor.u32 %v9740_v19, %v7584_v18  ;;  %v9704_v33 = vld [vmem:[%s15394_s1 + $0x92c] sm:$0xf0]  ;;  %4909 = vmatpush.bf16.msra.mxu0 %v7329_v25 }
  0x5d   :  { %v7312_v29 = vld [vmem:[%s15394_s1 + $0x820] sm:$0xf]  ;;  %v7713_v32 = vor.u32 %v9772_v24, %v7712_v23  ;;  %v9736_v35 = vld [vmem:[%s15394_s1 + $0xa2c] sm:$0xf0]  ;;  %4922 = vmatpush.bf16.msra.mxu1 %v7457_v27 }
  0x5e   :  { %v7440_v31 = vld [vmem:[%s15394_s1 + $0x920] sm:$0xf]  ;;  %v9768_v37 = vld [vmem:[%s15394_s1 + $0xb2c] sm:$0xf0]  ;;  %v7313_v38 = vor.u32 %v9672_v30, %v7312_v29  ;;  %4935 = vmatpush.bf16.msra.mxu2 %v7585_v28 }
  0x5f   :  { %v7568_v34 = vld [vmem:[%s15394_s1 + $0xa20] sm:$0xf]  ;;  %v9668_v40 = vld [vmem:[%s15394_s1 + $0x80c] sm:$0xf0]  ;;  %v7441_v41 = vor.u32 %v9704_v33, %v7440_v31  ;;  %4948 = vmatpush.bf16.msra.mxu3 %v7713_v32 }
  0x60   :  { %v7696_v36 = vld [vmem:[%s15394_s1 + $0xb20] sm:$0xf]  ;;  %v7569_v42 = vor.u32 %v9736_v35, %v7568_v34  ;;  %v9700_v44 = vld [vmem:[%s15394_s1 + $0x90c] sm:$0xf0]  ;;  %4910 = vmatpush.bf16.msra.mxu0 %v7313_v38 }
  0x61   :  { %v7296_v39 = vld [vmem:[%s15394_s1 + $0x800] sm:$0xf]  ;;  %v7697_v46 = vor.u32 %v9768_v37, %v7696_v36  ;;  %v9732_v47 = vld [vmem:[%s15394_s1 + $0xa0c] sm:$0xf0]  ;;  %4923 = vmatpush.bf16.msra.mxu1 %v7441_v41 }
  0x62   :  { %v7424_v43 = vld [vmem:[%s15394_s1 + $0x900] sm:$0xf]  ;;  %v9764_v49 = vld [vmem:[%s15394_s1 + $0xb0c] sm:$0xf0]  ;;  %v7297_v53 = vor.u32 %v9668_v40, %v7296_v39  ;;  %4936 = vmatpush.bf16.msra.mxu2 %v7569_v42 }
  0x63   :  { %v7552_v45 = vld [vmem:[%s15394_s1 + $0xa00] sm:$0xf]  ;;  %v9824_v51 = vld [vmem:[%s15394_s1 + $0xcec] sm:$0xf0]  ;;  %v7425_v57 = vor.u32 %v9700_v44, %v7424_v43  ;;  %4949 = vmatpush.bf16.msra.mxu3 %v7697_v46 }
  0x64   :  { %v7680_v48 = vld [vmem:[%s15394_s1 + $0xb00] sm:$0xf]  ;;  %v9856_v54 = vld [vmem:[%s15394_s1 + $0xdec] sm:$0xf0]  ;;  %v7553_v58 = vor.u32 %v9732_v47, %v7552_v45  ;;  %4911 = vmatpush.bf16.msra.mxu0 %v7297_v53 }
  0x65   :  { %v7920_v50 = vld [vmem:[%s15394_s1 + $0xce0] sm:$0xf]  ;;  %v9888_v56 = vld [vmem:[%s15394_s1 + $0xeec] sm:$0xf0]  ;;  %v7681_v62 = vor.u32 %v9764_v49, %v7680_v48  ;;  %4924 = vmatpush.bf16.msra.mxu1 %v7425_v57 }
  0x66   :  { %v8048_v52 = vld [vmem:[%s15394_s1 + $0xde0] sm:$0xf]  ;;  %v9920_v61 = vld [vmem:[%s15394_s1 + $0xfec] sm:$0xf0]  ;;  %v7921_v63 = vor.u32 %v9824_v51, %v7920_v50  ;;  %4937 = vmatpush.bf16.msra.mxu2 %v7553_v58 }
  0x67   :  { %v8176_v55 = vld [vmem:[%s15394_s1 + $0xee0] sm:$0xf]  ;;  %v8049_v3 = vor.u32 %v9856_v54, %v8048_v52  ;;  %v9820_v6 = vld [vmem:[%s15394_s1 + $0xccc] sm:$0xf0]  ;;  %4950 = vmatpush.bf16.msra.mxu3 %v7681_v62 }
  0x68   :  { %v8304_v59 = vld [vmem:[%s15394_s1 + $0xfe0] sm:$0xf]  ;;  %v8177_v4 = vor.u32 %v9888_v56, %v8176_v55  ;;  %v9852_v9 = vld [vmem:[%s15394_s1 + $0xdcc] sm:$0xf0]  ;;  %4956 = vmatpush.bf16.msrb.mxu0 %v7921_v63 }
  0x69   :  { %v7904_v5 = vld [vmem:[%s15394_s1 + $0xcc0] sm:$0xf]  ;;  %v8305_v8 = vor.u32 %v9920_v61, %v8304_v59  ;;  %v9884_v11 = vld [vmem:[%s15394_s1 + $0xecc] sm:$0xf0]  ;;  %4969 = vmatpush.bf16.msrb.mxu1 %v8049_v3 }
  0x6a   :  { %v8032_v7 = vld [vmem:[%s15394_s1 + $0xdc0] sm:$0xf]  ;;  %v9916_v14 = vld [vmem:[%s15394_s1 + $0xfcc] sm:$0xf0]  ;;  %v7905_v18 = vor.u32 %v9820_v6, %v7904_v5  ;;  %4982 = vmatpush.bf16.msrb.mxu2 %v8177_v4 }
  0x6b   :  { %v8160_v10 = vld [vmem:[%s15394_s1 + $0xec0] sm:$0xf]  ;;  %v10915_v15 = vld [vmem:[#allocation1 + $0x12] sm:$0xff]  ;;  %v10917_v16 = vld [vmem:[#allocation1 + $0x9] sm:$0xff]  ;;  %v8033_v19 = vor.u32 %v9852_v9, %v8032_v7  ;;  %4995 = vmatpush.bf16.msrb.mxu3 %v8305_v8 }
  0x6c   :  { %v10907_v12 = vld [vmem:[#allocation1] sm:$0xff]  ;;  %v8161_v23 = vor.u32 %v9884_v11, %v8160_v10  ;;  %v9816_v25 = vld [vmem:[%s15394_s1 + $0xcac] sm:$0xf0]  ;;  %4938 = vmatmul.bf16.vlgmr.msra.gmra.mxu2 %v10915_v15  ;;  %4925 = vmatmul.bf16.vlgmr.msra.gmra.mxu1 %v10917_v16 }
  0x6d   :  { %v8288_v13 = vld [vmem:[%s15394_s1 + $0xfc0] sm:$0xf]  ;;  %4912 = vmatmul.bf16.vlgmr.msra.gmra.mxu0 %v10907_v12  ;;  %v9848_v29 = vld [vmem:[%s15394_s1 + $0xdac] sm:$0xf0]  ;;  %4970 = vmatpush.bf16.msrb.mxu1 %v8033_v19 }
  0x6e   :  { %v10919_v17 = vld [vmem:[#allocation1 + $0x1b] sm:$0xff]  ;;  %v8289_v28 = vor.u32 %v9916_v14, %v8288_v13  ;;  %v9880_v31 = vld [vmem:[%s15394_s1 + $0xeac] sm:$0xf0]  ;;  %4957 = vmatpush.bf16.msrb.mxu0 %v7905_v18  ;;  %4983 = vmatpush.bf16.msrb.mxu2 %v8161_v23 }
  0x6f   :  { %v7888_v24 = vld [vmem:[%s15394_s1 + $0xca0] sm:$0xf]  ;;  %v9912_v33 = vld [vmem:[%s15394_s1 + $0xfac] sm:$0xf0]  ;;  %4951 = vmatmul.bf16.vlgmr.msra.gmra.mxu3 %v10919_v17 }
  0x70   :  { %v8016_v27 = vld [vmem:[%s15394_s1 + $0xda0] sm:$0xf]  ;;  %v7889_v34 = vor.u32 %v9816_v25, %v7888_v24  ;;  %v9812_v38 = vld [vmem:[%s15394_s1 + $0xc8c] sm:$0xf0]  ;;  %4996 = vmatpush.bf16.msrb.mxu3 %v8289_v28 }
  0x71   :  { %v8144_v30 = vld [vmem:[%s15394_s1 + $0xea0] sm:$0xf]  ;;  %v8017_v36 = vor.u32 %v9848_v29, %v8016_v27  ;;  %v9844_v40 = vld [vmem:[%s15394_s1 + $0xd8c] sm:$0xf0] }
  0x72   :  { %v8272_v32 = vld [vmem:[%s15394_s1 + $0xfa0] sm:$0xf]  ;;  %v8145_v37 = vor.u32 %v9880_v31, %v8144_v30  ;;  %v9876_v43 = vld [vmem:[%s15394_s1 + $0xe8c] sm:$0xf0] }
  0x73   :  { %v7872_v35 = vld [vmem:[%s15394_s1 + $0xc80] sm:$0xf]  ;;  %v8273_v41 = vor.u32 %v9912_v33, %v8272_v32  ;;  %v9908_v45 = vld [vmem:[%s15394_s1 + $0xf8c] sm:$0xf0] }
  0x74   :  { %v8000_v39 = vld [vmem:[%s15394_s1 + $0xd80] sm:$0xf] }
  0x75   :  { %v8128_v42 = vld [vmem:[%s15394_s1 + $0xe80] sm:$0xf] }
  0x76   :  { %v8256_v44 = vld [vmem:[%s15394_s1 + $0xf80] sm:$0xf] }
  0x77   :  { %10 = vsyncpa [#allocation3], 0  ;;  %4958 = vmatpush.bf16.msrb.mxu0 %v7889_v34  ;;  %v7873_v46 = vor.u32 %v9812_v38, %v7872_v35  ;;  %4971 = vmatpush.bf16.msrb.mxu1 %v8017_v36  ;;  %v8001_v47 = vor.u32 %v9844_v40, %v8000_v39  ;;  %v8129_v48 = vor.u32 %v9876_v43, %v8128_v42  ;;  %v7856_v49 = vld [vmem:[%s15394_s1 + $0xc60] sm:$0xf]  ;;  %v9808_v50 = vld [vmem:[%s15394_s1 + $0xc6c] sm:$0xf0] }
  0x78   :  { %4984 = vmatpush.bf16.msrb.mxu2 %v8145_v37  ;;  %v7984_v51 = vld [vmem:[%s15394_s1 + $0xd60] sm:$0xf]  ;;  %4997 = vmatpush.bf16.msrb.mxu3 %v8273_v41  ;;  %v8257_v52 = vor.u32 %v9908_v45, %v8256_v44  ;;  %v9840_v53 = vld [vmem:[%s15394_s1 + $0xd6c] sm:$0xf0]  ;;  %v7857_v58 = vor.u32 %v9808_v50, %v7856_v49  ;;  %vm4797_vm0 = vcmask 523264   ;;  %s10228_s13 = smov [#allocation2]  }
  0x79   :  { %v8112_v54 = vld [vmem:[%s15394_s1 + $0xe60] sm:$0xf]  ;;  %v9872_v55 = vld [vmem:[%s15394_s1 + $0xe6c] sm:$0xf0]  ;;  %v7985_v59 = vor.u32 %v9840_v53, %v7984_v51  ;;  %s6259_s14 = sshll.u32 %s10228_s13, 4  ;;  %s6261_s16 = sshll.u32 %s15398_s5, 4  ;;  %s6260_s14 = int_to_ptr.vmem [resolvable:$true] %s6259_s14  ;;  %s6262_s16 = int_to_ptr.hbm [resolvable:$true] %s6261_s16 }
  0x7a   :  { %v8240_v56 = vld [vmem:[%s15394_s1 + $0xf60] sm:$0xf]  ;;  %v9904_v57 = vld [vmem:[%s15394_s1 + $0xf6c] sm:$0xf0]  ;;  %v8113_v61 = vor.u32 %v9872_v55, %v8112_v54  ;;  %vm6252_vm1 = vcmask 41984  }
  0x7b   :  { %4959 = vmatpush.bf16.msrb.mxu0 %v7873_v46  ;;  %4972 = vmatpush.bf16.msrb.mxu1 %v8001_v47  ;;  %v7840_v62 = vld [vmem:[%s15394_s1 + $0xc40] sm:$0xf]  ;;  %v9804_v63 = vld [vmem:[%s15394_s1 + $0xc4c] sm:$0xf0]  ;;  %v8241_v4 = vor.u32 %v9904_v57, %v8240_v56  ;;  %v11081_v46 = vld [vmem:[#allocation1 + $0x24] sm:$0xff] }
  0x7c   :  { %4985 = vmatpush.bf16.msrb.mxu2 %v8129_v48  ;;  %v7968_v3 = vld [vmem:[%s15394_s1 + $0xd40] sm:$0xf]  ;;  %4998 = vmatpush.bf16.msrb.mxu3 %v8257_v52  ;;  %v9836_v5 = vld [vmem:[%s15394_s1 + $0xd4c] sm:$0xf0]  ;;  %v7841_v10 = vor.u32 %v9804_v63, %v7840_v62  ;;  %v11083_v47 = vld [vmem:[#allocation1 + $0x36] sm:$0xff] }
  0x7d   :  { %v8096_v6 = vld [vmem:[%s15394_s1 + $0xe40] sm:$0xf]  ;;  %v9868_v7 = vld [vmem:[%s15394_s1 + $0xe4c] sm:$0xf0]  ;;  %v7969_v13 = vor.u32 %v9836_v5, %v7968_v3 }
  0x7e   :  { %v8224_v8 = vld [vmem:[%s15394_s1 + $0xf40] sm:$0xf]  ;;  %v9900_v9 = vld [vmem:[%s15394_s1 + $0xf4c] sm:$0xf0]  ;;  %v8097_v14 = vor.u32 %v9868_v7, %v8096_v6 }
  0x7f   :  { %4960 = vmatpush.bf16.msrb.mxu0 %v7857_v58  ;;  %v7824_v11 = vld [vmem:[%s15394_s1 + $0xc20] sm:$0xf]  ;;  %4973 = vmatpush.bf16.msrb.mxu1 %v7985_v59  ;;  %v9800_v18 = vld [vmem:[%s15394_s1 + $0xc2c] sm:$0xf0]  ;;  %v8225_v24 = vor.u32 %v9900_v9, %v8224_v8 }
  0x80   :  { %4986 = vmatpush.bf16.msrb.mxu2 %v8113_v61  ;;  %v7952_v19 = vld [vmem:[%s15394_s1 + $0xd20] sm:$0xf]  ;;  %v9832_v23 = vld [vmem:[%s15394_s1 + $0xd2c] sm:$0xf0]  ;;  %4999 = vmatpush.bf16.msrb.mxu3 %v8241_v4  ;;  %v7825_v32 = vor.u32 %v9800_v18, %v7824_v11 }
  0x81   :  { %v8080_v25 = vld [vmem:[%s15394_s1 + $0xe20] sm:$0xf]  ;;  %v9864_v27 = vld [vmem:[%s15394_s1 + $0xe2c] sm:$0xf0]  ;;  %v7953_v37 = vor.u32 %v9832_v23, %v7952_v19 }
  0x82   :  { %v8208_v28 = vld [vmem:[%s15394_s1 + $0xf20] sm:$0xf]  ;;  %v9896_v29 = vld [vmem:[%s15394_s1 + $0xf2c] sm:$0xf0]  ;;  %v8081_v38 = vor.u32 %v9864_v27, %v8080_v25 }
  0x83   :  { %v7808_v30 = vld [vmem:[%s15394_s1 + $0xc00] sm:$0xf]  ;;  %v9796_v31 = vld [vmem:[%s15394_s1 + $0xc0c] sm:$0xf0]  ;;  %4961 = vmatpush.bf16.msrb.mxu0 %v7841_v10  ;;  %4974 = vmatpush.bf16.msrb.mxu1 %v7969_v13  ;;  %v8209_v43 = vor.u32 %v9896_v29, %v8208_v28 }
  0x84   :  { %v7936_v33 = vld [vmem:[%s15394_s1 + $0xd00] sm:$0xf]  ;;  %v9828_v34 = vld [vmem:[%s15394_s1 + $0xd0c] sm:$0xf0]  ;;  %4987 = vmatpush.bf16.msrb.mxu2 %v8097_v14  ;;  %5000 = vmatpush.bf16.msrb.mxu3 %v8225_v24  ;;  %v7809_v51 = vor.u32 %v9796_v31, %v7808_v30 }
  0x85   :  { %v8064_v35 = vld [vmem:[%s15394_s1 + $0xe00] sm:$0xf]  ;;  %v9860_v36 = vld [vmem:[%s15394_s1 + $0xe0c] sm:$0xf0]  ;;  %v7937_v54 = vor.u32 %v9828_v34, %v7936_v33 }
  0x86   :  { %v8192_v39 = vld [vmem:[%s15394_s1 + $0xf00] sm:$0xf]  ;;  %v9892_v40 = vld [vmem:[%s15394_s1 + $0xf0c] sm:$0xf0]  ;;  %v8065_v55 = vor.u32 %v9860_v36, %v8064_v35 }
  0x87   :  { %v8432_v41 = vld [vmem:[%s15394_s1 + $0x10e0] sm:$0xf]  ;;  %v9952_v42 = vld [vmem:[%s15394_s1 + $0x10ec] sm:$0xf0]  ;;  %4962 = vmatpush.bf16.msrb.mxu0 %v7825_v32  ;;  %4975 = vmatpush.bf16.msrb.mxu1 %v7953_v37  ;;  %v8193_v58 = vor.u32 %v9892_v40, %v8192_v39 }
  0x88   :  { %v8560_v44 = vld [vmem:[%s15394_s1 + $0x11e0] sm:$0xf]  ;;  %v9984_v45 = vld [vmem:[%s15394_s1 + $0x11ec] sm:$0xf0]  ;;  %4988 = vmatpush.bf16.msrb.mxu2 %v8081_v38  ;;  %5001 = vmatpush.bf16.msrb.mxu3 %v8209_v43  ;;  %v8433_v59 = vor.u32 %v9952_v42, %v8432_v41 }
  0x89   :  { %v11085_v48 = vld [vmem:[#allocation1 + $0x2d] sm:$0xff]  ;;  %v11087_v49 = vld [vmem:[#allocation1 + $0x3f] sm:$0xff]  ;;  %v8561_v61 = vor.u32 %v9984_v45, %v8560_v44 }
  0x8a   :  { %v24_v50 = vld [vmem:[%s15393_s0 + $0x10] sm:$0xff]  ;;  %v8688_v52 = vld [vmem:[%s15394_s1 + $0x12e0] sm:$0xf] }
  0x8b   :  { %v10016_v53 = vld [vmem:[%s15394_s1 + $0x12ec] sm:$0xf0]  ;;  %841 = vst [vmem:[#allocation1] ss:$9 sm:$0xff] %v24_v50  ;;  %v8816_v56 = vld [vmem:[%s15394_s1 + $0x13e0] sm:$0xf]  ;;  %4963 = vmatpush.bf16.msrb.mxu0 %v7809_v51  ;;  %4976 = vmatpush.bf16.msrb.mxu1 %v7937_v54 }
  0x8c   :  { %v10048_v57 = vld [vmem:[%s15394_s1 + $0x13ec] sm:$0xf0]  ;;  %v8689_v62 = vor.u32 %v10016_v53, %v8688_v52  ;;  %v8416_v63 = vld [vmem:[%s15394_s1 + $0x10c0] sm:$0xf]  ;;  %4989 = vmatpush.bf16.msrb.mxu2 %v8065_v55  ;;  %5002 = vmatpush.bf16.msrb.mxu3 %v8193_v58 }
  0x8d   :  { %v9948_v3 = vld [vmem:[%s15394_s1 + $0x10cc] sm:$0xf0]  ;;  %v8544_v4 = vld [vmem:[%s15394_s1 + $0x11c0] sm:$0xf]  ;;  %v8817_v5 = vor.u32 %v10048_v57, %v8816_v56 }
  0x8e   :  { %v9980_v6 = vld [vmem:[%s15394_s1 + $0x11cc] sm:$0xf0]  ;;  %v8672_v7 = vld [vmem:[%s15394_s1 + $0x12c0] sm:$0xf]  ;;  %v8417_v11 = vor.u32 %v9948_v3, %v8416_v63  ;;  %4964 = vmatmul.bf16.vlgmr.msrb.gmra.mxu0 %v11081_v46  ;;  %4977 = vmatmul.bf16.vlgmr.msrb.gmra.mxu1 %v11085_v48 }
  0x8f   :  { %v10012_v8 = vld [vmem:[%s15394_s1 + $0x12cc] sm:$0xf0]  ;;  %v8800_v9 = vld [vmem:[%s15394_s1 + $0x13c0] sm:$0xf]  ;;  %5008 = vmatpush.bf16.msra.mxu0 %v8433_v59  ;;  %5021 = vmatpush.bf16.msra.mxu1 %v8561_v61  ;;  %v8545_v13 = vor.u32 %v9980_v6, %v8544_v4 }
  0x90   :  { %v10044_v10 = vld [vmem:[%s15394_s1 + $0x13cc] sm:$0xf0]  ;;  %5034 = vmatpush.bf16.msra.mxu2 %v8689_v62  ;;  %v8673_v14 = vor.u32 %v10012_v8, %v8672_v7  ;;  %v8400_v18 = vld [vmem:[%s15394_s1 + $0x10a0] sm:$0xf]  ;;  %5047 = vmatpush.bf16.msra.mxu3 %v8817_v5 }
  0x91   :  { %v9944_v19 = vld [vmem:[%s15394_s1 + $0x10ac] sm:$0xf0]  ;;  %v8528_v23 = vld [vmem:[%s15394_s1 + $0x11a0] sm:$0xf]  ;;  %v8801_v24 = vor.u32 %v10044_v10, %v8800_v9  ;;  %4990 = vmatmul.bf16.vlgmr.msrb.gmra.mxu2 %v11083_v47  ;;  %5003 = vmatmul.bf16.vlgmr.msrb.gmra.mxu3 %v11087_v49 }
  0x92   :  { %v9976_v25 = vld [vmem:[%s15394_s1 + $0x11ac] sm:$0xf0]  ;;  %v8656_v27 = vld [vmem:[%s15394_s1 + $0x12a0] sm:$0xf]  ;;  %v8401_v31 = vor.u32 %v9944_v19, %v8400_v18 }
  0x93   :  { %v10008_v28 = vld [vmem:[%s15394_s1 + $0x12ac] sm:$0xf0]  ;;  %v8784_v29 = vld [vmem:[%s15394_s1 + $0x13a0] sm:$0xf]  ;;  %5009 = vmatpush.bf16.msra.mxu0 %v8417_v11  ;;  %5022 = vmatpush.bf16.msra.mxu1 %v8545_v13  ;;  %v8529_v32 = vor.u32 %v9976_v25, %v8528_v23 }
  0x94   :  { %v10040_v30 = vld [vmem:[%s15394_s1 + $0x13ac] sm:$0xf0]  ;;  %5035 = vmatpush.bf16.msra.mxu2 %v8673_v14  ;;  %v8657_v33 = vor.u32 %v10008_v28, %v8656_v27  ;;  %v8384_v34 = vld [vmem:[%s15394_s1 + $0x1080] sm:$0xf]  ;;  %5048 = vmatpush.bf16.msra.mxu3 %v8801_v24 }
  0x95   :  { %v9940_v35 = vld [vmem:[%s15394_s1 + $0x108c] sm:$0xf0]  ;;  %v8512_v36 = vld [vmem:[%s15394_s1 + $0x1180] sm:$0xf]  ;;  %v8785_v37 = vor.u32 %v10040_v30, %v8784_v29 }
  0x96   :  { %v9972_v38 = vld [vmem:[%s15394_s1 + $0x118c] sm:$0xf0]  ;;  %v8640_v39 = vld [vmem:[%s15394_s1 + $0x1280] sm:$0xf]  ;;  %v8385_v43 = vor.u32 %v9940_v35, %v8384_v34 }
  0x97   :  { %v10004_v40 = vld [vmem:[%s15394_s1 + $0x128c] sm:$0xf0]  ;;  %v8768_v41 = vld [vmem:[%s15394_s1 + $0x1380] sm:$0xf]  ;;  %5010 = vmatpush.bf16.msra.mxu0 %v8401_v31  ;;  %5023 = vmatpush.bf16.msra.mxu1 %v8529_v32  ;;  %v8513_v44 = vor.u32 %v9972_v38, %v8512_v36 }
  0x98   :  { %v10036_v42 = vld [vmem:[%s15394_s1 + $0x138c] sm:$0xf0]  ;;  %5036 = vmatpush.bf16.msra.mxu2 %v8657_v33  ;;  %v8641_v45 = vor.u32 %v10004_v40, %v8640_v39  ;;  %v8368_v50 = vld [vmem:[%s15394_s1 + $0x1060] sm:$0xf]  ;;  %5049 = vmatpush.bf16.msra.mxu3 %v8785_v37 }
  0x99   :  { %v9936_v51 = vld [vmem:[%s15394_s1 + $0x106c] sm:$0xf0]  ;;  %v8496_v52 = vld [vmem:[%s15394_s1 + $0x1160] sm:$0xf]  ;;  %v8769_v53 = vor.u32 %v10036_v42, %v8768_v41 }
  0x9a   :  { %v9968_v54 = vld [vmem:[%s15394_s1 + $0x116c] sm:$0xf0]  ;;  %v8624_v55 = vld [vmem:[%s15394_s1 + $0x1260] sm:$0xf]  ;;  %v8369_v59 = vor.u32 %v9936_v51, %v8368_v50 }
  0x9b   :  { %v10000_v56 = vld [vmem:[%s15394_s1 + $0x126c] sm:$0xf0]  ;;  %v8752_v57 = vld [vmem:[%s15394_s1 + $0x1360] sm:$0xf]  ;;  %5011 = vmatpush.bf16.msra.mxu0 %v8385_v43  ;;  %5024 = vmatpush.bf16.msra.mxu1 %v8513_v44  ;;  %v8497_v61 = vor.u32 %v9968_v54, %v8496_v52 }
  0x9c   :  { %v10032_v58 = vld [vmem:[%s15394_s1 + $0x136c] sm:$0xf0]  ;;  %5037 = vmatpush.bf16.msra.mxu2 %v8641_v45  ;;  %v8625_v62 = vor.u32 %v10000_v56, %v8624_v55  ;;  %v8352_v63 = vld [vmem:[%s15394_s1 + $0x1040] sm:$0xf]  ;;  %5050 = vmatpush.bf16.msra.mxu3 %v8769_v53 }
  0x9d   :  { %v9932_v3 = vld [vmem:[%s15394_s1 + $0x104c] sm:$0xf0]  ;;  %v8480_v4 = vld [vmem:[%s15394_s1 + $0x1140] sm:$0xf]  ;;  %v8753_v5 = vor.u32 %v10032_v58, %v8752_v57 }
  0x9e   :  { %v9964_v6 = vld [vmem:[%s15394_s1 + $0x114c] sm:$0xf0]  ;;  %v8608_v7 = vld [vmem:[%s15394_s1 + $0x1240] sm:$0xf]  ;;  %v8353_v11 = vor.u32 %v9932_v3, %v8352_v63 }
  0x9f   :  { %v9996_v8 = vld [vmem:[%s15394_s1 + $0x124c] sm:$0xf0]  ;;  %v8736_v9 = vld [vmem:[%s15394_s1 + $0x1340] sm:$0xf]  ;;  %5012 = vmatpush.bf16.msra.mxu0 %v8369_v59  ;;  %5025 = vmatpush.bf16.msra.mxu1 %v8497_v61  ;;  %v8481_v13 = vor.u32 %v9964_v6, %v8480_v4 }
  0xa0   :  { %v10028_v10 = vld [vmem:[%s15394_s1 + $0x134c] sm:$0xf0]  ;;  %5038 = vmatpush.bf16.msra.mxu2 %v8625_v62  ;;  %v8609_v14 = vor.u32 %v9996_v8, %v8608_v7  ;;  %v8336_v18 = vld [vmem:[%s15394_s1 + $0x1020] sm:$0xf]  ;;  %5051 = vmatpush.bf16.msra.mxu3 %v8753_v5 }
  0xa1   :  { %v9928_v19 = vld [vmem:[%s15394_s1 + $0x102c] sm:$0xf0]  ;;  %v8464_v23 = vld [vmem:[%s15394_s1 + $0x1120] sm:$0xf]  ;;  %v8737_v24 = vor.u32 %v10028_v10, %v8736_v9 }
  0xa2   :  { %v9960_v25 = vld [vmem:[%s15394_s1 + $0x112c] sm:$0xf0]  ;;  %v8592_v27 = vld [vmem:[%s15394_s1 + $0x1220] sm:$0xf]  ;;  %v8337_v31 = vor.u32 %v9928_v19, %v8336_v18 }
  0xa3   :  { %v9992_v28 = vld [vmem:[%s15394_s1 + $0x122c] sm:$0xf0]  ;;  %v8720_v29 = vld [vmem:[%s15394_s1 + $0x1320] sm:$0xf]  ;;  %5013 = vmatpush.bf16.msra.mxu0 %v8353_v11  ;;  %5026 = vmatpush.bf16.msra.mxu1 %v8481_v13  ;;  %v8465_v34 = vor.u32 %v9960_v25, %v8464_v23 }
  0xa4   :  { %v10024_v30 = vld [vmem:[%s15394_s1 + $0x132c] sm:$0xf0]  ;;  %v8320_v32 = vld [vmem:[%s15394_s1 + $0x1000] sm:$0xf]  ;;  %5039 = vmatpush.bf16.msra.mxu2 %v8609_v14  ;;  %v8593_v35 = vor.u32 %v9992_v28, %v8592_v27  ;;  %5052 = vmatpush.bf16.msra.mxu3 %v8737_v24 }
  0xa5   :  { %v9924_v33 = vld [vmem:[%s15394_s1 + $0x100c] sm:$0xf0]  ;;  %v8448_v36 = vld [vmem:[%s15394_s1 + $0x1100] sm:$0xf]  ;;  %v8721_v39 = vor.u32 %v10024_v30, %v8720_v29 }
  0xa6   :  { %v9956_v37 = vld [vmem:[%s15394_s1 + $0x110c] sm:$0xf0]  ;;  %v8576_v38 = vld [vmem:[%s15394_s1 + $0x1200] sm:$0xf]  ;;  %v8321_v50 = vor.u32 %v9924_v33, %v8320_v32 }
  0xa7   :  { %v9988_v40 = vld [vmem:[%s15394_s1 + $0x120c] sm:$0xf0]  ;;  %v8704_v41 = vld [vmem:[%s15394_s1 + $0x1300] sm:$0xf]  ;;  %5014 = vmatpush.bf16.msra.mxu0 %v8337_v31  ;;  %5027 = vmatpush.bf16.msra.mxu1 %v8465_v34  ;;  %v8449_v54 = vor.u32 %v9956_v37, %v8448_v36 }
  0xa8   :  { %v10020_v42 = vld [vmem:[%s15394_s1 + $0x130c] sm:$0xf0]  ;;  %v8944_v43 = vld [vmem:[%s15394_s1 + $0x14e0] sm:$0xf]  ;;  %5040 = vmatpush.bf16.msra.mxu2 %v8593_v35  ;;  %v8577_v55 = vor.u32 %v9988_v40, %v8576_v38  ;;  %5053 = vmatpush.bf16.msra.mxu3 %v8721_v39 }
  0xa9   :  { %v10080_v44 = vld [vmem:[%s15394_s1 + $0x14ec] sm:$0xf0]  ;;  %v9072_v45 = vld [vmem:[%s15394_s1 + $0x15e0] sm:$0xf]  ;;  %v8705_v58 = vor.u32 %v10020_v42, %v8704_v41 }
  0xaa   :  { %v10112_v51 = vld [vmem:[%s15394_s1 + $0x15ec] sm:$0xf0]  ;;  %v9200_v52 = vld [vmem:[%s15394_s1 + $0x16e0] sm:$0xf]  ;;  %v8945_v59 = vor.u32 %v10080_v44, %v8944_v43 }
  0xab   :  { %v10144_v53 = vld [vmem:[%s15394_s1 + $0x16ec] sm:$0xf0]  ;;  %v9328_v56 = vld [vmem:[%s15394_s1 + $0x17e0] sm:$0xf]  ;;  %v9073_v61 = vor.u32 %v10112_v51, %v9072_v45  ;;  %5015 = vmatpush.bf16.msra.mxu0 %v8321_v50  ;;  %5028 = vmatpush.bf16.msra.mxu1 %v8449_v54 }
  0xac   :  { %v10176_v57 = vld [vmem:[%s15394_s1 + $0x17ec] sm:$0xf0]  ;;  %v9201_v62 = vor.u32 %v10144_v53, %v9200_v52  ;;  %v8928_v63 = vld [vmem:[%s15394_s1 + $0x14c0] sm:$0xf]  ;;  %5041 = vmatpush.bf16.msra.mxu2 %v8577_v55  ;;  %5054 = vmatpush.bf16.msra.mxu3 %v8705_v58 }
  0xad   :  { %v10076_v3 = vld [vmem:[%s15394_s1 + $0x14cc] sm:$0xf0]  ;;  %v9056_v4 = vld [vmem:[%s15394_s1 + $0x15c0] sm:$0xf]  ;;  %v9329_v5 = vor.u32 %v10176_v57, %v9328_v56 }
  0xae   :  { %v10108_v6 = vld [vmem:[%s15394_s1 + $0x15cc] sm:$0xf0]  ;;  %v9184_v7 = vld [vmem:[%s15394_s1 + $0x16c0] sm:$0xf]  ;;  %v8929_v19 = vor.u32 %v10076_v3, %v8928_v63 }
  0xaf   :  { %v10140_v8 = vld [vmem:[%s15394_s1 + $0x16cc] sm:$0xf0]  ;;  %v11318_v9 = vld [vmem:[#allocation1] sm:$0xff]  ;;  %5060 = vmatpush.bf16.msrb.mxu0 %v8945_v59  ;;  %5073 = vmatpush.bf16.msrb.mxu1 %v9073_v61  ;;  %v9057_v23 = vor.u32 %v10108_v6, %v9056_v4 }
  0xb0   :  { %v9312_v10 = vld [vmem:[%s15394_s1 + $0x17c0] sm:$0xf]  ;;  %v10172_v11 = vld [vmem:[%s15394_s1 + $0x17cc] sm:$0xf0]  ;;  %5086 = vmatpush.bf16.msrb.mxu2 %v9201_v62  ;;  %v9185_v24 = vor.u32 %v10140_v8, %v9184_v7  ;;  %5099 = vmatpush.bf16.msrb.mxu3 %v9329_v5  ;;  %v11411_v4 = vld [vmem:[#allocation1 + $0x24] sm:$0xff] }
  0xb1   :  { %v11326_v13 = vld [vmem:[#allocation1 + $0x12] sm:$0xff]  ;;  %v11328_v14 = vld [vmem:[#allocation1 + $0x9] sm:$0xff]  ;;  %v11330_v18 = vld [vmem:[#allocation1 + $0x1b] sm:$0xff]  ;;  %5016 = vmatmul.bf16.vlgmr.msra.gmra.mxu0 %v11318_v9  ;;  %v9313_v29 = vor.u32 %v10172_v11, %v9312_v10 }
  0xb2   :  { %v8912_v25 = vld [vmem:[%s15394_s1 + $0x14a0] sm:$0xf]  ;;  %v10072_v27 = vld [vmem:[%s15394_s1 + $0x14ac] sm:$0xf0]  ;;  %5042 = vmatmul.bf16.vlgmr.msra.gmra.mxu2 %v11326_v13  ;;  %5029 = vmatmul.bf16.vlgmr.msra.gmra.mxu1 %v11328_v14  ;;  %v11413_v5 = vld [vmem:[#allocation1 + $0x36] sm:$0xff] }
  0xb3   :  { %v9040_v28 = vld [vmem:[%s15394_s1 + $0x15a0] sm:$0xf]  ;;  %v10104_v30 = vld [vmem:[%s15394_s1 + $0x15ac] sm:$0xf0]  ;;  %5055 = vmatmul.bf16.vlgmr.msra.gmra.mxu3 %v11330_v18  ;;  %5061 = vmatpush.bf16.msrb.mxu0 %v8929_v19  ;;  %v8913_v35 = vor.u32 %v10072_v27, %v8912_v25  ;;  %v25_v8 = vld [vmem:[%s15393_s0 + $0x18] sm:$0x1] }
  0xb4   :  { %v9168_v31 = vld [vmem:[%s15394_s1 + $0x16a0] sm:$0xf]  ;;  %v10136_v32 = vld [vmem:[%s15394_s1 + $0x16ac] sm:$0xf0]  ;;  %5074 = vmatpush.bf16.msrb.mxu1 %v9057_v23  ;;  %5087 = vmatpush.bf16.msrb.mxu2 %v9185_v24  ;;  %v9041_v37 = vor.u32 %v10104_v30, %v9040_v28 }
  0xb5   :  { %v9296_v33 = vld [vmem:[%s15394_s1 + $0x17a0] sm:$0xf]  ;;  %v10168_v34 = vld [vmem:[%s15394_s1 + $0x17ac] sm:$0xf0]  ;;  %v9169_v38 = vor.u32 %v10136_v32, %v9168_v31  ;;  %5100 = vmatpush.bf16.msrb.mxu3 %v9313_v29 }
  0xb6   :  { %v8896_v36 = vld [vmem:[%s15394_s1 + $0x1480] sm:$0xf]  ;;  %v10068_v39 = vld [vmem:[%s15394_s1 + $0x148c] sm:$0xf0]  ;;  %v9297_v42 = vor.u32 %v10168_v34, %v9296_v33 }
  0xb7   :  { %v9024_v40 = vld [vmem:[%s15394_s1 + $0x1580] sm:$0xf]  ;;  %v10100_v41 = vld [vmem:[%s15394_s1 + $0x158c] sm:$0xf0]  ;;  %5062 = vmatpush.bf16.msrb.mxu0 %v8913_v35  ;;  %v8897_v53 = vor.u32 %v10068_v39, %v8896_v36  ;;  %v4809_v35 = vpop.f32.mrf.mxu0 }
  0xb8   :  { %v9152_v43 = vld [vmem:[%s15394_s1 + $0x1680] sm:$0xf]  ;;  %v10132_v44 = vld [vmem:[%s15394_s1 + $0x168c] sm:$0xf0]  ;;  %5075 = vmatpush.bf16.msrb.mxu1 %v9041_v37  ;;  %5088 = vmatpush.bf16.msrb.mxu2 %v9169_v38  ;;  %v9025_v57 = vor.u32 %v10100_v41, %v9024_v40 }
  0xb9   :  { %v9280_v45 = vld [vmem:[%s15394_s1 + $0x1780] sm:$0xf]  ;;  %v10164_v50 = vld [vmem:[%s15394_s1 + $0x178c] sm:$0xf0]  ;;  %v9153_v58 = vor.u32 %v10132_v44, %v9152_v43  ;;  %5101 = vmatpush.bf16.msrb.mxu3 %v9297_v42  ;;  %v4822_v42 = vpop.f32.mrf.mxu1 }
  0xba   :  { %v8880_v51 = vld [vmem:[%s15394_s1 + $0x1460] sm:$0xf]  ;;  %v10064_v52 = vld [vmem:[%s15394_s1 + $0x146c] sm:$0xf0]  ;;  %v9281_v63 = vor.u32 %v10164_v50, %v9280_v45 }
  0xbb   :  { %v9008_v54 = vld [vmem:[%s15394_s1 + $0x1560] sm:$0xf]  ;;  %v10096_v55 = vld [vmem:[%s15394_s1 + $0x156c] sm:$0xf0]  ;;  %5063 = vmatpush.bf16.msrb.mxu0 %v8897_v53  ;;  %v8881_v10 = vor.u32 %v10064_v52, %v8880_v51 }
  0xbc   :  { %v9136_v56 = vld [vmem:[%s15394_s1 + $0x1660] sm:$0xf]  ;;  %v10128_v59 = vld [vmem:[%s15394_s1 + $0x166c] sm:$0xf0]  ;;  %5076 = vmatpush.bf16.msrb.mxu1 %v9025_v57  ;;  %5089 = vmatpush.bf16.msrb.mxu2 %v9153_v58  ;;  %v9009_v19 = vor.u32 %v10096_v55, %v9008_v54 }
  0xbd   :  { %v9264_v61 = vld [vmem:[%s15394_s1 + $0x1760] sm:$0xf]  ;;  %v10160_v62 = vld [vmem:[%s15394_s1 + $0x176c] sm:$0xf0]  ;;  %v9137_v23 = vor.u32 %v10128_v59, %v9136_v56  ;;  %5102 = vmatpush.bf16.msrb.mxu3 %v9281_v63  ;;  %v4835_v63 = vpop.f32.mrf.mxu2 }
  0xbe   :  { %v810_v3 = vld [vmem:[%s15395_s2] sm:$0xf]  ;;  %v11415_v6 = vld [vmem:[#allocation1 + $0x2d] sm:$0xff]  ;;  %v9265_v28 = vor.u32 %v10160_v62, %v9264_v61 }
  0xbf   :  { %v11417_v7 = vld [vmem:[#allocation1 + $0x3f] sm:$0xff]  ;;  %v10060_v24 = vld [vmem:[%s15394_s1 + $0x144c] sm:$0xf0]  ;;  %v812_v27 = vperm.slane %v810_v3, 0  ;;  %5064 = vmatpush.bf16.msrb.mxu0 %v8881_v10 }
  0xc0   :  { %v8864_v11 = vld [vmem:[%s15394_s1 + $0x1440] sm:$0xf]  ;;  %851 = vst [vmem:[#allocation1] ss:$9 sm:$0xff] %v25_v8  ;;  %v10092_v29 = vld [vmem:[%s15394_s1 + $0x154c] sm:$0xf0]  ;;  %5077 = vmatpush.bf16.msrb.mxu1 %v9009_v19  ;;  %5090 = vmatpush.bf16.msrb.mxu2 %v9137_v23  ;;  %v4848_v23 = vpop.f32.mrf.mxu3 }
  0xc1   :  { %v8992_v25 = vld [vmem:[%s15394_s1 + $0x1540] sm:$0xf]  ;;  %v10124_v31 = vld [vmem:[%s15394_s1 + $0x164c] sm:$0xf0]  ;;  %v8865_v34 = vor.u32 %v10060_v24, %v8864_v11  ;;  %v4810_v41 = vadd.f32 %v4809_v35, %v812_v27  ;;  %5103 = vmatpush.bf16.msrb.mxu3 %v9265_v28  ;;  %v9438_v27 = vld [vmem:[%s15394_s1 + $0xe4] sm:$0xf] }
  0xc2   :  { %v9120_v30 = vld [vmem:[%s15394_s1 + $0x1640] sm:$0xf]  ;;  %v10156_v33 = vld [vmem:[%s15394_s1 + $0x174c] sm:$0xf0]  ;;  %v8993_v36 = vor.u32 %v10092_v29, %v8992_v25  ;;  %v6386_v29 = vld [vmem:[%s15394_s1 + $0xf0] sm:$0xf0] }
  0xc3   :  { %v9248_v32 = vld [vmem:[%s15394_s1 + $0x1740] sm:$0xf]  ;;  %v9121_v37 = vor.u32 %v10124_v31, %v9120_v30  ;;  %v10056_v39 = vld [vmem:[%s15394_s1 + $0x142c] sm:$0xf0]  ;;  %v4823_v53 = vadd.f32 %v4822_v42, %v4810_v41  ;;  %5065 = vmatpush.bf16.msrb.mxu0 %v8865_v34  ;;  %v9470_v30 = vld [vmem:[%s15394_s1 + $0x1e4] sm:$0xf]  ;;  %v6389_v41 = vor.u32 %v9438_v27, %v6386_v29 }
  0xc4   :  { %v8848_v38 = vld [vmem:[%s15394_s1 + $0x1420] sm:$0xf]  ;;  %v9249_v43 = vor.u32 %v10156_v33, %v9248_v32  ;;  %v10088_v44 = vld [vmem:[%s15394_s1 + $0x152c] sm:$0xf0]  ;;  %5078 = vmatpush.bf16.msrb.mxu1 %v8993_v36  ;;  %v6514_v31 = vld [vmem:[%s15394_s1 + $0x1f0] sm:$0xf0]  ;;  %v4811_v33 = vpop.f32.mrf.mxu0 }
  0xc5   :  { %v8976_v40 = vld [vmem:[%s15394_s1 + $0x1520] sm:$0xf]  ;;  %v10120_v50 = vld [vmem:[%s15394_s1 + $0x162c] sm:$0xf0]  ;;  %v8849_v54 = vor.u32 %v10056_v39, %v8848_v38  ;;  %5091 = vmatpush.bf16.msrb.mxu2 %v9121_v37  ;;  %v4836_v19 = vadd.f32 %v4835_v63, %v4823_v53  ;;  %v9502_v36 = vld [vmem:[%s15394_s1 + $0x2e4] sm:$0xf]  ;;  %v4824_v38 = vpop.f32.mrf.mxu1  ;;  %v6517_v42 = vor.u32 %v9470_v30, %v6514_v31 }
  0xc6   :  { %v9104_v45 = vld [vmem:[%s15394_s1 + $0x1620] sm:$0xf]  ;;  %v10152_v52 = vld [vmem:[%s15394_s1 + $0x172c] sm:$0xf0]  ;;  %v8977_v57 = vor.u32 %v10088_v44, %v8976_v40  ;;  %5104 = vmatpush.bf16.msrb.mxu3 %v9249_v43  ;;  %v6642_v37 = vld [vmem:[%s15394_s1 + $0x2f0] sm:$0xf0] }
  0xc7   :  { %v9232_v51 = vld [vmem:[%s15394_s1 + $0x1720] sm:$0xf]  ;;  %v10052_v56 = vld [vmem:[%s15394_s1 + $0x140c] sm:$0xf0]  ;;  %v9105_v58 = vor.u32 %v10120_v50, %v9104_v45  ;;  %5066 = vmatpush.bf16.msrb.mxu0 %v8849_v54  ;;  %v11512_v32 = vadd.f32 %v4848_v23, %v4836_v19  ;;  %v9434_v45 = vld [vmem:[%s15394_s1 + $0xc4] sm:$0xf]  ;;  %v6645_v50 = vor.u32 %v9502_v36, %v6642_v37 }
  0xc8   :  { %v8832_v55 = vld [vmem:[%s15394_s1 + $0x1400] sm:$0xf]  ;;  %v10084_v61 = vld [vmem:[%s15394_s1 + $0x150c] sm:$0xf0]  ;;  %v9233_v3 = vor.u32 %v10152_v52, %v9232_v51  ;;  %5079 = vmatpush.bf16.msrb.mxu1 %v8977_v57  ;;  %v6370_v51 = vld [vmem:[%s15394_s1 + $0xd0] sm:$0xf0] }
  0xc9   :  { %v8960_v59 = vld [vmem:[%s15394_s1 + $0x1500] sm:$0xf]  ;;  %v10116_v8 = vld [vmem:[%s15394_s1 + $0x160c] sm:$0xf0]  ;;  %v8833_v28 = vor.u32 %v10052_v56, %v8832_v55  ;;  %5092 = vmatpush.bf16.msrb.mxu2 %v9105_v58  ;;  %v9466_v52 = vld [vmem:[%s15394_s1 + $0x1c4] sm:$0xf]  ;;  %v4837_v56 = vpop.f32.mrf.mxu2  ;;  %v4850_v58 = vpop.f32.mrf.mxu3 }
  0xca   :  { %v9088_v62 = vld [vmem:[%s15394_s1 + $0x1600] sm:$0xf]  ;;  %v10148_v11 = vld [vmem:[%s15394_s1 + $0x170c] sm:$0xf0]  ;;  %v8961_v34 = vor.u32 %v10084_v61, %v8960_v59  ;;  %5105 = vmatpush.bf16.msrb.mxu3 %v9233_v3  ;;  %v6498_v53 = vld [vmem:[%s15394_s1 + $0x1d0] sm:$0xf0]  ;;  %v6373_v59 = vor.u32 %v9434_v45, %v6370_v51 }
  0xcb   :  { %v9216_v10 = vld [vmem:[%s15394_s1 + $0x1700] sm:$0xf]  ;;  %v10192_v25 = vld [vmem:[%s15394_s1 + $0x186c] sm:$0xf0]  ;;  %v9089_v35 = vor.u32 %v10116_v8, %v9088_v62  ;;  %5067 = vmatpush.bf16.msrb.mxu0 %v8833_v28  ;;  %v9498_v54 = vld [vmem:[%s15394_s1 + $0x2c4] sm:$0xf]  ;;  %v6501_v61 = vor.u32 %v9466_v52, %v6498_v53 }
  0xcc   :  { %v9392_v24 = vld [vmem:[%s15394_s1 + $0x1860] sm:$0xf]  ;;  %v9217_v39 = vor.u32 %v10148_v11, %v9216_v10  ;;  %v10188_v44 = vld [vmem:[%s15394_s1 + $0x184c] sm:$0xf0]  ;;  %5080 = vmatpush.bf16.msrb.mxu1 %v8961_v34  ;;  %v6626_v55 = vld [vmem:[%s15394_s1 + $0x2d0] sm:$0xf0] }
  0xcd   :  { %v9393_v40 = vor.u32 %v10192_v25, %v9392_v24  ;;  %v9376_v43 = vld [vmem:[%s15394_s1 + $0x1840] sm:$0xf]  ;;  %5093 = vmatpush.bf16.msrb.mxu2 %v9089_v35  ;;  %v10184_v63 = vld [vmem:[%s15394_s1 + $0x182c] sm:$0xf0]  ;;  %v9430_v3 = vld [vmem:[%s15394_s1 + $0xa4] sm:$0xf]  ;;  %v6629_v8 = vor.u32 %v9498_v54, %v6626_v55  ;;  %v4874_v52 = vpop.f32.mrf.mxu1 }
  0xce   :  { %5106 = vmatpush.bf16.msrb.mxu3 %v9217_v39  ;;  %v9377_v57 = vor.u32 %v10188_v44, %v9376_v43  ;;  %v9360_v62 = vld [vmem:[%s15394_s1 + $0x1820] sm:$0xf]  ;;  %5068 = vmatmul.bf16.vlgmr.msrb.gmra.mxu0 %v11411_v4  ;;  %v6354_v10 = vld [vmem:[%s15394_s1 + $0xb0] sm:$0xf0]  ;;  %v9462_v11 = vld [vmem:[%s15394_s1 + $0x1a4] sm:$0xf] }
  0xcf   :  { %5116 = vmatpush.bf16.msra.mxu0 %v9393_v40  ;;  %v6482_v19 = vld [vmem:[%s15394_s1 + $0x1b0] sm:$0xf0]  ;;  %5081 = vmatmul.bf16.vlgmr.msrb.gmra.mxu1 %v11415_v6  ;;  %v9494_v23 = vld [vmem:[%s15394_s1 + $0x2a4] sm:$0xf]  ;;  %v9361_v25 = vor.u32 %v10184_v63, %v9360_v62  ;;  %v9344_v27 = vld [vmem:[%s15394_s1 + $0x1800] sm:$0xf]  ;;  %v6357_v28 = vor.u32 %v9430_v3, %v6354_v10 }
  0xd0   :  { %5125 = vmatpush.bf16.msra.mxu1 %v6389_v41  ;;  %5094 = vmatmul.bf16.vlgmr.msrb.gmra.mxu2 %v11413_v5  ;;  %v6610_v24 = vld [vmem:[%s15394_s1 + $0x2b0] sm:$0xf0]  ;;  %v6485_v29 = vor.u32 %v9462_v11, %v6482_v19  ;;  %v10180_v30 = vld [vmem:[%s15394_s1 + $0x180c] sm:$0xf0]  ;;  %v9426_v31 = vld [vmem:[%s15394_s1 + $0x84] sm:$0xf] }
  0xd1   :  { %5138 = vmatpush.bf16.msra.mxu2 %v6517_v42  ;;  %5107 = vmatmul.bf16.vlgmr.msrb.gmra.mxu3 %v11417_v7  ;;  %v6338_v33 = vld [vmem:[%s15394_s1 + $0x90] sm:$0xf0]  ;;  %v6613_v34 = vor.u32 %v9494_v23, %v6610_v24  ;;  %v9458_v35 = vld [vmem:[%s15394_s1 + $0x184] sm:$0xf]  ;;  %v9345_v41 = vor.u32 %v10180_v30, %v9344_v27  ;;  %v4861_v42 = vpop.f32.mrf.mxu0  ;;  %v4887_v10 = vpop.f32.mrf.mxu2 }
  0xd2   :  { %5151 = vmatpush.bf16.msra.mxu3 %v6645_v50  ;;  %v6466_v36 = vld [vmem:[%s15394_s1 + $0x190] sm:$0xf0]  ;;  %v9490_v37 = vld [vmem:[%s15394_s1 + $0x284] sm:$0xf]  ;;  %v6341_v43 = vor.u32 %v9426_v31, %v6338_v33  ;;  %v4862_v51 = vadd.f32 %v4861_v42, %v11512_v32 }
  0xd3   :  { %5117 = vmatpush.bf16.msra.mxu0 %v9377_v57  ;;  %v6594_v38 = vld [vmem:[%s15394_s1 + $0x290] sm:$0xf0]  ;;  %v9534_v39 = vld [vmem:[%s15394_s1 + $0x3e4] sm:$0xf]  ;;  %v6469_v44 = vor.u32 %v9458_v35, %v6466_v36 }
  0xd4   :  { %5126 = vmatpush.bf16.msra.mxu1 %v6373_v59  ;;  %v6770_v40 = vld [vmem:[%s15394_s1 + $0x3f0] sm:$0xf0]  ;;  %v9422_v45 = vld [vmem:[%s15394_s1 + $0x64] sm:$0xf]  ;;  %v6597_v53 = vor.u32 %v9490_v37, %v6594_v38 }
  0xd5   :  { %5139 = vmatpush.bf16.msra.mxu2 %v6501_v61  ;;  %v6322_v50 = vld [vmem:[%s15394_s1 + $0x70] sm:$0xf0]  ;;  %v6773_v54 = vor.u32 %v9534_v39, %v6770_v40  ;;  %v9454_v55 = vld [vmem:[%s15394_s1 + $0x164] sm:$0xf]  ;;  %v4875_v61 = vadd.f32 %v4874_v52, %v4862_v51  ;;  %v4876_v40 = vpop.f32.mrf.mxu1 }
  0xd6   :  { %5152 = vmatpush.bf16.msra.mxu3 %v6629_v8  ;;  %v6450_v56 = vld [vmem:[%s15394_s1 + $0x170] sm:$0xf0]  ;;  %v9486_v57 = vld [vmem:[%s15394_s1 + $0x264] sm:$0xf]  ;;  %v6325_v62 = vor.u32 %v9422_v45, %v6322_v50 }
  0xd7   :  { %5118 = vmatpush.bf16.msra.mxu0 %v9361_v25  ;;  %v6578_v32 = vld [vmem:[%s15394_s1 + $0x270] sm:$0xf0]  ;;  %v9530_v58 = vld [vmem:[%s15394_s1 + $0x3c4] sm:$0xf]  ;;  %v6453_v63 = vor.u32 %v9454_v55, %v6450_v56  ;;  %v4888_v27 = vadd.f32 %v4887_v10, %v4875_v61 }
  0xd8   :  { %5127 = vmatpush.bf16.msra.mxu1 %v6357_v28  ;;  %v6754_v59 = vld [vmem:[%s15394_s1 + $0x3d0] sm:$0xf0]  ;;  %v9418_v3 = vld [vmem:[%s15394_s1 + $0x44] sm:$0xf]  ;;  %v6581_v11 = vor.u32 %v9486_v57, %v6578_v32  ;;  %v4900_v28 = vpop.f32.mrf.mxu3 }
  0xd9   :  { %5140 = vmatpush.bf16.msra.mxu2 %v6485_v29  ;;  %v6306_v8 = vld [vmem:[%s15394_s1 + $0x50] sm:$0xf0]  ;;  %v6757_v19 = vor.u32 %v9530_v58, %v6754_v59  ;;  %v9450_v23 = vld [vmem:[%s15394_s1 + $0x144] sm:$0xf]  ;;  %v4863_v35 = vpop.f32.mrf.mxu0  ;;  %v4889_v32 = vpop.f32.mrf.mxu2 }
  0xda   :  { %5153 = vmatpush.bf16.msra.mxu3 %v6613_v34  ;;  %v6434_v24 = vld [vmem:[%s15394_s1 + $0x150] sm:$0xf0]  ;;  %v9482_v25 = vld [vmem:[%s15394_s1 + $0x244] sm:$0xf]  ;;  %v11651_v34 = vadd.f32 %v4900_v28, %v4888_v27  ;;  %v6309_v36 = vor.u32 %v9418_v3, %v6306_v8 }
  0xdb   :  { %5119 = vmatpush.bf16.msra.mxu0 %v9345_v41  ;;  %v6562_v29 = vld [vmem:[%s15394_s1 + $0x250] sm:$0xf0]  ;;  %v9526_v30 = vld [vmem:[%s15394_s1 + $0x3a4] sm:$0xf]  ;;  %v6437_v37 = vor.u32 %v9450_v23, %v6434_v24 }
  0xdc   :  { %5128 = vmatpush.bf16.msra.mxu1 %v6341_v43  ;;  %v6738_v31 = vld [vmem:[%s15394_s1 + $0x3b0] sm:$0xf0]  ;;  %v852_v33 = vld [vmem:[#allocation1] sm:$0xff]  ;;  %v6565_v41 = vor.u32 %v9482_v25, %v6562_v29 }
  0xdd   :  { %5141 = vmatpush.bf16.msra.mxu2 %v6469_v44  ;;  %v9414_v38 = vld [vmem:[%s15394_s1 + $0x24] sm:$0xf]  ;;  %v6290_v39 = vld [vmem:[%s15394_s1 + $0x30] sm:$0xf0]  ;;  %v6741_v42 = vor.u32 %v9526_v30, %v6738_v31 }
  0xde   :  { %5154 = vmatpush.bf16.msra.mxu3 %v6597_v53  ;;  %v9446_v43 = vld [vmem:[%s15394_s1 + $0x124] sm:$0xf]  ;;  %v6418_v44 = vld [vmem:[%s15394_s1 + $0x130] sm:$0xf0]  ;;  %9406 = vmatmul.msk.bf16.vlgmr.msra.gmra.mxu0 %vm4797_vm0, %v852_v33  ;;  %v6293_v53 = vor.u32 %v9414_v38, %v6290_v39 }
  0xdf   :  { %5164 = vmatpush.bf16.msrb.mxu0 %v6773_v54  ;;  %v9478_v45 = vld [vmem:[%s15394_s1 + $0x224] sm:$0xf]  ;;  %v6546_v50 = vld [vmem:[%s15394_s1 + $0x230] sm:$0xf0]  ;;  %v6421_v54 = vor.u32 %v9446_v43, %v6418_v44 }
  0xe0   :  { %5129 = vmatpush.bf16.msra.mxu1 %v6325_v62  ;;  %v9522_v51 = vld [vmem:[%s15394_s1 + $0x384] sm:$0xf]  ;;  %v6722_v52 = vld [vmem:[%s15394_s1 + $0x390] sm:$0xf0]  ;;  %v6549_v58 = vor.u32 %v9478_v45, %v6546_v50  ;;  %v4902_v3 = vpop.f32.mrf.mxu3 }
  0xe1   :  { %5142 = vmatpush.bf16.msra.mxu2 %v6453_v63  ;;  %v9410_v55 = vld [vmem:[%s15394_s1 + $0x4] sm:$0xf]  ;;  %v6274_v56 = vld [vmem:[%s15394_s1 + $0x10] sm:$0xf0]  ;;  %v6725_v59 = vor.u32 %v9522_v51, %v6722_v52 }
  0xe2   :  { %5155 = vmatpush.bf16.msra.mxu3 %v6581_v11  ;;  %v9442_v57 = vld [vmem:[%s15394_s1 + $0x104] sm:$0xf]  ;;  %v6402_v61 = vld [vmem:[%s15394_s1 + $0x110] sm:$0xf0]  ;;  %v6277_v25 = vor.u32 %v9410_v55, %v6274_v56 }
  0xe3   :  { %5165 = vmatpush.bf16.msrb.mxu0 %v6757_v19  ;;  %v9474_v62 = vld [vmem:[%s15394_s1 + $0x204] sm:$0xf]  ;;  %v6530_v63 = vld [vmem:[%s15394_s1 + $0x210] sm:$0xf0]  ;;  %v6405_v27 = vor.u32 %v9442_v57, %v6402_v61 }
  0xe4   :  { %5130 = vmatpush.bf16.msra.mxu1 %v6309_v36  ;;  %v9518_v8 = vld [vmem:[%s15394_s1 + $0x364] sm:$0xf]  ;;  %v6706_v10 = vld [vmem:[%s15394_s1 + $0x370] sm:$0xf0]  ;;  %v6533_v30 = vor.u32 %v9474_v62, %v6530_v63 }
  0xe5   :  { %5143 = vmatpush.bf16.msra.mxu2 %v6437_v37  ;;  %v9566_v11 = vld [vmem:[%s15394_s1 + $0x4e4] sm:$0xf]  ;;  %v6898_v19 = vld [vmem:[%s15394_s1 + $0x4f0] sm:$0xf0]  ;;  %v6709_v31 = vor.u32 %v9518_v8, %v6706_v10 }
  0xe6   :  { %5156 = vmatpush.bf16.msra.mxu3 %v6565_v41  ;;  %v9598_v23 = vld [vmem:[%s15394_s1 + $0x5e4] sm:$0xf]  ;;  %v7026_v24 = vld [vmem:[%s15394_s1 + $0x5f0] sm:$0xf0]  ;;  %v6901_v33 = vor.u32 %v9566_v11, %v6898_v19 }
  0xe7   :  { %5166 = vmatpush.bf16.msrb.mxu0 %v6741_v42  ;;  %v9630_v28 = vld [vmem:[%s15394_s1 + $0x6e4] sm:$0xf]  ;;  %v7154_v29 = vld [vmem:[%s15394_s1 + $0x6f0] sm:$0xf0]  ;;  %v7029_v35 = vor.u32 %v9598_v23, %v7026_v24 }
  0xe8   :  { %5131 = vmatpush.bf16.msra.mxu1 %v6293_v53  ;;  %v9514_v36 = vld [vmem:[%s15394_s1 + $0x344] sm:$0xf]  ;;  %v6690_v37 = vld [vmem:[%s15394_s1 + $0x350] sm:$0xf0]  ;;  %v7157_v39 = vor.u32 %v9630_v28, %v7154_v29 }
  0xe9   :  { %5144 = vmatpush.bf16.msra.mxu2 %v6421_v54  ;;  %v9562_v38 = vld [vmem:[%s15394_s1 + $0x4c4] sm:$0xf]  ;;  %v6882_v40 = vld [vmem:[%s15394_s1 + $0x4d0] sm:$0xf0]  ;;  %v6693_v45 = vor.u32 %v9514_v36, %v6690_v37 }
  0xea   :  { %5157 = vmatpush.bf16.msra.mxu3 %v6549_v58  ;;  %v9594_v41 = vld [vmem:[%s15394_s1 + $0x5c4] sm:$0xf]  ;;  %v7010_v42 = vld [vmem:[%s15394_s1 + $0x5d0] sm:$0xf0]  ;;  %v6885_v50 = vor.u32 %v9562_v38, %v6882_v40 }
  0xeb   :  { %5167 = vmatpush.bf16.msrb.mxu0 %v6725_v59  ;;  %v9626_v43 = vld [vmem:[%s15394_s1 + $0x6c4] sm:$0xf]  ;;  %v7138_v44 = vld [vmem:[%s15394_s1 + $0x6d0] sm:$0xf0]  ;;  %v7013_v51 = vor.u32 %v9594_v41, %v7010_v42 }
  0xec   :  { %5132 = vmatpush.bf16.msra.mxu1 %v6277_v25  ;;  %v9510_v52 = vld [vmem:[%s15394_s1 + $0x324] sm:$0xf]  ;;  %v6674_v53 = vld [vmem:[%s15394_s1 + $0x330] sm:$0xf0]  ;;  %v7141_v55 = vor.u32 %v9626_v43, %v7138_v44 }
  0xed   :  { %5145 = vmatpush.bf16.msra.mxu2 %v6405_v27  ;;  %v9558_v54 = vld [vmem:[%s15394_s1 + $0x4a4] sm:$0xf]  ;;  %v6866_v56 = vld [vmem:[%s15394_s1 + $0x4b0] sm:$0xf0]  ;;  %v6677_v61 = vor.u32 %v9510_v52, %v6674_v53  ;;  %v4913_v27 = vpop.f32.mrf.mxu0 }
  0xee   :  { %5158 = vmatpush.bf16.msra.mxu3 %v6533_v30  ;;  %v9590_v57 = vld [vmem:[%s15394_s1 + $0x5a4] sm:$0xf]  ;;  %v6994_v32 = vld [vmem:[%s15394_s1 + $0x5b0] sm:$0xf0]  ;;  %v6869_v63 = vor.u32 %v9558_v54, %v6866_v56 }
  0xef   :  { %5168 = vmatpush.bf16.msrb.mxu0 %v6709_v31  ;;  %v9622_v58 = vld [vmem:[%s15394_s1 + $0x6a4] sm:$0xf]  ;;  %v7122_v59 = vld [vmem:[%s15394_s1 + $0x6b0] sm:$0xf0]  ;;  %5133 = vmatmul.bf16.vlgmr.msra.gmra.mxu1 %v10564_v21  ;;  %v6997_v3 = vor.u32 %v9590_v57, %v6994_v32  ;;  %v4914_v31 = vadd.f32 %v4913_v27, %v11651_v34  ;;  %v4939_v57 = vpop.f32.mrf.mxu2 }
  0xf0   :  { %5177 = vmatpush.bf16.msrb.mxu1 %v6901_v33  ;;  %5146 = vmatmul.bf16.vlgmr.msra.gmra.mxu2 %v10575_v26  ;;  %v9506_v62 = vld [vmem:[%s15394_s1 + $0x304] sm:$0xf]  ;;  %v6658_v8 = vld [vmem:[%s15394_s1 + $0x310] sm:$0xf0]  ;;  %v7125_v19 = vor.u32 %v9622_v58, %v7122_v59 }
  0xf1   :  { %5190 = vmatpush.bf16.msrb.mxu2 %v7029_v35  ;;  %5159 = vmatmul.bf16.vlgmr.msra.gmra.mxu3 %v10562_v20  ;;  %v9554_v10 = vld [vmem:[%s15394_s1 + $0x484] sm:$0xf]  ;;  %v6850_v11 = vld [vmem:[%s15394_s1 + $0x490] sm:$0xf0]  ;;  %v6661_v33 = vor.u32 %v9506_v62, %v6658_v8  ;;  %v4926_v35 = vpop.f32.mrf.mxu1 }
  0xf2   :  { %5203 = vmatpush.bf16.msrb.mxu3 %v7157_v39  ;;  %v9586_v23 = vld [vmem:[%s15394_s1 + $0x584] sm:$0xf]  ;;  %v6978_v24 = vld [vmem:[%s15394_s1 + $0x590] sm:$0xf0]  ;;  %v6853_v36 = vor.u32 %v9554_v10, %v6850_v11  ;;  %v4927_v41 = vadd.f32 %v4926_v35, %v4914_v31 }
  0xf3   :  { %5169 = vmatpush.bf16.msrb.mxu0 %v6693_v45  ;;  %v9618_v25 = vld [vmem:[%s15394_s1 + $0x684] sm:$0xf]  ;;  %v7106_v28 = vld [vmem:[%s15394_s1 + $0x690] sm:$0xf0]  ;;  %v6981_v37 = vor.u32 %v9586_v23, %v6978_v24 }
  0xf4   :  { %5178 = vmatpush.bf16.msrb.mxu1 %v6885_v50  ;;  %v9662_v29 = vld [vmem:[%s15394_s1 + $0x7e4] sm:$0xf]  ;;  %v7282_v30 = vld [vmem:[%s15394_s1 + $0x7f0] sm:$0xf0]  ;;  %v7109_v40 = vor.u32 %v9618_v25, %v7106_v28  ;;  %v4940_v62 = vadd.f32 %v4939_v57, %v4927_v41 }
  0xf5   :  { %5191 = vmatpush.bf16.msrb.mxu2 %v7013_v51  ;;  %v9550_v38 = vld [vmem:[%s15394_s1 + $0x464] sm:$0xf]  ;;  %v6834_v39 = vld [vmem:[%s15394_s1 + $0x470] sm:$0xf0]  ;;  %v7285_v42 = vor.u32 %v9662_v29, %v7282_v30  ;;  %v4915_v11 = vpop.f32.mrf.mxu0 }
  0xf6   :  { %5204 = vmatpush.bf16.msrb.mxu3 %v7141_v55  ;;  %v9582_v34 = vld [vmem:[%s15394_s1 + $0x564] sm:$0xf]  ;;  %v6962_v43 = vld [vmem:[%s15394_s1 + $0x570] sm:$0xf0]  ;;  %v6837_v52 = vor.u32 %v9550_v38, %v6834_v39 }
  0xf7   :  { %5170 = vmatpush.bf16.msrb.mxu0 %v6677_v61  ;;  %v9614_v44 = vld [vmem:[%s15394_s1 + $0x664] sm:$0xf]  ;;  %v7090_v45 = vld [vmem:[%s15394_s1 + $0x670] sm:$0xf0]  ;;  %v6965_v53 = vor.u32 %v9582_v34, %v6962_v43 }
  0xf8   :  { %5179 = vmatpush.bf16.msrb.mxu1 %v6869_v63  ;;  %v9658_v50 = vld [vmem:[%s15394_s1 + $0x7c4] sm:$0xf]  ;;  %v7266_v51 = vld [vmem:[%s15394_s1 + $0x7d0] sm:$0xf0]  ;;  %v7093_v56 = vor.u32 %v9614_v44, %v7090_v45  ;;  %v4952_v63 = vpop.f32.mrf.mxu3 }
  0xf9   :  { %5192 = vmatpush.bf16.msrb.mxu2 %v6997_v3  ;;  %v9546_v54 = vld [vmem:[%s15394_s1 + $0x444] sm:$0xf]  ;;  %v6818_v55 = vld [vmem:[%s15394_s1 + $0x450] sm:$0xf0]  ;;  %v7269_v32 = vor.u32 %v9658_v50, %v7266_v51  ;;  %v11851_v23 = vadd.f32 %v4952_v63, %v4940_v62 }
  0xfa   :  { %5205 = vmatpush.bf16.msrb.mxu3 %v7125_v19  ;;  %v9578_v58 = vld [vmem:[%s15394_s1 + $0x544] sm:$0xf]  ;;  %v6946_v59 = vld [vmem:[%s15394_s1 + $0x550] sm:$0xf0]  ;;  %v4928_v19 = vpop.f32.mrf.mxu1  ;;  %v6821_v24 = vor.u32 %v9546_v54, %v6818_v55 }
  0xfb   :  { %5171 = vmatpush.bf16.msrb.mxu0 %v6661_v33  ;;  %v9610_v61 = vld [vmem:[%s15394_s1 + $0x644] sm:$0xf]  ;;  %v7074_v3 = vld [vmem:[%s15394_s1 + $0x650] sm:$0xf0]  ;;  %v6949_v25 = vor.u32 %v9578_v58, %v6946_v59 }
  0xfc   :  { %5180 = vmatpush.bf16.msrb.mxu1 %v6853_v36  ;;  %v9654_v8 = vld [vmem:[%s15394_s1 + $0x7a4] sm:$0xf]  ;;  %v7250_v10 = vld [vmem:[%s15394_s1 + $0x7b0] sm:$0xf0]  ;;  %v7077_v29 = vor.u32 %v9610_v61, %v7074_v3 }
  0xfd   :  { %5193 = vmatpush.bf16.msrb.mxu2 %v6981_v37  ;;  %v9542_v27 = vld [vmem:[%s15394_s1 + $0x424] sm:$0xf]  ;;  %v6802_v28 = vld [vmem:[%s15394_s1 + $0x430] sm:$0xf0]  ;;  %v7253_v30 = vor.u32 %v9654_v8, %v7250_v10 }
  0xfe   :  { %5206 = vmatpush.bf16.msrb.mxu3 %v7109_v40  ;;  %5172 = vmatmul.bf16.vlgmr.msrb.gmra.mxu0 %v10566_v22  ;;  %v9574_v31 = vld [vmem:[%s15394_s1 + $0x524] sm:$0xf]  ;;  %v6930_v33 = vld [vmem:[%s15394_s1 + $0x530] sm:$0xf0]  ;;  %v6805_v39 = vor.u32 %v9542_v27, %v6802_v28 }
  0xff   :  { %5216 = vmatpush.bf16.msra.mxu0 %v7285_v42  ;;  %v9606_v35 = vld [vmem:[%s15394_s1 + $0x624] sm:$0xf]  ;;  %v7058_v36 = vld [vmem:[%s15394_s1 + $0x630] sm:$0xf0]  ;;  %v6933_v40 = vor.u32 %v9574_v31, %v6930_v33 }
 0x100   :  { %5181 = vmatpush.bf16.msrb.mxu1 %v6837_v52  ;;  %v9650_v37 = vld [vmem:[%s15394_s1 + $0x784] sm:$0xf]  ;;  %v7234_v38 = vld [vmem:[%s15394_s1 + $0x790] sm:$0xf0]  ;;  %v7061_v43 = vor.u32 %v9606_v35, %v7058_v36  ;;  %v4941_v52 = vpop.f32.mrf.mxu2 }
 0x101   :  { %5194 = vmatpush.bf16.msrb.mxu2 %v6965_v53  ;;  %v9538_v41 = vld [vmem:[%s15394_s1 + $0x404] sm:$0xf]  ;;  %v6786_v42 = vld [vmem:[%s15394_s1 + $0x410] sm:$0xf0]  ;;  %v7237_v44 = vor.u32 %v9650_v37, %v7234_v38 }
 0x102   :  { %5207 = vmatpush.bf16.msrb.mxu3 %v7093_v56  ;;  %v9570_v34 = vld [vmem:[%s15394_s1 + $0x504] sm:$0xf]  ;;  %v6914_v45 = vld [vmem:[%s15394_s1 + $0x510] sm:$0xf0]  ;;  %v4954_v56 = vpop.f32.mrf.mxu3  ;;  %v6789_v59 = vor.u32 %v9538_v41, %v6786_v42 }
 0x103   :  { %5217 = vmatpush.bf16.msra.mxu0 %v7269_v32  ;;  %v9602_v50 = vld [vmem:[%s15394_s1 + $0x604] sm:$0xf]  ;;  %v7042_v51 = vld [vmem:[%s15394_s1 + $0x610] sm:$0xf0]  ;;  %v6917_v61 = vor.u32 %v9570_v34, %v6914_v45 }
 0x104   :  { %5182 = vmatpush.bf16.msrb.mxu1 %v6821_v24  ;;  %v9646_v53 = vld [vmem:[%s15394_s1 + $0x764] sm:$0xf]  ;;  %v7218_v54 = vld [vmem:[%s15394_s1 + $0x770] sm:$0xf0]  ;;  %v7045_v3 = vor.u32 %v9602_v50, %v7042_v51 }
 0x105   :  { %5195 = vmatpush.bf16.msrb.mxu2 %v6949_v25  ;;  %v9694_v55 = vld [vmem:[%s15394_s1 + $0x8e4] sm:$0xf]  ;;  %v7410_v57 = vld [vmem:[%s15394_s1 + $0x8f0] sm:$0xf0]  ;;  %v7221_v8 = vor.u32 %v9646_v53, %v7218_v54 }
 0x106   :  { %5208 = vmatpush.bf16.msrb.mxu3 %v7077_v29  ;;  %v9726_v32 = vld [vmem:[%s15394_s1 + $0x9e4] sm:$0xf]  ;;  %v7538_v58 = vld [vmem:[%s15394_s1 + $0x9f0] sm:$0xf0]  ;;  %v7413_v10 = vor.u32 %v9694_v55, %v7410_v57 }
 0x107   :  { %5218 = vmatpush.bf16.msra.mxu0 %v7253_v30  ;;  %v9758_v62 = vld [vmem:[%s15394_s1 + $0xae4] sm:$0xf]  ;;  %v7666_v63 = vld [vmem:[%s15394_s1 + $0xaf0] sm:$0xf0]  ;;  %v7541_v11 = vor.u32 %v9726_v32, %v7538_v58 }
 0x108   :  { %5183 = vmatpush.bf16.msrb.mxu1 %v6805_v39  ;;  %v9642_v19 = vld [vmem:[%s15394_s1 + $0x744] sm:$0xf]  ;;  %v7202_v24 = vld [vmem:[%s15394_s1 + $0x750] sm:$0xf0]  ;;  %v7669_v27 = vor.u32 %v9758_v62, %v7666_v63 }
 0x109   :  { %5196 = vmatpush.bf16.msrb.mxu2 %v6933_v40  ;;  %v9690_v25 = vld [vmem:[%s15394_s1 + $0x8c4] sm:$0xf]  ;;  %v7394_v28 = vld [vmem:[%s15394_s1 + $0x8d0] sm:$0xf0]  ;;  %v7205_v35 = vor.u32 %v9642_v19, %v7202_v24 }
 0x10a   :  { %5209 = vmatpush.bf16.msrb.mxu3 %v7061_v43  ;;  %v9722_v29 = vld [vmem:[%s15394_s1 + $0x9c4] sm:$0xf]  ;;  %v7522_v30 = vld [vmem:[%s15394_s1 + $0x9d0] sm:$0xf0]  ;;  %v7397_v36 = vor.u32 %v9690_v25, %v7394_v28 }
 0x10b   :  { %5219 = vmatpush.bf16.msra.mxu0 %v7237_v44  ;;  %v9754_v31 = vld [vmem:[%s15394_s1 + $0xac4] sm:$0xf]  ;;  %v7650_v33 = vld [vmem:[%s15394_s1 + $0xad0] sm:$0xf0]  ;;  %v7525_v37 = vor.u32 %v9722_v29, %v7522_v30 }
 0x10c   :  { %5184 = vmatpush.bf16.msrb.mxu1 %v6789_v59  ;;  %v9638_v38 = vld [vmem:[%s15394_s1 + $0x724] sm:$0xf]  ;;  %v7186_v39 = vld [vmem:[%s15394_s1 + $0x730] sm:$0xf0]  ;;  %v7653_v41 = vor.u32 %v9754_v31, %v7650_v33 }
 0x10d   :  { %5197 = vmatpush.bf16.msrb.mxu2 %v6917_v61  ;;  %v9686_v40 = vld [vmem:[%s15394_s1 + $0x8a4] sm:$0xf]  ;;  %v7378_v42 = vld [vmem:[%s15394_s1 + $0x8b0] sm:$0xf0]  ;;  %v7189_v50 = vor.u32 %v9638_v38, %v7186_v39  ;;  %v4965_v61 = vpop.f32.mrf.mxu0 }
 0x10e   :  { %5210 = vmatpush.bf16.msrb.mxu3 %v7045_v3  ;;  %v9718_v34 = vld [vmem:[%s15394_s1 + $0x9a4] sm:$0xf]  ;;  %v7506_v43 = vld [vmem:[%s15394_s1 + $0x9b0] sm:$0xf0]  ;;  %v7381_v52 = vor.u32 %v9686_v40, %v7378_v42 }
 0x10f   :  { %5220 = vmatpush.bf16.msra.mxu0 %v7221_v8  ;;  %v9750_v44 = vld [vmem:[%s15394_s1 + $0xaa4] sm:$0xf]  ;;  %v7634_v45 = vld [vmem:[%s15394_s1 + $0xab0] sm:$0xf0]  ;;  %5185 = vmatmul.bf16.vlgmr.msrb.gmra.mxu1 %v10657_v0  ;;  %v7509_v53 = vor.u32 %v9718_v34, %v7506_v43  ;;  %v4966_v8 = vadd.f32 %v4965_v61, %v11851_v23 }
 0x110   :  { %5229 = vmatpush.bf16.msra.mxu1 %v7413_v10  ;;  %5198 = vmatmul.bf16.vlgmr.msrb.gmra.mxu2 %v10661_v2  ;;  %v9634_v51 = vld [vmem:[%s15394_s1 + $0x704] sm:$0xf]  ;;  %v7170_v54 = vld [vmem:[%s15394_s1 + $0x710] sm:$0xf0]  ;;  %v7637_v57 = vor.u32 %v9750_v44, %v7634_v45 }
 0x111   :  { %5242 = vmatpush.bf16.msra.mxu2 %v7541_v11  ;;  %5211 = vmatmul.bf16.vlgmr.msrb.gmra.mxu3 %v10652_v60  ;;  %v9682_v55 = vld [vmem:[%s15394_s1 + $0x884] sm:$0xf]  ;;  %v7362_v56 = vld [vmem:[%s15394_s1 + $0x890] sm:$0xf0]  ;;  %v7173_v10 = vor.u32 %v9634_v51, %v7170_v54  ;;  %v4978_v11 = vpop.f32.mrf.mxu1 }
 0x112   :  { %5255 = vmatpush.bf16.msra.mxu3 %v7669_v27  ;;  %v9714_v32 = vld [vmem:[%s15394_s1 + $0x984] sm:$0xf]  ;;  %v7490_v58 = vld [vmem:[%s15394_s1 + $0x990] sm:$0xf0]  ;;  %v7365_v19 = vor.u32 %v9682_v55, %v7362_v56  ;;  %v4979_v29 = vadd.f32 %v4978_v11, %v4966_v8 }
 0x113   :  { %5221 = vmatpush.bf16.msra.mxu0 %v7205_v35  ;;  %v9746_v59 = vld [vmem:[%s15394_s1 + $0xa84] sm:$0xf]  ;;  %v7618_v62 = vld [vmem:[%s15394_s1 + $0xa90] sm:$0xf0]  ;;  %v7493_v24 = vor.u32 %v9714_v32, %v7490_v58 }
 0x114   :  { %5230 = vmatpush.bf16.msra.mxu1 %v7397_v36  ;;  %v9790_v63 = vld [vmem:[%s15394_s1 + $0xbe4] sm:$0xf]  ;;  %v7794_v3 = vld [vmem:[%s15394_s1 + $0xbf0] sm:$0xf0]  ;;  %v7621_v28 = vor.u32 %v9746_v59, %v7618_v62  ;;  %v4991_v34 = vpop.f32.mrf.mxu2 }
 0x115   :  { %5243 = vmatpush.bf16.msra.mxu2 %v7525_v37  ;;  %v9678_v25 = vld [vmem:[%s15394_s1 + $0x864] sm:$0xf]  ;;  %v7346_v27 = vld [vmem:[%s15394_s1 + $0x870] sm:$0xf0]  ;;  %v7797_v30 = vor.u32 %v9790_v63, %v7794_v3  ;;  %v4992_v51 = vadd.f32 %v4991_v34, %v4979_v29  ;;  %v4967_v56 = vpop.f32.mrf.mxu0 }
 0x116   :  { %5256 = vmatpush.bf16.msra.mxu3 %v7653_v41  ;;  %v9710_v23 = vld [vmem:[%s15394_s1 + $0x964] sm:$0xf]  ;;  %v7474_v31 = vld [vmem:[%s15394_s1 + $0x970] sm:$0xf0]  ;;  %v7349_v38 = vor.u32 %v9678_v25, %v7346_v27 }
 0x117   :  { %5222 = vmatpush.bf16.msra.mxu0 %v7189_v50  ;;  %v9742_v33 = vld [vmem:[%s15394_s1 + $0xa64] sm:$0xf]  ;;  %v7602_v35 = vld [vmem:[%s15394_s1 + $0xa70] sm:$0xf0]  ;;  %v7477_v39 = vor.u32 %v9710_v23, %v7474_v31 }
 0x118   :  { %5231 = vmatpush.bf16.msra.mxu1 %v7381_v52  ;;  %v9786_v36 = vld [vmem:[%s15394_s1 + $0xbc4] sm:$0xf]  ;;  %v7778_v37 = vld [vmem:[%s15394_s1 + $0xbd0] sm:$0xf0]  ;;  %v7605_v42 = vor.u32 %v9742_v33, %v7602_v35  ;;  %v5004_v52 = vpop.f32.mrf.mxu3 }
 0x119   :  { %5244 = vmatpush.bf16.msra.mxu2 %v7509_v53  ;;  %v9674_v40 = vld [vmem:[%s15394_s1 + $0x844] sm:$0xf]  ;;  %v7330_v41 = vld [vmem:[%s15394_s1 + $0x850] sm:$0xf0]  ;;  %v7781_v43 = vor.u32 %v9786_v36, %v7778_v37  ;;  %v12050_v32 = vadd.f32 %v5004_v52, %v4992_v51 }
 0x11a   :  { %5257 = vmatpush.bf16.msra.mxu3 %v7637_v57  ;;  %v9706_v44 = vld [vmem:[%s15394_s1 + $0x944] sm:$0xf]  ;;  %v7458_v45 = vld [vmem:[%s15394_s1 + $0x950] sm:$0xf0]  ;;  %v4980_v57 = vpop.f32.mrf.mxu1  ;;  %v7333_v58 = vor.u32 %v9674_v40, %v7330_v41 }
 0x11b   :  { %5223 = vmatpush.bf16.msra.mxu0 %v7173_v10  ;;  %v9738_v50 = vld [vmem:[%s15394_s1 + $0xa44] sm:$0xf]  ;;  %v7586_v53 = vld [vmem:[%s15394_s1 + $0xa50] sm:$0xf0]  ;;  %v7461_v59 = vor.u32 %v9706_v44, %v7458_v45 }
 0x11c   :  { %5232 = vmatpush.bf16.msra.mxu1 %v7365_v19  ;;  %v9782_v54 = vld [vmem:[%s15394_s1 + $0xba4] sm:$0xf]  ;;  %v7762_v55 = vld [vmem:[%s15394_s1 + $0xbb0] sm:$0xf0]  ;;  %v7589_v63 = vor.u32 %v9738_v50, %v7586_v53 }
 0x11d   :  { %5245 = vmatpush.bf16.msra.mxu2 %v7493_v24  ;;  %v9670_v61 = vld [vmem:[%s15394_s1 + $0x824] sm:$0xf]  ;;  %v7314_v62 = vld [vmem:[%s15394_s1 + $0x830] sm:$0xf0]  ;;  %v7765_v3 = vor.u32 %v9782_v54, %v7762_v55 }
 0x11e   :  { %5258 = vmatpush.bf16.msra.mxu3 %v7621_v28  ;;  %5224 = vmatmul.bf16.vlgmr.msra.gmra.mxu0 %v10659_v1  ;;  %v9702_v8 = vld [vmem:[%s15394_s1 + $0x924] sm:$0xf]  ;;  %v7442_v10 = vld [vmem:[%s15394_s1 + $0x930] sm:$0xf0]  ;;  %v7317_v27 = vor.u32 %v9670_v61, %v7314_v62 }
 0x11f   :  { %5268 = vmatpush.bf16.msrb.mxu0 %v7797_v30  ;;  %v9734_v11 = vld [vmem:[%s15394_s1 + $0xa24] sm:$0xf]  ;;  %v7570_v19 = vld [vmem:[%s15394_s1 + $0xa30] sm:$0xf0]  ;;  %v7445_v28 = vor.u32 %v9702_v8, %v7442_v10 }
 0x120   :  { %5233 = vmatpush.bf16.msra.mxu1 %v7349_v38  ;;  %v9778_v24 = vld [vmem:[%s15394_s1 + $0xb84] sm:$0xf]  ;;  %v7746_v25 = vld [vmem:[%s15394_s1 + $0xb90] sm:$0xf0]  ;;  %v7573_v31 = vor.u32 %v9734_v11, %v7570_v19  ;;  %v4993_v38 = vpop.f32.mrf.mxu2 }
 0x121   :  { %5246 = vmatpush.bf16.msra.mxu2 %v7477_v39  ;;  %v9666_v29 = vld [vmem:[%s15394_s1 + $0x804] sm:$0xf]  ;;  %v7298_v30 = vld [vmem:[%s15394_s1 + $0x810] sm:$0xf0]  ;;  %v7749_v33 = vor.u32 %v9778_v24, %v7746_v25 }
 0x122   :  { %5259 = vmatpush.bf16.msra.mxu3 %v7605_v42  ;;  %v9698_v23 = vld [vmem:[%s15394_s1 + $0x904] sm:$0xf]  ;;  %v7426_v35 = vld [vmem:[%s15394_s1 + $0x910] sm:$0xf0]  ;;  %v5006_v42 = vpop.f32.mrf.mxu3  ;;  %v7301_v45 = vor.u32 %v9666_v29, %v7298_v30 }
 0x123   :  { %5269 = vmatpush.bf16.msrb.mxu0 %v7781_v43  ;;  %v9730_v36 = vld [vmem:[%s15394_s1 + $0xa04] sm:$0xf]  ;;  %v7554_v37 = vld [vmem:[%s15394_s1 + $0xa10] sm:$0xf0]  ;;  %v7429_v50 = vor.u32 %v9698_v23, %v7426_v35 }
 0x124   :  { %5234 = vmatpush.bf16.msra.mxu1 %v7333_v58  ;;  %v9774_v39 = vld [vmem:[%s15394_s1 + $0xb64] sm:$0xf]  ;;  %v7730_v40 = vld [vmem:[%s15394_s1 + $0xb70] sm:$0xf0]  ;;  %v7557_v53 = vor.u32 %v9730_v36, %v7554_v37 }
 0x125   :  { %5247 = vmatpush.bf16.msra.mxu2 %v7461_v59  ;;  %v9822_v41 = vld [vmem:[%s15394_s1 + $0xce4] sm:$0xf]  ;;  %v7922_v34 = vld [vmem:[%s15394_s1 + $0xcf0] sm:$0xf0]  ;;  %v7733_v54 = vor.u32 %v9774_v39, %v7730_v40 }
 0x126   :  { %5260 = vmatpush.bf16.msra.mxu3 %v7589_v63  ;;  %v9854_v43 = vld [vmem:[%s15394_s1 + $0xde4] sm:$0xf]  ;;  %v8050_v44 = vld [vmem:[%s15394_s1 + $0xdf0] sm:$0xf0]  ;;  %v7925_v55 = vor.u32 %v9822_v41, %v7922_v34 }
 0x127   :  { %5270 = vmatpush.bf16.msrb.mxu0 %v7765_v3  ;;  %v9886_v51 = vld [vmem:[%s15394_s1 + $0xee4] sm:$0xf]  ;;  %v8178_v52 = vld [vmem:[%s15394_s1 + $0xef0] sm:$0xf0]  ;;  %v8053_v56 = vor.u32 %v9854_v43, %v8050_v44 }
 0x128   :  { %5235 = vmatpush.bf16.msra.mxu1 %v7317_v27  ;;  %v9770_v57 = vld [vmem:[%s15394_s1 + $0xb44] sm:$0xf]  ;;  %v7714_v58 = vld [vmem:[%s15394_s1 + $0xb50] sm:$0xf0]  ;;  %v8181_v61 = vor.u32 %v9886_v51, %v8178_v52 }
 0x129   :  { %5248 = vmatpush.bf16.msra.mxu2 %v7445_v28  ;;  %v9818_v59 = vld [vmem:[%s15394_s1 + $0xcc4] sm:$0xf]  ;;  %v7906_v62 = vld [vmem:[%s15394_s1 + $0xcd0] sm:$0xf0]  ;;  %v7717_v11 = vor.u32 %v9770_v57, %v7714_v58 }
 0x12a   :  { %5261 = vmatpush.bf16.msra.mxu3 %v7573_v31  ;;  %v9850_v63 = vld [vmem:[%s15394_s1 + $0xdc4] sm:$0xf]  ;;  %v8034_v3 = vld [vmem:[%s15394_s1 + $0xdd0] sm:$0xf0]  ;;  %v7909_v19 = vor.u32 %v9818_v59, %v7906_v62 }
 0x12b   :  { %5271 = vmatpush.bf16.msrb.mxu0 %v7749_v33  ;;  %v9882_v8 = vld [vmem:[%s15394_s1 + $0xec4] sm:$0xf]  ;;  %v8162_v10 = vld [vmem:[%s15394_s1 + $0xed0] sm:$0xf0]  ;;  %v8037_v24 = vor.u32 %v9850_v63, %v8034_v3 }
 0x12c   :  { %5236 = vmatpush.bf16.msra.mxu1 %v7301_v45  ;;  %v9766_v25 = vld [vmem:[%s15394_s1 + $0xb24] sm:$0xf]  ;;  %v7698_v27 = vld [vmem:[%s15394_s1 + $0xb30] sm:$0xf0]  ;;  %v8165_v29 = vor.u32 %v9882_v8, %v8162_v10 }
 0x12d   :  { %5249 = vmatpush.bf16.msra.mxu2 %v7429_v50  ;;  %v9814_v28 = vld [vmem:[%s15394_s1 + $0xca4] sm:$0xf]  ;;  %v7890_v30 = vld [vmem:[%s15394_s1 + $0xcb0] sm:$0xf0]  ;;  %v7701_v36 = vor.u32 %v9766_v25, %v7698_v27 }
 0x12e   :  { %5262 = vmatpush.bf16.msra.mxu3 %v7557_v53  ;;  %v9846_v23 = vld [vmem:[%s15394_s1 + $0xda4] sm:$0xf]  ;;  %v8018_v31 = vld [vmem:[%s15394_s1 + $0xdb0] sm:$0xf0]  ;;  %v7893_v38 = vor.u32 %v9814_v28, %v7890_v30  ;;  %v5017_v50 = vpop.f32.mrf.mxu0 }
 0x12f   :  { %5272 = vmatpush.bf16.msrb.mxu0 %v7733_v54  ;;  %5237 = vmatmul.bf16.vlgmr.msra.gmra.mxu1 %v10907_v12  ;;  %v9878_v33 = vld [vmem:[%s15394_s1 + $0xea4] sm:$0xf]  ;;  %v8146_v35 = vld [vmem:[%s15394_s1 + $0xeb0] sm:$0xf0]  ;;  %v8021_v39 = vor.u32 %v9846_v23, %v8018_v31  ;;  %v5018_v54 = vadd.f32 %v5017_v50, %v12050_v32 }
 0x130   :  { %5281 = vmatpush.bf16.msrb.mxu1 %v7925_v55  ;;  %5250 = vmatmul.bf16.vlgmr.msra.gmra.mxu2 %v10917_v16  ;;  %v9762_v37 = vld [vmem:[%s15394_s1 + $0xb04] sm:$0xf]  ;;  %v7682_v40 = vld [vmem:[%s15394_s1 + $0xb10] sm:$0xf0]  ;;  %v8149_v34 = vor.u32 %v9878_v33, %v8146_v35 }
 0x131   :  { %5294 = vmatpush.bf16.msrb.mxu2 %v8053_v56  ;;  %5263 = vmatmul.bf16.vlgmr.msra.gmra.mxu3 %v10915_v15  ;;  %v9810_v41 = vld [vmem:[%s15394_s1 + $0xc84] sm:$0xf]  ;;  %v7874_v42 = vld [vmem:[%s15394_s1 + $0xc90] sm:$0xf0]  ;;  %v7685_v55 = vor.u32 %v9762_v37, %v7682_v40  ;;  %v5030_v56 = vpop.f32.mrf.mxu1 }
 0x132   :  { %5307 = vmatpush.bf16.msrb.mxu3 %v8181_v61  ;;  %v9842_v43 = vld [vmem:[%s15394_s1 + $0xd84] sm:$0xf]  ;;  %v8002_v44 = vld [vmem:[%s15394_s1 + $0xd90] sm:$0xf0]  ;;  %v7877_v57 = vor.u32 %v9810_v41, %v7874_v42  ;;  %v5031_v63 = vadd.f32 %v5030_v56, %v5018_v54 }
 0x133   :  { %5273 = vmatpush.bf16.msrb.mxu0 %v7717_v11  ;;  %v9874_v45 = vld [vmem:[%s15394_s1 + $0xe84] sm:$0xf]  ;;  %v8130_v51 = vld [vmem:[%s15394_s1 + $0xe90] sm:$0xf0]  ;;  %v8005_v58 = vor.u32 %v9842_v43, %v8002_v44 }
 0x134   :  { %5282 = vmatpush.bf16.msrb.mxu1 %v7909_v19  ;;  %v9918_v52 = vld [vmem:[%s15394_s1 + $0xfe4] sm:$0xf]  ;;  %v8306_v53 = vld [vmem:[%s15394_s1 + $0xff0] sm:$0xf0]  ;;  %v8133_v62 = vor.u32 %v9874_v45, %v8130_v51 }
 0x135   :  { %5295 = vmatpush.bf16.msrb.mxu2 %v8037_v24  ;;  %v9806_v59 = vld [vmem:[%s15394_s1 + $0xc64] sm:$0xf]  ;;  %v7858_v61 = vld [vmem:[%s15394_s1 + $0xc70] sm:$0xf0]  ;;  %v8309_v3 = vor.u32 %v9918_v52, %v8306_v53  ;;  %v5043_v23 = vpop.f32.mrf.mxu2 }
 0x136   :  { %5308 = vmatpush.bf16.msrb.mxu3 %v8165_v29  ;;  %v9838_v32 = vld [vmem:[%s15394_s1 + $0xd64] sm:$0xf]  ;;  %v7986_v8 = vld [vmem:[%s15394_s1 + $0xd70] sm:$0xf0]  ;;  %v7861_v25 = vor.u32 %v9806_v59, %v7858_v61  ;;  %v5044_v37 = vadd.f32 %v5043_v23, %v5031_v63  ;;  %v5019_v42 = vpop.f32.mrf.mxu0 }
 0x137   :  { %5274 = vmatpush.bf16.msrb.mxu0 %v7701_v36  ;;  %v9870_v10 = vld [vmem:[%s15394_s1 + $0xe64] sm:$0xf]  ;;  %v8114_v11 = vld [vmem:[%s15394_s1 + $0xe70] sm:$0xf0]  ;;  %v7989_v27 = vor.u32 %v9838_v32, %v7986_v8 }
 0x138   :  { %5283 = vmatpush.bf16.msrb.mxu1 %v7893_v38  ;;  %v9914_v19 = vld [vmem:[%s15394_s1 + $0xfc4] sm:$0xf]  ;;  %v8290_v24 = vld [vmem:[%s15394_s1 + $0xfd0] sm:$0xf0]  ;;  %v8117_v30 = vor.u32 %v9870_v10, %v8114_v11  ;;  %v5056_v38 = vpop.f32.mrf.mxu3 }
 0x139   :  { %5296 = vmatpush.bf16.msrb.mxu2 %v8021_v39  ;;  %v9802_v28 = vld [vmem:[%s15394_s1 + $0xc44] sm:$0xf]  ;;  %v7842_v29 = vld [vmem:[%s15394_s1 + $0xc50] sm:$0xf0]  ;;  %v8293_v31 = vor.u32 %v9914_v19, %v8290_v24  ;;  %v12249_v43 = vadd.f32 %v5056_v38, %v5044_v37 }
 0x13a   :  { %5309 = vmatpush.bf16.msrb.mxu3 %v8149_v34  ;;  %v9834_v33 = vld [vmem:[%s15394_s1 + $0xd44] sm:$0xf]  ;;  %v7970_v35 = vld [vmem:[%s15394_s1 + $0xd50] sm:$0xf0]  ;;  %v5032_v34 = vpop.f32.mrf.mxu1  ;;  %v7845_v44 = vor.u32 %v9802_v28, %v7842_v29 }
 0x13b   :  { %5275 = vmatpush.bf16.msrb.mxu0 %v7685_v55  ;;  %v9866_v36 = vld [vmem:[%s15394_s1 + $0xe44] sm:$0xf]  ;;  %v8098_v39 = vld [vmem:[%s15394_s1 + $0xe50] sm:$0xf0]  ;;  %v7973_v45 = vor.u32 %v9834_v33, %v7970_v35 }
 0x13c   :  { %5284 = vmatpush.bf16.msrb.mxu1 %v7877_v57  ;;  %v9910_v40 = vld [vmem:[%s15394_s1 + $0xfa4] sm:$0xf]  ;;  %v8274_v41 = vld [vmem:[%s15394_s1 + $0xfb0] sm:$0xf0]  ;;  %v8101_v52 = vor.u32 %v9866_v36, %v8098_v39 }
 0x13d   :  { %5297 = vmatpush.bf16.msrb.mxu2 %v8005_v58  ;;  %v9798_v50 = vld [vmem:[%s15394_s1 + $0xc24] sm:$0xf]  ;;  %v7826_v51 = vld [vmem:[%s15394_s1 + $0xc30] sm:$0xf0]  ;;  %v8277_v53 = vor.u32 %v9910_v40, %v8274_v41 }
 0x13e   :  { %5310 = vmatpush.bf16.msrb.mxu3 %v8133_v62  ;;  %5276 = vmatmul.bf16.vlgmr.msrb.gmra.mxu0 %v10919_v17  ;;  %v9830_v54 = vld [vmem:[%s15394_s1 + $0xd24] sm:$0xf]  ;;  %v7954_v55 = vld [vmem:[%s15394_s1 + $0xd30] sm:$0xf0]  ;;  %v7829_v61 = vor.u32 %v9798_v50, %v7826_v51 }
 0x13f   :  { %5320 = vmatpush.bf16.msra.mxu0 %v8309_v3  ;;  %v9862_v56 = vld [vmem:[%s15394_s1 + $0xe24] sm:$0xf]  ;;  %v8082_v57 = vld [vmem:[%s15394_s1 + $0xe30] sm:$0xf0]  ;;  %v7957_v62 = vor.u32 %v9830_v54, %v7954_v55 }
 0x140   :  { %5285 = vmatpush.bf16.msrb.mxu1 %v7861_v25  ;;  %v9906_v58 = vld [vmem:[%s15394_s1 + $0xf84] sm:$0xf]  ;;  %v8258_v59 = vld [vmem:[%s15394_s1 + $0xf90] sm:$0xf0]  ;;  %v8085_v8 = vor.u32 %v9862_v56, %v8082_v57  ;;  %v5045_v25 = vpop.f32.mrf.mxu2 }
 0x141   :  { %5298 = vmatpush.bf16.msrb.mxu2 %v7989_v27  ;;  %v9794_v63 = vld [vmem:[%s15394_s1 + $0xc04] sm:$0xf]  ;;  %v7810_v3 = vld [vmem:[%s15394_s1 + $0xc10] sm:$0xf0]  ;;  %v8261_v10 = vor.u32 %v9906_v58, %v8258_v59 }
 0x142   :  { %5311 = vmatpush.bf16.msrb.mxu3 %v8117_v30  ;;  %v9826_v32 = vld [vmem:[%s15394_s1 + $0xd04] sm:$0xf]  ;;  %v7938_v11 = vld [vmem:[%s15394_s1 + $0xd10] sm:$0xf0]  ;;  %v5058_v30 = vpop.f32.mrf.mxu3  ;;  %v7813_v35 = vor.u32 %v9794_v63, %v7810_v3 }
 0x143   :  { %5321 = vmatpush.bf16.msra.mxu0 %v8293_v31  ;;  %v9858_v19 = vld [vmem:[%s15394_s1 + $0xe04] sm:$0xf]  ;;  %v8066_v24 = vld [vmem:[%s15394_s1 + $0xe10] sm:$0xf0]  ;;  %v7941_v36 = vor.u32 %v9826_v32, %v7938_v11 }
 0x144   :  { %5286 = vmatpush.bf16.msrb.mxu1 %v7845_v44  ;;  %v9902_v27 = vld [vmem:[%s15394_s1 + $0xf64] sm:$0xf]  ;;  %v8242_v28 = vld [vmem:[%s15394_s1 + $0xf70] sm:$0xf0]  ;;  %v8069_v39 = vor.u32 %v9858_v19, %v8066_v24 }
 0x145   :  { %5299 = vmatpush.bf16.msrb.mxu2 %v7973_v45  ;;  %v9950_v29 = vld [vmem:[%s15394_s1 + $0x10e4] sm:$0xf]  ;;  %v8434_v23 = vld [vmem:[%s15394_s1 + $0x10f0] sm:$0xf0]  ;;  %v8245_v40 = vor.u32 %v9902_v27, %v8242_v28 }
 0x146   :  { %5312 = vmatpush.bf16.msrb.mxu3 %v8101_v52  ;;  %v9982_v31 = vld [vmem:[%s15394_s1 + $0x11e4] sm:$0xf]  ;;  %v8562_v33 = vld [vmem:[%s15394_s1 + $0x11f0] sm:$0xf0]  ;;  %v8437_v41 = vor.u32 %v9950_v29, %v8434_v23 }
 0x147   :  { %5322 = vmatpush.bf16.msra.mxu0 %v8277_v53  ;;  %v10014_v37 = vld [vmem:[%s15394_s1 + $0x12e4] sm:$0xf]  ;;  %v8690_v38 = vld [vmem:[%s15394_s1 + $0x12f0] sm:$0xf0]  ;;  %v8565_v42 = vor.u32 %v9982_v31, %v8562_v33 }
 0x148   :  { %5287 = vmatpush.bf16.msrb.mxu1 %v7829_v61  ;;  %v9898_v34 = vld [vmem:[%s15394_s1 + $0xf44] sm:$0xf]  ;;  %v8226_v44 = vld [vmem:[%s15394_s1 + $0xf50] sm:$0xf0]  ;;  %v8693_v50 = vor.u32 %v10014_v37, %v8690_v38 }
 0x149   :  { %5300 = vmatpush.bf16.msrb.mxu2 %v7957_v62  ;;  %v9946_v45 = vld [vmem:[%s15394_s1 + $0x10c4] sm:$0xf]  ;;  %v8418_v51 = vld [vmem:[%s15394_s1 + $0x10d0] sm:$0xf0]  ;;  %v8229_v56 = vor.u32 %v9898_v34, %v8226_v44 }
 0x14a   :  { %5313 = vmatpush.bf16.msrb.mxu3 %v8085_v8  ;;  %v9978_v52 = vld [vmem:[%s15394_s1 + $0x11c4] sm:$0xf]  ;;  %v8546_v53 = vld [vmem:[%s15394_s1 + $0x11d0] sm:$0xf0]  ;;  %v8421_v57 = vor.u32 %v9946_v45, %v8418_v51 }
 0x14b   :  { %5323 = vmatpush.bf16.msra.mxu0 %v8261_v10  ;;  %v10010_v54 = vld [vmem:[%s15394_s1 + $0x12c4] sm:$0xf]  ;;  %v8674_v55 = vld [vmem:[%s15394_s1 + $0x12d0] sm:$0xf0]  ;;  %v8549_v58 = vor.u32 %v9978_v52, %v8546_v53 }
 0x14c   :  { %5288 = vmatpush.bf16.msrb.mxu1 %v7813_v35  ;;  %v9894_v59 = vld [vmem:[%s15394_s1 + $0xf24] sm:$0xf]  ;;  %v8210_v61 = vld [vmem:[%s15394_s1 + $0xf30] sm:$0xf0]  ;;  %v8677_v63 = vor.u32 %v10010_v54, %v8674_v55 }
 0x14d   :  { %5301 = vmatpush.bf16.msrb.mxu2 %v7941_v36  ;;  %v9942_v62 = vld [vmem:[%s15394_s1 + $0x10a4] sm:$0xf]  ;;  %v8402_v3 = vld [vmem:[%s15394_s1 + $0x10b0] sm:$0xf0]  ;;  %v8213_v19 = vor.u32 %v9894_v59, %v8210_v61  ;;  %v5069_v36 = vpop.f32.mrf.mxu0 }
 0x14e   :  { %5314 = vmatpush.bf16.msrb.mxu3 %v8069_v39  ;;  %v9974_v32 = vld [vmem:[%s15394_s1 + $0x11a4] sm:$0xf]  ;;  %v8530_v8 = vld [vmem:[%s15394_s1 + $0x11b0] sm:$0xf0]  ;;  %v8405_v25 = vor.u32 %v9942_v62, %v8402_v3 }
 0x14f   :  { %5324 = vmatpush.bf16.msra.mxu0 %v8245_v40  ;;  %5289 = vmatmul.bf16.vlgmr.msrb.gmra.mxu1 %v11081_v46  ;;  %v10006_v10 = vld [vmem:[%s15394_s1 + $0x12a4] sm:$0xf]  ;;  %v8658_v11 = vld [vmem:[%s15394_s1 + $0x12b0] sm:$0xf0]  ;;  %v8533_v27 = vor.u32 %v9974_v32, %v8530_v8  ;;  %v5070_v40 = vadd.f32 %v5069_v36, %v12249_v43 }
 0x150   :  { %5333 = vmatpush.bf16.msra.mxu1 %v8437_v41  ;;  %5302 = vmatmul.bf16.vlgmr.msrb.gmra.mxu2 %v11085_v48  ;;  %v9890_v24 = vld [vmem:[%s15394_s1 + $0xf04] sm:$0xf]  ;;  %v8194_v28 = vld [vmem:[%s15394_s1 + $0xf10] sm:$0xf0]  ;;  %v8661_v23 = vor.u32 %v10006_v10, %v8658_v11 }
 0x151   :  { %5346 = vmatpush.bf16.msra.mxu2 %v8565_v42  ;;  %5315 = vmatmul.bf16.vlgmr.msrb.gmra.mxu3 %v11083_v47  ;;  %v9938_v29 = vld [vmem:[%s15394_s1 + $0x1084] sm:$0xf]  ;;  %v8386_v30 = vld [vmem:[%s15394_s1 + $0x1090] sm:$0xf0]  ;;  %v8197_v41 = vor.u32 %v9890_v24, %v8194_v28  ;;  %v5082_v42 = vpop.f32.mrf.mxu1 }
 0x152   :  { %5359 = vmatpush.bf16.msra.mxu3 %v8693_v50  ;;  %v9970_v31 = vld [vmem:[%s15394_s1 + $0x1184] sm:$0xf]  ;;  %v8514_v33 = vld [vmem:[%s15394_s1 + $0x1190] sm:$0xf0]  ;;  %v8389_v34 = vor.u32 %v9938_v29, %v8386_v30  ;;  %v5083_v52 = vadd.f32 %v5082_v42, %v5070_v40 }
 0x153   :  { %5325 = vmatpush.bf16.msra.mxu0 %v8229_v56  ;;  %v10002_v35 = vld [vmem:[%s15394_s1 + $0x1284] sm:$0xf]  ;;  %v8642_v37 = vld [vmem:[%s15394_s1 + $0x1290] sm:$0xf0]  ;;  %v8517_v44 = vor.u32 %v9970_v31, %v8514_v33  ;;  %v5095_v32 = vpop.f32.mrf.mxu2 }
 0x154   :  { %5334 = vmatpush.bf16.msra.mxu1 %v8421_v57  ;;  %v10046_v38 = vld [vmem:[%s15394_s1 + $0x13e4] sm:$0xf]  ;;  %v8818_v39 = vld [vmem:[%s15394_s1 + $0x13f0] sm:$0xf0]  ;;  %v8645_v51 = vor.u32 %v10002_v35, %v8642_v37  ;;  %v5096_v24 = vadd.f32 %v5095_v32, %v5083_v52 }
 0x155   :  { %5347 = vmatpush.bf16.msra.mxu2 %v8549_v58  ;;  %v9934_v45 = vld [vmem:[%s15394_s1 + $0x1064] sm:$0xf]  ;;  %v8370_v50 = vld [vmem:[%s15394_s1 + $0x1070] sm:$0xf0]  ;;  %v8821_v53 = vor.u32 %v10046_v38, %v8818_v39 }
 0x156   :  { %5360 = vmatpush.bf16.msra.mxu3 %v8677_v63  ;;  %v9966_v43 = vld [vmem:[%s15394_s1 + $0x1164] sm:$0xf]  ;;  %v8498_v54 = vld [vmem:[%s15394_s1 + $0x1170] sm:$0xf0]  ;;  %v8373_v59 = vor.u32 %v9934_v45, %v8370_v50 }
 0x157   :  { %5326 = vmatpush.bf16.msra.mxu0 %v8213_v19  ;;  %v9998_v55 = vld [vmem:[%s15394_s1 + $0x1264] sm:$0xf]  ;;  %v8626_v56 = vld [vmem:[%s15394_s1 + $0x1270] sm:$0xf0]  ;;  %v8501_v61 = vor.u32 %v9966_v43, %v8498_v54 }
 0x158   :  { %5335 = vmatpush.bf16.msra.mxu1 %v8405_v25  ;;  %v10042_v57 = vld [vmem:[%s15394_s1 + $0x13c4] sm:$0xf]  ;;  %v8802_v58 = vld [vmem:[%s15394_s1 + $0x13d0] sm:$0xf0]  ;;  %v8629_v3 = vor.u32 %v9998_v55, %v8626_v56  ;;  %v5071_v25 = vpop.f32.mrf.mxu0 }
 0x159   :  { %5348 = vmatpush.bf16.msra.mxu2 %v8533_v27  ;;  %v9930_v62 = vld [vmem:[%s15394_s1 + $0x1044] sm:$0xf]  ;;  %v8354_v63 = vld [vmem:[%s15394_s1 + $0x1050] sm:$0xf0]  ;;  %v8805_v8 = vor.u32 %v10042_v57, %v8802_v58  ;;  %v5108_v27 = vpop.f32.mrf.mxu3 }
 0x15a   :  { %5361 = vmatpush.bf16.msra.mxu3 %v8661_v23  ;;  %v9962_v10 = vld [vmem:[%s15394_s1 + $0x1144] sm:$0xf]  ;;  %v8482_v11 = vld [vmem:[%s15394_s1 + $0x1150] sm:$0xf0]  ;;  %v5084_v23 = vpop.f32.mrf.mxu1  ;;  %v5109_v31 = vadd.f32 %v5108_v27, %v5096_v24  ;;  %v8357_v33 = vor.u32 %v9930_v62, %v8354_v63 }
 0x15b   :  { %5327 = vmatpush.bf16.msra.mxu0 %v8197_v41  ;;  %v9994_v19 = vld [vmem:[%s15394_s1 + $0x1244] sm:$0xf]  ;;  %v8610_v28 = vld [vmem:[%s15394_s1 + $0x1250] sm:$0xf0]  ;;  %v8485_v35 = vor.u32 %v9962_v10, %v8482_v11 }
 0x15c   :  { %5336 = vmatpush.bf16.msra.mxu1 %v8389_v34  ;;  %v10038_v29 = vld [vmem:[%s15394_s1 + $0x13a4] sm:$0xf]  ;;  %v8786_v30 = vld [vmem:[%s15394_s1 + $0x13b0] sm:$0xf0]  ;;  %v8613_v38 = vor.u32 %v9994_v19, %v8610_v28 }
 0x15d   :  { %5349 = vmatpush.bf16.msra.mxu2 %v8517_v44  ;;  %v9926_v36 = vld [vmem:[%s15394_s1 + $0x1024] sm:$0xf]  ;;  %v8338_v37 = vld [vmem:[%s15394_s1 + $0x1030] sm:$0xf0]  ;;  %v8789_v39 = vor.u32 %v10038_v29, %v8786_v30 }
 0x15e   :  { %5362 = vmatpush.bf16.msra.mxu3 %v8645_v51  ;;  %5328 = vmatmul.bf16.vlgmr.msra.gmra.mxu0 %v11087_v49  ;;  %v9958_v40 = vld [vmem:[%s15394_s1 + $0x1124] sm:$0xf]  ;;  %v8466_v41 = vld [vmem:[%s15394_s1 + $0x1130] sm:$0xf0]  ;;  %v8341_v50 = vor.u32 %v9926_v36, %v8338_v37 }
 0x15f   :  { %5372 = vmatpush.bf16.msrb.mxu0 %v8821_v53  ;;  %v9990_v42 = vld [vmem:[%s15394_s1 + $0x1224] sm:$0xf]  ;;  %v8594_v34 = vld [vmem:[%s15394_s1 + $0x1230] sm:$0xf0]  ;;  %v8469_v51 = vor.u32 %v9958_v40, %v8466_v41 }
 0x160   :  { %5337 = vmatpush.bf16.msra.mxu1 %v8373_v59  ;;  %v10034_v44 = vld [vmem:[%s15394_s1 + $0x1384] sm:$0xf]  ;;  %v8770_v45 = vld [vmem:[%s15394_s1 + $0x1390] sm:$0xf0]  ;;  %v8597_v54 = vor.u32 %v9990_v42, %v8594_v34  ;;  %v5097_v59 = vpop.f32.mrf.mxu2  ;;  %v5121_v32 = vpop.f32.mrf.mxu0 }
 0x161   :  { %5350 = vmatpush.bf16.msra.mxu2 %v8501_v61  ;;  %v9922_v52 = vld [vmem:[%s15394_s1 + $0x1004] sm:$0xf]  ;;  %v8322_v53 = vld [vmem:[%s15394_s1 + $0x1010] sm:$0xf0]  ;;  %v8773_v55 = vor.u32 %v10034_v44, %v8770_v45  ;;  %v12508_v19 = vadd.f32 %v5121_v32, %v5109_v31 }
 0x162   :  { %5363 = vmatpush.bf16.msra.mxu3 %v8629_v3  ;;  %v9954_v43 = vld [vmem:[%s15394_s1 + $0x1104] sm:$0xf]  ;;  %v8450_v56 = vld [vmem:[%s15394_s1 + $0x1110] sm:$0xf0]  ;;  %v5110_v3 = vpop.f32.mrf.mxu3  ;;  %v8325_v24 = vor.u32 %v9922_v52, %v8322_v53 }
 0x163   :  { %5373 = vmatpush.bf16.msrb.mxu0 %v8805_v8  ;;  %v9986_v57 = vld [vmem:[%s15394_s1 + $0x1204] sm:$0xf]  ;;  %v8578_v58 = vld [vmem:[%s15394_s1 + $0x1210] sm:$0xf0]  ;;  %v8453_v25 = vor.u32 %v9954_v43, %v8450_v56 }
 0x164   :  { %5338 = vmatpush.bf16.msra.mxu1 %v8357_v33  ;;  %v10030_v61 = vld [vmem:[%s15394_s1 + $0x1364] sm:$0xf]  ;;  %v8754_v62 = vld [vmem:[%s15394_s1 + $0x1370] sm:$0xf0]  ;;  %v8581_v29 = vor.u32 %v9986_v57, %v8578_v58 }
 0x165   :  { %5351 = vmatpush.bf16.msra.mxu2 %v8485_v35  ;;  %v10078_v63 = vld [vmem:[%s15394_s1 + $0x14e4] sm:$0xf]  ;;  %v8946_v8 = vld [vmem:[%s15394_s1 + $0x14f0] sm:$0xf0]  ;;  %v8757_v30 = vor.u32 %v10030_v61, %v8754_v62 }
 0x166   :  { %5364 = vmatpush.bf16.msra.mxu3 %v8613_v38  ;;  %v10110_v10 = vld [vmem:[%s15394_s1 + $0x15e4] sm:$0xf]  ;;  %v9074_v11 = vld [vmem:[%s15394_s1 + $0x15f0] sm:$0xf0]  ;;  %v8949_v23 = vor.u32 %v10078_v63, %v8946_v8 }
 0x167   :  { %5374 = vmatpush.bf16.msrb.mxu0 %v8789_v39  ;;  %v10142_v27 = vld [vmem:[%s15394_s1 + $0x16e4] sm:$0xf]  ;;  %v9202_v28 = vld [vmem:[%s15394_s1 + $0x16f0] sm:$0xf0]  ;;  %v9077_v33 = vor.u32 %v10110_v10, %v9074_v11 }
 0x168   :  { %5339 = vmatpush.bf16.msra.mxu1 %v8341_v50  ;;  %v10026_v31 = vld [vmem:[%s15394_s1 + $0x1344] sm:$0xf]  ;;  %v8738_v35 = vld [vmem:[%s15394_s1 + $0x1350] sm:$0xf0]  ;;  %v9205_v37 = vor.u32 %v10142_v27, %v9202_v28  ;;  %v5123_v56 = vpop.f32.mrf.mxu0  ;;  %v10196_v27 = vld [vmem:[%s15395_s2] sm:$0xf] }
 0x169   :  { %5352 = vmatpush.bf16.msra.mxu2 %v8469_v51  ;;  %v10074_v36 = vld [vmem:[%s15394_s1 + $0x14c4] sm:$0xf]  ;;  %v8930_v38 = vld [vmem:[%s15394_s1 + $0x14d0] sm:$0xf0]  ;;  %v8741_v34 = vor.u32 %v10026_v31, %v8738_v35  ;;  %v813_v28 = vperm.slane %v10196_v27, 1 }
 0x16a   :  { %5365 = vmatpush.bf16.msra.mxu3 %v8597_v54  ;;  %v10106_v39 = vld [vmem:[%s15394_s1 + $0x15c4] sm:$0xf]  ;;  %v9058_v40 = vld [vmem:[%s15394_s1 + $0x15d0] sm:$0xf0]  ;;  %v8933_v44 = vor.u32 %v10074_v36, %v8930_v38 }
 0x16b   :  { %5375 = vmatpush.bf16.msrb.mxu0 %v8773_v55  ;;  %v10138_v41 = vld [vmem:[%s15394_s1 + $0x16c4] sm:$0xf]  ;;  %v9186_v42 = vld [vmem:[%s15394_s1 + $0x16d0] sm:$0xf0]  ;;  %v9061_v45 = vor.u32 %v10106_v39, %v9058_v40 }
 0x16c   :  { %5340 = vmatpush.bf16.msra.mxu1 %v8325_v24  ;;  %v10022_v50 = vld [vmem:[%s15394_s1 + $0x1324] sm:$0xf]  ;;  %v8722_v51 = vld [vmem:[%s15394_s1 + $0x1330] sm:$0xf0]  ;;  %v9189_v53 = vor.u32 %v10138_v41, %v9186_v42  ;;  %v5134_v31 = vpop.f32.mrf.mxu1 }
 0x16d   :  { %5353 = vmatpush.bf16.msra.mxu2 %v8453_v25  ;;  %v10070_v52 = vld [vmem:[%s15394_s1 + $0x14a4] sm:$0xf]  ;;  %v8914_v43 = vld [vmem:[%s15394_s1 + $0x14b0] sm:$0xf0]  ;;  %v8725_v59 = vor.u32 %v10022_v50, %v8722_v51 }
 0x16e   :  { %5366 = vmatpush.bf16.msra.mxu3 %v8581_v29  ;;  %v10102_v54 = vld [vmem:[%s15394_s1 + $0x15a4] sm:$0xf]  ;;  %v9042_v55 = vld [vmem:[%s15394_s1 + $0x15b0] sm:$0xf0]  ;;  %v8917_v63 = vor.u32 %v10070_v52, %v8914_v43 }
 0x16f   :  { %5376 = vmatpush.bf16.msrb.mxu0 %v8757_v30  ;;  %5341 = vmatmul.bf16.vlgmr.msra.gmra.mxu1 %v11318_v9  ;;  %v10134_v57 = vld [vmem:[%s15394_s1 + $0x16a4] sm:$0xf]  ;;  %v9170_v58 = vld [vmem:[%s15394_s1 + $0x16b0] sm:$0xf0]  ;;  %v9045_v3 = vor.u32 %v10102_v54, %v9042_v55 }
 0x170   :  { %5385 = vmatpush.bf16.msrb.mxu1 %v8949_v23  ;;  %5354 = vmatmul.bf16.vlgmr.msra.gmra.mxu2 %v11328_v14  ;;  %v10018_v61 = vld [vmem:[%s15394_s1 + $0x1304] sm:$0xf]  ;;  %v8706_v62 = vld [vmem:[%s15394_s1 + $0x1310] sm:$0xf0]  ;;  %v9173_v11 = vor.u32 %v10134_v57, %v9170_v58 }
 0x171   :  { %5398 = vmatpush.bf16.msrb.mxu2 %v9077_v33  ;;  %5367 = vmatmul.bf16.vlgmr.msra.gmra.mxu3 %v11326_v13  ;;  %v10066_v32 = vld [vmem:[%s15394_s1 + $0x1484] sm:$0xf]  ;;  %v8898_v8 = vld [vmem:[%s15394_s1 + $0x1490] sm:$0xf0]  ;;  %v8709_v33 = vor.u32 %v10018_v61, %v8706_v62 }
 0x172   :  { %5411 = vmatpush.bf16.msrb.mxu3 %v9205_v37  ;;  %v10098_v10 = vld [vmem:[%s15394_s1 + $0x1584] sm:$0xf]  ;;  %v9026_v24 = vld [vmem:[%s15394_s1 + $0x1590] sm:$0xf0]  ;;  %v8901_v35 = vor.u32 %v10066_v32, %v8898_v8 }
 0x173   :  { %5377 = vmatpush.bf16.msrb.mxu0 %v8741_v34  ;;  %v10130_v25 = vld [vmem:[%s15394_s1 + $0x1684] sm:$0xf]  ;;  %v9154_v29 = vld [vmem:[%s15394_s1 + $0x1690] sm:$0xf0]  ;;  %v9029_v36 = vor.u32 %v10098_v10, %v9026_v24  ;;  %v5147_v55 = vpop.f32.mrf.mxu2 }
 0x174   :  { %5386 = vmatpush.bf16.msrb.mxu1 %v8933_v44  ;;  %v10174_v30 = vld [vmem:[%s15394_s1 + $0x17e4] sm:$0xf]  ;;  %v9330_v23 = vld [vmem:[%s15394_s1 + $0x17f0] sm:$0xf0]  ;;  %v9157_v39 = vor.u32 %v10130_v25, %v9154_v29  ;;  %v5135_v44 = vadd.f32 %v5134_v31, %v813_v28 }
 0x175   :  { %5399 = vmatpush.bf16.msrb.mxu2 %v9061_v45  ;;  %v10062_v37 = vld [vmem:[%s15394_s1 + $0x1464] sm:$0xf]  ;;  %v8882_v38 = vld [vmem:[%s15394_s1 + $0x1470] sm:$0xf0]  ;;  %v9333_v40 = vor.u32 %v10174_v30, %v9330_v23 }
 0x176   :  { %5412 = vmatpush.bf16.msrb.mxu3 %v9189_v53  ;;  %v10094_v41 = vld [vmem:[%s15394_s1 + $0x1564] sm:$0xf]  ;;  %v9010_v42 = vld [vmem:[%s15394_s1 + $0x1570] sm:$0xf0]  ;;  %v8885_v52 = vor.u32 %v10062_v37, %v8882_v38  ;;  %v5148_v62 = vadd.f32 %v5147_v55, %v5135_v44 }
 0x177   :  { %5378 = vmatpush.bf16.msrb.mxu0 %v8725_v59  ;;  %v10126_v34 = vld [vmem:[%s15394_s1 + $0x1664] sm:$0xf]  ;;  %v9138_v45 = vld [vmem:[%s15394_s1 + $0x1670] sm:$0xf0]  ;;  %v9013_v53 = vor.u32 %v10094_v41, %v9010_v42 }
 0x178   :  { %5387 = vmatpush.bf16.msrb.mxu1 %v8917_v63  ;;  %v10170_v50 = vld [vmem:[%s15394_s1 + $0x17c4] sm:$0xf]  ;;  %v9314_v51 = vld [vmem:[%s15394_s1 + $0x17d0] sm:$0xf0]  ;;  %v9141_v56 = vor.u32 %v10126_v34, %v9138_v45  ;;  %v5160_v63 = vpop.f32.mrf.mxu3 }
 0x179   :  { %5400 = vmatpush.bf16.msrb.mxu2 %v9045_v3  ;;  %v10058_v43 = vld [vmem:[%s15394_s1 + $0x1444] sm:$0xf]  ;;  %v8866_v54 = vld [vmem:[%s15394_s1 + $0x1450] sm:$0xf0]  ;;  %v9317_v57 = vor.u32 %v10170_v50, %v9314_v51  ;;  %v5161_v10 = vadd.f32 %v5160_v63, %v5148_v62 }
 0x17a   :  { %5413 = vmatpush.bf16.msrb.mxu3 %v9173_v11  ;;  %v10090_v58 = vld [vmem:[%s15394_s1 + $0x1544] sm:$0xf]  ;;  %v8994_v59 = vld [vmem:[%s15394_s1 + $0x1550] sm:$0xf0]  ;;  %v5136_v11 = vpop.f32.mrf.mxu1  ;;  %v8869_v24 = vor.u32 %v10058_v43, %v8866_v54 }
 0x17b   :  { %5379 = vmatpush.bf16.msrb.mxu0 %v8709_v33  ;;  %v10122_v61 = vld [vmem:[%s15394_s1 + $0x1644] sm:$0xf]  ;;  %v9122_v3 = vld [vmem:[%s15394_s1 + $0x1650] sm:$0xf0]  ;;  %v8997_v25 = vor.u32 %v10090_v58, %v8994_v59  ;;  %v5173_v38 = vpop.f32.mrf.mxu0  ;;  %v5149_v45 = vpop.f32.mrf.mxu2  ;;  %v6392_v59 = vld [vmem:[%s15394_s1 + $0xe8] sm:$0xf] }
 0x17c   :  { %5388 = vmatpush.bf16.msrb.mxu1 %v8901_v35  ;;  %v10166_v32 = vld [vmem:[%s15394_s1 + $0x17a4] sm:$0xf]  ;;  %v9298_v8 = vld [vmem:[%s15394_s1 + $0x17b0] sm:$0xf0]  ;;  %v9125_v29 = vor.u32 %v10122_v61, %v9122_v3  ;;  %v12682_v44 = vadd.f32 %v5173_v38, %v5161_v10  ;;  %v9441_v61 = vld [vmem:[%s15394_s1 + $0xf4] sm:$0xf0] }
 0x17d   :  { %5401 = vmatpush.bf16.msrb.mxu2 %v9029_v36  ;;  %v10054_v27 = vld [vmem:[%s15394_s1 + $0x1424] sm:$0xf]  ;;  %v8850_v28 = vld [vmem:[%s15394_s1 + $0x1430] sm:$0xf0]  ;;  %v9301_v30 = vor.u32 %v10166_v32, %v9298_v8  ;;  %v6520_v3 = vld [vmem:[%s15394_s1 + $0x1e8] sm:$0xf] }
 0x17e   :  { %5414 = vmatpush.bf16.msrb.mxu3 %v9157_v39  ;;  %5380 = vmatmul.bf16.vlgmr.msrb.gmra.mxu0 %v11330_v18  ;;  %v10086_v23 = vld [vmem:[%s15394_s1 + $0x1524] sm:$0xf]  ;;  %v8978_v33 = vld [vmem:[%s15394_s1 + $0x1530] sm:$0xf0]  ;;  %v8853_v39 = vor.u32 %v10054_v27, %v8850_v28  ;;  %v9473_v32 = vld [vmem:[%s15394_s1 + $0x1f4] sm:$0xf0] }
 0x17f   :  { %5424 = vmatpush.bf16.msra.mxu0 %v9333_v40  ;;  %v10118_v31 = vld [vmem:[%s15394_s1 + $0x1624] sm:$0xf]  ;;  %v9106_v35 = vld [vmem:[%s15394_s1 + $0x1630] sm:$0xf0]  ;;  %v8981_v40 = vor.u32 %v10086_v23, %v8978_v33  ;;  %v6376_v23 = vld [vmem:[%s15394_s1 + $0xc8] sm:$0xf] }
 0x180   :  { %5389 = vmatpush.bf16.msrb.mxu1 %v8885_v52  ;;  %v10162_v36 = vld [vmem:[%s15394_s1 + $0x1784] sm:$0xf]  ;;  %v9282_v37 = vld [vmem:[%s15394_s1 + $0x1790] sm:$0xf0]  ;;  %v9109_v50 = vor.u32 %v10118_v31, %v9106_v35  ;;  %v5162_v54 = vpop.f32.mrf.mxu3  ;;  %v9437_v33 = vld [vmem:[%s15394_s1 + $0xd4] sm:$0xf0] }
 0x181   :  { %5402 = vmatpush.bf16.msrb.mxu2 %v9013_v53  ;;  %v10050_v41 = vld [vmem:[%s15394_s1 + $0x1404] sm:$0xf]  ;;  %v8834_v42 = vld [vmem:[%s15394_s1 + $0x1410] sm:$0xf0]  ;;  %v9285_v51 = vor.u32 %v10162_v36, %v9282_v37  ;;  %v6504_v35 = vld [vmem:[%s15394_s1 + $0x1c8] sm:$0xf] }
 0x182   :  { %5415 = vmatpush.bf16.msrb.mxu3 %v9141_v56  ;;  %v10082_v34 = vld [vmem:[%s15394_s1 + $0x1504] sm:$0xf]  ;;  %v8962_v52 = vld [vmem:[%s15394_s1 + $0x1510] sm:$0xf0]  ;;  %v8837_v62 = vor.u32 %v10050_v41, %v8834_v42  ;;  %v9469_v36 = vld [vmem:[%s15394_s1 + $0x1d4] sm:$0xf0] }
 0x183   :  { %5425 = vmatpush.bf16.msra.mxu0 %v9317_v57  ;;  %v10114_v53 = vld [vmem:[%s15394_s1 + $0x1604] sm:$0xf]  ;;  %v9090_v43 = vld [vmem:[%s15394_s1 + $0x1610] sm:$0xf0]  ;;  %v8965_v63 = vor.u32 %v10082_v34, %v8962_v52  ;;  %v5175_v31 = vpop.f32.mrf.mxu0  ;;  %v6505_v34 = vor.u32 %v9469_v36, %v6504_v35  ;;  %v6488_v52 = vld [vmem:[%s15394_s1 + $0x1a8] sm:$0xf] }
 0x184   :  { %5390 = vmatpush.bf16.msrb.mxu1 %v8869_v24  ;;  %v10158_v55 = vld [vmem:[%s15394_s1 + $0x1764] sm:$0xf]  ;;  %v9266_v56 = vld [vmem:[%s15394_s1 + $0x1770] sm:$0xf0]  ;;  %v9093_v8 = vor.u32 %v10114_v53, %v9090_v43  ;;  %v6393_v24 = vor.u32 %v9441_v61, %v6392_v59  ;;  %v9465_v53 = vld [vmem:[%s15394_s1 + $0x1b4] sm:$0xf0] }
 0x185   :  { %5403 = vmatpush.bf16.msrb.mxu2 %v8997_v25  ;;  %v10190_v57 = vld [vmem:[%s15394_s1 + $0x1864] sm:$0xf]  ;;  %v9394_v58 = vld [vmem:[%s15394_s1 + $0x1870] sm:$0xf0]  ;;  %v9269_v10 = vor.u32 %v10158_v55, %v9266_v56  ;;  %v6489_v61 = vor.u32 %v9465_v53, %v6488_v52  ;;  %v6328_v31 = vld [vmem:[%s15394_s1 + $0x68] sm:$0xf] }
 0x186   :  { %5416 = vmatpush.bf16.msrb.mxu3 %v9125_v29  ;;  %v9397_v11 = vor.u32 %v10190_v57, %v9394_v58  ;;  %v10154_v25 = vld [vmem:[%s15394_s1 + $0x1744] sm:$0xf]  ;;  %v9250_v27 = vld [vmem:[%s15394_s1 + $0x1750] sm:$0xf0]  ;;  %v6521_v29 = vor.u32 %v9473_v32, %v6520_v3  ;;  %v6472_v3 = vld [vmem:[%s15394_s1 + $0x188] sm:$0xf] }
 0x187   :  { %5426 = vmatpush.bf16.msra.mxu0 %v9301_v30  ;;  %v10186_v28 = vld [vmem:[%s15394_s1 + $0x1844] sm:$0xf]  ;;  %v9378_v30 = vld [vmem:[%s15394_s1 + $0x1850] sm:$0xf0]  ;;  %v9253_v37 = vor.u32 %v10154_v25, %v9250_v27  ;;  %v9461_v32 = vld [vmem:[%s15394_s1 + $0x194] sm:$0xf0] }
 0x188   :  { %5391 = vmatpush.bf16.msrb.mxu1 %v8853_v39  ;;  %v9381_v38 = vor.u32 %v10186_v28, %v9378_v30  ;;  %v6377_v39 = vor.u32 %v9437_v33, %v6376_v23  ;;  %v9234_v41 = vld [vmem:[%s15394_s1 + $0x1730] sm:$0xf0]  ;;  %v10182_v42 = vld [vmem:[%s15394_s1 + $0x1824] sm:$0xf]  ;;  %v9537_v25 = vld [vmem:[%s15394_s1 + $0x3f4] sm:$0xf0]  ;;  %v6473_v23 = vor.u32 %v9461_v32, %v6472_v3 }
 0x189   :  { %5404 = vmatpush.bf16.msrb.mxu2 %v8981_v40  ;;  %v10150_v40 = vld [vmem:[%s15394_s1 + $0x1724] sm:$0xf]  ;;  %v9362_v45 = vld [vmem:[%s15394_s1 + $0x1830] sm:$0xf0]  ;;  %v9425_v35 = vld [vmem:[%s15394_s1 + $0x74] sm:$0xf0] }
 0x18a   :  { %5417 = vmatpush.bf16.msrb.mxu3 %v9109_v50  ;;  %v6360_v50 = vld [vmem:[%s15394_s1 + $0xa8] sm:$0xf]  ;;  %v9237_v43 = vor.u32 %v10150_v40, %v9234_v41  ;;  %v10146_v54 = vld [vmem:[%s15394_s1 + $0x1704] sm:$0xf]  ;;  %v9365_v55 = vor.u32 %v10182_v42, %v9362_v45  ;;  %v9218_v57 = vld [vmem:[%s15394_s1 + $0x1710] sm:$0xf0]  ;;  %v6329_v42 = vor.u32 %v9425_v35, %v6328_v31 }
 0x18b   :  { %5427 = vmatpush.bf16.msra.mxu0 %v9285_v51  ;;  %v9433_v51 = vld [vmem:[%s15394_s1 + $0xb4] sm:$0xf0]  ;;  %v10178_v58 = vld [vmem:[%s15394_s1 + $0x1804] sm:$0xf]  ;;  %v9346_v59 = vld [vmem:[%s15394_s1 + $0x1810] sm:$0xf0] }
 0x18c   :  { %5392 = vmatpush.bf16.msrb.mxu1 %v8837_v62  ;;  %v6361_v56 = vor.u32 %v9433_v51, %v6360_v50  ;;  %v6344_v62 = vld [vmem:[%s15394_s1 + $0x88] sm:$0xf]  ;;  %v5186_v27 = vpop.f32.mrf.mxu1  ;;  %v9349_v28 = vor.u32 %v10178_v58, %v9346_v59  ;;  %v9533_v41 = vld [vmem:[%s15394_s1 + $0x3d4] sm:$0xf0] }
 0x18d   :  { %5405 = vmatpush.bf16.msrb.mxu2 %v8965_v63  ;;  %v9429_v63 = vld [vmem:[%s15394_s1 + $0x94] sm:$0xf0]  ;;  %v5187_v30 = vadd.f32 %v5186_v27, %v12682_v44  ;;  %v6456_v36 = vld [vmem:[%s15394_s1 + $0x168] sm:$0xf] }
 0x18e   :  { %5418 = vmatpush.bf16.msrb.mxu3 %v9093_v8  ;;  %v6648_v8 = vld [vmem:[%s15394_s1 + $0x2e8] sm:$0xf]  ;;  %v9457_v44 = vld [vmem:[%s15394_s1 + $0x174] sm:$0xf0] }
 0x18f   :  { %5428 = vmatpush.bf16.msra.mxu0 %v9269_v10  ;;  %5393 = vmatmul.bf16.vlgmr.msrb.gmra.mxu1 %v11411_v4  ;;  %v9505_v10 = vld [vmem:[%s15394_s1 + $0x2f4] sm:$0xf0]  ;;  %v6760_v40 = vld [vmem:[%s15394_s1 + $0x3c8] sm:$0xf]  ;;  %v6457_v45 = vor.u32 %v9457_v44, %v6456_v36 }
 0x190   :  { %5441 = vmatpush.bf16.msra.mxu1 %v9397_v11  ;;  %5406 = vmatmul.bf16.vlgmr.msrb.gmra.mxu2 %v11415_v6  ;;  %v9221_v11 = vor.u32 %v10146_v54, %v9218_v57  ;;  %v6649_v33 = vor.u32 %v9505_v10, %v6648_v8  ;;  %v6312_v51 = vld [vmem:[%s15394_s1 + $0x48] sm:$0xf]  ;;  %v9421_v52 = vld [vmem:[%s15394_s1 + $0x54] sm:$0xf0] }
 0x191   :  { %5450 = vmatpush.bf16.msra.mxu2 %v6393_v24  ;;  %5419 = vmatmul.bf16.vlgmr.msrb.gmra.mxu3 %v11413_v5  ;;  %v6776_v24 = vld [vmem:[%s15394_s1 + $0x3e8] sm:$0xf]  ;;  %v9497_v58 = vld [vmem:[%s15394_s1 + $0x2b4] sm:$0xf0]  ;;  %v6313_v3 = vor.u32 %v9421_v52, %v6312_v51 }
 0x192   :  { %5463 = vmatpush.bf16.msra.mxu3 %v6521_v29  ;;  %v6345_v29 = vor.u32 %v9429_v63, %v6344_v62  ;;  %v6440_v53 = vld [vmem:[%s15394_s1 + $0x148] sm:$0xf]  ;;  %v9449_v27 = vld [vmem:[%s15394_s1 + $0x134] sm:$0xf0] }
 0x193   :  { %5429 = vmatpush.bf16.msra.mxu0 %v9253_v37  ;;  %v6777_v37 = vor.u32 %v9537_v25, %v6776_v24  ;;  %v6616_v57 = vld [vmem:[%s15394_s1 + $0x2a8] sm:$0xf]  ;;  %v9525_v31 = vld [vmem:[%s15394_s1 + $0x394] sm:$0xf0] }
 0x194   :  { %5442 = vmatpush.bf16.msra.mxu1 %v9381_v38  ;;  %v6632_v38 = vld [vmem:[%s15394_s1 + $0x2c8] sm:$0xf]  ;;  %v5212_v54 = vpop.f32.mrf.mxu3  ;;  %v5188_v63 = vpop.f32.mrf.mxu1  ;;  %v6617_v8 = vor.u32 %v9497_v58, %v6616_v57  ;;  %v9489_v51 = vld [vmem:[%s15394_s1 + $0x274] sm:$0xf0] }
 0x195   :  { %5451 = vmatpush.bf16.msra.mxu2 %v6377_v39  ;;  %v9501_v39 = vld [vmem:[%s15394_s1 + $0x2d4] sm:$0xf0]  ;;  %v6744_v59 = vld [vmem:[%s15394_s1 + $0x3a8] sm:$0xf] }
 0x196   :  { %5464 = vmatpush.bf16.msra.mxu3 %v6505_v34  ;;  %v5199_v34 = vpop.f32.mrf.mxu2  ;;  %v6633_v50 = vor.u32 %v9501_v39, %v6632_v38  ;;  %v6296_v10 = vld [vmem:[%s15394_s1 + $0x28] sm:$0xf]  ;;  %v9601_v57 = vld [vmem:[%s15394_s1 + $0x5f4] sm:$0xf0] }
 0x197   :  { %5430 = vmatpush.bf16.msra.mxu0 %v9237_v43  ;;  %v5200_v43 = vadd.f32 %v5199_v34, %v5187_v30  ;;  %v6424_v24 = vld [vmem:[%s15394_s1 + $0x128] sm:$0xf]  ;;  %v10197_v30 = vld [vmem:[#allocation1] sm:$0xff] }
 0x198   :  { %5443 = vmatpush.bf16.msra.mxu1 %v9365_v55  ;;  %v6761_v55 = vor.u32 %v9533_v41, %v6760_v40  ;;  %v6425_v38 = vor.u32 %v9449_v27, %v6424_v24  ;;  %v9413_v40 = vld [vmem:[%s15394_s1 + $0x14] sm:$0xf0]  ;;  %v6408_v41 = vld [vmem:[%s15394_s1 + $0x108] sm:$0xf] }
 0x199   :  { %5452 = vmatpush.bf16.msra.mxu2 %v6361_v56  ;;  %v9453_v56 = vld [vmem:[%s15394_s1 + $0x154] sm:$0xf0]  ;;  %v5213_v62 = vadd.f32 %v5212_v54, %v5200_v43  ;;  %v6712_v52 = vld [vmem:[%s15394_s1 + $0x368] sm:$0xf] }
 0x19a   :  { %5465 = vmatpush.bf16.msra.mxu3 %v6489_v61  ;;  %v9529_v61 = vld [vmem:[%s15394_s1 + $0x3b4] sm:$0xf0]  ;;  %v6441_v32 = vor.u32 %v9453_v56, %v6440_v53  ;;  %v6904_v43 = vld [vmem:[%s15394_s1 + $0x4e8] sm:$0xf] }
 0x19b   :  { %5431 = vmatpush.bf16.msra.mxu0 %v9221_v11  ;;  %v9417_v11 = vld [vmem:[%s15394_s1 + $0x34] sm:$0xf0]  ;;  %v6745_v25 = vor.u32 %v9529_v61, %v6744_v59  ;;  %v7032_v56 = vld [vmem:[%s15394_s1 + $0x5e8] sm:$0xf] }
 0x19c   :  { %5444 = vmatpush.bf16.msra.mxu1 %v9349_v28  ;;  %v6600_v28 = vld [vmem:[%s15394_s1 + $0x288] sm:$0xf]  ;;  %v6297_v35 = vor.u32 %v9417_v11, %v6296_v10  ;;  %v5214_v34 = vpop.f32.mrf.mxu3  ;;  %v9521_v53 = vld [vmem:[%s15394_s1 + $0x374] sm:$0xf0] }
 0x19d   :  { %5453 = vmatpush.bf16.msra.mxu2 %v6345_v29  ;;  %v9493_v29 = vld [vmem:[%s15394_s1 + $0x294] sm:$0xf0]  ;;  %v6713_v61 = vor.u32 %v9521_v53, %v6712_v52  ;;  %v6568_v63 = vld [vmem:[%s15394_s1 + $0x248] sm:$0xf] }
 0x19e   :  { %5466 = vmatpush.bf16.msra.mxu3 %v6473_v23  ;;  %5432 = vmatmul.bf16.vlgmr.msra.gmra.mxu0 %v11417_v7  ;;  %v5225_v23 = vpop.f32.mrf.mxu0  ;;  %v5201_v44 = vpop.f32.mrf.mxu2  ;;  %v6601_v39 = vor.u32 %v9493_v29, %v6600_v28  ;;  %v9569_v54 = vld [vmem:[%s15394_s1 + $0x4f4] sm:$0xf0]  ;;  %v6888_v11 = vld [vmem:[%s15394_s1 + $0x4c8] sm:$0xf] }
 0x19f   :  { %5476 = vmatpush.bf16.msrb.mxu0 %v6649_v33  ;;  %9407 = vmatmul.msk.bf16.vlgmr.msra.gmra.mxu1 %vm4797_vm0, %v10197_v30  ;;  %v6728_v33 = vld [vmem:[%s15394_s1 + $0x388] sm:$0xf]  ;;  %v12879_v36 = vadd.f32 %v5225_v23, %v5213_v62  ;;  %v6905_v62 = vor.u32 %v9569_v54, %v6904_v43  ;;  %v9517_v10 = vld [vmem:[%s15394_s1 + $0x354] sm:$0xf0] }
 0x1a0   :  { %5489 = vmatpush.bf16.msrb.mxu1 %v6777_v37  ;;  %v6280_v37 = vld [vmem:[%s15394_s1 + $0x8] sm:$0xf]  ;;  %v9565_v24 = vld [vmem:[%s15394_s1 + $0x4d4] sm:$0xf0] }
 0x1a1   :  { %5454 = vmatpush.bf16.msra.mxu2 %v6329_v42  ;;  %v9445_v42 = vld [vmem:[%s15394_s1 + $0x114] sm:$0xf0]  ;;  %v7016_v27 = vld [vmem:[%s15394_s1 + $0x5c8] sm:$0xf]  ;;  %v6889_v23 = vor.u32 %v9565_v24, %v6888_v11 }
 0x1a2   :  { %5467 = vmatpush.bf16.msra.mxu3 %v6457_v45  ;;  %v6729_v45 = vor.u32 %v9525_v31, %v6728_v33  ;;  %v6409_v58 = vor.u32 %v9445_v42, %v6408_v41  ;;  %v9597_v28 = vld [vmem:[%s15394_s1 + $0x5d4] sm:$0xf0]  ;;  %v6552_v33 = vld [vmem:[%s15394_s1 + $0x228] sm:$0xf] }
 0x1a3   :  { %5477 = vmatpush.bf16.msrb.mxu0 %v6633_v50  ;;  %v6584_v50 = vld [vmem:[%s15394_s1 + $0x268] sm:$0xf]  ;;  %v9481_v31 = vld [vmem:[%s15394_s1 + $0x234] sm:$0xf0] }
 0x1a4   :  { %5490 = vmatpush.bf16.msrb.mxu1 %v6761_v55  ;;  %v6281_v55 = vor.u32 %v9413_v40, %v6280_v37  ;;  %v6585_v59 = vor.u32 %v9489_v51, %v6584_v50  ;;  %v7017_v37 = vor.u32 %v9597_v28, %v7016_v27  ;;  %v9513_v44 = vld [vmem:[%s15394_s1 + $0x334] sm:$0xf0]  ;;  %v7000_v40 = vld [vmem:[%s15394_s1 + $0x5a8] sm:$0xf]  ;;  %v6553_v42 = vor.u32 %v9481_v31, %v6552_v33 }
 0x1a5   :  { %5455 = vmatpush.bf16.msra.mxu2 %v6313_v3  ;;  %v9485_v3 = vld [vmem:[%s15394_s1 + $0x254] sm:$0xf0]  ;;  %v6536_v34 = vld [vmem:[%s15394_s1 + $0x208] sm:$0xf] }
 0x1a6   :  { %5468 = vmatpush.bf16.msra.mxu3 %v6441_v32  ;;  %v6696_v32 = vld [vmem:[%s15394_s1 + $0x348] sm:$0xf]  ;;  %v6569_v29 = vor.u32 %v9485_v3, %v6568_v63  ;;  %v9593_v41 = vld [vmem:[%s15394_s1 + $0x5b4] sm:$0xf0] }
 0x1a7   :  { %5478 = vmatpush.bf16.msrb.mxu0 %v6617_v8  ;;  %v7033_v8 = vor.u32 %v9601_v57, %v7032_v56  ;;  %v6697_v30 = vor.u32 %v9517_v10, %v6696_v32  ;;  %v9477_v51 = vld [vmem:[%s15394_s1 + $0x214] sm:$0xf0]  ;;  %v6664_v52 = vld [vmem:[%s15394_s1 + $0x308] sm:$0xf]  ;;  %v7001_v43 = vor.u32 %v9593_v41, %v7000_v40 }
 0x1a8   :  { %5491 = vmatpush.bf16.msrb.mxu1 %v6745_v25  ;;  %v5227_v25 = vpop.f32.mrf.mxu0  ;;  %v9509_v53 = vld [vmem:[%s15394_s1 + $0x314] sm:$0xf0]  ;;  %v6856_v54 = vld [vmem:[%s15394_s1 + $0x488] sm:$0xf]  ;;  %v6537_v63 = vor.u32 %v9477_v51, %v6536_v34 }
 0x1a9   :  { %5456 = vmatpush.bf16.msra.mxu2 %v6297_v35  ;;  %v6680_v35 = vld [vmem:[%s15394_s1 + $0x328] sm:$0xf]  ;;  %v9665_v32 = vld [vmem:[%s15394_s1 + $0x7f4] sm:$0xf0] }
 0x1aa   :  { %5469 = vmatpush.bf16.msra.mxu3 %v6425_v38  ;;  %v6872_v38 = vld [vmem:[%s15394_s1 + $0x4a8] sm:$0xf]  ;;  %v9553_v25 = vld [vmem:[%s15394_s1 + $0x474] sm:$0xf0] }
 0x1ab   :  { %5479 = vmatpush.bf16.msrb.mxu0 %v6601_v39  ;;  %v9561_v39 = vld [vmem:[%s15394_s1 + $0x4b4] sm:$0xf0]  ;;  %v6984_v56 = vld [vmem:[%s15394_s1 + $0x588] sm:$0xf] }
 0x1ac   :  { %5492 = vmatpush.bf16.msrb.mxu1 %v6729_v45  ;;  %v6681_v45 = vor.u32 %v9513_v44, %v6680_v35  ;;  %v6873_v50 = vor.u32 %v9561_v39, %v6872_v38  ;;  %v5238_v57 = vpop.f32.mrf.mxu1  ;;  %v7288_v3 = vld [vmem:[%s15394_s1 + $0x7e8] sm:$0xf]  ;;  %v9661_v31 = vld [vmem:[%s15394_s1 + $0x7d4] sm:$0xf0] }
 0x1ad   :  { %5457 = vmatpush.bf16.msra.mxu2 %v6281_v55  ;;  %v9557_v55 = vld [vmem:[%s15394_s1 + $0x494] sm:$0xf0]  ;;  %v6968_v27 = vld [vmem:[%s15394_s1 + $0x568] sm:$0xf]  ;;  %v7289_v28 = vor.u32 %v9665_v32, %v7288_v3 }
 0x1ae   :  { %5470 = vmatpush.bf16.msra.mxu3 %v6409_v58  ;;  %v9589_v58 = vld [vmem:[%s15394_s1 + $0x594] sm:$0xf0]  ;;  %v6857_v10 = vor.u32 %v9557_v55, %v6856_v54  ;;  %v7272_v33 = vld [vmem:[%s15394_s1 + $0x7c8] sm:$0xf] }
 0x1af   :  { %5480 = vmatpush.bf16.msrb.mxu0 %v6585_v59  ;;  %v7160_v59 = vld [vmem:[%s15394_s1 + $0x6e8] sm:$0xf]  ;;  %v6985_v11 = vor.u32 %v9589_v58, %v6984_v56  ;;  %v9549_v41 = vld [vmem:[%s15394_s1 + $0x454] sm:$0xf0] }
 0x1b0   :  { %5493 = vmatpush.bf16.msrb.mxu1 %v6713_v61  ;;  %5458 = vmatmul.bf16.vlgmr.msra.gmra.mxu2 %v10564_v21  ;;  %v9633_v61 = vld [vmem:[%s15394_s1 + $0x6f4] sm:$0xf0]  ;;  %v6824_v40 = vld [vmem:[%s15394_s1 + $0x448] sm:$0xf] }
 0x1b1   :  { %5502 = vmatpush.bf16.msrb.mxu2 %v6905_v62  ;;  %5471 = vmatmul.bf16.vlgmr.msra.gmra.mxu3 %v10575_v26  ;;  %v5239_v62 = vadd.f32 %v5238_v57, %v12879_v36  ;;  %v7161_v24 = vor.u32 %v9633_v61, %v7160_v59  ;;  %v6840_v36 = vld [vmem:[%s15394_s1 + $0x468] sm:$0xf]  ;;  %v9657_v54 = vld [vmem:[%s15394_s1 + $0x7b4] sm:$0xf0]  ;;  %v6825_v56 = vor.u32 %v9549_v41, %v6824_v40 }
 0x1b2   :  { %5515 = vmatpush.bf16.msrb.mxu3 %v7033_v8  ;;  %v6665_v8 = vor.u32 %v9509_v53, %v6664_v52  ;;  %v6841_v35 = vor.u32 %v9553_v25, %v6840_v36  ;;  %v7128_v51 = vld [vmem:[%s15394_s1 + $0x6a8] sm:$0xf]  ;;  %v9625_v52 = vld [vmem:[%s15394_s1 + $0x6b4] sm:$0xf0] }
 0x1b3   :  { %5481 = vmatpush.bf16.msrb.mxu0 %v6569_v29  ;;  %v9585_v29 = vld [vmem:[%s15394_s1 + $0x574] sm:$0xf0]  ;;  %v5251_v44 = vpop.f32.mrf.mxu2  ;;  %v7129_v58 = vor.u32 %v9625_v52, %v7128_v51  ;;  %v6808_v59 = vld [vmem:[%s15394_s1 + $0x428] sm:$0xf] }
 0x1b4   :  { %5494 = vmatpush.bf16.msrb.mxu1 %v6697_v30  ;;  %v7144_v30 = vld [vmem:[%s15394_s1 + $0x6c8] sm:$0xf]  ;;  %v5264_v39 = vpop.f32.mrf.mxu3  ;;  %v5252_v34 = vadd.f32 %v5251_v44, %v5239_v62  ;;  %v5240_v53 = vpop.f32.mrf.mxu1  ;;  %v9545_v61 = vld [vmem:[%s15394_s1 + $0x434] sm:$0xf0] }
 0x1b5   :  { %5503 = vmatpush.bf16.msrb.mxu2 %v6889_v23  ;;  %v9629_v23 = vld [vmem:[%s15394_s1 + $0x6d4] sm:$0xf0]  ;;  %v6936_v62 = vld [vmem:[%s15394_s1 + $0x528] sm:$0xf]  ;;  %v6809_v25 = vor.u32 %v9545_v61, %v6808_v59 }
 0x1b6   :  { %5516 = vmatpush.bf16.msrb.mxu3 %v7017_v37  ;;  %v6969_v37 = vor.u32 %v9585_v29, %v6968_v27  ;;  %v7145_v38 = vor.u32 %v9629_v23, %v7144_v30  ;;  %v5265_v55 = vadd.f32 %v5264_v39, %v5252_v34  ;;  %v9577_v3 = vld [vmem:[%s15394_s1 + $0x534] sm:$0xf0]  ;;  %v7112_v32 = vld [vmem:[%s15394_s1 + $0x688] sm:$0xf] }
 0x1b7   :  { %5482 = vmatpush.bf16.msrb.mxu0 %v6553_v42  ;;  %v6952_v42 = vld [vmem:[%s15394_s1 + $0x548] sm:$0xf]  ;;  %v9541_v30 = vld [vmem:[%s15394_s1 + $0x414] sm:$0xf0] }
 0x1b8   :  { %5495 = vmatpush.bf16.msrb.mxu1 %v6681_v45  ;;  %v7273_v45 = vor.u32 %v9661_v31, %v7272_v33  ;;  %v6792_v27 = vld [vmem:[%s15394_s1 + $0x408] sm:$0xf]  ;;  %v9573_v33 = vld [vmem:[%s15394_s1 + $0x514] sm:$0xf0] }
 0x1b9   :  { %5504 = vmatpush.bf16.msrb.mxu2 %v6873_v50  ;;  %v9581_v50 = vld [vmem:[%s15394_s1 + $0x554] sm:$0xf0]  ;;  %v6920_v23 = vld [vmem:[%s15394_s1 + $0x508] sm:$0xf]  ;;  %v6793_v34 = vor.u32 %v9541_v30, %v6792_v27 }
 0x1ba   :  { %5517 = vmatpush.bf16.msrb.mxu3 %v7001_v43  ;;  %v7256_v43 = vld [vmem:[%s15394_s1 + $0x7a8] sm:$0xf]  ;;  %v6953_v57 = vor.u32 %v9581_v50, %v6952_v42  ;;  %v9649_v40 = vld [vmem:[%s15394_s1 + $0x774] sm:$0xf0]  ;;  %v6921_v51 = vor.u32 %v9573_v33, %v6920_v23 }
 0x1bb   :  { %5483 = vmatpush.bf16.msrb.mxu0 %v6537_v63  ;;  %v7257_v63 = vor.u32 %v9657_v54, %v7256_v43  ;;  %v5253_v31 = vpop.f32.mrf.mxu2  ;;  %v7096_v44 = vld [vmem:[%s15394_s1 + $0x668] sm:$0xf]  ;;  %v9697_v42 = vld [vmem:[%s15394_s1 + $0x8f4] sm:$0xf0] }
 0x1bc   :  { %5496 = vmatpush.bf16.msrb.mxu1 %v6665_v8  ;;  %v9621_v8 = vld [vmem:[%s15394_s1 + $0x694] sm:$0xf0]  ;;  %v7224_v39 = vld [vmem:[%s15394_s1 + $0x768] sm:$0xf] }
 0x1bd   :  { %5505 = vmatpush.bf16.msrb.mxu2 %v6857_v10  ;;  %v5277_v10 = vpop.f32.mrf.mxu0  ;;  %v7113_v29 = vor.u32 %v9621_v8, %v7112_v32  ;;  %v7416_v41 = vld [vmem:[%s15394_s1 + $0x8e8] sm:$0xf]  ;;  %v9729_v50 = vld [vmem:[%s15394_s1 + $0x9f4] sm:$0xf0]  ;;  %v7225_v53 = vor.u32 %v9649_v40, %v7224_v39 }
 0x1be   :  { %5518 = vmatpush.bf16.msrb.mxu3 %v6985_v11  ;;  %5484 = vmatmul.bf16.vlgmr.msrb.gmra.mxu0 %v10562_v20  ;;  %v7240_v11 = vld [vmem:[%s15394_s1 + $0x788] sm:$0xf]  ;;  %v13078_v36 = vadd.f32 %v5277_v10, %v5265_v55  ;;  %v7417_v43 = vor.u32 %v9697_v42, %v7416_v41  ;;  %v9613_v55 = vld [vmem:[%s15394_s1 + $0x654] sm:$0xf0] }
 0x1bf   :  { %5528 = vmatpush.bf16.msra.mxu0 %v7161_v24  ;;  %5497 = vmatmul.bf16.vlgmr.msrb.gmra.mxu1 %v10566_v22  ;;  %v9653_v24 = vld [vmem:[%s15394_s1 + $0x794] sm:$0xf0]  ;;  %v7080_v54 = vld [vmem:[%s15394_s1 + $0x648] sm:$0xf] }
 0x1c0   :  { %5541 = vmatpush.bf16.msra.mxu1 %v7289_v28  ;;  %v6937_v28 = vor.u32 %v9577_v3, %v6936_v62  ;;  %v7400_v59 = vld [vmem:[%s15394_s1 + $0x8c8] sm:$0xf]  ;;  %v9693_v61 = vld [vmem:[%s15394_s1 + $0x8d4] sm:$0xf0]  ;;  %v7081_v32 = vor.u32 %v9613_v55, %v7080_v54 }
 0x1c1   :  { %5506 = vmatpush.bf16.msrb.mxu2 %v6841_v35  ;;  %v5266_v35 = vpop.f32.mrf.mxu3  ;;  %v9725_v3 = vld [vmem:[%s15394_s1 + $0x9d4] sm:$0xf0]  ;;  %v7401_v10 = vor.u32 %v9693_v61, %v7400_v59  ;;  %v7512_v23 = vld [vmem:[%s15394_s1 + $0x9a8] sm:$0xf] }
 0x1c2   :  { %5519 = vmatpush.bf16.msrb.mxu3 %v6969_v37  ;;  %v7241_v37 = vor.u32 %v9653_v24, %v7240_v11  ;;  %v7064_v11 = vld [vmem:[%s15394_s1 + $0x628] sm:$0xf]  ;;  %v9609_v24 = vld [vmem:[%s15394_s1 + $0x634] sm:$0xf0] }
 0x1c3   :  { %5529 = vmatpush.bf16.msra.mxu0 %v7145_v38  ;;  %v9617_v38 = vld [vmem:[%s15394_s1 + $0x674] sm:$0xf0]  ;;  %v7065_v31 = vor.u32 %v9609_v24, %v7064_v11  ;;  %v7048_v35 = vld [vmem:[%s15394_s1 + $0x608] sm:$0xf] }
 0x1c4   :  { %5542 = vmatpush.bf16.msra.mxu1 %v7273_v45  ;;  %v7544_v45 = vld [vmem:[%s15394_s1 + $0x9e8] sm:$0xf]  ;;  %v7097_v52 = vor.u32 %v9617_v38, %v7096_v44  ;;  %v9689_v30 = vld [vmem:[%s15394_s1 + $0x8b4] sm:$0xf0] }
 0x1c5   :  { %5507 = vmatpush.bf16.msrb.mxu2 %v6825_v56  ;;  %v7208_v56 = vld [vmem:[%s15394_s1 + $0x748] sm:$0xf]  ;;  %v5279_v62 = vpop.f32.mrf.mxu0  ;;  %v9721_v33 = vld [vmem:[%s15394_s1 + $0x9b4] sm:$0xf0] }
 0x1c6   :  { %5520 = vmatpush.bf16.msrb.mxu3 %v6953_v57  ;;  %v7545_v57 = vor.u32 %v9729_v50, %v7544_v45  ;;  %v9605_v38 = vld [vmem:[%s15394_s1 + $0x614] sm:$0xf0]  ;;  %v7176_v39 = vld [vmem:[%s15394_s1 + $0x708] sm:$0xf]  ;;  %v7513_v41 = vor.u32 %v9721_v33, %v7512_v23 }
 0x1c7   :  { %5530 = vmatpush.bf16.msra.mxu0 %v7129_v58  ;;  %v9645_v58 = vld [vmem:[%s15394_s1 + $0x754] sm:$0xf0]  ;;  %v7368_v42 = vld [vmem:[%s15394_s1 + $0x888] sm:$0xf]  ;;  %v7049_v54 = vor.u32 %v9605_v38, %v7048_v35 }
 0x1c8   :  { %5543 = vmatpush.bf16.msra.mxu1 %v7257_v63  ;;  %v7528_v63 = vld [vmem:[%s15394_s1 + $0x9c8] sm:$0xf]  ;;  %v7209_v8 = vor.u32 %v9645_v58, %v7208_v56  ;;  %v9637_v40 = vld [vmem:[%s15394_s1 + $0x714] sm:$0xf0] }
 0x1c9   :  { %5508 = vmatpush.bf16.msrb.mxu2 %v6809_v25  ;;  %v7192_v25 = vld [vmem:[%s15394_s1 + $0x728] sm:$0xf]  ;;  %v7529_v27 = vor.u32 %v9725_v3, %v7528_v63  ;;  %v9793_v56 = vld [vmem:[%s15394_s1 + $0xbf4] sm:$0xf0] }
 0x1ca   :  { %5521 = vmatpush.bf16.msrb.mxu3 %v6937_v28  ;;  %v9641_v28 = vld [vmem:[%s15394_s1 + $0x734] sm:$0xf0]  ;;  %v7496_v45 = vld [vmem:[%s15394_s1 + $0x988] sm:$0xf] }
 0x1cb   :  { %5531 = vmatpush.bf16.msra.mxu0 %v7113_v29  ;;  %v7384_v29 = vld [vmem:[%s15394_s1 + $0x8a8] sm:$0xf]  ;;  %v9681_v62 = vld [vmem:[%s15394_s1 + $0x874] sm:$0xf0] }
 0x1cc   :  { %5544 = vmatpush.bf16.msra.mxu1 %v7241_v37  ;;  %v7193_v37 = vor.u32 %v9641_v28, %v7192_v25  ;;  %v7385_v44 = vor.u32 %v9689_v30, %v7384_v29  ;;  %v5290_v50 = vpop.f32.mrf.mxu1  ;;  %v7800_v55 = vld [vmem:[%s15394_s1 + $0xbe8] sm:$0xf]  ;;  %v9789_v24 = vld [vmem:[%s15394_s1 + $0xbd4] sm:$0xf0] }
 0x1cd   :  { %5509 = vmatpush.bf16.msrb.mxu2 %v6793_v34  ;;  %v9685_v34 = vld [vmem:[%s15394_s1 + $0x894] sm:$0xf0]  ;;  %v7480_v63 = vld [vmem:[%s15394_s1 + $0x968] sm:$0xf]  ;;  %v7801_v3 = vor.u32 %v9793_v56, %v7800_v55 }
 0x1ce   :  { %5522 = vmatpush.bf16.msrb.mxu3 %v6921_v51  ;;  %v9717_v51 = vld [vmem:[%s15394_s1 + $0x994] sm:$0xf0]  ;;  %v7369_v58 = vor.u32 %v9685_v34, %v7368_v42  ;;  %v7784_v11 = vld [vmem:[%s15394_s1 + $0xbc8] sm:$0xf] }
 0x1cf   :  { %5532 = vmatpush.bf16.msra.mxu0 %v7097_v52  ;;  %v7672_v52 = vld [vmem:[%s15394_s1 + $0xae8] sm:$0xf]  ;;  %v7497_v59 = vor.u32 %v9717_v51, %v7496_v45  ;;  %v9677_v33 = vld [vmem:[%s15394_s1 + $0x854] sm:$0xf0] }
 0x1d0   :  { %5545 = vmatpush.bf16.msra.mxu1 %v7225_v53  ;;  %5510 = vmatmul.bf16.vlgmr.msrb.gmra.mxu2 %v10657_v0  ;;  %v9761_v53 = vld [vmem:[%s15394_s1 + $0xaf4] sm:$0xf0]  ;;  %v7336_v23 = vld [vmem:[%s15394_s1 + $0x848] sm:$0xf] }
 0x1d1   :  { %5554 = vmatpush.bf16.msra.mxu2 %v7417_v43  ;;  %5523 = vmatmul.bf16.vlgmr.msrb.gmra.mxu3 %v10661_v2  ;;  %v5291_v43 = vadd.f32 %v5290_v50, %v13078_v36  ;;  %v7673_v61 = vor.u32 %v9761_v53, %v7672_v52  ;;  %v7352_v36 = vld [vmem:[%s15394_s1 + $0x868] sm:$0xf]  ;;  %v9785_v42 = vld [vmem:[%s15394_s1 + $0xbb4] sm:$0xf0]  ;;  %v7337_v45 = vor.u32 %v9677_v33, %v7336_v23 }
 0x1d2   :  { %5567 = vmatpush.bf16.msra.mxu3 %v7545_v57  ;;  %v7177_v57 = vor.u32 %v9637_v40, %v7176_v39  ;;  %v7353_v25 = vor.u32 %v9681_v62, %v7352_v36  ;;  %v7640_v38 = vld [vmem:[%s15394_s1 + $0xaa8] sm:$0xf]  ;;  %v9753_v39 = vld [vmem:[%s15394_s1 + $0xab4] sm:$0xf0] }
 0x1d3   :  { %5533 = vmatpush.bf16.msra.mxu0 %v7081_v32  ;;  %v9713_v32 = vld [vmem:[%s15394_s1 + $0x974] sm:$0xf0]  ;;  %v5303_v28 = vpop.f32.mrf.mxu2  ;;  %v7641_v51 = vor.u32 %v9753_v39, %v7640_v38  ;;  %v7320_v52 = vld [vmem:[%s15394_s1 + $0x828] sm:$0xf] }
 0x1d4   :  { %5546 = vmatpush.bf16.msra.mxu1 %v7209_v8  ;;  %v7656_v8 = vld [vmem:[%s15394_s1 + $0xac8] sm:$0xf]  ;;  %v5316_v30 = vpop.f32.mrf.mxu3  ;;  %v5304_v35 = vadd.f32 %v5303_v28, %v5291_v43  ;;  %v5292_v40 = vpop.f32.mrf.mxu1  ;;  %v9673_v53 = vld [vmem:[%s15394_s1 + $0x834] sm:$0xf0] }
 0x1d5   :  { %5555 = vmatpush.bf16.msra.mxu2 %v7401_v10  ;;  %v9757_v10 = vld [vmem:[%s15394_s1 + $0xad4] sm:$0xf0]  ;;  %v7448_v43 = vld [vmem:[%s15394_s1 + $0x928] sm:$0xf]  ;;  %v7321_v62 = vor.u32 %v9673_v53, %v7320_v52 }
 0x1d6   :  { %5568 = vmatpush.bf16.msra.mxu3 %v7529_v27  ;;  %v7481_v27 = vor.u32 %v9713_v32, %v7480_v63  ;;  %v7657_v29 = vor.u32 %v9757_v10, %v7656_v8  ;;  %v5317_v34 = vadd.f32 %v5316_v30, %v5304_v35  ;;  %v9705_v55 = vld [vmem:[%s15394_s1 + $0x934] sm:$0xf0]  ;;  %v7624_v56 = vld [vmem:[%s15394_s1 + $0xa88] sm:$0xf] }
 0x1d7   :  { %5534 = vmatpush.bf16.msra.mxu0 %v7065_v31  ;;  %v7464_v31 = vld [vmem:[%s15394_s1 + $0x948] sm:$0xf]  ;;  %v9669_v8 = vld [vmem:[%s15394_s1 + $0x814] sm:$0xf0] }
 0x1d8   :  { %5547 = vmatpush.bf16.msra.mxu1 %v7193_v37  ;;  %v7785_v37 = vor.u32 %v9789_v24, %v7784_v11  ;;  %v7304_v63 = vld [vmem:[%s15394_s1 + $0x808] sm:$0xf]  ;;  %v9701_v11 = vld [vmem:[%s15394_s1 + $0x914] sm:$0xf0] }
 0x1d9   :  { %5556 = vmatpush.bf16.msra.mxu2 %v7385_v44  ;;  %v9709_v44 = vld [vmem:[%s15394_s1 + $0x954] sm:$0xf0]  ;;  %v7432_v10 = vld [vmem:[%s15394_s1 + $0x908] sm:$0xf]  ;;  %v7305_v35 = vor.u32 %v9669_v8, %v7304_v63 }
 0x1da   :  { %5569 = vmatpush.bf16.msra.mxu3 %v7513_v41  ;;  %v7768_v41 = vld [vmem:[%s15394_s1 + $0xba8] sm:$0xf]  ;;  %v7465_v50 = vor.u32 %v9709_v44, %v7464_v31  ;;  %v9777_v23 = vld [vmem:[%s15394_s1 + $0xb74] sm:$0xf0]  ;;  %v7433_v38 = vor.u32 %v9701_v11, %v7432_v10 }
 0x1db   :  { %5535 = vmatpush.bf16.msra.mxu0 %v7049_v54  ;;  %v7769_v54 = vor.u32 %v9785_v42, %v7768_v41  ;;  %v5305_v24 = vpop.f32.mrf.mxu2  ;;  %v7608_v28 = vld [vmem:[%s15394_s1 + $0xa68] sm:$0xf]  ;;  %v9825_v31 = vld [vmem:[%s15394_s1 + $0xcf4] sm:$0xf0] }
 0x1dc   :  { %5548 = vmatpush.bf16.msra.mxu1 %v7177_v57  ;;  %v9749_v57 = vld [vmem:[%s15394_s1 + $0xa94] sm:$0xf0]  ;;  %v7736_v30 = vld [vmem:[%s15394_s1 + $0xb68] sm:$0xf] }
 0x1dd   :  { %5557 = vmatpush.bf16.msra.mxu2 %v7369_v58  ;;  %v5329_v58 = vpop.f32.mrf.mxu0  ;;  %v7625_v32 = vor.u32 %v9749_v57, %v7624_v56  ;;  %v7928_v33 = vld [vmem:[%s15394_s1 + $0xce8] sm:$0xf]  ;;  %v9857_v44 = vld [vmem:[%s15394_s1 + $0xdf4] sm:$0xf0]  ;;  %v7737_v40 = vor.u32 %v9777_v23, %v7736_v30 }
 0x1de   :  { %5570 = vmatpush.bf16.msra.mxu3 %v7497_v59  ;;  %5536 = vmatmul.bf16.vlgmr.msra.gmra.mxu0 %v10652_v60  ;;  %v7752_v59 = vld [vmem:[%s15394_s1 + $0xb88] sm:$0xf]  ;;  %v13277_v36 = vadd.f32 %v5329_v58, %v5317_v34  ;;  %v7929_v41 = vor.u32 %v9825_v31, %v7928_v33  ;;  %v9741_v34 = vld [vmem:[%s15394_s1 + $0xa54] sm:$0xf0] }
 0x1df   :  { %5580 = vmatpush.bf16.msrb.mxu0 %v7673_v61  ;;  %5549 = vmatmul.bf16.vlgmr.msra.gmra.mxu1 %v10659_v1  ;;  %v9781_v61 = vld [vmem:[%s15394_s1 + $0xb94] sm:$0xf0]  ;;  %v7592_v42 = vld [vmem:[%s15394_s1 + $0xa48] sm:$0xf] }
 0x1e0   :  { %5593 = vmatpush.bf16.msrb.mxu1 %v7801_v3  ;;  %v7449_v3 = vor.u32 %v9705_v55, %v7448_v43  ;;  %v7912_v52 = vld [vmem:[%s15394_s1 + $0xcc8] sm:$0xf]  ;;  %v9821_v53 = vld [vmem:[%s15394_s1 + $0xcd4] sm:$0xf0]  ;;  %v7593_v56 = vor.u32 %v9741_v34, %v7592_v42 }
 0x1e1   :  { %5558 = vmatpush.bf16.msra.mxu2 %v7353_v25  ;;  %v5318_v25 = vpop.f32.mrf.mxu3  ;;  %v9853_v55 = vld [vmem:[%s15394_s1 + $0xdd4] sm:$0xf0]  ;;  %v7913_v58 = vor.u32 %v9821_v53, %v7912_v52  ;;  %v8024_v10 = vld [vmem:[%s15394_s1 + $0xda8] sm:$0xf] }
 0x1e2   :  { %5571 = vmatpush.bf16.msra.mxu3 %v7481_v27  ;;  %v7753_v27 = vor.u32 %v9781_v61, %v7752_v59  ;;  %v7576_v59 = vld [vmem:[%s15394_s1 + $0xa28] sm:$0xf]  ;;  %v9737_v61 = vld [vmem:[%s15394_s1 + $0xa34] sm:$0xf0] }
 0x1e3   :  { %5581 = vmatpush.bf16.msrb.mxu0 %v7657_v29  ;;  %v9745_v29 = vld [vmem:[%s15394_s1 + $0xa74] sm:$0xf0]  ;;  %v7577_v24 = vor.u32 %v9737_v61, %v7576_v59  ;;  %v7560_v25 = vld [vmem:[%s15394_s1 + $0xa08] sm:$0xf] }
 0x1e4   :  { %5594 = vmatpush.bf16.msrb.mxu1 %v7785_v37  ;;  %v8056_v37 = vld [vmem:[%s15394_s1 + $0xde8] sm:$0xf]  ;;  %v7609_v39 = vor.u32 %v9745_v29, %v7608_v28  ;;  %v9817_v8 = vld [vmem:[%s15394_s1 + $0xcb4] sm:$0xf0] }
 0x1e5   :  { %5559 = vmatpush.bf16.msra.mxu2 %v7337_v45  ;;  %v7720_v45 = vld [vmem:[%s15394_s1 + $0xb48] sm:$0xf]  ;;  %v5331_v43 = vpop.f32.mrf.mxu0  ;;  %v9849_v11 = vld [vmem:[%s15394_s1 + $0xdb4] sm:$0xf0] }
 0x1e6   :  { %5572 = vmatpush.bf16.msra.mxu3 %v7465_v50  ;;  %v8057_v50 = vor.u32 %v9857_v44, %v8056_v37  ;;  %v9733_v29 = vld [vmem:[%s15394_s1 + $0xa14] sm:$0xf0]  ;;  %v7688_v30 = vld [vmem:[%s15394_s1 + $0xb08] sm:$0xf]  ;;  %v8025_v33 = vor.u32 %v9849_v11, %v8024_v10 }
 0x1e7   :  { %5582 = vmatpush.bf16.msrb.mxu0 %v7641_v51  ;;  %v9773_v51 = vld [vmem:[%s15394_s1 + $0xb54] sm:$0xf0]  ;;  %v7880_v31 = vld [vmem:[%s15394_s1 + $0xc88] sm:$0xf]  ;;  %v7561_v42 = vor.u32 %v9733_v29, %v7560_v25 }
 0x1e8   :  { %5595 = vmatpush.bf16.msrb.mxu1 %v7769_v54  ;;  %v8040_v54 = vld [vmem:[%s15394_s1 + $0xdc8] sm:$0xf]  ;;  %v7721_v57 = vor.u32 %v9773_v51, %v7720_v45  ;;  %v9765_v23 = vld [vmem:[%s15394_s1 + $0xb14] sm:$0xf0] }
 0x1e9   :  { %5560 = vmatpush.bf16.msra.mxu2 %v7321_v62  ;;  %v7704_v62 = vld [vmem:[%s15394_s1 + $0xb28] sm:$0xf]  ;;  %v8041_v63 = vor.u32 %v9853_v55, %v8040_v54  ;;  %v9921_v45 = vld [vmem:[%s15394_s1 + $0xff4] sm:$0xf0] }
 0x1ea   :  { %5573 = vmatpush.bf16.msra.mxu3 %v7449_v3  ;;  %v9769_v3 = vld [vmem:[%s15394_s1 + $0xb34] sm:$0xf0]  ;;  %v8008_v37 = vld [vmem:[%s15394_s1 + $0xd88] sm:$0xf] }
 0x1eb   :  { %5583 = vmatpush.bf16.msrb.mxu0 %v7625_v32  ;;  %v7896_v32 = vld [vmem:[%s15394_s1 + $0xca8] sm:$0xf]  ;;  %v9809_v43 = vld [vmem:[%s15394_s1 + $0xc74] sm:$0xf0] }
 0x1ec   :  { %5596 = vmatpush.bf16.msrb.mxu1 %v7753_v27  ;;  %v7705_v27 = vor.u32 %v9769_v3, %v7704_v62  ;;  %v7897_v28 = vor.u32 %v9817_v8, %v7896_v32  ;;  %v5342_v44 = vpop.f32.mrf.mxu1  ;;  %v8312_v34 = vld [vmem:[%s15394_s1 + $0xfe8] sm:$0xf]  ;;  %v9917_v61 = vld [vmem:[%s15394_s1 + $0xfd4] sm:$0xf0] }
 0x1ed   :  { %5561 = vmatpush.bf16.msra.mxu2 %v7305_v35  ;;  %v9813_v35 = vld [vmem:[%s15394_s1 + $0xc94] sm:$0xf0]  ;;  %v7992_v54 = vld [vmem:[%s15394_s1 + $0xd68] sm:$0xf]  ;;  %v8313_v55 = vor.u32 %v9921_v45, %v8312_v34 }
 0x1ee   :  { %5574 = vmatpush.bf16.msra.mxu3 %v7433_v38  ;;  %v9845_v38 = vld [vmem:[%s15394_s1 + $0xd94] sm:$0xf0]  ;;  %v7881_v51 = vor.u32 %v9813_v35, %v7880_v31  ;;  %v8296_v59 = vld [vmem:[%s15394_s1 + $0xfc8] sm:$0xf] }
 0x1ef   :  { %5584 = vmatpush.bf16.msrb.mxu0 %v7609_v39  ;;  %v8184_v39 = vld [vmem:[%s15394_s1 + $0xee8] sm:$0xf]  ;;  %v8009_v52 = vor.u32 %v9845_v38, %v8008_v37  ;;  %v9805_v11 = vld [vmem:[%s15394_s1 + $0xc54] sm:$0xf0] }
 0x1f0   :  { %5597 = vmatpush.bf16.msrb.mxu1 %v7737_v40  ;;  %5562 = vmatmul.bf16.vlgmr.msra.gmra.mxu2 %v10907_v12  ;;  %v9889_v40 = vld [vmem:[%s15394_s1 + $0xef4] sm:$0xf0]  ;;  %v7848_v10 = vld [vmem:[%s15394_s1 + $0xc48] sm:$0xf] }
 0x1f1   :  { %5606 = vmatpush.bf16.msrb.mxu2 %v7929_v41  ;;  %5575 = vmatmul.bf16.vlgmr.msra.gmra.mxu3 %v10917_v16  ;;  %v5343_v41 = vadd.f32 %v5342_v44, %v13277_v36  ;;  %v8185_v53 = vor.u32 %v9889_v40, %v8184_v39  ;;  %v7864_v36 = vld [vmem:[%s15394_s1 + $0xc68] sm:$0xf]  ;;  %v9913_v31 = vld [vmem:[%s15394_s1 + $0xfb4] sm:$0xf0]  ;;  %v7849_v37 = vor.u32 %v9805_v11, %v7848_v10 }
 0x1f2   :  { %5619 = vmatpush.bf16.msrb.mxu3 %v8057_v50  ;;  %v7689_v50 = vor.u32 %v9765_v23, %v7688_v30  ;;  %v7865_v62 = vor.u32 %v9809_v43, %v7864_v36  ;;  %v8152_v29 = vld [vmem:[%s15394_s1 + $0xea8] sm:$0xf]  ;;  %v9881_v30 = vld [vmem:[%s15394_s1 + $0xeb4] sm:$0xf0] }
 0x1f3   :  { %5585 = vmatpush.bf16.msrb.mxu0 %v7593_v56  ;;  %v9841_v56 = vld [vmem:[%s15394_s1 + $0xd74] sm:$0xf0]  ;;  %v5355_v3 = vpop.f32.mrf.mxu2  ;;  %v8153_v38 = vor.u32 %v9881_v30, %v8152_v29  ;;  %v7832_v39 = vld [vmem:[%s15394_s1 + $0xc28] sm:$0xf] }
 0x1f4   :  { %5598 = vmatpush.bf16.msrb.mxu1 %v7721_v57  ;;  %v8168_v57 = vld [vmem:[%s15394_s1 + $0xec8] sm:$0xf]  ;;  %v5368_v8 = vpop.f32.mrf.mxu3  ;;  %v5356_v25 = vadd.f32 %v5355_v3, %v5343_v41  ;;  %v5344_v23 = vpop.f32.mrf.mxu1  ;;  %v9801_v40 = vld [vmem:[%s15394_s1 + $0xc34] sm:$0xf0] }
 0x1f5   :  { %5607 = vmatpush.bf16.msrb.mxu2 %v7913_v58  ;;  %v9885_v58 = vld [vmem:[%s15394_s1 + $0xed4] sm:$0xf0]  ;;  %v7960_v41 = vld [vmem:[%s15394_s1 + $0xd28] sm:$0xf]  ;;  %v7833_v43 = vor.u32 %v9801_v40, %v7832_v39 }
 0x1f6   :  { %5620 = vmatpush.bf16.msrb.mxu3 %v8041_v63  ;;  %v7993_v63 = vor.u32 %v9841_v56, %v7992_v54  ;;  %v8169_v32 = vor.u32 %v9885_v58, %v8168_v57  ;;  %v5369_v35 = vadd.f32 %v5368_v8, %v5356_v25  ;;  %v9833_v34 = vld [vmem:[%s15394_s1 + $0xd34] sm:$0xf0]  ;;  %v8136_v45 = vld [vmem:[%s15394_s1 + $0xe88] sm:$0xf] }
 0x1f7   :  { %5586 = vmatpush.bf16.msrb.mxu0 %v7577_v24  ;;  %v7976_v24 = vld [vmem:[%s15394_s1 + $0xd48] sm:$0xf]  ;;  %v9797_v57 = vld [vmem:[%s15394_s1 + $0xc14] sm:$0xf0] }
 0x1f8   :  { %5599 = vmatpush.bf16.msrb.mxu1 %v7705_v27  ;;  %v8297_v27 = vor.u32 %v9917_v61, %v8296_v59  ;;  %v7816_v54 = vld [vmem:[%s15394_s1 + $0xc08] sm:$0xf]  ;;  %v9829_v59 = vld [vmem:[%s15394_s1 + $0xd14] sm:$0xf0] }
 0x1f9   :  { %5608 = vmatpush.bf16.msrb.mxu2 %v7897_v28  ;;  %v9837_v28 = vld [vmem:[%s15394_s1 + $0xd54] sm:$0xf0]  ;;  %v7944_v58 = vld [vmem:[%s15394_s1 + $0xd08] sm:$0xf]  ;;  %v7817_v25 = vor.u32 %v9797_v57, %v7816_v54 }
 0x1fa   :  { %5621 = vmatpush.bf16.msrb.mxu3 %v8025_v33  ;;  %v8280_v33 = vld [vmem:[%s15394_s1 + $0xfa8] sm:$0xf]  ;;  %v7977_v44 = vor.u32 %v9837_v28, %v7976_v24  ;;  %v9905_v10 = vld [vmem:[%s15394_s1 + $0xf74] sm:$0xf0]  ;;  %v7945_v29 = vor.u32 %v9829_v59, %v7944_v58 }
 0x1fb   :  { %5587 = vmatpush.bf16.msrb.mxu0 %v7561_v42  ;;  %v8281_v42 = vor.u32 %v9913_v31, %v8280_v33  ;;  %v5357_v61 = vpop.f32.mrf.mxu2  ;;  %v8120_v3 = vld [vmem:[%s15394_s1 + $0xe68] sm:$0xf]  ;;  %v9953_v24 = vld [vmem:[%s15394_s1 + $0x10f4] sm:$0xf0] }
 0x1fc   :  { %5600 = vmatpush.bf16.msrb.mxu1 %v7689_v50  ;;  %v9877_v50 = vld [vmem:[%s15394_s1 + $0xe94] sm:$0xf0]  ;;  %v8248_v8 = vld [vmem:[%s15394_s1 + $0xf68] sm:$0xf] }
 0x1fd   :  { %5609 = vmatpush.bf16.msrb.mxu2 %v7881_v51  ;;  %v5381_v51 = vpop.f32.mrf.mxu0  ;;  %v8137_v56 = vor.u32 %v9877_v50, %v8136_v45  ;;  %v8440_v11 = vld [vmem:[%s15394_s1 + $0x10e8] sm:$0xf]  ;;  %v9985_v28 = vld [vmem:[%s15394_s1 + $0x11f4] sm:$0xf0]  ;;  %v8249_v23 = vor.u32 %v9905_v10, %v8248_v8 }
 0x1fe   :  { %5622 = vmatpush.bf16.msrb.mxu3 %v8009_v52  ;;  %5588 = vmatmul.bf16.vlgmr.msrb.gmra.mxu0 %v10915_v15  ;;  %v8264_v52 = vld [vmem:[%s15394_s1 + $0xf88] sm:$0xf]  ;;  %v13476_v36 = vadd.f32 %v5381_v51, %v5369_v35  ;;  %v8441_v33 = vor.u32 %v9953_v24, %v8440_v11  ;;  %v9869_v35 = vld [vmem:[%s15394_s1 + $0xe54] sm:$0xf0] }
 0x1ff   :  { %5632 = vmatpush.bf16.msra.mxu0 %v8185_v53  ;;  %5601 = vmatmul.bf16.vlgmr.msrb.gmra.mxu1 %v10919_v17  ;;  %v9909_v53 = vld [vmem:[%s15394_s1 + $0xf94] sm:$0xf0]  ;;  %v8104_v31 = vld [vmem:[%s15394_s1 + $0xe48] sm:$0xf] }
 0x200   :  { %5645 = vmatpush.bf16.msra.mxu1 %v8313_v55  ;;  %v7961_v55 = vor.u32 %v9833_v34, %v7960_v41  ;;  %v8424_v39 = vld [vmem:[%s15394_s1 + $0x10c8] sm:$0xf]  ;;  %v9949_v40 = vld [vmem:[%s15394_s1 + $0x10d4] sm:$0xf0]  ;;  %v8105_v45 = vor.u32 %v9869_v35, %v8104_v31 }
 0x201   :  { %5610 = vmatpush.bf16.msrb.mxu2 %v7865_v62  ;;  %v5370_v62 = vpop.f32.mrf.mxu3  ;;  %v9981_v34 = vld [vmem:[%s15394_s1 + $0x11d4] sm:$0xf0]  ;;  %v8425_v51 = vor.u32 %v9949_v40, %v8424_v39  ;;  %v8536_v58 = vld [vmem:[%s15394_s1 + $0x11a8] sm:$0xf] }
 0x202   :  { %5623 = vmatpush.bf16.msrb.mxu3 %v7993_v63  ;;  %v8265_v63 = vor.u32 %v9909_v53, %v8264_v52  ;;  %v8088_v52 = vld [vmem:[%s15394_s1 + $0xe28] sm:$0xf]  ;;  %v9865_v53 = vld [vmem:[%s15394_s1 + $0xe34] sm:$0xf0] }
 0x203   :  { %5633 = vmatpush.bf16.msra.mxu0 %v8169_v32  ;;  %v9873_v32 = vld [vmem:[%s15394_s1 + $0xe74] sm:$0xf0]  ;;  %v8089_v61 = vor.u32 %v9865_v53, %v8088_v52  ;;  %v8072_v62 = vld [vmem:[%s15394_s1 + $0xe08] sm:$0xf] }
 0x204   :  { %5646 = vmatpush.bf16.msra.mxu1 %v8297_v27  ;;  %v8568_v27 = vld [vmem:[%s15394_s1 + $0x11e8] sm:$0xf]  ;;  %v8121_v30 = vor.u32 %v9873_v32, %v8120_v3  ;;  %v9945_v57 = vld [vmem:[%s15394_s1 + $0x10b4] sm:$0xf0] }
 0x205   :  { %5611 = vmatpush.bf16.msrb.mxu2 %v7849_v37  ;;  %v8232_v37 = vld [vmem:[%s15394_s1 + $0xf48] sm:$0xf]  ;;  %v5383_v41 = vpop.f32.mrf.mxu0  ;;  %v9977_v59 = vld [vmem:[%s15394_s1 + $0x11b4] sm:$0xf0] }
 0x206   :  { %5624 = vmatpush.bf16.msrb.mxu3 %v7977_v44  ;;  %v8569_v44 = vor.u32 %v9985_v28, %v8568_v27  ;;  %v9861_v32 = vld [vmem:[%s15394_s1 + $0xe14] sm:$0xf0]  ;;  %v8200_v8 = vld [vmem:[%s15394_s1 + $0xf08] sm:$0xf]  ;;  %v8537_v11 = vor.u32 %v9977_v59, %v8536_v58 }
 0x207   :  { %5634 = vmatpush.bf16.msra.mxu0 %v8153_v38  ;;  %v9901_v38 = vld [vmem:[%s15394_s1 + $0xf54] sm:$0xf0]  ;;  %v8392_v24 = vld [vmem:[%s15394_s1 + $0x1088] sm:$0xf]  ;;  %v8073_v31 = vor.u32 %v9861_v32, %v8072_v62 }
 0x208   :  { %5647 = vmatpush.bf16.msra.mxu1 %v8281_v42  ;;  %v8552_v42 = vld [vmem:[%s15394_s1 + $0x11c8] sm:$0xf]  ;;  %v8233_v50 = vor.u32 %v9901_v38, %v8232_v37  ;;  %v9893_v10 = vld [vmem:[%s15394_s1 + $0xf14] sm:$0xf0] }
 0x209   :  { %5612 = vmatpush.bf16.msrb.mxu2 %v7833_v43  ;;  %v8216_v43 = vld [vmem:[%s15394_s1 + $0xf28] sm:$0xf]  ;;  %v8553_v54 = vor.u32 %v9981_v34, %v8552_v42  ;;  %v10049_v37 = vld [vmem:[%s15394_s1 + $0x13f4] sm:$0xf0] }
 0x20a   :  { %5625 = vmatpush.bf16.msrb.mxu3 %v7961_v55  ;;  %v9897_v55 = vld [vmem:[%s15394_s1 + $0xf34] sm:$0xf0]  ;;  %v8520_v27 = vld [vmem:[%s15394_s1 + $0x1188] sm:$0xf] }
 0x20b   :  { %5635 = vmatpush.bf16.msra.mxu0 %v8137_v56  ;;  %v8408_v56 = vld [vmem:[%s15394_s1 + $0x10a8] sm:$0xf]  ;;  %v9937_v41 = vld [vmem:[%s15394_s1 + $0x1074] sm:$0xf0] }
 0x20c   :  { %5648 = vmatpush.bf16.msra.mxu1 %v8265_v63  ;;  %v8217_v63 = vor.u32 %v9897_v55, %v8216_v43  ;;  %v8409_v3 = vor.u32 %v9945_v57, %v8408_v56  ;;  %v5394_v28 = vpop.f32.mrf.mxu1  ;;  %v8824_v35 = vld [vmem:[%s15394_s1 + $0x13e8] sm:$0xf]  ;;  %v10045_v53 = vld [vmem:[%s15394_s1 + $0x13d4] sm:$0xf0] }
 0x20d   :  { %5613 = vmatpush.bf16.msrb.mxu2 %v7817_v25  ;;  %v9941_v25 = vld [vmem:[%s15394_s1 + $0x1094] sm:$0xf0]  ;;  %v8504_v42 = vld [vmem:[%s15394_s1 + $0x1168] sm:$0xf]  ;;  %v8825_v34 = vor.u32 %v10049_v37, %v8824_v35 }
 0x20e   :  { %5626 = vmatpush.bf16.msrb.mxu3 %v7945_v29  ;;  %v9973_v29 = vld [vmem:[%s15394_s1 + $0x1194] sm:$0xf0]  ;;  %v8393_v38 = vor.u32 %v9941_v25, %v8392_v24  ;;  %v8808_v52 = vld [vmem:[%s15394_s1 + $0x13c8] sm:$0xf] }
 0x20f   :  { %5636 = vmatpush.bf16.msra.mxu0 %v8121_v30  ;;  %v8696_v30 = vld [vmem:[%s15394_s1 + $0x12e8] sm:$0xf]  ;;  %v8521_v39 = vor.u32 %v9973_v29, %v8520_v27  ;;  %v9933_v59 = vld [vmem:[%s15394_s1 + $0x1054] sm:$0xf0] }
 0x210   :  { %5649 = vmatpush.bf16.msra.mxu1 %v8249_v23  ;;  %5614 = vmatmul.bf16.vlgmr.msrb.gmra.mxu2 %v11081_v46  ;;  %v10017_v23 = vld [vmem:[%s15394_s1 + $0x12f4] sm:$0xf0]  ;;  %v8360_v58 = vld [vmem:[%s15394_s1 + $0x1048] sm:$0xf] }
 0x211   :  { %5658 = vmatpush.bf16.msra.mxu2 %v8441_v33  ;;  %5627 = vmatmul.bf16.vlgmr.msrb.gmra.mxu3 %v11085_v48  ;;  %v5395_v33 = vadd.f32 %v5394_v28, %v13476_v36  ;;  %v8697_v40 = vor.u32 %v10017_v23, %v8696_v30  ;;  %v8376_v36 = vld [vmem:[%s15394_s1 + $0x1068] sm:$0xf]  ;;  %v9965_v32 = vld [vmem:[%s15394_s1 + $0x1154] sm:$0xf0]  ;;  %v8361_v27 = vor.u32 %v9933_v59, %v8360_v58 }
 0x212   :  { %5671 = vmatpush.bf16.msra.mxu3 %v8569_v44  ;;  %v8201_v44 = vor.u32 %v9893_v10, %v8200_v8  ;;  %v8377_v43 = vor.u32 %v9937_v41, %v8376_v36  ;;  %v8664_v8 = vld [vmem:[%s15394_s1 + $0x12a8] sm:$0xf]  ;;  %v10009_v10 = vld [vmem:[%s15394_s1 + $0x12b4] sm:$0xf0] }
 0x213   :  { %5637 = vmatpush.bf16.msra.mxu0 %v8105_v45  ;;  %v9969_v45 = vld [vmem:[%s15394_s1 + $0x1174] sm:$0xf0]  ;;  %v5407_v55 = vpop.f32.mrf.mxu2  ;;  %v8665_v29 = vor.u32 %v10009_v10, %v8664_v8  ;;  %v8344_v30 = vld [vmem:[%s15394_s1 + $0x1028] sm:$0xf] }
 0x214   :  { %5650 = vmatpush.bf16.msra.mxu1 %v8233_v50  ;;  %v8680_v50 = vld [vmem:[%s15394_s1 + $0x12c8] sm:$0xf]  ;;  %v5420_v57 = vpop.f32.mrf.mxu3  ;;  %v5408_v62 = vadd.f32 %v5407_v55, %v5395_v33  ;;  %v10041_v24 = vld [vmem:[%s15394_s1 + $0x13b4] sm:$0xf0] }
 0x215   :  { %5659 = vmatpush.bf16.msra.mxu2 %v8425_v51  ;;  %v10013_v51 = vld [vmem:[%s15394_s1 + $0x12d4] sm:$0xf0]  ;;  %v8472_v33 = vld [vmem:[%s15394_s1 + $0x1128] sm:$0xf] }
 0x216   :  { %5672 = vmatpush.bf16.msra.mxu3 %v8553_v54  ;;  %v8505_v54 = vor.u32 %v9969_v45, %v8504_v42  ;;  %v8681_v56 = vor.u32 %v10013_v51, %v8680_v50  ;;  %v5421_v25 = vadd.f32 %v5420_v57, %v5408_v62  ;;  %v9929_v23 = vld [vmem:[%s15394_s1 + $0x1034] sm:$0xf0]  ;;  %v8648_v37 = vld [vmem:[%s15394_s1 + $0x1288] sm:$0xf] }
 0x217   :  { %5638 = vmatpush.bf16.msra.mxu0 %v8089_v61  ;;  %v8488_v61 = vld [vmem:[%s15394_s1 + $0x1148] sm:$0xf]  ;;  %v9961_v35 = vld [vmem:[%s15394_s1 + $0x1134] sm:$0xf0]  ;;  %v8345_v41 = vor.u32 %v9929_v23, %v8344_v30 }
 0x218   :  { %5651 = vmatpush.bf16.msra.mxu1 %v8217_v63  ;;  %v8809_v63 = vor.u32 %v10045_v53, %v8808_v52  ;;  %v8489_v28 = vor.u32 %v9965_v32, %v8488_v61  ;;  %v8328_v42 = vld [vmem:[%s15394_s1 + $0x1008] sm:$0xf]  ;;  %v9925_v50 = vld [vmem:[%s15394_s1 + $0x1014] sm:$0xf0] }
 0x219   :  { %5660 = vmatpush.bf16.msra.mxu2 %v8409_v3  ;;  %v5396_v3 = vpop.f32.mrf.mxu1  ;;  %v8456_v51 = vld [vmem:[%s15394_s1 + $0x1108] sm:$0xf]  ;;  %v9957_v52 = vld [vmem:[%s15394_s1 + $0x1114] sm:$0xf0] }
 0x21a   :  { %5673 = vmatpush.bf16.msra.mxu3 %v8537_v11  ;;  %v8792_v11 = vld [vmem:[%s15394_s1 + $0x13a8] sm:$0xf]  ;;  %v10033_v58 = vld [vmem:[%s15394_s1 + $0x1374] sm:$0xf0]  ;;  %v8457_v10 = vor.u32 %v9957_v52, %v8456_v51 }
 0x21b   :  { %5639 = vmatpush.bf16.msra.mxu0 %v8073_v31  ;;  %v8793_v31 = vor.u32 %v10041_v24, %v8792_v11  ;;  %v8632_v55 = vld [vmem:[%s15394_s1 + $0x1268] sm:$0xf]  ;;  %v10081_v61 = vld [vmem:[%s15394_s1 + $0x14f4] sm:$0xf0] }
 0x21c   :  { %5652 = vmatpush.bf16.msra.mxu1 %v8201_v44  ;;  %v10005_v44 = vld [vmem:[%s15394_s1 + $0x1294] sm:$0xf0]  ;;  %v5422_v53 = vpop.f32.mrf.mxu3  ;;  %v8760_v57 = vld [vmem:[%s15394_s1 + $0x1368] sm:$0xf] }
 0x21d   :  { %5661 = vmatpush.bf16.msra.mxu2 %v8393_v38  ;;  %v5433_v38 = vpop.f32.mrf.mxu0  ;;  %v8649_v45 = vor.u32 %v10005_v44, %v8648_v37  ;;  %v8952_v59 = vld [vmem:[%s15394_s1 + $0x14e8] sm:$0xf]  ;;  %v10113_v32 = vld [vmem:[%s15394_s1 + $0x15f4] sm:$0xf0]  ;;  %v8761_v24 = vor.u32 %v10033_v58, %v8760_v57 }
 0x21e   :  { %5674 = vmatpush.bf16.msra.mxu3 %v8521_v39  ;;  %5640 = vmatmul.bf16.vlgmr.msra.gmra.mxu0 %v11083_v47  ;;  %v8776_v39 = vld [vmem:[%s15394_s1 + $0x1388] sm:$0xf]  ;;  %v5434_v36 = vadd.f32 %v5433_v38, %v5421_v25  ;;  %v8953_v25 = vor.u32 %v10081_v61, %v8952_v59  ;;  %v10029_v23 = vld [vmem:[%s15394_s1 + $0x1354] sm:$0xf0] }
 0x21f   :  { %5684 = vmatpush.bf16.msrb.mxu0 %v8697_v40  ;;  %5653 = vmatmul.bf16.vlgmr.msra.gmra.mxu1 %v11087_v49  ;;  %v10037_v40 = vld [vmem:[%s15394_s1 + $0x1394] sm:$0xf0]  ;;  %v9080_v3 = vld [vmem:[%s15394_s1 + $0x15e8] sm:$0xf] }
 0x220   :  { %5697 = vmatpush.bf16.msrb.mxu1 %v8825_v34  ;;  %v8473_v34 = vor.u32 %v9961_v35, %v8472_v33  ;;  %v9081_v30 = vor.u32 %v10113_v32, %v9080_v3  ;;  %v8936_v33 = vld [vmem:[%s15394_s1 + $0x14c8] sm:$0xf]  ;;  %v10109_v44 = vld [vmem:[%s15394_s1 + $0x15d4] sm:$0xf0] }
 0x221   :  { %5662 = vmatpush.bf16.msra.mxu2 %v8377_v43  ;;  %v5409_v43 = vpop.f32.mrf.mxu2  ;;  %v5446_v62 = vpop.f32.mrf.mxu1  ;;  %v9064_v37 = vld [vmem:[%s15394_s1 + $0x15c8] sm:$0xf]  ;;  %v10073_v51 = vld [vmem:[%s15394_s1 + $0x14b4] sm:$0xf0] }
 0x222   :  { %5675 = vmatpush.bf16.msra.mxu3 %v8505_v54  ;;  %v8777_v54 = vor.u32 %v10037_v40, %v8776_v39  ;;  %v13711_v8 = vadd.f32 %v5446_v62, %v5434_v36  ;;  %v8600_v36 = vld [vmem:[%s15394_s1 + $0x1228] sm:$0xf]  ;;  %v10105_v53 = vld [vmem:[%s15394_s1 + $0x15b4] sm:$0xf0] }
 0x223   :  { %5685 = vmatpush.bf16.msrb.mxu0 %v8681_v56  ;;  %v10001_v56 = vld [vmem:[%s15394_s1 + $0x1274] sm:$0xf0]  ;;  %v9048_v52 = vld [vmem:[%s15394_s1 + $0x15a8] sm:$0xf] }
 0x224   :  { %5698 = vmatpush.bf16.msrb.mxu1 %v8809_v63  ;;  %v8329_v63 = vor.u32 %v9925_v50, %v8328_v42  ;;  %v8633_v11 = vor.u32 %v10001_v56, %v8632_v55  ;;  %v8728_v42 = vld [vmem:[%s15394_s1 + $0x1328] sm:$0xf]  ;;  %v9989_v58 = vld [vmem:[%s15394_s1 + $0x1214] sm:$0xf0]  ;;  %v9049_v62 = vor.u32 %v10105_v53, %v9048_v52 }
 0x225   :  { %5663 = vmatpush.bf16.msra.mxu2 %v8361_v27  ;;  %v8616_v27 = vld [vmem:[%s15394_s1 + $0x1248] sm:$0xf]  ;;  %v5435_v35 = vpop.f32.mrf.mxu0  ;;  %v10021_v61 = vld [vmem:[%s15394_s1 + $0x1314] sm:$0xf0] }
 0x226   :  { %5676 = vmatpush.bf16.msra.mxu3 %v8489_v28  ;;  %v9997_v28 = vld [vmem:[%s15394_s1 + $0x1254] sm:$0xf0]  ;;  %v8920_v50 = vld [vmem:[%s15394_s1 + $0x14a8] sm:$0xf] }
 0x227   :  { %5686 = vmatpush.bf16.msrb.mxu0 %v8665_v29  ;;  %v8744_v29 = vld [vmem:[%s15394_s1 + $0x1348] sm:$0xf]  ;;  %v8617_v38 = vor.u32 %v9997_v28, %v8616_v27  ;;  %v8921_v57 = vor.u32 %v10073_v51, %v8920_v50  ;;  %v10069_v3 = vld [vmem:[%s15394_s1 + $0x1494] sm:$0xf0] }
 0x228   :  { %5699 = vmatpush.bf16.msrb.mxu1 %v8793_v31  ;;  %v10077_v31 = vld [vmem:[%s15394_s1 + $0x14d4] sm:$0xf0]  ;;  %v8745_v39 = vor.u32 %v10029_v23, %v8744_v29  ;;  %v8584_v55 = vld [vmem:[%s15394_s1 + $0x1208] sm:$0xf] }
 0x229   :  { %5664 = vmatpush.bf16.msra.mxu2 %v8345_v41  ;;  %v8937_v40 = vor.u32 %v10077_v31, %v8936_v33  ;;  %v9993_v41 = vld [vmem:[%s15394_s1 + $0x1234] sm:$0xf0]  ;;  %v5448_v43 = vpop.f32.mrf.mxu1  ;;  %v8712_v59 = vld [vmem:[%s15394_s1 + $0x1308] sm:$0xf] }
 0x22a   :  { %5677 = vmatpush.bf16.msra.mxu3 %v8473_v34  ;;  %v9065_v34 = vor.u32 %v10109_v44, %v9064_v37  ;;  %v9032_v32 = vld [vmem:[%s15394_s1 + $0x1588] sm:$0xf]  ;;  %v10177_v28 = vld [vmem:[%s15394_s1 + $0x17f4] sm:$0xf0]  ;;  %v8713_v29 = vor.u32 %v10021_v61, %v8712_v59  ;;  %v10198_v44 = vld [vmem:[%s15395_s2] sm:$0xf] }
 0x22b   :  { %5687 = vmatpush.bf16.msrb.mxu0 %v8649_v45  ;;  %v10025_v45 = vld [vmem:[%s15394_s1 + $0x1334] sm:$0xf0]  ;;  %v9336_v27 = vld [vmem:[%s15394_s1 + $0x17e8] sm:$0xf] }
 0x22c   :  { %5700 = vmatpush.bf16.msrb.mxu1 %v8777_v54  ;;  %v8601_v54 = vor.u32 %v9993_v41, %v8600_v36  ;;  %v8729_v56 = vor.u32 %v10025_v45, %v8728_v42  ;;  %v8888_v23 = vld [vmem:[%s15394_s1 + $0x1468] sm:$0xf]  ;;  %v10065_v35 = vld [vmem:[%s15394_s1 + $0x1474] sm:$0xf0] }
 0x22d   :  { %5665 = vmatpush.bf16.msra.mxu2 %v8329_v63  ;;  %v8904_v63 = vld [vmem:[%s15394_s1 + $0x1488] sm:$0xf]  ;;  %v10141_v41 = vld [vmem:[%s15394_s1 + $0x16d4] sm:$0xf0]  ;;  %v8889_v45 = vor.u32 %v10065_v35, %v8888_v23 }
 0x22e   :  { %5678 = vmatpush.bf16.msra.mxu3 %v8457_v10  ;;  %v10101_v10 = vld [vmem:[%s15394_s1 + $0x1594] sm:$0xf0]  ;;  %v9016_v37 = vld [vmem:[%s15394_s1 + $0x1568] sm:$0xf] }
 0x22f   :  { %5688 = vmatpush.bf16.msrb.mxu0 %v8633_v11  ;;  %v9208_v11 = vld [vmem:[%s15394_s1 + $0x16e8] sm:$0xf]  ;;  %v9033_v33 = vor.u32 %v10101_v10, %v9032_v32  ;;  %v10061_v43 = vld [vmem:[%s15394_s1 + $0x1454] sm:$0xf0] }
 0x230   :  { %5701 = vmatpush.bf16.msrb.mxu1 %v8761_v24  ;;  %5666 = vmatmul.bf16.vlgmr.msra.gmra.mxu2 %v11318_v9  ;;  %v10145_v24 = vld [vmem:[%s15394_s1 + $0x16f4] sm:$0xf0]  ;;  %v9192_v36 = vld [vmem:[%s15394_s1 + $0x16c8] sm:$0xf] }
 0x231   :  { %5710 = vmatpush.bf16.msrb.mxu2 %v8953_v25  ;;  %5679 = vmatmul.bf16.vlgmr.msra.gmra.mxu3 %v11328_v14  ;;  %v8585_v25 = vor.u32 %v9989_v58, %v8584_v55  ;;  %v9209_v31 = vor.u32 %v10145_v24, %v9208_v11  ;;  %v9320_v42 = vld [vmem:[%s15394_s1 + $0x17c8] sm:$0xf]  ;;  %v9193_v52 = vor.u32 %v10141_v41, %v9192_v36  ;;  %v10093_v58 = vld [vmem:[%s15394_s1 + $0x1554] sm:$0xf0] }
 0x232   :  { %5723 = vmatpush.bf16.msrb.mxu3 %v9081_v30  ;;  %v8905_v30 = vor.u32 %v10069_v3, %v8904_v63  ;;  %v8872_v53 = vld [vmem:[%s15394_s1 + $0x1448] sm:$0xf]  ;;  %v10137_v61 = vld [vmem:[%s15394_s1 + $0x16b4] sm:$0xf0] }
 0x233   :  { %5689 = vmatpush.bf16.msrb.mxu0 %v8617_v38  ;;  %v814_v38 = vperm.slane %v10198_v44, 2  ;;  %v5459_v50 = vpop.f32.mrf.mxu2  ;;  %v9176_v59 = vld [vmem:[%s15394_s1 + $0x16a8] sm:$0xf]  ;;  %v10169_v63 = vld [vmem:[%s15394_s1 + $0x17b4] sm:$0xf0]  ;;  %v8873_v32 = vor.u32 %v10061_v43, %v8872_v53 }
 0x234   :  { %5702 = vmatpush.bf16.msrb.mxu1 %v8745_v39  ;;  %v9337_v39 = vor.u32 %v10177_v28, %v9336_v27  ;;  %v9177_v11 = vor.u32 %v10137_v61, %v9176_v59  ;;  %v8856_v24 = vld [vmem:[%s15394_s1 + $0x1428] sm:$0xf]  ;;  %v10133_v23 = vld [vmem:[%s15394_s1 + $0x1694] sm:$0xf0] }
 0x235   :  { %5711 = vmatpush.bf16.msrb.mxu2 %v8937_v40  ;;  %v10097_v40 = vld [vmem:[%s15394_s1 + $0x1574] sm:$0xf0]  ;;  %v5460_v55 = vadd.f32 %v5459_v50, %v814_v38  ;;  %v8984_v27 = vld [vmem:[%s15394_s1 + $0x1528] sm:$0xf] }
 0x236   :  { %5724 = vmatpush.bf16.msrb.mxu3 %v9065_v34  ;;  %v10173_v34 = vld [vmem:[%s15394_s1 + $0x17d4] sm:$0xf0]  ;;  %v9017_v51 = vor.u32 %v10097_v40, %v9016_v37  ;;  %v8840_v44 = vld [vmem:[%s15394_s1 + $0x1408] sm:$0xf] }
 0x237   :  { %5690 = vmatpush.bf16.msrb.mxu0 %v8601_v54  ;;  %v9000_v54 = vld [vmem:[%s15394_s1 + $0x1548] sm:$0xf]  ;;  %v10053_v41 = vld [vmem:[%s15394_s1 + $0x1414] sm:$0xf0] }
 0x238   :  { %5703 = vmatpush.bf16.msrb.mxu1 %v8729_v56  ;;  %v5472_v56 = vpop.f32.mrf.mxu3  ;;  %v9001_v10 = vor.u32 %v10093_v58, %v9000_v54  ;;  %v9272_v53 = vld [vmem:[%s15394_s1 + $0x1768] sm:$0xf]  ;;  %v10161_v43 = vld [vmem:[%s15394_s1 + $0x1774] sm:$0xf0]  ;;  %v6394_v58 = vld [vmem:[%s15394_s1 + $0xf8] sm:$0xf0] }
 0x239   :  { %5712 = vmatpush.bf16.msrb.mxu2 %v8921_v57  ;;  %v9321_v57 = vor.u32 %v10173_v34, %v9320_v42  ;;  %v13852_v3 = vadd.f32 %v5472_v56, %v5460_v55  ;;  %v8968_v42 = vld [vmem:[%s15394_s1 + $0x1508] sm:$0xf]  ;;  %v10085_v34 = vld [vmem:[%s15394_s1 + $0x1514] sm:$0xf0]  ;;  %v8841_v56 = vor.u32 %v10053_v41, %v8840_v44 }
 0x23a   :  { %5725 = vmatpush.bf16.msrb.mxu3 %v9049_v62  ;;  %v9304_v62 = vld [vmem:[%s15394_s1 + $0x17a8] sm:$0xf]  ;;  %v10193_v55 = vld [vmem:[%s15394_s1 + $0x1874] sm:$0xf0]  ;;  %v8969_v59 = vor.u32 %v10085_v34, %v8968_v42 }
 0x23b   :  { %5691 = vmatpush.bf16.msrb.mxu0 %v8585_v25  ;;  %v10057_v25 = vld [vmem:[%s15394_s1 + $0x1434] sm:$0xf0]  ;;  %v9305_v28 = vor.u32 %v10169_v63, %v9304_v62  ;;  %v13878_v35 = vpop.f32.mrf.mxu0  ;;  %v9400_v54 = vld [vmem:[%s15394_s1 + $0x1868] sm:$0xf]  ;;  %v9273_v62 = vor.u32 %v10161_v43, %v9272_v53 }
 0x23c   :  { %5704 = vmatpush.bf16.msrb.mxu1 %v8713_v29  ;;  %v10089_v29 = vld [vmem:[%s15394_s1 + $0x1534] sm:$0xf0]  ;;  %v8857_v37 = vor.u32 %v10057_v25, %v8856_v24  ;;  %v13883_v38 = vpop.f32.mrf.mxu1  ;;  %v9401_v63 = vor.u32 %v10193_v55, %v9400_v54  ;;  %v9368_v34 = vld [vmem:[%s15394_s1 + $0x1828] sm:$0xf] }
 0x23d   :  { %5713 = vmatpush.bf16.msrb.mxu2 %v8905_v30  ;;  %v9160_v30 = vld [vmem:[%s15394_s1 + $0x1688] sm:$0xf]  ;;  %v8985_v40 = vor.u32 %v10089_v29, %v8984_v27  ;;  %v10157_v25 = vld [vmem:[%s15394_s1 + $0x1754] sm:$0xf0] }
 0x23e   :  { %5726 = vmatpush.bf16.msrb.mxu3 %v9033_v33  ;;  %5692 = vmatmul.bf16.vlgmr.msrb.gmra.mxu0 %v11326_v13  ;;  %v9288_v33 = vld [vmem:[%s15394_s1 + $0x1788] sm:$0xf]  ;;  %v9161_v36 = vor.u32 %v10133_v23, %v9160_v30  ;;  %v9435_v30 = vld [vmem:[%s15394_s1 + $0xcc] sm:$0xf]  ;;  %v6378_v23 = vld [vmem:[%s15394_s1 + $0xd8] sm:$0xf0] }
 0x23f   :  { %5736 = vmatpush.bf16.msra.mxu0 %v9209_v31  ;;  %5705 = vmatmul.bf16.vlgmr.msrb.gmra.mxu1 %v11330_v18  ;;  %v10165_v31 = vld [vmem:[%s15394_s1 + $0x1794] sm:$0xf0]  ;;  %v9384_v27 = vld [vmem:[%s15394_s1 + $0x1848] sm:$0xf]  ;;  %v6381_v41 = vor.u32 %v9435_v30, %v6378_v23 }
 0x240   :  { %5749 = vmatpush.bf16.msra.mxu1 %v9337_v39  ;;  %v5461_v39 = vpop.f32.mrf.mxu2  ;;  %v9289_v50 = vor.u32 %v10165_v31, %v9288_v33  ;;  %v10153_v42 = vld [vmem:[%s15394_s1 + $0x1734] sm:$0xf0]  ;;  %v9096_v53 = vld [vmem:[%s15394_s1 + $0x1608] sm:$0xf] }
 0x241   :  { %5714 = vmatpush.bf16.msrb.mxu2 %v8889_v45  ;;  %v5474_v45 = vpop.f32.mrf.mxu3  ;;  %v9112_v39 = vld [vmem:[%s15394_s1 + $0x1628] sm:$0xf]  ;;  %v10117_v43 = vld [vmem:[%s15394_s1 + $0x1614] sm:$0xf0] }
 0x242   :  { %5727 = vmatpush.bf16.msrb.mxu3 %v9017_v51  ;;  %v9144_v51 = vld [vmem:[%s15394_s1 + $0x1668] sm:$0xf]  ;;  %v10185_v45 = vld [vmem:[%s15394_s1 + $0x1834] sm:$0xf0] }
 0x243   :  { %5737 = vmatpush.bf16.msra.mxu0 %v9193_v52  ;;  %v10129_v52 = vld [vmem:[%s15394_s1 + $0x1674] sm:$0xf0]  ;;  %v5487_v29 = vpop.f32.mrf.mxu0  ;;  %v9369_v55 = vor.u32 %v10185_v45, %v9368_v34  ;;  %v6762_v34 = vld [vmem:[%s15394_s1 + $0x3d8] sm:$0xf0] }
 0x244   :  { %5750 = vmatpush.bf16.msra.mxu1 %v9321_v57  ;;  %v9439_v57 = vld [vmem:[%s15394_s1 + $0xec] sm:$0xf]  ;;  %v9145_v61 = vor.u32 %v10129_v52, %v9144_v51  ;;  %v5500_v33 = vpop.f32.mrf.mxu1  ;;  %v6362_v51 = vld [vmem:[%s15394_s1 + $0xb8] sm:$0xf0] }
 0x245   :  { %5715 = vmatpush.bf16.msrb.mxu2 %v8873_v32  ;;  %v9128_v32 = vld [vmem:[%s15394_s1 + $0x1648] sm:$0xf]  ;;  %v6397_v24 = vor.u32 %v9439_v57, %v6394_v58  ;;  %v10149_v57 = vld [vmem:[%s15394_s1 + $0x1714] sm:$0xf0] }
 0x246   :  { %5728 = vmatpush.bf16.msrb.mxu3 %v9001_v10  ;;  %v10125_v10 = vld [vmem:[%s15394_s1 + $0x1654] sm:$0xf0]  ;;  %v9352_v58 = vld [vmem:[%s15394_s1 + $0x1808] sm:$0xf] }
 0x247   :  { %5738 = vmatpush.bf16.msra.mxu0 %v9177_v11  ;;  %v9256_v11 = vld [vmem:[%s15394_s1 + $0x1748] sm:$0xf]  ;;  %v9129_v31 = vor.u32 %v10125_v10, %v9128_v32  ;;  %v6346_v32 = vld [vmem:[%s15394_s1 + $0x98] sm:$0xf0]  ;;  %v9471_v10 = vld [vmem:[%s15394_s1 + $0x1ec] sm:$0xf] }
 0x248   :  { %5751 = vmatpush.bf16.msra.mxu1 %v9305_v28  ;;  %v10189_v28 = vld [vmem:[%s15394_s1 + $0x1854] sm:$0xf0] }
 0x249   :  { %5716 = vmatpush.bf16.msrb.mxu2 %v8857_v37  ;;  %v9257_v37 = vor.u32 %v10157_v25, %v9256_v11  ;;  %v9385_v44 = vor.u32 %v10189_v28, %v9384_v27  ;;  %v9097_v11 = vor.u32 %v10117_v43, %v9096_v53  ;;  %v9535_v25 = vld [vmem:[%s15394_s1 + $0x3ec] sm:$0xf]  ;;  %v6778_v27 = vld [vmem:[%s15394_s1 + $0x3f8] sm:$0xf0] }
 0x24a   :  { %5729 = vmatpush.bf16.msrb.mxu3 %v8985_v40  ;;  %v10121_v40 = vld [vmem:[%s15394_s1 + $0x1634] sm:$0xf0]  ;;  %v6314_v53 = vld [vmem:[%s15394_s1 + $0x58] sm:$0xf0] }
 0x24b   :  { %5739 = vmatpush.bf16.msra.mxu0 %v9161_v36  ;;  %v9240_v36 = vld [vmem:[%s15394_s1 + $0x1728] sm:$0xf]  ;;  %v9113_v52 = vor.u32 %v10121_v40, %v9112_v39  ;;  %v6781_v39 = vor.u32 %v9535_v25, %v6778_v27  ;;  %v9467_v40 = vld [vmem:[%s15394_s1 + $0x1cc] sm:$0xf] }
 0x24c   :  { %5752 = vmatpush.bf16.msra.mxu1 %v9289_v50  ;;  %v9431_v50 = vld [vmem:[%s15394_s1 + $0xac] sm:$0xf]  ;;  %v9241_v54 = vor.u32 %v10153_v42, %v9240_v36 }
 0x24d   :  { %5717 = vmatpush.bf16.msrb.mxu2 %v8841_v56  ;;  %v9224_v56 = vld [vmem:[%s15394_s1 + $0x1708] sm:$0xf]  ;;  %v9499_v36 = vld [vmem:[%s15394_s1 + $0x2cc] sm:$0xf] }
 0x24e   :  { %5730 = vmatpush.bf16.msrb.mxu3 %v8969_v59  ;;  %v6365_v59 = vor.u32 %v9431_v50, %v6362_v51  ;;  %v9225_v28 = vor.u32 %v10149_v57, %v9224_v56  ;;  %v9531_v42 = vld [vmem:[%s15394_s1 + $0x3cc] sm:$0xf] }
 0x24f   :  { %5740 = vmatpush.bf16.msra.mxu0 %v9145_v61  ;;  %v5486_v61 = vadd.f32 %v13878_v35, %v13852_v3  ;;  %v6522_v3 = vld [vmem:[%s15394_s1 + $0x1f8] sm:$0xf0]  ;;  %v9503_v35 = vld [vmem:[%s15394_s1 + $0x2ec] sm:$0xf]  ;;  %v6765_v56 = vor.u32 %v9531_v42, %v6762_v34 }
 0x250   :  { %5753 = vmatpush.bf16.msra.mxu1 %v9273_v62  ;;  %5718 = vmatmul.bf16.vlgmr.msrb.gmra.mxu2 %v11411_v4  ;;  %v10181_v62 = vld [vmem:[%s15394_s1 + $0x1814] sm:$0xf0]  ;;  %v6525_v33 = vor.u32 %v9471_v10, %v6522_v3  ;;  %v9463_v57 = vld [vmem:[%s15394_s1 + $0x1ac] sm:$0xf]  ;;  %v6282_v42 = vld [vmem:[%s15394_s1 + $0x18] sm:$0xf0] }
 0x251   :  { %5766 = vmatpush.bf16.msra.mxu2 %v9401_v63  ;;  %5731 = vmatmul.bf16.vlgmr.msrb.gmra.mxu3 %v11415_v6  ;;  %v9427_v63 = vld [vmem:[%s15394_s1 + $0x8c] sm:$0xf]  ;;  %v9353_v29 = vor.u32 %v10181_v62, %v9352_v58  ;;  %v5499_v30 = vadd.f32 %v13883_v38, %v5486_v61  ;;  %v6506_v38 = vld [vmem:[%s15394_s1 + $0x1d8] sm:$0xf0] }
 0x252   :  { %5775 = vmatpush.bf16.msra.mxu3 %v6397_v24  ;;  %v6650_v24 = vld [vmem:[%s15394_s1 + $0x2f8] sm:$0xf0]  ;;  %v6349_v23 = vor.u32 %v9427_v63, %v6346_v32  ;;  %v6509_v51 = vor.u32 %v9467_v40, %v6506_v38  ;;  %v9527_v62 = vld [vmem:[%s15394_s1 + $0x3ac] sm:$0xf] }
 0x253   :  { %5741 = vmatpush.bf16.msra.mxu0 %v9129_v31  ;;  %v9423_v31 = vld [vmem:[%s15394_s1 + $0x6c] sm:$0xf]  ;;  %v5511_v45 = vpop.f32.mrf.mxu2  ;;  %v6490_v58 = vld [vmem:[%s15394_s1 + $0x1b8] sm:$0xf0] }
 0x254   :  { %5754 = vmatpush.bf16.msra.mxu1 %v9257_v37  ;;  %v6330_v37 = vld [vmem:[%s15394_s1 + $0x78] sm:$0xf0]  ;;  %v5512_v43 = vadd.f32 %v5511_v45, %v5499_v30  ;;  %v6493_v3 = vor.u32 %v9463_v57, %v6490_v58  ;;  %v9459_v27 = vld [vmem:[%s15394_s1 + $0x18c] sm:$0xf]  ;;  %v10199_v30 = vld [vmem:[#allocation1] sm:$0xff] }
 0x255   :  { %5767 = vmatpush.bf16.msra.mxu2 %v9385_v44  ;;  %v6653_v44 = vor.u32 %v9503_v35, %v6650_v24  ;;  %v6333_v50 = vor.u32 %v9423_v31, %v6330_v37  ;;  %v6618_v61 = vld [vmem:[%s15394_s1 + $0x2b8] sm:$0xf0]  ;;  %v9415_v35 = vld [vmem:[%s15394_s1 + $0x2c] sm:$0xf] }
 0x256   :  { %5776 = vmatpush.bf16.msra.mxu3 %v6381_v41  ;;  %v6634_v41 = vld [vmem:[%s15394_s1 + $0x2d8] sm:$0xf0]  ;;  %v9523_v31 = vld [vmem:[%s15394_s1 + $0x38c] sm:$0xf] }
 0x257   :  { %5742 = vmatpush.bf16.msra.mxu0 %v9113_v52  ;;  %v9419_v52 = vld [vmem:[%s15394_s1 + $0x4c] sm:$0xf]  ;;  %v6746_v63 = vld [vmem:[%s15394_s1 + $0x3b8] sm:$0xf0] }
 0x258   :  { %5755 = vmatpush.bf16.msra.mxu1 %v9241_v54  ;;  %v5524_v54 = vpop.f32.mrf.mxu3  ;;  %v6317_v10 = vor.u32 %v9419_v52, %v6314_v53  ;;  %v6749_v25 = vor.u32 %v9527_v62, %v6746_v63  ;;  %v6730_v37 = vld [vmem:[%s15394_s1 + $0x398] sm:$0xf0]  ;;  %v9455_v52 = vld [vmem:[%s15394_s1 + $0x16c] sm:$0xf] }
 0x259   :  { %5768 = vmatpush.bf16.msra.mxu2 %v9369_v55  ;;  %v6637_v55 = vor.u32 %v9499_v36, %v6634_v41  ;;  %v5525_v32 = vadd.f32 %v5524_v54, %v5512_v43  ;;  %v9411_v41 = vld [vmem:[%s15394_s1 + $0xc] sm:$0xf]  ;;  %v6458_v53 = vld [vmem:[%s15394_s1 + $0x178] sm:$0xf0] }
 0x25a   :  { %5777 = vmatpush.bf16.msra.mxu3 %v6365_v59  ;;  %v9495_v59 = vld [vmem:[%s15394_s1 + $0x2ac] sm:$0xf]  ;;  %v6586_v54 = vld [vmem:[%s15394_s1 + $0x278] sm:$0xf0] }
 0x25b   :  { %5743 = vmatpush.bf16.msra.mxu0 %v9097_v11  ;;  %v6298_v11 = vld [vmem:[%s15394_s1 + $0x38] sm:$0xf0]  ;;  %v6621_v24 = vor.u32 %v9495_v59, %v6618_v61  ;;  %v5513_v40 = vpop.f32.mrf.mxu2  ;;  %v9487_v43 = vld [vmem:[%s15394_s1 + $0x26c] sm:$0xf]  ;;  %v6285_v59 = vor.u32 %v9411_v41, %v6282_v42  ;;  %v6461_v61 = vor.u32 %v9455_v52, %v6458_v53 }
 0x25c   :  { %5756 = vmatpush.bf16.msra.mxu1 %v9225_v28  ;;  %v6474_v28 = vld [vmem:[%s15394_s1 + $0x198] sm:$0xf0]  ;;  %v6301_v38 = vor.u32 %v9415_v35, %v6298_v11  ;;  %v9567_v57 = vld [vmem:[%s15394_s1 + $0x4ec] sm:$0xf]  ;;  %v6589_v62 = vor.u32 %v9487_v43, %v6586_v54 }
 0x25d   :  { %5769 = vmatpush.bf16.msra.mxu2 %v9353_v29  ;;  %v9491_v29 = vld [vmem:[%s15394_s1 + $0x28c] sm:$0xf]  ;;  %v6477_v36 = vor.u32 %v9459_v27, %v6474_v28  ;;  %v6906_v58 = vld [vmem:[%s15394_s1 + $0x4f8] sm:$0xf0] }
 0x25e   :  { %5778 = vmatpush.bf16.msra.mxu3 %v6349_v23  ;;  %5744 = vmatmul.bf16.vlgmr.msra.gmra.mxu0 %v11413_v5  ;;  %v5537_v23 = vpop.f32.mrf.mxu0  ;;  %v6909_v35 = vor.u32 %v9567_v57, %v6906_v58  ;;  %v6570_v11 = vld [vmem:[%s15394_s1 + $0x258] sm:$0xf0]  ;;  %v9563_v28 = vld [vmem:[%s15394_s1 + $0x4cc] sm:$0xf] }
 0x25f   :  { %5788 = vmatpush.bf16.msrb.mxu0 %v6525_v33  ;;  %5757 = vmatmul.bf16.vlgmr.msra.gmra.mxu1 %v11417_v7  ;;  %v6602_v33 = vld [vmem:[%s15394_s1 + $0x298] sm:$0xf0]  ;;  %v9559_v42 = vld [vmem:[%s15394_s1 + $0x4ac] sm:$0xf] }
 0x260   :  { %5801 = vmatpush.bf16.msrb.mxu1 %v6653_v44  ;;  %9408 = vmatmul.msk.bf16.vlgmr.msra.gmra.mxu2 %vm4797_vm0, %v10199_v30  ;;  %v5538_v44 = vadd.f32 %v5537_v23, %v5525_v32  ;;  %v5526_v34 = vpop.f32.mrf.mxu3  ;;  %v6605_v45 = vor.u32 %v9491_v29, %v6602_v33  ;;  %v9451_v32 = vld [vmem:[%s15394_s1 + $0x14c] sm:$0xf]  ;;  %v6890_v29 = vld [vmem:[%s15394_s1 + $0x4d8] sm:$0xf0] }
 0x261   :  { %5814 = vmatpush.bf16.msrb.mxu2 %v6781_v39  ;;  %v5550_v39 = vpop.f32.mrf.mxu1  ;;  %v6893_v40 = vor.u32 %v9563_v28, %v6890_v29  ;;  %v6682_v41 = vld [vmem:[%s15394_s1 + $0x338] sm:$0xf0]  ;;  %v9475_v54 = vld [vmem:[%s15394_s1 + $0x20c] sm:$0xf] }
 0x262   :  { %5779 = vmatpush.bf16.msra.mxu3 %v6333_v50  ;;  %v6733_v50 = vor.u32 %v9523_v31, %v6730_v37  ;;  %v9447_v37 = vld [vmem:[%s15394_s1 + $0x12c] sm:$0xf]  ;;  %v6874_v34 = vld [vmem:[%s15394_s1 + $0x4b8] sm:$0xf0] }
 0x263   :  { %5789 = vmatpush.bf16.msrb.mxu0 %v6509_v51  ;;  %v14094_v51 = vadd.f32 %v5550_v39, %v5538_v44  ;;  %v6426_v44 = vld [vmem:[%s15394_s1 + $0x138] sm:$0xf0]  ;;  %v9479_v39 = vld [vmem:[%s15394_s1 + $0x22c] sm:$0xf] }
 0x264   :  { %5802 = vmatpush.bf16.msrb.mxu1 %v6637_v55  ;;  %v9519_v55 = vld [vmem:[%s15394_s1 + $0x36c] sm:$0xf]  ;;  %v6410_v52 = vld [vmem:[%s15394_s1 + $0x118] sm:$0xf0] }
 0x265   :  { %5815 = vmatpush.bf16.msrb.mxu2 %v6765_v56  ;;  %v6714_v56 = vld [vmem:[%s15394_s1 + $0x378] sm:$0xf0]  ;;  %v9555_v58 = vld [vmem:[%s15394_s1 + $0x48c] sm:$0xf] }
 0x266   :  { %5780 = vmatpush.bf16.msra.mxu3 %v6317_v10  ;;  %v6717_v63 = vor.u32 %v9519_v55, %v6714_v56  ;;  %v6442_v10 = vld [vmem:[%s15394_s1 + $0x158] sm:$0xf0]  ;;  %v5539_v27 = vpop.f32.mrf.mxu0  ;;  %v9507_v55 = vld [vmem:[%s15394_s1 + $0x30c] sm:$0xf]  ;;  %v6877_v56 = vor.u32 %v9559_v42, %v6874_v34 }
 0x267   :  { %5790 = vmatpush.bf16.msrb.mxu0 %v6493_v3  ;;  %v9483_v3 = vld [vmem:[%s15394_s1 + $0x24c] sm:$0xf]  ;;  %v6445_v23 = vor.u32 %v9451_v32, %v6442_v10  ;;  %v6666_v57 = vld [vmem:[%s15394_s1 + $0x318] sm:$0xf0] }
 0x268   :  { %5803 = vmatpush.bf16.msrb.mxu1 %v6621_v24  ;;  %v9515_v24 = vld [vmem:[%s15394_s1 + $0x34c] sm:$0xf]  ;;  %v6573_v33 = vor.u32 %v9483_v3, %v6570_v11  ;;  %v7162_v10 = vld [vmem:[%s15394_s1 + $0x6f8] sm:$0xf0] }
 0x269   :  { %5816 = vmatpush.bf16.msrb.mxu2 %v6749_v25  ;;  %v6698_v25 = vld [vmem:[%s15394_s1 + $0x358] sm:$0xf0]  ;;  %v5552_v30 = vpop.f32.mrf.mxu1  ;;  %v9663_v3 = vld [vmem:[%s15394_s1 + $0x7ec] sm:$0xf] }
 0x26a   :  { %5781 = vmatpush.bf16.msra.mxu3 %v6301_v38  ;;  %v6701_v31 = vor.u32 %v9515_v24, %v6698_v25  ;;  %v6554_v38 = vld [vmem:[%s15394_s1 + $0x238] sm:$0xf0]  ;;  %v6669_v24 = vor.u32 %v9507_v55, %v6666_v57  ;;  %v9551_v28 = vld [vmem:[%s15394_s1 + $0x46c] sm:$0xf] }
 0x26b   :  { %5791 = vmatpush.bf16.msrb.mxu0 %v6477_v36  ;;  %v9511_v36 = vld [vmem:[%s15394_s1 + $0x32c] sm:$0xf]  ;;  %v6557_v53 = vor.u32 %v9479_v39, %v6554_v38  ;;  %v6842_v29 = vld [vmem:[%s15394_s1 + $0x478] sm:$0xf0] }
 0x26c   :  { %5804 = vmatpush.bf16.msrb.mxu1 %v6605_v45  ;;  %v6429_v45 = vor.u32 %v9447_v37, %v6426_v44  ;;  %v6685_v43 = vor.u32 %v9511_v36, %v6682_v41  ;;  %v9627_v37 = vld [vmem:[%s15394_s1 + $0x6cc] sm:$0xf]  ;;  %v7146_v44 = vld [vmem:[%s15394_s1 + $0x6d8] sm:$0xf0]  ;;  %v6845_v36 = vor.u32 %v9551_v28, %v6842_v29 }
 0x26d   :  { %5817 = vmatpush.bf16.msrb.mxu2 %v6733_v50  ;;  %v9443_v50 = vld [vmem:[%s15394_s1 + $0x10c] sm:$0xf]  ;;  %v7130_v55 = vld [vmem:[%s15394_s1 + $0x6b8] sm:$0xf0] }
 0x26e   :  { %5782 = vmatpush.bf16.msra.mxu3 %v6285_v59  ;;  %v6858_v59 = vld [vmem:[%s15394_s1 + $0x498] sm:$0xf0]  ;;  %v6413_v32 = vor.u32 %v9443_v50, %v6410_v52  ;;  %v9659_v39 = vld [vmem:[%s15394_s1 + $0x7cc] sm:$0xf]  ;;  %v7149_v52 = vor.u32 %v9627_v37, %v7146_v44 }
 0x26f   :  { %5792 = vmatpush.bf16.msrb.mxu0 %v6461_v61  ;;  %v9599_v61 = vld [vmem:[%s15394_s1 + $0x5ec] sm:$0xf]  ;;  %v6861_v25 = vor.u32 %v9555_v58, %v6858_v59  ;;  %v6826_v50 = vld [vmem:[%s15394_s1 + $0x458] sm:$0xf0] }
 0x270   :  { %5805 = vmatpush.bf16.msrb.mxu1 %v6589_v62  ;;  %v7034_v62 = vld [vmem:[%s15394_s1 + $0x5f8] sm:$0xf0] }
 0x271   :  { %5818 = vmatpush.bf16.msrb.mxu2 %v6717_v63  ;;  %5783 = vmatmul.bf16.vlgmr.msra.gmra.mxu3 %v10564_v21  ;;  %v6538_v21 = vld [vmem:[%s15394_s1 + $0x218] sm:$0xf0]  ;;  %v9631_v63 = vld [vmem:[%s15394_s1 + $0x6ec] sm:$0xf]  ;;  %v7037_v27 = vor.u32 %v9599_v61, %v7034_v62 }
 0x272   :  { %5827 = vmatpush.bf16.msrb.mxu3 %v6909_v35  ;;  %v7290_v35 = vld [vmem:[%s15394_s1 + $0x7f8] sm:$0xf0]  ;;  %v6541_v11 = vor.u32 %v9475_v54, %v6538_v21  ;;  %v7165_v30 = vor.u32 %v9631_v63, %v7162_v10  ;;  %v9623_v54 = vld [vmem:[%s15394_s1 + $0x6ac] sm:$0xf] }
 0x273   :  { %5793 = vmatpush.bf16.msrb.mxu0 %v6445_v23  ;;  %v7293_v23 = vor.u32 %v9663_v3, %v7290_v35  ;;  %v5563_v38 = vpop.f32.mrf.mxu2  ;;  %v7258_v57 = vld [vmem:[%s15394_s1 + $0x7b8] sm:$0xf0]  ;;  %v9543_v61 = vld [vmem:[%s15394_s1 + $0x42c] sm:$0xf]  ;;  %v7133_v63 = vor.u32 %v9623_v54, %v7130_v55 }
 0x274   :  { %5806 = vmatpush.bf16.msrb.mxu1 %v6573_v33  ;;  %v9595_v33 = vld [vmem:[%s15394_s1 + $0x5cc] sm:$0xf]  ;;  %v5564_v41 = vadd.f32 %v5563_v38, %v14094_v51  ;;  %v5576_v34 = vpop.f32.mrf.mxu3  ;;  %v7002_v51 = vld [vmem:[%s15394_s1 + $0x5b8] sm:$0xf0] }
 0x275   :  { %5819 = vmatpush.bf16.msrb.mxu2 %v6701_v31  ;;  %v7018_v31 = vld [vmem:[%s15394_s1 + $0x5d8] sm:$0xf0]  ;;  %v9651_v35 = vld [vmem:[%s15394_s1 + $0x78c] sm:$0xf] }
 0x276   :  { %5828 = vmatpush.bf16.msrb.mxu3 %v6893_v40  ;;  %v7274_v40 = vld [vmem:[%s15394_s1 + $0x7d8] sm:$0xf0]  ;;  %v7021_v42 = vor.u32 %v9595_v33, %v7018_v31  ;;  %v5577_v21 = vadd.f32 %v5576_v34, %v5564_v41  ;;  %v9615_v38 = vld [vmem:[%s15394_s1 + $0x66c] sm:$0xf] }
 0x277   :  { %5794 = vmatpush.bf16.msrb.mxu0 %v6429_v45  ;;  %v9547_v45 = vld [vmem:[%s15394_s1 + $0x44c] sm:$0xf]  ;;  %v6810_v62 = vld [vmem:[%s15394_s1 + $0x438] sm:$0xf0] }
 0x278   :  { %5807 = vmatpush.bf16.msrb.mxu1 %v6557_v53  ;;  %v7277_v53 = vor.u32 %v9659_v39, %v7274_v40  ;;  %v6829_v58 = vor.u32 %v9547_v45, %v6826_v50  ;;  %v7114_v3 = vld [vmem:[%s15394_s1 + $0x698] sm:$0xf0]  ;;  %v6813_v28 = vor.u32 %v9543_v61, %v6810_v62  ;;  %v9583_v39 = vld [vmem:[%s15394_s1 + $0x56c] sm:$0xf] }
 0x279   :  { %5820 = vmatpush.bf16.msrb.mxu2 %v6685_v43  ;;  %v9591_v43 = vld [vmem:[%s15394_s1 + $0x5ac] sm:$0xf]  ;;  %v6970_v40 = vld [vmem:[%s15394_s1 + $0x578] sm:$0xf0] }
 0x27a   :  { %5829 = vmatpush.bf16.msrb.mxu3 %v6877_v56  ;;  %v9655_v56 = vld [vmem:[%s15394_s1 + $0x7ac] sm:$0xf]  ;;  %v7005_v59 = vor.u32 %v9591_v43, %v7002_v51  ;;  %v7418_v45 = vld [vmem:[%s15394_s1 + $0x8f8] sm:$0xf0] }
 0x27b   :  { %5795 = vmatpush.bf16.msrb.mxu0 %v6413_v32  ;;  %v9619_v32 = vld [vmem:[%s15394_s1 + $0x68c] sm:$0xf]  ;;  %v5589_v10 = vpop.f32.mrf.mxu0  ;;  %v6954_v54 = vld [vmem:[%s15394_s1 + $0x558] sm:$0xf0] }
 0x27c   :  { %5808 = vmatpush.bf16.msrb.mxu1 %v6541_v11  ;;  %v7242_v11 = vld [vmem:[%s15394_s1 + $0x798] sm:$0xf0]  ;;  %v5578_v33 = vpop.f32.mrf.mxu3  ;;  %v7117_v31 = vor.u32 %v9619_v32, %v7114_v3  ;;  %v9647_v41 = vld [vmem:[%s15394_s1 + $0x76c] sm:$0xf] }
 0x27d   :  { %5821 = vmatpush.bf16.msrb.mxu2 %v6669_v24  ;;  %v5590_v24 = vadd.f32 %v5589_v10, %v5577_v21  ;;  %v7245_v37 = vor.u32 %v9651_v35, %v7242_v11  ;;  %v9695_v34 = vld [vmem:[%s15394_s1 + $0x8ec] sm:$0xf]  ;;  %v7402_v62 = vld [vmem:[%s15394_s1 + $0x8d8] sm:$0xf0] }
 0x27e   :  { %5830 = vmatpush.bf16.msrb.mxu3 %v6861_v25  ;;  %5796 = vmatmul.bf16.vlgmr.msrb.gmra.mxu0 %v10575_v26  ;;  %v6986_v26 = vld [vmem:[%s15394_s1 + $0x598] sm:$0xf0]  ;;  %v5602_v25 = vpop.f32.mrf.mxu1  ;;  %v9579_v51 = vld [vmem:[%s15394_s1 + $0x54c] sm:$0xf]  ;;  %v7421_v55 = vor.u32 %v9695_v34, %v7418_v45 }
 0x27f   :  { %5840 = vmatpush.bf16.msra.mxu0 %v7037_v27  ;;  %5809 = vmatmul.bf16.vlgmr.msrb.gmra.mxu1 %v10562_v20  ;;  %v9587_v20 = vld [vmem:[%s15394_s1 + $0x58c] sm:$0xf]  ;;  %v5565_v27 = vpop.f32.mrf.mxu2  ;;  %v14293_v44 = vadd.f32 %v5602_v25, %v5590_v24  ;;  %v6938_v10 = vld [vmem:[%s15394_s1 + $0x538] sm:$0xf0] }
 0x280   :  { %5853 = vmatpush.bf16.msra.mxu1 %v7165_v30  ;;  %5822 = vmatmul.bf16.vlgmr.msrb.gmra.mxu2 %v10566_v22  ;;  %v7261_v22 = vor.u32 %v9655_v56, %v7258_v57  ;;  %v6989_v29 = vor.u32 %v9587_v20, %v6986_v26  ;;  %v9539_v30 = vld [vmem:[%s15394_s1 + $0x40c] sm:$0xf]  ;;  %v7082_v56 = vld [vmem:[%s15394_s1 + $0x658] sm:$0xf0] }
 0x281   :  { %5866 = vmatpush.bf16.msra.mxu2 %v7293_v23  ;;  %v6794_v23 = vld [vmem:[%s15394_s1 + $0x418] sm:$0xf0]  ;;  %v9611_v21 = vld [vmem:[%s15394_s1 + $0x64c] sm:$0xf] }
 0x282   :  { %5831 = vmatpush.bf16.msrb.mxu3 %v6845_v36  ;;  %v7098_v36 = vld [vmem:[%s15394_s1 + $0x678] sm:$0xf0]  ;;  %v6797_v50 = vor.u32 %v9539_v30, %v6794_v23  ;;  %v9643_v57 = vld [vmem:[%s15394_s1 + $0x74c] sm:$0xf]  ;;  %v7085_v20 = vor.u32 %v9611_v21, %v7082_v56 }
 0x283   :  { %5841 = vmatpush.bf16.msra.mxu0 %v7021_v42  ;;  %v7226_v42 = vld [vmem:[%s15394_s1 + $0x778] sm:$0xf0]  ;;  %v9691_v61 = vld [vmem:[%s15394_s1 + $0x8cc] sm:$0xf] }
 0x284   :  { %5854 = vmatpush.bf16.msra.mxu1 %v7149_v52  ;;  %v6973_v52 = vor.u32 %v9583_v39, %v6970_v40  ;;  %v7229_v43 = vor.u32 %v9647_v41, %v7226_v42  ;;  %v9575_v32 = vld [vmem:[%s15394_s1 + $0x52c] sm:$0xf]  ;;  %v7405_v35 = vor.u32 %v9691_v61, %v7402_v62  ;;  %v7066_v11 = vld [vmem:[%s15394_s1 + $0x638] sm:$0xf0] }
 0x285   :  { %5867 = vmatpush.bf16.msra.mxu2 %v7277_v53  ;;  %v7101_v53 = vor.u32 %v9615_v38, %v7098_v36  ;;  %v9607_v3 = vld [vmem:[%s15394_s1 + $0x62c] sm:$0xf]  ;;  %v7194_v25 = vld [vmem:[%s15394_s1 + $0x738] sm:$0xf0] }
 0x286   :  { %5832 = vmatpush.bf16.msrb.mxu3 %v6829_v58  ;;  %v7210_v58 = vld [vmem:[%s15394_s1 + $0x758] sm:$0xf0]  ;;  %v9639_v24 = vld [vmem:[%s15394_s1 + $0x72c] sm:$0xf] }
 0x287   :  { %5842 = vmatpush.bf16.msra.mxu0 %v7005_v59  ;;  %v5591_v59 = vpop.f32.mrf.mxu0  ;;  %v7213_v26 = vor.u32 %v9643_v57, %v7210_v58  ;;  %v9687_v27 = vld [vmem:[%s15394_s1 + $0x8ac] sm:$0xf]  ;;  %v6922_v23 = vld [vmem:[%s15394_s1 + $0x518] sm:$0xf0]  ;;  %v7197_v33 = vor.u32 %v9639_v24, %v7194_v25 }
 0x288   :  { %5855 = vmatpush.bf16.msra.mxu1 %v7133_v63  ;;  %v5604_v63 = vpop.f32.mrf.mxu1  ;;  %v9571_v30 = vld [vmem:[%s15394_s1 + $0x50c] sm:$0xf]  ;;  %v7178_v38 = vld [vmem:[%s15394_s1 + $0x718] sm:$0xf0] }
 0x289   :  { %5868 = vmatpush.bf16.msra.mxu2 %v7261_v22  ;;  %v6957_v22 = vor.u32 %v9579_v51, %v6954_v54  ;;  %v9635_v39 = vld [vmem:[%s15394_s1 + $0x70c] sm:$0xf]  ;;  %v7370_v41 = vld [vmem:[%s15394_s1 + $0x898] sm:$0xf0] }
 0x28a   :  { %5833 = vmatpush.bf16.msrb.mxu3 %v6813_v28  ;;  %v7386_v28 = vld [vmem:[%s15394_s1 + $0x8b8] sm:$0xf0]  ;;  %v9683_v36 = vld [vmem:[%s15394_s1 + $0x88c] sm:$0xf]  ;;  %v7181_v54 = vor.u32 %v9635_v39, %v7178_v38 }
 0x28b   :  { %5843 = vmatpush.bf16.msra.mxu0 %v6989_v29  ;;  %v6941_v29 = vor.u32 %v9575_v32, %v6938_v10  ;;  %v7389_v40 = vor.u32 %v9687_v27, %v7386_v28  ;;  %v9727_v42 = vld [vmem:[%s15394_s1 + $0x9ec] sm:$0xf]  ;;  %v7546_v34 = vld [vmem:[%s15394_s1 + $0x9f8] sm:$0xf0]  ;;  %v7373_v21 = vor.u32 %v9683_v36, %v7370_v41 }
 0x28c   :  { %5856 = vmatpush.bf16.msra.mxu1 %v7117_v31  ;;  %v9603_v31 = vld [vmem:[%s15394_s1 + $0x60c] sm:$0xf]  ;;  %v7354_v57 = vld [vmem:[%s15394_s1 + $0x878] sm:$0xf0] }
 0x28d   :  { %5869 = vmatpush.bf16.msra.mxu2 %v7245_v37  ;;  %v7050_v37 = vld [vmem:[%s15394_s1 + $0x618] sm:$0xf0]  ;;  %v9759_v45 = vld [vmem:[%s15394_s1 + $0xaec] sm:$0xf] }
 0x28e   :  { %5834 = vmatpush.bf16.msrb.mxu3 %v6797_v50  ;;  %v6925_v50 = vor.u32 %v9571_v30, %v6922_v23  ;;  %v7053_v51 = vor.u32 %v9603_v31, %v7050_v37  ;;  %v9679_v56 = vld [vmem:[%s15394_s1 + $0x86c] sm:$0xf]  ;;  %v7530_v62 = vld [vmem:[%s15394_s1 + $0x9d8] sm:$0xf0] }
 0x28f   :  { %5844 = vmatpush.bf16.msra.mxu0 %v6973_v52  ;;  %v7674_v52 = vld [vmem:[%s15394_s1 + $0xaf8] sm:$0xf0]  ;;  %v9723_v61 = vld [vmem:[%s15394_s1 + $0x9cc] sm:$0xf]  ;;  %v7357_v10 = vor.u32 %v9679_v56, %v7354_v57 }
 0x290   :  { %5857 = vmatpush.bf16.msra.mxu1 %v7101_v53  ;;  %v9791_v53 = vld [vmem:[%s15394_s1 + $0xbec] sm:$0xf]  ;;  %v7677_v58 = vor.u32 %v9759_v45, %v7674_v52  ;;  %v7338_v25 = vld [vmem:[%s15394_s1 + $0x858] sm:$0xf0] }
 0x291   :  { %5870 = vmatpush.bf16.msra.mxu2 %v7229_v43  ;;  %5835 = vmatmul.bf16.vlgmr.msrb.gmra.mxu3 %v10657_v0  ;;  %v7069_v0 = vor.u32 %v9607_v3, %v7066_v11  ;;  %v7802_v43 = vld [vmem:[%s15394_s1 + $0xbf8] sm:$0xf0]  ;;  %v9755_v63 = vld [vmem:[%s15394_s1 + $0xacc] sm:$0xf] }
 0x292   :  { %5879 = vmatpush.bf16.msra.mxu3 %v7421_v55  ;;  %v7549_v55 = vor.u32 %v9727_v42, %v7546_v34  ;;  %v7805_v59 = vor.u32 %v9791_v53, %v7802_v43  ;;  %v9675_v24 = vld [vmem:[%s15394_s1 + $0x84c] sm:$0xf]  ;;  %v7770_v31 = vld [vmem:[%s15394_s1 + $0xbb8] sm:$0xf0] }
 0x293   :  { %5845 = vmatpush.bf16.msra.mxu0 %v6957_v22  ;;  %v7658_v22 = vld [vmem:[%s15394_s1 + $0xad8] sm:$0xf0]  ;;  %v5615_v32 = vpop.f32.mrf.mxu2  ;;  %v9751_v30 = vld [vmem:[%s15394_s1 + $0xaac] sm:$0xf] }
 0x294   :  { %5858 = vmatpush.bf16.msra.mxu1 %v7085_v20  ;;  %v9787_v20 = vld [vmem:[%s15394_s1 + $0xbcc] sm:$0xf]  ;;  %v5616_v3 = vadd.f32 %v5615_v32, %v14293_v44  ;;  %v5628_v11 = vpop.f32.mrf.mxu3  ;;  %v7661_v27 = vor.u32 %v9755_v63, %v7658_v22  ;;  %v7514_v44 = vld [vmem:[%s15394_s1 + $0x9b8] sm:$0xf0] }
 0x295   :  { %5871 = vmatpush.bf16.msra.mxu2 %v7213_v26  ;;  %v7786_v26 = vld [vmem:[%s15394_s1 + $0xbd8] sm:$0xf0]  ;;  %v9747_v41 = vld [vmem:[%s15394_s1 + $0xa8c] sm:$0xf] }
 0x296   :  { %5880 = vmatpush.bf16.msra.mxu3 %v7405_v35  ;;  %v7533_v35 = vor.u32 %v9723_v61, %v7530_v62  ;;  %v7789_v28 = vor.u32 %v9787_v20, %v7786_v26  ;;  %v5629_v23 = vadd.f32 %v5628_v11, %v5616_v3  ;;  %v7322_v39 = vld [vmem:[%s15394_s1 + $0x838] sm:$0xf0]  ;;  %v9779_v45 = vld [vmem:[%s15394_s1 + $0xb8c] sm:$0xf] }
 0x297   :  { %5846 = vmatpush.bf16.msra.mxu0 %v6941_v29  ;;  %v9719_v29 = vld [vmem:[%s15394_s1 + $0x9ac] sm:$0xf]  ;;  %v7498_v36 = vld [vmem:[%s15394_s1 + $0x998] sm:$0xf0] }
 0x298   :  { %5859 = vmatpush.bf16.msra.mxu1 %v7069_v0  ;;  %v7642_v0 = vld [vmem:[%s15394_s1 + $0xab8] sm:$0xf0]  ;;  %v7517_v37 = vor.u32 %v9719_v29, %v7514_v44  ;;  %v9711_v61 = vld [vmem:[%s15394_s1 + $0x96c] sm:$0xf] }
 0x299   :  { %5872 = vmatpush.bf16.msra.mxu2 %v7197_v33  ;;  %v9783_v33 = vld [vmem:[%s15394_s1 + $0xbac] sm:$0xf]  ;;  %v7626_v34 = vld [vmem:[%s15394_s1 + $0xa98] sm:$0xf0] }
 0x29a   :  { %5881 = vmatpush.bf16.msra.mxu3 %v7389_v40  ;;  %v7645_v40 = vor.u32 %v9751_v30, %v7642_v0  ;;  %v7773_v38 = vor.u32 %v9783_v33, %v7770_v31  ;;  %v7629_v57 = vor.u32 %v9747_v41, %v7626_v34  ;;  %v7482_v62 = vld [vmem:[%s15394_s1 + $0x978] sm:$0xf0]  ;;  %v9743_v63 = vld [vmem:[%s15394_s1 + $0xa6c] sm:$0xf] }
 0x29b   :  { %5847 = vmatpush.bf16.msra.mxu0 %v6925_v50  ;;  %v5641_v42 = vpop.f32.mrf.mxu0  ;;  %v7754_v50 = vld [vmem:[%s15394_s1 + $0xb98] sm:$0xf0]  ;;  %v5617_v43 = vpop.f32.mrf.mxu2  ;;  %v9775_v20 = vld [vmem:[%s15394_s1 + $0xb6c] sm:$0xf] }
 0x29c   :  { %5860 = vmatpush.bf16.msra.mxu1 %v7053_v51  ;;  %v5642_v52 = vadd.f32 %v5641_v42, %v5629_v23  ;;  %v5654_v53 = vpop.f32.mrf.mxu1  ;;  %v5630_v56 = vpop.f32.mrf.mxu3  ;;  %v7610_v22 = vld [vmem:[%s15394_s1 + $0xa78] sm:$0xf0]  ;;  %v9823_v32 = vld [vmem:[%s15394_s1 + $0xcec] sm:$0xf] }
 0x29d   :  { %5873 = vmatpush.bf16.msra.mxu2 %v7181_v54  ;;  %v7738_v26 = vld [vmem:[%s15394_s1 + $0xb78] sm:$0xf0]  ;;  %v7613_v11 = vor.u32 %v9743_v63, %v7610_v22  ;;  %v9771_v30 = vld [vmem:[%s15394_s1 + $0xb4c] sm:$0xf] }
 0x29e   :  { %5882 = vmatpush.bf16.msra.mxu3 %v7373_v21  ;;  %5848 = vmatmul.bf16.vlgmr.msra.gmra.mxu0 %v10661_v2  ;;  %v9671_v2 = vld [vmem:[%s15394_s1 + $0x82c] sm:$0xf]  ;;  %v7594_v44 = vld [vmem:[%s15394_s1 + $0xa58] sm:$0xf0] }
 0x29f   :  { %5892 = vmatpush.bf16.msrb.mxu0 %v7549_v55  ;;  %5861 = vmatmul.bf16.vlgmr.msra.gmra.mxu1 %v10652_v60  ;;  %v9715_v60 = vld [vmem:[%s15394_s1 + $0x98c] sm:$0xf]  ;;  %v7325_v51 = vor.u32 %v9671_v2, %v7322_v39  ;;  %v7306_v55 = vld [vmem:[%s15394_s1 + $0x818] sm:$0xf0] }
 0x2a0   :  { %5905 = vmatpush.bf16.msrb.mxu1 %v7677_v58  ;;  %5874 = vmatmul.bf16.vlgmr.msra.gmra.mxu2 %v10659_v1  ;;  %v7341_v1 = vor.u32 %v9675_v24, %v7338_v25  ;;  %v7501_v54 = vor.u32 %v9715_v60, %v7498_v36  ;;  %v9667_v21 = vld [vmem:[%s15394_s1 + $0x80c] sm:$0xf]  ;;  %v7757_v58 = vor.u32 %v9779_v45, %v7754_v50  ;;  %v7722_v23 = vld [vmem:[%s15394_s1 + $0xb58] sm:$0xf0] }
 0x2a1   :  { %5918 = vmatpush.bf16.msrb.mxu2 %v7805_v59  ;;  %v14492_v59 = vadd.f32 %v5654_v53, %v5642_v52  ;;  %v7309_v3 = vor.u32 %v9667_v21, %v7306_v55  ;;  %v7741_v24 = vor.u32 %v9775_v20, %v7738_v26  ;;  %v9707_v25 = vld [vmem:[%s15394_s1 + $0x94c] sm:$0xf]  ;;  %v7914_v31 = vld [vmem:[%s15394_s1 + $0xcd8] sm:$0xf0]  ;;  %v7725_v39 = vor.u32 %v9771_v30, %v7722_v23 }
 0x2a2   :  { %5883 = vmatpush.bf16.msra.mxu3 %v7357_v10  ;;  %v7930_v10 = vld [vmem:[%s15394_s1 + $0xcf8] sm:$0xf0]  ;;  %v9819_v33 = vld [vmem:[%s15394_s1 + $0xccc] sm:$0xf] }
 0x2a3   :  { %5893 = vmatpush.bf16.msrb.mxu0 %v7533_v35  ;;  %v7485_v35 = vor.u32 %v9711_v61, %v7482_v62  ;;  %v7933_v29 = vor.u32 %v9823_v32, %v7930_v10  ;;  %v5643_v0 = vpop.f32.mrf.mxu0  ;;  %v9735_v60 = vld [vmem:[%s15394_s1 + $0xa2c] sm:$0xf]  ;;  %v7917_v36 = vor.u32 %v9819_v33, %v7914_v31  ;;  %v7578_v41 = vld [vmem:[%s15394_s1 + $0xa38] sm:$0xf0] }
 0x2a4   :  { %5906 = vmatpush.bf16.msrb.mxu1 %v7661_v27  ;;  %v7466_v27 = vld [vmem:[%s15394_s1 + $0x958] sm:$0xf0]  ;;  %v9767_v42 = vld [vmem:[%s15394_s1 + $0xb2c] sm:$0xf] }
 0x2a5   :  { %5919 = vmatpush.bf16.msrb.mxu2 %v7789_v28  ;;  %v9739_v28 = vld [vmem:[%s15394_s1 + $0xa4c] sm:$0xf]  ;;  %v7706_v34 = vld [vmem:[%s15394_s1 + $0xb38] sm:$0xf0] }
 0x2a6   :  { %5884 = vmatpush.bf16.msra.mxu3 %v7341_v1  ;;  %v5656_v1 = vpop.f32.mrf.mxu1  ;;  %v7597_v2 = vor.u32 %v9739_v28, %v7594_v44  ;;  %v9815_v45 = vld [vmem:[%s15394_s1 + $0xcac] sm:$0xf]  ;;  %v7898_v50 = vld [vmem:[%s15394_s1 + $0xcb8] sm:$0xf0] }
 0x2a7   :  { %5894 = vmatpush.bf16.msrb.mxu0 %v7517_v37  ;;  %v7469_v37 = vor.u32 %v9707_v25, %v7466_v27  ;;  %v9699_v53 = vld [vmem:[%s15394_s1 + $0x90c] sm:$0xf]  ;;  %v7434_v43 = vld [vmem:[%s15394_s1 + $0x918] sm:$0xf0]  ;;  %v7901_v56 = vor.u32 %v9815_v45, %v7898_v50 }
 0x2a8   :  { %5907 = vmatpush.bf16.msrb.mxu1 %v7645_v40  ;;  %v9703_v40 = vld [vmem:[%s15394_s1 + $0x92c] sm:$0xf]  ;;  %v7562_v21 = vld [vmem:[%s15394_s1 + $0xa18] sm:$0xf0]  ;;  %v7437_v20 = vor.u32 %v9699_v53, %v7434_v43 }
 0x2a9   :  { %5920 = vmatpush.bf16.msrb.mxu2 %v7773_v38  ;;  %v7450_v38 = vld [vmem:[%s15394_s1 + $0x938] sm:$0xf0]  ;;  %v9763_v55 = vld [vmem:[%s15394_s1 + $0xb0c] sm:$0xf] }
 0x2aa   :  { %5885 = vmatpush.bf16.msra.mxu3 %v7325_v51  ;;  %v7453_v52 = vor.u32 %v9703_v40, %v7450_v38  ;;  %v7709_v51 = vor.u32 %v9767_v42, %v7706_v34  ;;  %v7882_v61 = vld [vmem:[%s15394_s1 + $0xc98] sm:$0xf0]  ;;  %v9855_v62 = vld [vmem:[%s15394_s1 + $0xdec] sm:$0xf] }
 0x2ab   :  { %5895 = vmatpush.bf16.msrb.mxu0 %v7501_v54  ;;  %v9731_v54 = vld [vmem:[%s15394_s1 + $0xa0c] sm:$0xf]  ;;  %v8058_v63 = vld [vmem:[%s15394_s1 + $0xdf8] sm:$0xf0] }
 0x2ac   :  { %5908 = vmatpush.bf16.msrb.mxu1 %v7629_v57  ;;  %v7690_v57 = vld [vmem:[%s15394_s1 + $0xb18] sm:$0xf0]  ;;  %v9887_v22 = vld [vmem:[%s15394_s1 + $0xeec] sm:$0xf] }
 0x2ad   :  { %5921 = vmatpush.bf16.msrb.mxu2 %v7757_v58  ;;  %v9811_v58 = vld [vmem:[%s15394_s1 + $0xc8c] sm:$0xf]  ;;  %v8186_v26 = vld [vmem:[%s15394_s1 + $0xef8] sm:$0xf0] }
 0x2ae   :  { %5886 = vmatpush.bf16.msra.mxu3 %v7309_v3  ;;  %v9919_v32 = vld [vmem:[%s15394_s1 + $0xfec] sm:$0xf]  ;;  %v8314_v10 = vld [vmem:[%s15394_s1 + $0xff8] sm:$0xf0]  ;;  %v7565_v3 = vor.u32 %v9731_v54, %v7562_v21  ;;  %v8189_v28 = vor.u32 %v9887_v22, %v8186_v26 }
 0x2af   :  { %5896 = vmatpush.bf16.msrb.mxu0 %v7485_v35  ;;  %v7693_v35 = vor.u32 %v9763_v55, %v7690_v57  ;;  %v9807_v25 = vld [vmem:[%s15394_s1 + $0xc6c] sm:$0xf]  ;;  %v7866_v27 = vld [vmem:[%s15394_s1 + $0xc78] sm:$0xf0] }
 0x2b0   :  { %5909 = vmatpush.bf16.msrb.mxu1 %v7613_v11  ;;  %v7885_v11 = vor.u32 %v9811_v58, %v7882_v61  ;;  %v9851_v44 = vld [vmem:[%s15394_s1 + $0xdcc] sm:$0xf]  ;;  %v8042_v30 = vld [vmem:[%s15394_s1 + $0xdd8] sm:$0xf0] }
 0x2b1   :  { %5922 = vmatpush.bf16.msrb.mxu2 %v7741_v24  ;;  %5887 = vmatmul.bf16.vlgmr.msra.gmra.mxu3 %v10907_v12  ;;  %v7581_v12 = vor.u32 %v9735_v60, %v7578_v41  ;;  %v8061_v24 = vor.u32 %v9855_v62, %v8058_v63  ;;  %v9883_v23 = vld [vmem:[%s15394_s1 + $0xecc] sm:$0xf]  ;;  %v8170_v0 = vld [vmem:[%s15394_s1 + $0xed8] sm:$0xf0] }
 0x2b2   :  { %5931 = vmatpush.bf16.msrb.mxu3 %v7933_v29  ;;  %v8317_v29 = vor.u32 %v9919_v32, %v8314_v10  ;;  %v9915_v33 = vld [vmem:[%s15394_s1 + $0xfcc] sm:$0xf]  ;;  %v8298_v31 = vld [vmem:[%s15394_s1 + $0xfd8] sm:$0xf0] }
 0x2b3   :  { %5897 = vmatpush.bf16.msrb.mxu0 %v7469_v37  ;;  %v5667_v1 = vpop.f32.mrf.mxu2  ;;  %v7869_v37 = vor.u32 %v9807_v25, %v7866_v27  ;;  %v9803_v38 = vld [vmem:[%s15394_s1 + $0xc4c] sm:$0xf]  ;;  %v7850_v60 = vld [vmem:[%s15394_s1 + $0xc58] sm:$0xf0]  ;;  %v8301_v41 = vor.u32 %v9915_v33, %v8298_v31 }
 0x2b4   :  { %5910 = vmatpush.bf16.msrb.mxu1 %v7597_v2  ;;  %v5668_v2 = vadd.f32 %v5667_v1, %v14492_v59  ;;  %v5680_v40 = vpop.f32.mrf.mxu3  ;;  %v9847_v42 = vld [vmem:[%s15394_s1 + $0xdac] sm:$0xf]  ;;  %v8026_v59 = vld [vmem:[%s15394_s1 + $0xdb8] sm:$0xf0] }
 0x2b5   :  { %5923 = vmatpush.bf16.msrb.mxu2 %v7725_v39  ;;  %v8045_v39 = vor.u32 %v9851_v44, %v8042_v30  ;;  %v9879_v34 = vld [vmem:[%s15394_s1 + $0xeac] sm:$0xf]  ;;  %v8154_v50 = vld [vmem:[%s15394_s1 + $0xeb8] sm:$0xf0]  ;;  %v8029_v43 = vor.u32 %v9847_v42, %v8026_v59 }
 0x2b6   :  { %5932 = vmatpush.bf16.msrb.mxu3 %v7917_v36  ;;  %v8173_v36 = vor.u32 %v9883_v23, %v8170_v0  ;;  %v5681_v45 = vadd.f32 %v5680_v40, %v5668_v2  ;;  %v8282_v53 = vld [vmem:[%s15394_s1 + $0xfb8] sm:$0xf0]  ;;  %v9875_v55 = vld [vmem:[%s15394_s1 + $0xe8c] sm:$0xf] }
 0x2b7   :  { %5898 = vmatpush.bf16.msrb.mxu0 %v7453_v52  ;;  %v9911_v52 = vld [vmem:[%s15394_s1 + $0xfac] sm:$0xf]  ;;  %v8010_v21 = vld [vmem:[%s15394_s1 + $0xd98] sm:$0xf0] }
 0x2b8   :  { %5911 = vmatpush.bf16.msrb.mxu1 %v7581_v12  ;;  %v7834_v12 = vld [vmem:[%s15394_s1 + $0xc38] sm:$0xf0]  ;;  %v8285_v54 = vor.u32 %v9911_v52, %v8282_v53  ;;  %v9907_v58 = vld [vmem:[%s15394_s1 + $0xf8c] sm:$0xf] }
 0x2b9   :  { %5924 = vmatpush.bf16.msrb.mxu2 %v7709_v51  ;;  %v8157_v51 = vor.u32 %v9879_v34, %v8154_v50  ;;  %v8138_v57 = vld [vmem:[%s15394_s1 + $0xe98] sm:$0xf0]  ;;  %v9795_v32 = vld [vmem:[%s15394_s1 + $0xc0c] sm:$0xf] }
 0x2ba   :  { %5933 = vmatpush.bf16.msrb.mxu3 %v7901_v56  ;;  %v8266_v61 = vld [vmem:[%s15394_s1 + $0xf98] sm:$0xf0]  ;;  %v9839_v25 = vld [vmem:[%s15394_s1 + $0xd6c] sm:$0xf] }
 0x2bb   :  { %5899 = vmatpush.bf16.msrb.mxu0 %v7437_v20  ;;  %v5693_v56 = vpop.f32.mrf.mxu0  ;;  %v5669_v22 = vpop.f32.mrf.mxu2  ;;  %v7818_v10 = vld [vmem:[%s15394_s1 + $0xc18] sm:$0xf0]  ;;  %v9903_v44 = vld [vmem:[%s15394_s1 + $0xf6c] sm:$0xf] }
 0x2bc   :  { %5912 = vmatpush.bf16.msrb.mxu1 %v7565_v3  ;;  %v5694_v62 = vadd.f32 %v5693_v56, %v5681_v45  ;;  %v5706_v63 = vpop.f32.mrf.mxu1  ;;  %v5682_v3 = vpop.f32.mrf.mxu3  ;;  %v7994_v27 = vld [vmem:[%s15394_s1 + $0xd78] sm:$0xf0]  ;;  %v9951_v23 = vld [vmem:[%s15394_s1 + $0x10ec] sm:$0xf]  ;;  %v7821_v33 = vor.u32 %v9795_v32, %v7818_v10 }
 0x2bd   :  { %5925 = vmatpush.bf16.msrb.mxu2 %v7693_v35  ;;  %v8141_v35 = vor.u32 %v9875_v55, %v8138_v57  ;;  %v8250_v30 = vld [vmem:[%s15394_s1 + $0xf78] sm:$0xf0]  ;;  %v7997_v31 = vor.u32 %v9839_v25, %v7994_v27  ;;  %v9835_v2 = vld [vmem:[%s15394_s1 + $0xd4c] sm:$0xf] }
 0x2be   :  { %5934 = vmatpush.bf16.msrb.mxu3 %v7885_v11  ;;  %5900 = vmatmul.bf16.vlgmr.msrb.gmra.mxu0 %v10917_v16  ;;  %v7853_v16 = vor.u32 %v9803_v38, %v7850_v60  ;;  %v8269_v11 = vor.u32 %v9907_v58, %v8266_v61  ;;  %v8442_v0 = vld [vmem:[%s15394_s1 + $0x10f8] sm:$0xf0]  ;;  %v9867_v40 = vld [vmem:[%s15394_s1 + $0xe4c] sm:$0xf] }
 0x2bf   :  { %5944 = vmatpush.bf16.msra.mxu0 %v8061_v24  ;;  %5913 = vmatmul.bf16.vlgmr.msrb.gmra.mxu1 %v10915_v15  ;;  %v9843_v15 = vld [vmem:[%s15394_s1 + $0xd8c] sm:$0xf]  ;;  %v14691_v24 = vadd.f32 %v5706_v63, %v5694_v62  ;;  %v8445_v38 = vor.u32 %v9951_v23, %v8442_v0  ;;  %v8106_v60 = vld [vmem:[%s15394_s1 + $0xe58] sm:$0xf0] }
 0x2c0   :  { %5957 = vmatpush.bf16.msra.mxu1 %v8189_v28  ;;  %5926 = vmatmul.bf16.vlgmr.msrb.gmra.mxu2 %v10919_v17  ;;  %v9799_v17 = vld [vmem:[%s15394_s1 + $0xc2c] sm:$0xf]  ;;  %v8013_v26 = vor.u32 %v9843_v15, %v8010_v21  ;;  %v8426_v34 = vld [vmem:[%s15394_s1 + $0x10d8] sm:$0xf0]  ;;  %v8109_v52 = vor.u32 %v9867_v40, %v8106_v60 }
 0x2c1   :  { %5970 = vmatpush.bf16.msra.mxu2 %v8317_v29  ;;  %v7837_v20 = vor.u32 %v9799_v17, %v7834_v12  ;;  %v9871_v28 = vld [vmem:[%s15394_s1 + $0xe6c] sm:$0xf]  ;;  %v8122_v29 = vld [vmem:[%s15394_s1 + $0xe78] sm:$0xf0] }
 0x2c2   :  { %5935 = vmatpush.bf16.msrb.mxu3 %v7869_v37  ;;  %v8125_v1 = vor.u32 %v9871_v28, %v8122_v29  ;;  %v8253_v37 = vor.u32 %v9903_v44, %v8250_v30  ;;  %v9947_v59 = vld [vmem:[%s15394_s1 + $0x10cc] sm:$0xf]  ;;  %v8218_v15 = vld [vmem:[%s15394_s1 + $0xf38] sm:$0xf0] }
 0x2c3   :  { %5945 = vmatpush.bf16.msra.mxu0 %v8045_v39  ;;  %v7978_v39 = vld [vmem:[%s15394_s1 + $0xd58] sm:$0xf0]  ;;  %v5695_v42 = vpop.f32.mrf.mxu0  ;;  %v9863_v17 = vld [vmem:[%s15394_s1 + $0xe2c] sm:$0xf]  ;;  %v8429_v12 = vor.u32 %v9947_v59, %v8426_v34 }
 0x2c4   :  { %5958 = vmatpush.bf16.msra.mxu1 %v8173_v36  ;;  %v9899_v36 = vld [vmem:[%s15394_s1 + $0xf4c] sm:$0xf]  ;;  %v5708_v45 = vpop.f32.mrf.mxu1  ;;  %v7981_v50 = vor.u32 %v9835_v2, %v7978_v39  ;;  %v8410_v55 = vld [vmem:[%s15394_s1 + $0x10b8] sm:$0xf0] }
 0x2c5   :  { %5971 = vmatpush.bf16.msra.mxu2 %v8301_v41  ;;  %v8234_v41 = vld [vmem:[%s15394_s1 + $0xf58] sm:$0xf0]  ;;  %v9943_v21 = vld [vmem:[%s15394_s1 + $0x10ac] sm:$0xf] }
 0x2c6   :  { %5936 = vmatpush.bf16.msrb.mxu3 %v7853_v16  ;;  %v8237_v53 = vor.u32 %v9899_v36, %v8234_v41  ;;  %v9831_v16 = vld [vmem:[%s15394_s1 + $0xd2c] sm:$0xf]  ;;  %v7946_v58 = vld [vmem:[%s15394_s1 + $0xd18] sm:$0xf0] }
 0x2c7   :  { %5946 = vmatpush.bf16.msra.mxu0 %v8029_v43  ;;  %v7962_v43 = vld [vmem:[%s15394_s1 + $0xd38] sm:$0xf0]  ;;  %v9827_v57 = vld [vmem:[%s15394_s1 + $0xd0c] sm:$0xf] }
 0x2c8   :  { %5959 = vmatpush.bf16.msra.mxu1 %v8157_v51  ;;  %v8090_v51 = vld [vmem:[%s15394_s1 + $0xe38] sm:$0xf0]  ;;  %v7965_v56 = vor.u32 %v9831_v16, %v7962_v43  ;;  %v9859_v62 = vld [vmem:[%s15394_s1 + $0xe0c] sm:$0xf]  ;;  %v7949_v25 = vor.u32 %v9827_v57, %v7946_v58 }
 0x2c9   :  { %5972 = vmatpush.bf16.msra.mxu2 %v8285_v54  ;;  %v9895_v54 = vld [vmem:[%s15394_s1 + $0xf2c] sm:$0xf]  ;;  %v8074_v63 = vld [vmem:[%s15394_s1 + $0xe18] sm:$0xf0] }
 0x2ca   :  { %5937 = vmatpush.bf16.msrb.mxu3 %v7837_v20  ;;  %v8221_v61 = vor.u32 %v9895_v54, %v8218_v15  ;;  %v9891_v22 = vld [vmem:[%s15394_s1 + $0xf0c] sm:$0xf]  ;;  %v8413_v20 = vor.u32 %v9943_v21, %v8410_v55  ;;  %v8394_v10 = vld [vmem:[%s15394_s1 + $0x1098] sm:$0xf0]  ;;  %v8077_v44 = vor.u32 %v9859_v62, %v8074_v63 }
 0x2cb   :  { %5947 = vmatpush.bf16.msra.mxu0 %v8013_v26  ;;  %v8202_v26 = vld [vmem:[%s15394_s1 + $0xf18] sm:$0xf0]  ;;  %v9939_v32 = vld [vmem:[%s15394_s1 + $0x108c] sm:$0xf] }
 0x2cc   :  { %5960 = vmatpush.bf16.msra.mxu1 %v8141_v35  ;;  %v9983_v3 = vld [vmem:[%s15394_s1 + $0x11ec] sm:$0xf]  ;;  %v8570_v35 = vld [vmem:[%s15394_s1 + $0x11f8] sm:$0xf0]  ;;  %v8205_v30 = vor.u32 %v9891_v22, %v8202_v26  ;;  %v8397_v23 = vor.u32 %v9939_v32, %v8394_v10 }
 0x2cd   :  { %5973 = vmatpush.bf16.msra.mxu2 %v8269_v11  ;;  %v10015_v11 = vld [vmem:[%s15394_s1 + $0x12ec] sm:$0xf]  ;;  %v8698_v27 = vld [vmem:[%s15394_s1 + $0x12f8] sm:$0xf0]  ;;  %v8573_v0 = vor.u32 %v9983_v3, %v8570_v35 }
 0x2ce   :  { %5938 = vmatpush.bf16.msrb.mxu3 %v7821_v33  ;;  %v10047_v28 = vld [vmem:[%s15394_s1 + $0x13ec] sm:$0xf]  ;;  %v8826_v29 = vld [vmem:[%s15394_s1 + $0x13f8] sm:$0xf0] }
 0x2cf   :  { %5948 = vmatpush.bf16.msra.mxu0 %v7997_v31  ;;  %v9935_v33 = vld [vmem:[%s15394_s1 + $0x106c] sm:$0xf]  ;;  %v8378_v31 = vld [vmem:[%s15394_s1 + $0x1078] sm:$0xf0] }
 0x2d0   :  { %5961 = vmatpush.bf16.msra.mxu1 %v8125_v1  ;;  %v8701_v1 = vor.u32 %v10015_v11, %v8698_v27  ;;  %v9979_v2 = vld [vmem:[%s15394_s1 + $0x11cc] sm:$0xf]  ;;  %v8554_v39 = vld [vmem:[%s15394_s1 + $0x11d8] sm:$0xf0]  ;;  %v8381_v42 = vor.u32 %v9935_v33, %v8378_v31 }
 0x2d1   :  { %5974 = vmatpush.bf16.msra.mxu2 %v8253_v37  ;;  %5939 = vmatmul.bf16.vlgmr.msrb.gmra.mxu3 %v11081_v46  ;;  %v8093_v46 = vor.u32 %v9863_v17, %v8090_v51  ;;  %v8829_v37 = vor.u32 %v10047_v28, %v8826_v29  ;;  %v10011_v40 = vld [vmem:[%s15394_s1 + $0x12cc] sm:$0xf]  ;;  %v8810_v36 = vld [vmem:[%s15394_s1 + $0x13d8] sm:$0xf0]  ;;  %v8557_v34 = vor.u32 %v9979_v2, %v8554_v39 }
 0x2d2   :  { %5983 = vmatpush.bf16.msra.mxu3 %v8445_v38  ;;  %v8682_v38 = vld [vmem:[%s15394_s1 + $0x12d8] sm:$0xf0]  ;;  %v10043_v60 = vld [vmem:[%s15394_s1 + $0x13cc] sm:$0xf] }
 0x2d3   :  { %5949 = vmatpush.bf16.msra.mxu0 %v7981_v50  ;;  %v5719_v41 = vpop.f32.mrf.mxu2  ;;  %v9931_v50 = vld [vmem:[%s15394_s1 + $0x104c] sm:$0xf]  ;;  %v8813_v16 = vor.u32 %v10043_v60, %v8810_v36  ;;  %v8666_v51 = vld [vmem:[%s15394_s1 + $0x12b8] sm:$0xf0] }
 0x2d4   :  { %5962 = vmatpush.bf16.msra.mxu1 %v8109_v52  ;;  %v5720_v59 = vadd.f32 %v5719_v41, %v14691_v24  ;;  %v5732_v45 = vpop.f32.mrf.mxu3  ;;  %v8362_v52 = vld [vmem:[%s15394_s1 + $0x1058] sm:$0xf0]  ;;  %v9975_v43 = vld [vmem:[%s15394_s1 + $0x11ac] sm:$0xf] }
 0x2d5   :  { %5975 = vmatpush.bf16.msra.mxu2 %v8237_v53  ;;  %v8685_v53 = vor.u32 %v10011_v40, %v8682_v38  ;;  %v8538_v24 = vld [vmem:[%s15394_s1 + $0x11b8] sm:$0xf0]  ;;  %v10007_v17 = vld [vmem:[%s15394_s1 + $0x12ac] sm:$0xf] }
 0x2d6   :  { %5984 = vmatpush.bf16.msra.mxu3 %v8429_v12  ;;  %v5733_v12 = vadd.f32 %v5732_v45, %v5720_v59  ;;  %v10039_v54 = vld [vmem:[%s15394_s1 + $0x13ac] sm:$0xf]  ;;  %v8794_v15 = vld [vmem:[%s15394_s1 + $0x13b8] sm:$0xf0]  ;;  %v8541_v21 = vor.u32 %v9975_v43, %v8538_v24 }
 0x2d7   :  { %5950 = vmatpush.bf16.msra.mxu0 %v7965_v56  ;;  %v8346_v55 = vld [vmem:[%s15394_s1 + $0x1038] sm:$0xf0]  ;;  %v8669_v56 = vor.u32 %v10007_v17, %v8666_v51  ;;  %v8797_v57 = vor.u32 %v10039_v54, %v8794_v15  ;;  %v10035_v62 = vld [vmem:[%s15394_s1 + $0x138c] sm:$0xf] }
 0x2d8   :  { %5963 = vmatpush.bf16.msra.mxu1 %v8093_v46  ;;  %v8522_v58 = vld [vmem:[%s15394_s1 + $0x1198] sm:$0xf0]  ;;  %v10003_v46 = vld [vmem:[%s15394_s1 + $0x128c] sm:$0xf] }
 0x2d9   :  { %5976 = vmatpush.bf16.msra.mxu2 %v8221_v61  ;;  %v8650_v61 = vld [vmem:[%s15394_s1 + $0x1298] sm:$0xf0]  ;;  %v9923_v35 = vld [vmem:[%s15394_s1 + $0x100c] sm:$0xf] }
 0x2da   :  { %5985 = vmatpush.bf16.msra.mxu3 %v8413_v20  ;;  %v8778_v63 = vld [vmem:[%s15394_s1 + $0x1398] sm:$0xf0]  ;;  %v8653_v27 = vor.u32 %v10003_v46, %v8650_v61  ;;  %v9967_v29 = vld [vmem:[%s15394_s1 + $0x116c] sm:$0xf] }
 0x2db   :  { %5951 = vmatpush.bf16.msra.mxu0 %v7949_v25  ;;  %v5745_v22 = vpop.f32.mrf.mxu0  ;;  %v5721_v20 = vpop.f32.mrf.mxu2  ;;  %v8330_v11 = vld [vmem:[%s15394_s1 + $0x1018] sm:$0xf0]  ;;  %v8781_v28 = vor.u32 %v10035_v62, %v8778_v63  ;;  %v10031_v33 = vld [vmem:[%s15394_s1 + $0x136c] sm:$0xf] }
 0x2dc   :  { %5964 = vmatpush.bf16.msra.mxu1 %v8077_v44  ;;  %v5746_v26 = vadd.f32 %v5745_v22, %v5733_v12  ;;  %v5758_v3 = vpop.f32.mrf.mxu1  ;;  %v5734_v25 = vpop.f32.mrf.mxu3  ;;  %v8506_v44 = vld [vmem:[%s15394_s1 + $0x1178] sm:$0xf0]  ;;  %v8333_v2 = vor.u32 %v9923_v35, %v8330_v11  ;;  %v9963_v60 = vld [vmem:[%s15394_s1 + $0x114c] sm:$0xf] }
 0x2dd   :  { %5977 = vmatpush.bf16.msra.mxu2 %v8205_v30  ;;  %v9999_v30 = vld [vmem:[%s15394_s1 + $0x126c] sm:$0xf]  ;;  %v8762_v31 = vld [vmem:[%s15394_s1 + $0x1378] sm:$0xf0]  ;;  %v8509_v39 = vor.u32 %v9967_v29, %v8506_v44 }
 0x2de   :  { %5986 = vmatpush.bf16.msra.mxu3 %v8397_v23  ;;  %5952 = vmatmul.bf16.vlgmr.msra.gmra.mxu0 %v11085_v48  ;;  %v8365_v48 = vor.u32 %v9931_v50, %v8362_v52  ;;  %v5759_v23 = vadd.f32 %v5758_v3, %v5746_v26  ;;  %v8765_v38 = vor.u32 %v10031_v33, %v8762_v31  ;;  %v8490_v36 = vld [vmem:[%s15394_s1 + $0x1158] sm:$0xf0]  ;;  %v9995_v41 = vld [vmem:[%s15394_s1 + $0x124c] sm:$0xf] }
 0x2df   :  { %5996 = vmatpush.bf16.msrb.mxu0 %v8573_v0  ;;  %5965 = vmatmul.bf16.vlgmr.msra.gmra.mxu1 %v11083_v47  ;;  %v9971_v47 = vld [vmem:[%s15394_s1 + $0x118c] sm:$0xf]  ;;  %v8634_v0 = vld [vmem:[%s15394_s1 + $0x1278] sm:$0xf0] }
 0x2e0   :  { %6009 = vmatpush.bf16.msrb.mxu1 %v8701_v1  ;;  %5978 = vmatmul.bf16.vlgmr.msra.gmra.mxu2 %v11087_v49  ;;  %v9927_v49 = vld [vmem:[%s15394_s1 + $0x102c] sm:$0xf]  ;;  %v8525_v10 = vor.u32 %v9971_v47, %v8522_v58  ;;  %v8637_v40 = vor.u32 %v9999_v30, %v8634_v0  ;;  %v8618_v59 = vld [vmem:[%s15394_s1 + $0x1258] sm:$0xf0] }
 0x2e1   :  { %6022 = vmatpush.bf16.msrb.mxu2 %v8829_v37  ;;  %v8349_v32 = vor.u32 %v9927_v49, %v8346_v55  ;;  %v10079_v1 = vld [vmem:[%s15394_s1 + $0x14ec] sm:$0xf]  ;;  %v8954_v37 = vld [vmem:[%s15394_s1 + $0x14f8] sm:$0xf0]  ;;  %v8621_v17 = vor.u32 %v9995_v41, %v8618_v59 }
 0x2e2   :  { %5987 = vmatpush.bf16.msra.mxu3 %v8381_v42  ;;  %v8957_v42 = vor.u32 %v10079_v1, %v8954_v37  ;;  %v8746_v45 = vld [vmem:[%s15394_s1 + $0x1358] sm:$0xf0]  ;;  %v10075_v50 = vld [vmem:[%s15394_s1 + $0x14cc] sm:$0xf] }
 0x2e3   :  { %5997 = vmatpush.bf16.msrb.mxu0 %v8557_v34  ;;  %v10027_v34 = vld [vmem:[%s15394_s1 + $0x134c] sm:$0xf]  ;;  %v8938_v52 = vld [vmem:[%s15394_s1 + $0x14d8] sm:$0xf0]  ;;  %v5771_v24 = vpop.f32.mrf.mxu2 }
 0x2e4   :  { %6010 = vmatpush.bf16.msrb.mxu1 %v8685_v53  ;;  %v5747_v53 = vpop.f32.mrf.mxu0  ;;  %v5760_v43 = vpop.f32.mrf.mxu1  ;;  %v8749_v12 = vor.u32 %v10027_v34, %v8746_v45  ;;  %v9959_v51 = vld [vmem:[%s15394_s1 + $0x112c] sm:$0xf]  ;;  %v8474_v54 = vld [vmem:[%s15394_s1 + $0x1138] sm:$0xf0] }
 0x2e5   :  { %6023 = vmatpush.bf16.msrb.mxu2 %v8813_v16  ;;  %v8493_v16 = vor.u32 %v9963_v60, %v8490_v36  ;;  %v9991_v15 = vld [vmem:[%s15394_s1 + $0x122c] sm:$0xf]  ;;  %v8602_v49 = vld [vmem:[%s15394_s1 + $0x1238] sm:$0xf0]  ;;  %v8477_v58 = vor.u32 %v9959_v51, %v8474_v54 }
 0x2e6   :  { %5988 = vmatpush.bf16.msra.mxu3 %v8365_v48  ;;  %v14947_v48 = vadd.f32 %v5771_v24, %v5759_v23  ;;  %v10023_v55 = vld [vmem:[%s15394_s1 + $0x132c] sm:$0xf]  ;;  %v8922_v47 = vld [vmem:[%s15394_s1 + $0x14b8] sm:$0xf0] }
 0x2e7   :  { %5998 = vmatpush.bf16.msrb.mxu0 %v8541_v21  ;;  %v8941_v21 = vor.u32 %v10075_v50, %v8938_v52  ;;  %v9955_v46 = vld [vmem:[%s15394_s1 + $0x110c] sm:$0xf]  ;;  %v8458_v61 = vld [vmem:[%s15394_s1 + $0x1118] sm:$0xf0]  ;;  %v10200_v52 = vld [vmem:[%s15395_s2] sm:$0xf] }
 0x2e8   :  { %6011 = vmatpush.bf16.msrb.mxu1 %v8669_v56  ;;  %v8730_v56 = vld [vmem:[%s15394_s1 + $0x1338] sm:$0xf0]  ;;  %v9987_v63 = vld [vmem:[%s15394_s1 + $0x120c] sm:$0xf]  ;;  %v815_v53 = vperm.slane %v10200_v52, 3 }
 0x2e9   :  { %6024 = vmatpush.bf16.msrb.mxu2 %v8797_v57  ;;  %v10071_v57 = vld [vmem:[%s15394_s1 + $0x14ac] sm:$0xf]  ;;  %v8733_v62 = vor.u32 %v10023_v55, %v8730_v56  ;;  %v8586_v22 = vld [vmem:[%s15394_s1 + $0x1218] sm:$0xf0] }
 0x2ea   :  { %5989 = vmatpush.bf16.msra.mxu3 %v8349_v32  ;;  %v10019_v20 = vld [vmem:[%s15394_s1 + $0x130c] sm:$0xf]  ;;  %v8925_v26 = vor.u32 %v10071_v57, %v8922_v47  ;;  %v8714_v32 = vld [vmem:[%s15394_s1 + $0x1318] sm:$0xf0]  ;;  %v8589_v30 = vor.u32 %v9987_v63, %v8586_v22 }
 0x2eb   :  { %5999 = vmatpush.bf16.msrb.mxu0 %v8525_v10  ;;  %v10067_v10 = vld [vmem:[%s15394_s1 + $0x148c] sm:$0xf]  ;;  %v8906_v3 = vld [vmem:[%s15394_s1 + $0x1498] sm:$0xf0]  ;;  %v8717_v23 = vor.u32 %v10019_v20, %v8714_v32  ;;  %v5773_v0 = vpop.f32.mrf.mxu2 }
 0x2ec   :  { %6012 = vmatpush.bf16.msrb.mxu1 %v8653_v27  ;;  %v10111_v35 = vld [vmem:[%s15394_s1 + $0x15ec] sm:$0xf]  ;;  %v9082_v11 = vld [vmem:[%s15394_s1 + $0x15f8] sm:$0xf0]  ;;  %v8461_v27 = vor.u32 %v9955_v46, %v8458_v61  ;;  %v8909_v33 = vor.u32 %v10067_v10, %v8906_v3 }
 0x2ed   :  { %6025 = vmatpush.bf16.msrb.mxu2 %v8781_v28  ;;  %v10143_v25 = vld [vmem:[%s15394_s1 + $0x16ec] sm:$0xf]  ;;  %v9210_v28 = vld [vmem:[%s15394_s1 + $0x16f8] sm:$0xf0]  ;;  %v9085_v31 = vor.u32 %v10111_v35, %v9082_v11 }
 0x2ee   :  { %5990 = vmatpush.bf16.msra.mxu3 %v8333_v2  ;;  %v10175_v29 = vld [vmem:[%s15394_s1 + $0x17ec] sm:$0xf]  ;;  %v9338_v44 = vld [vmem:[%s15394_s1 + $0x17f8] sm:$0xf0]  ;;  %v9213_v2 = vor.u32 %v10143_v25, %v9210_v28 }
 0x2ef   :  { %6000 = vmatpush.bf16.msrb.mxu0 %v8509_v39  ;;  %v10063_v1 = vld [vmem:[%s15394_s1 + $0x146c] sm:$0xf]  ;;  %v8890_v37 = vld [vmem:[%s15394_s1 + $0x1478] sm:$0xf0]  ;;  %v9341_v39 = vor.u32 %v10175_v29, %v9338_v44 }
 0x2f0   :  { %6013 = vmatpush.bf16.msrb.mxu1 %v8637_v40  ;;  %v10107_v40 = vld [vmem:[%s15394_s1 + $0x15cc] sm:$0xf]  ;;  %v9194_v36 = vld [vmem:[%s15394_s1 + $0x16d8] sm:$0xf0]  ;;  %v8893_v59 = vor.u32 %v10063_v1, %v8890_v37 }
 0x2f1   :  { %6026 = vmatpush.bf16.msrb.mxu2 %v8765_v38  ;;  %5991 = vmatmul.bf16.vlgmr.msra.gmra.mxu3 %v11318_v9  ;;  %v8605_v9 = vor.u32 %v9991_v15, %v8602_v49  ;;  %v9066_v38 = vld [vmem:[%s15394_s1 + $0x15d8] sm:$0xf0]  ;;  %v10139_v60 = vld [vmem:[%s15394_s1 + $0x16cc] sm:$0xf] }
 0x2f2   :  { %6035 = vmatpush.bf16.msrb.mxu3 %v8957_v42  ;;  %v10171_v41 = vld [vmem:[%s15394_s1 + $0x17cc] sm:$0xf]  ;;  %v9322_v42 = vld [vmem:[%s15394_s1 + $0x17d8] sm:$0xf0]  ;;  %v9069_v34 = vor.u32 %v10107_v40, %v9066_v38  ;;  %v9197_v43 = vor.u32 %v10139_v60, %v9194_v36 }
 0x2f3   :  { %6001 = vmatpush.bf16.msrb.mxu0 %v8493_v16  ;;  %v10059_v45 = vld [vmem:[%s15394_s1 + $0x144c] sm:$0xf]  ;;  %v8874_v50 = vld [vmem:[%s15394_s1 + $0x1458] sm:$0xf0]  ;;  %v9325_v24 = vor.u32 %v10171_v41, %v9322_v42 }
 0x2f4   :  { %6014 = vmatpush.bf16.msrb.mxu1 %v8621_v17  ;;  %v5784_v16 = vpop.f32.mrf.mxu3  ;;  %v10103_v17 = vld [vmem:[%s15394_s1 + $0x15ac] sm:$0xf]  ;;  %v9178_v54 = vld [vmem:[%s15394_s1 + $0x16b8] sm:$0xf0]  ;;  %v8877_v49 = vor.u32 %v10059_v45, %v8874_v50 }
 0x2f5   :  { %6027 = vmatpush.bf16.msrb.mxu2 %v8749_v12  ;;  %v9050_v12 = vld [vmem:[%s15394_s1 + $0x15b8] sm:$0xf0]  ;;  %v10135_v51 = vld [vmem:[%s15394_s1 + $0x16ac] sm:$0xf]  ;;  %v5785_v56 = vadd.f32 %v5784_v16, %v815_v53 }
 0x2f6   :  { %6036 = vmatpush.bf16.msrb.mxu3 %v8941_v21  ;;  %v10167_v15 = vld [vmem:[%s15394_s1 + $0x17ac] sm:$0xf]  ;;  %v9306_v21 = vld [vmem:[%s15394_s1 + $0x17b8] sm:$0xf0]  ;;  %v9181_v57 = vor.u32 %v10135_v51, %v9178_v54 }
 0x2f7   :  { %6002 = vmatpush.bf16.msrb.mxu0 %v8477_v58  ;;  %v8858_v55 = vld [vmem:[%s15394_s1 + $0x1438] sm:$0xf0]  ;;  %v9309_v47 = vor.u32 %v10167_v15, %v9306_v21  ;;  %v10131_v46 = vld [vmem:[%s15394_s1 + $0x168c] sm:$0xf] }
 0x2f8   :  { %6015 = vmatpush.bf16.msrb.mxu1 %v8605_v9  ;;  %v9034_v58 = vld [vmem:[%s15394_s1 + $0x1598] sm:$0xf0]  ;;  %v10163_v9 = vld [vmem:[%s15394_s1 + $0x178c] sm:$0xf] }
 0x2f9   :  { %6028 = vmatpush.bf16.msrb.mxu2 %v8733_v62  ;;  %v9162_v61 = vld [vmem:[%s15394_s1 + $0x1698] sm:$0xf0]  ;;  %v10127_v29 = vld [vmem:[%s15394_s1 + $0x166c] sm:$0xf] }
 0x2fa   :  { %6037 = vmatpush.bf16.msrb.mxu3 %v8925_v26  ;;  %v9290_v62 = vld [vmem:[%s15394_s1 + $0x1798] sm:$0xf0]  ;;  %v10051_v26 = vld [vmem:[%s15394_s1 + $0x140c] sm:$0xf]  ;;  %v9165_v11 = vor.u32 %v10131_v46, %v9162_v61 }
 0x2fb   :  { %6003 = vmatpush.bf16.msrb.mxu0 %v8461_v27  ;;  %v5797_v63 = vpop.f32.mrf.mxu0  ;;  %v8842_v32 = vld [vmem:[%s15394_s1 + $0x1418] sm:$0xf0]  ;;  %v9293_v25 = vor.u32 %v10163_v9, %v9290_v62  ;;  %v10095_v27 = vld [vmem:[%s15394_s1 + $0x156c] sm:$0xf] }
 0x2fc   :  { %6016 = vmatpush.bf16.msrb.mxu1 %v8589_v30  ;;  %v5798_v10 = vadd.f32 %v5797_v63, %v5785_v56  ;;  %v5810_v3 = vpop.f32.mrf.mxu1  ;;  %v5786_v35 = vpop.f32.mrf.mxu3  ;;  %v9018_v28 = vld [vmem:[%s15394_s1 + $0x1578] sm:$0xf0]  ;;  %v10159_v30 = vld [vmem:[%s15394_s1 + $0x176c] sm:$0xf]  ;;  %v8845_v1 = vor.u32 %v10051_v26, %v8842_v32 }
 0x2fd   :  { %6029 = vmatpush.bf16.msrb.mxu2 %v8717_v23  ;;  %v9146_v44 = vld [vmem:[%s15394_s1 + $0x1678] sm:$0xf0]  ;;  %v9021_v37 = vor.u32 %v10095_v27, %v9018_v28  ;;  %v10091_v40 = vld [vmem:[%s15394_s1 + $0x154c] sm:$0xf]  ;;  %v6118_v27 = vld [vmem:[%s15396_s3 + $0x70] sm:$0xff] }
 0x2fe   :  { %6038 = vmatpush.bf16.msrb.mxu3 %v8909_v33  ;;  %6004 = vmatmul.bf16.vlgmr.msrb.gmra.mxu0 %v11328_v14  ;;  %v9053_v14 = vor.u32 %v10103_v17, %v9050_v12  ;;  %v9274_v23 = vld [vmem:[%s15394_s1 + $0x1778] sm:$0xf0]  ;;  %v5811_v0 = vadd.f32 %v5810_v3, %v5798_v10  ;;  %v10191_v33 = vld [vmem:[%s15394_s1 + $0x186c] sm:$0xf] }
 0x2ff   :  { %6048 = vmatpush.bf16.msra.mxu0 %v9085_v31  ;;  %6017 = vmatmul.bf16.vlgmr.msrb.gmra.mxu1 %v11326_v13  ;;  %v10099_v13 = vld [vmem:[%s15394_s1 + $0x158c] sm:$0xf]  ;;  %v9402_v31 = vld [vmem:[%s15394_s1 + $0x1878] sm:$0xf0] }
 0x300   :  { %6061 = vmatpush.bf16.msra.mxu1 %v9213_v2  ;;  %6030 = vmatmul.bf16.vlgmr.msrb.gmra.mxu2 %v11330_v18  ;;  %v10055_v18 = vld [vmem:[%s15394_s1 + $0x142c] sm:$0xf]  ;;  %v9037_v20 = vor.u32 %v10099_v13, %v9034_v58  ;;  %v9149_v2 = vor.u32 %v10127_v29, %v9146_v44  ;;  %v9002_v38 = vld [vmem:[%s15394_s1 + $0x1558] sm:$0xf0]  ;;  %v9405_v41 = vor.u32 %v10191_v33, %v9402_v31  ;;  %v6134_v29 = vld [vmem:[%s15396_s3 + $0xf0] sm:$0xff] }
 0x301   :  { %6074 = vmatpush.bf16.msra.mxu2 %v9341_v39  ;;  %v8861_v22 = vor.u32 %v10055_v18, %v8858_v55  ;;  %v9277_v39 = vor.u32 %v10159_v30, %v9274_v23  ;;  %v10123_v60 = vld [vmem:[%s15394_s1 + $0x164c] sm:$0xf]  ;;  %v9130_v42 = vld [vmem:[%s15394_s1 + $0x1658] sm:$0xf0]  ;;  %v9005_v16 = vor.u32 %v10091_v40, %v9002_v38  ;;  %v6150_v44 = vld [vmem:[%s15396_s3 + $0x170] sm:$0xff] }
 0x302   :  { %6039 = vmatpush.bf16.msrb.mxu3 %v8893_v59  ;;  %v10155_v59 = vld [vmem:[%s15394_s1 + $0x174c] sm:$0xf]  ;;  %v9386_v52 = vld [vmem:[%s15394_s1 + $0x1858] sm:$0xf0]  ;;  %v6148_v31 = vld [vmem:[%s15396_s3 + $0x160] sm:$0xff] }
 0x303   :  { %6049 = vmatpush.bf16.msra.mxu0 %v9069_v34  ;;  %v5823_v36 = vpop.f32.mrf.mxu2  ;;  %v9258_v34 = vld [vmem:[%s15394_s1 + $0x1758] sm:$0xf0]  ;;  %v10187_v50 = vld [vmem:[%s15394_s1 + $0x184c] sm:$0xf]  ;;  %v5799_v53 = vpop.f32.mrf.mxu0  ;;  %v6114_v40 = vld [vmem:[%s15396_s3 + $0x50] sm:$0xff] }
 0x304   :  { %6062 = vmatpush.bf16.msra.mxu1 %v9197_v43  ;;  %v5824_v45 = vadd.f32 %v5823_v36, %v5811_v0  ;;  %v5812_v43 = vpop.f32.mrf.mxu1  ;;  %v9261_v17 = vor.u32 %v10155_v59, %v9258_v34  ;;  %v10087_v12 = vld [vmem:[%s15394_s1 + $0x152c] sm:$0xf]  ;;  %v8986_v51 = vld [vmem:[%s15394_s1 + $0x1538] sm:$0xf0]  ;;  %v9389_v15 = vor.u32 %v10187_v50, %v9386_v52  ;;  %v6112_v52 = vld [vmem:[%s15396_s3 + $0x40] sm:$0xff] }
 0x305   :  { %6075 = vmatpush.bf16.msra.mxu2 %v9325_v24  ;;  %v9133_v24 = vor.u32 %v10123_v60, %v9130_v42  ;;  %v10119_v54 = vld [vmem:[%s15394_s1 + $0x162c] sm:$0xf]  ;;  %v9114_v21 = vld [vmem:[%s15394_s1 + $0x1638] sm:$0xf0]  ;;  %v8989_v56 = vor.u32 %v10087_v12, %v8986_v51  ;;  %v6146_v42 = vld [vmem:[%s15396_s3 + $0x150] sm:$0xff] }
 0x306   :  { %6040 = vmatpush.bf16.msrb.mxu3 %v8877_v49  ;;  %v10151_v49 = vld [vmem:[%s15394_s1 + $0x172c] sm:$0xf]  ;;  %v9370_v55 = vld [vmem:[%s15394_s1 + $0x1838] sm:$0xf0]  ;;  %v6128_v53 = vld [vmem:[%s15396_s3 + $0xc0] sm:$0xff] }
 0x307   :  { %6050 = vmatpush.bf16.msra.mxu0 %v9053_v14  ;;  %v9242_v14 = vld [vmem:[%s15394_s1 + $0x1738] sm:$0xf0]  ;;  %v10183_v18 = vld [vmem:[%s15394_s1 + $0x182c] sm:$0xf] }
 0x308   :  { %6063 = vmatpush.bf16.msra.mxu1 %v9181_v57  ;;  %v9117_v57 = vor.u32 %v10119_v54, %v9114_v21  ;;  %v10083_v13 = vld [vmem:[%s15394_s1 + $0x150c] sm:$0xf]  ;;  %v9373_v61 = vor.u32 %v10183_v18, %v9370_v55  ;;  %v9098_v9 = vld [vmem:[%s15394_s1 + $0x1618] sm:$0xf0] }
 0x309   :  { %6076 = vmatpush.bf16.msra.mxu2 %v9309_v47  ;;  %v9245_v47 = vor.u32 %v10151_v49, %v9242_v14  ;;  %v10115_v58 = vld [vmem:[%s15394_s1 + $0x160c] sm:$0xf]  ;;  %v9226_v63 = vld [vmem:[%s15394_s1 + $0x1718] sm:$0xf0]  ;;  %v6126_v49 = vld [vmem:[%s15396_s3 + $0xb0] sm:$0xff] }
 0x30a   :  { %6041 = vmatpush.bf16.msrb.mxu3 %v8861_v22  ;;  %v10147_v62 = vld [vmem:[%s15394_s1 + $0x170c] sm:$0xf]  ;;  %v9354_v26 = vld [vmem:[%s15394_s1 + $0x1818] sm:$0xf0]  ;;  %v9101_v32 = vor.u32 %v10115_v58, %v9098_v9  ;;  %v6142_v14 = vld [vmem:[%s15396_s3 + $0x130] sm:$0xff] }
 0x30b   :  { %6051 = vmatpush.bf16.msra.mxu0 %v9037_v20  ;;  %v5825_v46 = vpop.f32.mrf.mxu2  ;;  %v10179_v20 = vld [vmem:[%s15394_s1 + $0x180c] sm:$0xf]  ;;  %v9229_v10 = vor.u32 %v10147_v62, %v9226_v63  ;;  %v6119_v3 = vld [vmem:[%s15396_s3 + $0x78] sm:$0xff]  ;;  %v6106_v9 = vld [vmem:[%s15396_s3 + $0x10] sm:$0xff] }
 0x30c   :  { %6064 = vmatpush.bf16.msra.mxu1 %v9165_v11  ;;  %v6135_v35 = vld [vmem:[%s15396_s3 + $0xf8] sm:$0xff]  ;;  %v9357_v11 = vor.u32 %v10179_v20, %v9354_v26  ;;  %v6117_v23 = vld [vmem:[%s15396_s3 + $0x68] sm:$0xff]  ;;  %v6122_v62 = vld [vmem:[%s15396_s3 + $0x90] sm:$0xff] }
 0x30d   :  { %6077 = vmatpush.bf16.msra.mxu2 %v9293_v25  ;;  %v6151_v25 = vld [vmem:[%s15396_s3 + $0x178] sm:$0xff]  ;;  %v6133_v0 = vld [vmem:[%s15396_s3 + $0xe8] sm:$0xff]  ;;  %v6138_v63 = vld [vmem:[%s15396_s3 + $0x110] sm:$0xff] }
 0x30e   :  { %6042 = vmatpush.bf16.msrb.mxu3 %v8845_v1  ;;  %v6149_v33 = vld [vmem:[%s15396_s3 + $0x168] sm:$0xff]  ;;  %v6115_v1 = vld [vmem:[%s15396_s3 + $0x58] sm:$0xff] }
 0x30f   :  { %6052 = vmatpush.bf16.msra.mxu0 %v9021_v37  ;;  %v6131_v37 = vld [vmem:[%s15396_s3 + $0xd8] sm:$0xff]  ;;  %v6113_v59 = vld [vmem:[%s15396_s3 + $0x48] sm:$0xff] }
 0x310   :  { %6065 = vmatpush.bf16.msra.mxu1 %v9149_v2  ;;  %v6147_v2 = vld [vmem:[%s15396_s3 + $0x158] sm:$0xff]  ;;  %v6145_v50 = vld [vmem:[%s15396_s3 + $0x148] sm:$0xff] }
 0x311   :  { %6078 = vmatpush.bf16.msra.mxu2 %v9277_v39  ;;  %6043 = vmatmul.bf16.vlgmr.msrb.gmra.mxu3 %v11411_v4  ;;  %v8970_v4 = vld [vmem:[%s15394_s1 + $0x1518] sm:$0xf0]  ;;  %v6109_v18 = vld [vmem:[%s15396_s3 + $0x28] sm:$0xff] }
 0x312   :  { %6091 = vmatpush.bf16.msra.mxu3 %v9405_v41  ;;  %v8973_v22 = vor.u32 %v10083_v13, %v8970_v4  ;;  %v6130_v41 = vld [vmem:[%s15396_s3 + $0xd0] sm:$0xff]  ;;  %v6127_v12 = vld [vmem:[%s15396_s3 + $0xb8] sm:$0xff]  ;;  %v6125_v55 = vld [vmem:[%s15396_s3 + $0xa8] sm:$0xff] }
 0x313   :  { %6053 = vmatpush.bf16.msra.mxu0 %v9005_v16  ;;  %v6144_v16 = vld [vmem:[%s15396_s3 + $0x140] sm:$0xff]  ;;  %v6143_v51 = vld [vmem:[%s15396_s3 + $0x138] sm:$0xff]  ;;  %v6121_v20 = vld [vmem:[%s15396_s3 + $0x88] sm:$0xff] }
 0x314   :  { %6066 = vmatpush.bf16.msra.mxu1 %v9133_v24  ;;  %v5836_v28 = vpop.f32.mrf.mxu3  ;;  %v6111_v24 = vld [vmem:[%s15396_s3 + $0x38] sm:$0xff]  ;;  %v6140_v13 = vld [vmem:[%s15396_s3 + $0x120] sm:$0xff]  ;;  %v6137_v26 = vld [vmem:[%s15396_s3 + $0x108] sm:$0xff] }
 0x315   :  { %6079 = vmatpush.bf16.msra.mxu2 %v9261_v17  ;;  %v5837_v30 = vadd.f32 %v5836_v28, %v5824_v45  ;;  %v6129_v45 = vld [vmem:[%s15396_s3 + $0xc8] sm:$0xff]  ;;  %v6107_v58 = vld [vmem:[%s15396_s3 + $0x18] sm:$0xff]  ;;  %v6102_v28 = vmax.f32 %v14947_v48, 0.0 }
 0x316   :  { %6092 = vmatpush.bf16.msra.mxu3 %v9389_v15  ;;  %v6110_v15 = vld [vmem:[%s15396_s3 + $0x30] sm:$0xff]  ;;  %v6123_v46 = vld [vmem:[%s15396_s3 + $0x98] sm:$0xff] }
 0x317   :  { %6054 = vmatpush.bf16.msra.mxu0 %v8989_v56  ;;  %v6141_v56 = vld [vmem:[%s15396_s3 + $0x128] sm:$0xff]  ;;  %v6167_v48 = vld [vmem:[%s15396_s3 + $0x1f8] sm:$0xff] }
 0x318   :  { %6067 = vmatpush.bf16.msra.mxu1 %v9117_v57  ;;  %v6108_v57 = vld [vmem:[%s15396_s3 + $0x20] sm:$0xff] }
 0x319   :  { %6080 = vmatpush.bf16.msra.mxu2 %v9245_v47  ;;  %v6124_v47 = vld [vmem:[%s15396_s3 + $0xa0] sm:$0xff] }
 0x31a   :  { %6093 = vmatpush.bf16.msra.mxu3 %v9373_v61  ;;  %v6139_v61 = vld [vmem:[%s15396_s3 + $0x118] sm:$0xff] }
 0x31b   :  { %6055 = vmatpush.bf16.msra.mxu0 %v8973_v22  ;;  %v5849_v39 = vpop.f32.mrf.mxu0  ;;  %v6105_v22 = vld [vmem:[%s15396_s3 + $0x8] sm:$0xff] }
 0x31c   :  { %6068 = vmatpush.bf16.msra.mxu1 %v9101_v32  ;;  %v5850_v38 = vadd.f32 %v5849_v39, %v5837_v30  ;;  %v5862_v60 = vpop.f32.mrf.mxu1  ;;  %v5838_v36 = vpop.f32.mrf.mxu3  ;;  %v6104_v32 = vld [vmem:[%s15396_s3] sm:$0xff] }
 0x31d   :  { %6081 = vmatpush.bf16.msra.mxu2 %v9229_v10  ;;  %v6120_v10 = vld [vmem:[%s15396_s3 + $0x80] sm:$0xff] }
 0x31e   :  { %6094 = vmatpush.bf16.msra.mxu3 %v9357_v11  ;;  %6056 = vmatmul.bf16.vlgmr.msra.gmra.mxu0 %v11415_v6  ;;  %v10201_v6 = vld [vmem:[#allocation1] sm:$0xff]  ;;  %v5863_v34 = vadd.f32 %v5862_v60, %v5850_v38  ;;  %v6100_v11 = vmax.f32 %v12508_v19, 0.0 }
 0x31f   :  { %6172 = vmatpush.msrb.mxu0 %v6119_v3  ;;  %6069 = vmatmul.bf16.vlgmr.msra.gmra.mxu1 %v11413_v5  ;;  %v6116_v5 = vld [vmem:[%s15396_s3 + $0x60] sm:$0xff] }
 0x320   :  { %6192 = vmatpush.msrb.mxu1 %v6135_v35  ;;  %6082 = vmatmul.bf16.vlgmr.msra.gmra.mxu2 %v11417_v7  ;;  %v6132_v7 = vld [vmem:[%s15396_s3 + $0xe0] sm:$0xff] }
 0x321   :  { %6212 = vmatpush.msrb.mxu2 %v6151_v25  ;;  %6173 = vmatpush.msrb.mxu0 %v6118_v27  ;;  %v6136_v3 = vld [vmem:[%s15396_s3 + $0x100] sm:$0xff]  ;;  %v6101_v25 = vmax.f32 %v13711_v8, 0.0 }
 0x322   :  { %6193 = vmatpush.msrb.mxu1 %v6134_v29  ;;  %9409 = vmatmul.msk.bf16.vlgmr.msra.gmra.mxu3 %vm4797_vm0, %v10201_v6  ;;  %v6164_v36 = vld [vmem:[%s15396_s3 + $0x1e0] sm:$0xff] }
 0x323   :  { %6213 = vmatpush.msrb.mxu2 %v6150_v44  ;;  %6174 = vmatpush.msrb.mxu0 %v6117_v23  ;;  %v5875_v43 = vpop.f32.mrf.mxu2  ;;  %v5851_v54 = vpop.f32.mrf.mxu0 }
 0x324   :  { %6194 = vmatpush.msrb.mxu1 %v6133_v0  ;;  %v5876_v17 = vadd.f32 %v5875_v43, %v5863_v34  ;;  %v5864_v21 = vpop.f32.mrf.mxu1  ;;  %6232 = vmatpush.msrb.mxu3 %v6167_v48  ;;  %v6161_v34 = vld [vmem:[%s15396_s3 + $0x1c8] sm:$0xff]  ;;  %v6155_v54 = vld [vmem:[%s15396_s3 + $0x198] sm:$0xff] }
 0x325   :  { %6214 = vmatpush.msrb.mxu2 %v6149_v33  ;;  %6175 = vmatpush.msrb.mxu0 %v6116_v5 }
 0x326   :  { %6195 = vmatpush.msrb.mxu1 %v6132_v7 }
 0x327   :  { %6215 = vmatpush.msrb.mxu2 %v6148_v31  ;;  %6176 = vmatpush.msrb.mxu0 %v6115_v1 }
 0x328   :  { %6196 = vmatpush.msrb.mxu1 %v6131_v37 }
 0x329   :  { %6216 = vmatpush.msrb.mxu2 %v6147_v2  ;;  %6177 = vmatpush.msrb.mxu0 %v6114_v40  ;;  %v6166_v2 = vld [vmem:[%s15396_s3 + $0x1f0] sm:$0xff]  ;;  %v6165_v40 = vld [vmem:[%s15396_s3 + $0x1e8] sm:$0xff] }
 0x32a   :  { %6197 = vmatpush.msrb.mxu1 %v6130_v41  ;;  %6233 = vmatpush.msrb.mxu3 %v6166_v2  ;;  %v6163_v41 = vld [vmem:[%s15396_s3 + $0x1d8] sm:$0xff] }
 0x32b   :  { %6217 = vmatpush.msrb.mxu2 %v6146_v42  ;;  %6178 = vmatpush.msrb.mxu0 %v6113_v59  ;;  %v5877_v4 = vpop.f32.mrf.mxu2  ;;  %v6162_v59 = vld [vmem:[%s15396_s3 + $0x1d0] sm:$0xff] }
 0x32c   :  { %6198 = vmatpush.msrb.mxu1 %v6129_v45  ;;  %6234 = vmatpush.msrb.mxu3 %v6165_v40 }
 0x32d   :  { %6218 = vmatpush.msrb.mxu2 %v6145_v50  ;;  %6179 = vmatpush.msrb.mxu0 %v6112_v52  ;;  %v6160_v50 = vld [vmem:[%s15396_s3 + $0x1c0] sm:$0xff]  ;;  %v6159_v52 = vld [vmem:[%s15396_s3 + $0x1b8] sm:$0xff] }
 0x32e   :  { %6199 = vmatpush.msrb.mxu1 %v6128_v53  ;;  %6235 = vmatpush.msrb.mxu3 %v6164_v36 }
 0x32f   :  { %6219 = vmatpush.msrb.mxu2 %v6144_v16  ;;  %6180 = vmatpush.msrb.mxu0 %v6111_v24  ;;  %v6158_v24 = vld [vmem:[%s15396_s3 + $0x1b0] sm:$0xff] }
 0x330   :  { %6200 = vmatpush.msrb.mxu1 %v6127_v12  ;;  %6236 = vmatpush.msrb.mxu3 %v6163_v41  ;;  %v6156_v12 = vld [vmem:[%s15396_s3 + $0x1a0] sm:$0xff] }
 0x331   :  { %6220 = vmatpush.msrb.mxu2 %v6143_v51  ;;  %6181 = vmatpush.msrb.mxu0 %v6110_v15 }
 0x332   :  { %6201 = vmatpush.msrb.mxu1 %v6126_v49  ;;  %6237 = vmatpush.msrb.mxu3 %v6162_v59  ;;  %v6154_v49 = vld [vmem:[%s15396_s3 + $0x190] sm:$0xff] }
 0x333   :  { %6221 = vmatpush.msrb.mxu2 %v6142_v14  ;;  %6182 = vmatpush.msrb.mxu0 %v6109_v18  ;;  %v6153_v18 = vld [vmem:[%s15396_s3 + $0x188] sm:$0xff] }
 0x334   :  { %6202 = vmatpush.msrb.mxu1 %v6125_v55  ;;  %v5888_v35 = vpop.f32.mrf.mxu3  ;;  %6238 = vmatpush.msrb.mxu3 %v6161_v34  ;;  %v6152_v55 = vld [vmem:[%s15396_s3 + $0x180] sm:$0xff] }
 0x335   :  { %6222 = vmatpush.msrb.mxu2 %v6141_v56  ;;  %6183 = vmatpush.msrb.mxu0 %v6108_v57  ;;  %v5889_v27 = vadd.f32 %v5888_v35, %v5876_v17  ;;  %v6157_v17 = vld [vmem:[%s15396_s3 + $0x1a8] sm:$0xff] }
 0x336   :  { %6203 = vmatpush.msrb.mxu1 %v6124_v47  ;;  %6239 = vmatpush.msrb.mxu3 %v6160_v50 }
 0x337   :  { %6223 = vmatpush.msrb.mxu2 %v6140_v13  ;;  %6184 = vmatpush.msrb.mxu0 %v6107_v58 }
 0x338   :  { %6204 = vmatpush.msrb.mxu1 %v6123_v46  ;;  %6240 = vmatpush.msrb.mxu3 %v6159_v52 }
 0x339   :  { %6224 = vmatpush.msrb.mxu2 %v6139_v61  ;;  %6185 = vmatpush.msrb.mxu0 %v6106_v9 }
 0x33a   :  { %6205 = vmatpush.msrb.mxu1 %v6122_v62  ;;  %6241 = vmatpush.msrb.mxu3 %v6158_v24 }
 0x33b   :  { %6225 = vmatpush.msrb.mxu2 %v6138_v63  ;;  %6186 = vmatpush.msrb.mxu0 %v6105_v22  ;;  %v5901_v29 = vpop.f32.mrf.mxu0 }
 0x33c   :  { %6206 = vmatpush.msrb.mxu1 %v6121_v20  ;;  %v5902_v44 = vadd.f32 %v5901_v29, %v5889_v27  ;;  %v5914_v30 = vpop.f32.mrf.mxu1  ;;  %v5890_v23 = vpop.f32.mrf.mxu3  ;;  %6242 = vmatpush.msrb.mxu3 %v6157_v17 }
 0x33d   :  { %6226 = vmatpush.msrb.mxu2 %v6137_v26  ;;  %6187 = vmatpush.msrb.mxu0 %v6104_v32 }
 0x33e   :  { %6207 = vmatpush.msrb.mxu1 %v6120_v10  ;;  %6188 = vmatmul.f32.vlgmr.msrb.gmra.mxu0 %v6100_v11  ;;  %v5915_v0 = vadd.f32 %v5914_v30, %v5902_v44  ;;  %v10195_v30 = vld [vmem:[%s15397_s4] ss:$0 sm:$0xff] }
 0x33f   :  { %6227 = vmatpush.msrb.mxu2 %v6136_v3  ;;  %6208 = vmatmul.f32.vlgmr.msrb.gmra.mxu1 %v6101_v25 }
 0x340   :  { %6228 = vmatmul.f32.vlgmr.msrb.gmra.mxu2 %v6102_v28  ;;  %6243 = vmatpush.msrb.mxu3 %v6156_v12 }
 0x342   :  { %6244 = vmatpush.msrb.mxu3 %v6155_v54 }
 0x343   :  { %v5927_v33 = vpop.f32.mrf.mxu2  ;;  %v5903_v6 = vpop.f32.mrf.mxu0 }
 0x344   :  { %v5928_v5 = vadd.f32 %v5927_v33, %v5915_v0  ;;  %v5916_v19 = vpop.f32.mrf.mxu1  ;;  %6245 = vmatpush.msrb.mxu3 %v6154_v49 }
 0x346   :  { %6246 = vmatpush.msrb.mxu3 %v6153_v18 }
 0x348   :  { %6247 = vmatpush.msrb.mxu3 %v6152_v55 }
 0x34b   :  { %v5929_v7 = vpop.f32.mrf.mxu2 }
 0x354   :  { %v5940_v8 = vpop.f32.mrf.mxu3 }
 0x355   :  { %v5941_v14 = vadd.f32 %v5940_v8, %v5928_v5 }
 0x35b   :  { %v5953_v31 = vpop.f32.mrf.mxu0 }
 0x35c   :  { %v5966_v1 = vpop.f32.mrf.mxu1  ;;  %v5942_v37 = vpop.f32.mrf.mxu3  ;;  %v5954_v56 = vadd.f32 %v5953_v31, %v5941_v14 }
 0x35e   :  { %v5967_v47 = vadd.f32 %v5966_v1, %v5954_v56 }
 0x363   :  { %v5979_v39 = vpop.f32.mrf.mxu2  ;;  %v5955_v38 = vpop.f32.mrf.mxu0 }
 0x364   :  { %v5968_v60 = vpop.f32.mrf.mxu1  ;;  %v5980_v13 = vadd.f32 %v5979_v39, %v5967_v47 }
 0x36b   :  { %v5981_v42 = vpop.f32.mrf.mxu2 }
 0x374   :  { %v5992_v45 = vpop.f32.mrf.mxu3 }
 0x375   :  { %v5993_v4 = vadd.f32 %v5992_v45, %v5980_v13 }
 0x37b   :  { %v6005_v53 = vpop.f32.mrf.mxu0 }
 0x37c   :  { %v6018_v16 = vpop.f32.mrf.mxu1  ;;  %v5994_v43 = vpop.f32.mrf.mxu3  ;;  %v6006_v58 = vadd.f32 %v6005_v53, %v5993_v4 }
 0x37e   :  { %v6019_v61 = vadd.f32 %v6018_v16, %v6006_v58 }
 0x383   :  { %v6031_v51 = vpop.f32.mrf.mxu2  ;;  %v6007_v15 = vpop.f32.mrf.mxu0 }
 0x384   :  { %v6020_v21 = vpop.f32.mrf.mxu1  ;;  %v6032_v9 = vadd.f32 %v6031_v51, %v6019_v61 }
 0x38b   :  { %v6033_v57 = vpop.f32.mrf.mxu2 }
 0x394   :  { %v6044_v46 = vpop.f32.mrf.mxu3 }
 0x395   :  { %v6045_v62 = vadd.f32 %v6044_v46, %v6032_v9 }
 0x39b   :  { %v6057_v63 = vpop.f32.mrf.mxu0 }
 0x39c   :  { %v6070_v22 = vpop.f32.mrf.mxu1  ;;  %v6046_v20 = vpop.f32.mrf.mxu3  ;;  %v6058_v26 = vadd.f32 %v6057_v63, %v6045_v62 }
 0x39e   :  { %v6071_v32 = vadd.f32 %v6070_v22, %v6058_v26 }
 0x3a3   :  { %v6083_v10 = vpop.f32.mrf.mxu2  ;;  %v6059_v35 = vpop.f32.mrf.mxu0 }
 0x3a4   :  { %v6084_v3 = vadd.f32 %v6083_v10, %v6071_v32  ;;  %v6072_v11 = vpop.f32.mrf.mxu1 }
 0x3a5   :  { %v6096_v25 = vpop.f32.mrf.mxu3 }
 0x3a6   :  { %v6097_v27 = vadd.f32 %v6096_v25, %v6084_v3 }
 0x3a8   :  { %v6103_v28 = vmax.f32 %v6097_v27, 0.0 }
 0x3aa   :  { %6248 = vmatmul.f32.vlgmr.msrb.gmra.mxu3 %v6103_v28 }
 0x3ab   :  { %v6085_v29 = vpop.f32.mrf.mxu2 }
 0x3ad   :  { %v6098_v44 = vpop.f32.mrf.mxu3 }
 0x3bb   :  { %v6189_v23 = vpop.f32.mrf.mxu0 }
 0x3bc   :  { %v6190_v0 = vadd.f32 %v10195_v30, %v6189_v23  ;;  %v6209_v33 = vpop.f32.mrf.mxu1 }
 0x3be   :  { %v6210_v6 = vadd.f32 %v6209_v33, %v6190_v0 }
 0x3c3   :  { %v6229_v5 = vpop.f32.mrf.mxu2 }
 0x3c4   :  { %v6230_v19 = vadd.f32 %v6229_v5, %v6210_v6 }
 0x42d   :  { %v6249_v7 = vpop.f32.mrf.mxu3 }
 0x42e   :  { %v6250_v8 = vadd.f32 %v6249_v7, %v6230_v19 }
 0x430   :  { %6253 = vst.msk [vmem:[#allocation2] sm:$0x3] %vm6252_vm1, %v6250_v8 }
 0x431   :  { %6264 = dma.vmem_to_hbm [thread:$0]  %s6260_s14, 32, %s6262_s16, [#allocation3]  }
 0x432   :  { %10226 = dma.done.wait [#allocation3], 32  }
 0x433   :  { %10227 = vsyncadd [#allocation3], 4294967264 }
 0x434   :  { %6269 = vsyncpa [#allocation3], 1 }

</bundles_post_ra>
